<compile_context>
chip_gen: v5e
topology: v5e:2x2
jax: 0.10.0
libtpu: 0.0.40
codegen_flags: <defaults>
</compile_context>

<pallas_src>
import functools

import jax
import jax.numpy as jnp
from jax.experimental import pallas as pl
from jax.experimental.pallas import tpu as pltpu


# ---------------------------------------------------------------------------
# Megacore detection: the M-split only pays on 2-TensorCore chips (v7x).
# ---------------------------------------------------------------------------
@functools.lru_cache(maxsize=None)
def _is_megacore():
    try:
        return "v7" in jax.devices()[0].device_kind.lower()
    except Exception:
        return False


# ---------------------------------------------------------------------------
# Kernel 1: matmul + fused ReLU (conv1 / conv2; pool + BN follow as XLA glue).
# A (bf16) and W (bf16) come in ready-to-MXU; accumulate f32, store f32.
# ---------------------------------------------------------------------------
def _matmul_relu_kernel(a_ref, b_ref, o_ref):
    acc = jnp.dot(a_ref[...], b_ref[...], preferred_element_type=jnp.float32)
    o_ref[...] = jnp.maximum(acc, 0.0)


def matmul_relu(a, b):
    """a: (M, K) bf16, b: (K, N) bf16 (N lane-aligned) -> (M, N) f32."""
    M, K = a.shape
    _, N = b.shape
    # Two "parallel" grid steps only on megacore chips so the second
    # TensorCore gets work; single block on v5e/v6e (per-step overhead > gain).
    splits = 2 if (_is_megacore() and M >= 512 and (M // 2) % 16 == 0) else 1
    bm = M // splits
    return pl.pallas_call(
        _matmul_relu_kernel,
        out_shape=jax.ShapeDtypeStruct((M, N), jnp.float32),
        grid=(splits,),
        in_specs=[
            pl.BlockSpec((bm, K), lambda i: (i, 0)),   # true K, full trailing dim
            pl.BlockSpec((K, N), lambda i: (0, 0)),    # W resident across steps
        ],
        out_specs=pl.BlockSpec((bm, N), lambda i: (i, 0)),
        compiler_params=pltpu.CompilerParams(
            dimension_semantics=("parallel",) if splits > 1 else ("arbitrary",)),
    )(a, b)


# ---------------------------------------------------------------------------
# Kernel 2: matmul + ReLU + training-mode BatchNorm fused in the epilogue.
# Used for conv3/conv4/conv5: the full output block is resident (single grid
# step), so per-channel batch mean/var over the M axis (= N*H*W) is exact.
# Stores bf16 (identical to f32 store + the bf16 cast the next im2col does).
# ---------------------------------------------------------------------------
def _matmul_relu_bn_kernel(a_ref, b_ref, o_ref, *, eps):
    acc = jnp.dot(a_ref[...], b_ref[...], preferred_element_type=jnp.float32)
    acc = jnp.maximum(acc, 0.0)                                    # ReLU
    mean = jnp.mean(acc, axis=0, keepdims=True)                    # batch stats
    var = jnp.mean((acc - mean) ** 2, axis=0, keepdims=True)
    o_ref[...] = ((acc - mean) * jax.lax.rsqrt(var + eps)).astype(o_ref.dtype)


def matmul_relu_bn(a, b, eps=1e-5):
    M, K = a.shape
    _, N = b.shape
    return pl.pallas_call(
        functools.partial(_matmul_relu_bn_kernel, eps=eps),
        out_shape=jax.ShapeDtypeStruct((M, N), jnp.bfloat16),
        grid=(1,),
        in_specs=[pl.BlockSpec((M, K), lambda i: (0, 0)),
                  pl.BlockSpec((K, N), lambda i: (0, 0))],
        out_specs=pl.BlockSpec((M, N), lambda i: (0, 0)),
        compiler_params=pltpu.CompilerParams(
            dimension_semantics=("arbitrary",)),
    )(a, b)


# ---------------------------------------------------------------------------
# Kernel 3: fused head  fc1 + bias + ReLU + bn7(batch stats) + fc2 + log_softmax.
# x / fc weights are bf16; BN stats, softmax and accumulation stay f32.
# fc2 weight/bias are zero-padded to 128 output lanes; softmax masked to the
# first `n_valid` columns so the result is exact.
# ---------------------------------------------------------------------------
def _head_kernel(x_ref, w1_ref, b1_ref, w2_ref, b2_ref, o_ref, *, n_valid, eps):
    h = jnp.dot(x_ref[...], w1_ref[...], preferred_element_type=jnp.float32)
    h = jnp.maximum(h + b1_ref[...], 0.0)                        # fc1 + ReLU
    mean = jnp.mean(h, axis=0, keepdims=True)                    # bn7 (batch stats)
    var = jnp.mean((h - mean) ** 2, axis=0, keepdims=True)
    h = (h - mean) * jax.lax.rsqrt(var + eps)
    logits = jnp.dot(h.astype(jnp.bfloat16), w2_ref[...],
                     preferred_element_type=jnp.float32) + b2_ref[...]
    col = jax.lax.broadcasted_iota(jnp.int32, logits.shape, 1)
    masked = jnp.where(col < n_valid, logits, -1e30)             # ignore pad lanes
    m = jnp.max(masked, axis=1, keepdims=True)
    lse = jnp.log(jnp.sum(jnp.exp(masked - m), axis=1, keepdims=True)) + m
    o_ref[...] = logits - lse                                    # log_softmax


def head_forward(x, w1, b1, w2p, b2p, n_classes=10):
    B, _ = x.shape
    Np = w2p.shape[1]
    out = pl.pallas_call(
        functools.partial(_head_kernel, n_valid=n_classes, eps=1e-5),
        out_shape=jax.ShapeDtypeStruct((B, Np), jnp.float32),
        grid=(1,),
        in_specs=[
            pl.BlockSpec(x.shape, lambda i: (0, 0)),
            pl.BlockSpec(w1.shape, lambda i: (0, 0)),
            pl.BlockSpec(b1.shape, lambda i: (0, 0)),
            pl.BlockSpec(w2p.shape, lambda i: (0, 0)),
            pl.BlockSpec(b2p.shape, lambda i: (0, 0)),
        ],
        out_specs=pl.BlockSpec((B, Np), lambda i: (0, 0)),
        compiler_params=pltpu.CompilerParams(
            dimension_semantics=("arbitrary",)),
    )(x, w1, b1, w2p, b2p)
    return out[:, :n_classes]


# ---------------------------------------------------------------------------
# Thin XLA glue: im2col (host-side bf16 cast), training-mode BatchNorm for
# bn1/bn2/bn3, 2x2 maxpool.  These need global stats / spatial restructuring
# that a single-pass tile kernel cannot express cleanly.
# ---------------------------------------------------------------------------
def _im2col(x, kh, kw, padding=0):
    """x: (N,H,W,C) -> A: (N*OH*OW, kh*kw*C) bf16, taps major / C fastest."""
    if padding:
        x = jnp.pad(x, ((0, 0), (padding, padding), (padding, padding), (0, 0)))
    n, h, wd, c = x.shape
    oh, ow = h - kh + 1, wd - kw + 1
    cols = [x[:, i:i + oh, j:j + ow, :] for i in range(kh) for j in range(kw)]
    a = jnp.concatenate(cols, axis=-1).astype(jnp.bfloat16)
    return a.reshape(n * oh * ow, kh * kw * c), (n, oh, ow)


def conv2d_relu(x, w_mat, kh, kw, padding=0):
    a, (n, oh, ow) = _im2col(x, kh, kw, padding)
    return matmul_relu(a, w_mat).reshape(n, oh, ow, w_mat.shape[1])


def conv2d_relu_bn(x, w_mat, kh, kw, padding=0):
    a, (n, oh, ow) = _im2col(x, kh, kw, padding)
    return matmul_relu_bn(a, w_mat).reshape(n, oh, ow, w_mat.shape[1])


def batchnorm(x, axes, eps=1e-5):
    # Training-mode batch statistics, gamma=1, beta=0 (PyTorch defaults at init).
    mean = jnp.mean(x, axis=axes, keepdims=True)
    var = jnp.mean((x - mean) ** 2, axis=axes, keepdims=True)
    return (x - mean) * jax.lax.rsqrt(var + eps)


def maxpool2x2(x):
    n, h, w, c = x.shape
    return x.reshape(n, h // 2, 2, w // 2, 2, c).max(axis=(2, 4))


# ---------------------------------------------------------------------------
# Parameter init: Kaiming-normal (std = sqrt(2/fan_in)) on the NATURAL shapes,
# then all padding / reshaping / casting done once here (static).
# Conv weights use the TRUE cin (no input-channel padding anymore); only the
# output channel dim is padded to 128 lanes.
# ---------------------------------------------------------------------------
def _kaiming_conv(key, kh, kw, cin, cout):
    std = (2.0 / (kh * kw * cin)) ** 0.5
    return jax.random.normal(key, (kh, kw, cin, cout), jnp.float32) * std


def _pack_conv_weight(w, cout_pad=128):
    kh, kw, cin, cout = w.shape
    w = jnp.pad(w, ((0, 0), (0, 0), (0, 0), (0, cout_pad - cout)))
    # Row ordering (kh, kw, cin) with cin fastest — matches the im2col concat.
    return w.reshape(kh * kw * cin, cout_pad).astype(jnp.bfloat16)


def init_params(key):
    ks = jax.random.split(key, 10)

    conv1 = _pack_conv_weight(_kaiming_conv(ks[0], 5, 5, 1, 32))      # K=25
    conv2 = _pack_conv_weight(_kaiming_conv(ks[1], 3, 3, 32, 64))     # K=288
    conv3 = _pack_conv_weight(_kaiming_conv(ks[2], 3, 3, 64, 128))    # K=576
    conv4 = _pack_conv_weight(_kaiming_conv(ks[3], 3, 3, 128, 128))   # K=1152
    conv5 = _pack_conv_weight(_kaiming_conv(ks[4], 3, 3, 128, 128))   # K=1152

    # fc1 in torch consumes a (C, H, W)-ordered flatten; we flatten NHWC, so
    # permute the weight rows once at init (free) instead of transposing the
    # activation every forward.
    fc1_torch = jax.random.normal(ks[5], (128 * 4 * 4, 256),
                                  jnp.float32) * (2.0 / 2048.0) ** 0.5
    h_i = jnp.arange(4)[:, None, None]
    w_i = jnp.arange(4)[None, :, None]
    c_i = jnp.arange(128)[None, None, :]
    f_of_g = (c_i * 16 + h_i * 4 + w_i).reshape(-1)   # NHWC index -> torch index
    fc1_w = fc1_torch[f_of_g].astype(jnp.bfloat16)    # (2048, 256) bf16

    fc1_b = jax.random.uniform(ks[6], (1, 256), jnp.float32,
                               -1.0 / (2048.0 ** 0.5), 1.0 / (2048.0 ** 0.5))

    fc2_nat = jax.random.normal(ks[7], (256, 10), jnp.float32) * (2.0 / 256.0) ** 0.5
    fc2_w = jnp.pad(fc2_nat, ((0, 0), (0, 128 - 10))).astype(jnp.bfloat16)
    fc2_b_nat = jax.random.uniform(ks[8], (10,), jnp.float32,
                                   -1.0 / (256.0 ** 0.5), 1.0 / (256.0 ** 0.5))
    fc2_b = jnp.pad(fc2_b_nat, (0, 128 - 10)).reshape(1, 128)

    return {"conv1": conv1, "conv2": conv2, "conv3": conv3,
            "conv4": conv4, "conv5": conv5,
            "fc1_w": fc1_w, "fc1_b": fc1_b,
            "fc2_w": fc2_w, "fc2_b": fc2_b}


# ---------------------------------------------------------------------------
# Forward pass (mirrors Baseline.forward).
# ReLU is fused into every conv kernel (valid for conv1/conv2 because ReLU
# commutes with 2x2 max-pool); bn4/bn5/bn6 are fused into conv3/4/5; the
# head fuses fc1 + ReLU + bn7 + fc2 + log_softmax.
# ---------------------------------------------------------------------------
@jax.jit
def baseline_forward(params, x_nchw):
    x = jnp.transpose(x_nchw, (0, 2, 3, 1))                 # NCHW -> NHWC
    x = batchnorm(x, (0, 1, 2))                             # bn1

    y = conv2d_relu(x, params["conv1"], 5, 5)               # conv1 + relu (f32 out)
    x = batchnorm(maxpool2x2(y), (0, 1, 2))                 # pool + bn2

    y = conv2d_relu(x[..., :32], params["conv2"], 3, 3)     # conv2 (true K=288)
    x = batchnorm(maxpool2x2(y), (0, 1, 2))                 # pool + bn3

    x = conv2d_relu_bn(x[..., :64], params["conv3"], 3, 3)              # conv3+bn4
    x = conv2d_relu_bn(x, params["conv4"], 3, 3, padding=1)             # conv4+bn5
    x = conv2d_relu_bn(x, params["conv5"], 3, 3)                        # conv5+bn6

    x = x.reshape(x.shape[0], 128 * 4 * 4).astype(jnp.bfloat16)  # NHWC flatten
    return head_forward(x, params["fc1_w"], params["fc1_b"],
                        params["fc2_w"], params["fc2_b"])    # fc1/bn7/fc2/log_softmax


if __name__ == "__main__":
    key = jax.random.PRNGKey(0)
    pkey, xkey = jax.random.split(key)
    params = init_params(pkey)
    # Spatial size must be 40x40 so the final feature map is 128 x 4 x 4
    # (required by x.view(x.size(0), 128 * 4 ** 2) in the reference).
    x = jax.random.normal(xkey, (2, 1, 40, 40), jnp.float32)
    out = baseline_forward(params, x)
    jax.block_until_ready(out)
    assert out.shape == (2, 10)
    print("KERNEL_OK")
</pallas_src>

<mosaic_0001>
module attributes {stable_mosaic.version = 11 : i64} {
  func.func @_matmul_relu_kernel(%arg0: i32, %arg1: memref<2592x25xbf16, #tpu.memory_space<vmem>>, %arg2: memref<25x128xbf16, #tpu.memory_space<vmem>>, %arg3: memref<2592x128xf32, #tpu.memory_space<vmem>>) attributes {dimension_semantics = [#tpu.dimension_semantics<arbitrary>], iteration_bounds = array<i64: 1>, scalar_prefetch = 0 : i64, scratch_operands = 0 : i64, tpu.core_type = #tpu.core_type<tc>, window_params = [{transform_indices = @transform_0, window_bounds = array<i64: 2592, 25>}, {pipeline_mode = #tpu.pipeline_mode<synchronous>, transform_indices = @transform_1, window_bounds = array<i64: 25, 128>}, {transform_indices = @transform_2, window_bounds = array<i64: 2592, 128>}]} {
    %c0 = arith.constant 0 : index
    %c0_0 = arith.constant 0 : index
    %0 = vector.load %arg1[%c0, %c0_0] : memref<2592x25xbf16, #tpu.memory_space<vmem>>, vector<2592x25xbf16>
    %c0_1 = arith.constant 0 : index
    %c0_2 = arith.constant 0 : index
    %1 = vector.load %arg2[%c0_1, %c0_2] : memref<25x128xbf16, #tpu.memory_space<vmem>>, vector<25x128xbf16>
    %cst = arith.constant dense<0.000000e+00> : vector<2592x128xf32>
    %2 = tpu.matmul %0, %1, %cst {dimension_numbers = #tpu.dot_dimension_numbers<[1], [0], [0], [1], [0, 0, 1, 1], [], []>} : vector<2592x25xbf16>, vector<25x128xbf16>, vector<2592x128xf32> -> vector<2592x128xf32>
    %cst_3 = arith.constant 0.000000e+00 : f32
    %3 = vector.broadcast %cst_3 : f32 to vector<2592x128xf32>
    %4 = arith.maximumf %2, %3 : vector<2592x128xf32>
    %c0_4 = arith.constant 0 : index
    %c0_5 = arith.constant 0 : index
    %5 = vector.load %arg3[%c0_4, %c0_5] : memref<2592x128xf32, #tpu.memory_space<vmem>>, vector<2592x128xf32>
    tpu.vector_store %arg3[%c0_4, %c0_5], %4 {strides = array<i32>} : memref<2592x128xf32, #tpu.memory_space<vmem>>, vector<2592x128xf32>,
    return
  }
  func.func @transform_0(%arg0: i32) -> (i32, i32) {
    %c0_i32 = arith.constant 0 : i32
    %c0_i32_0 = arith.constant 0 : i32
    return %arg0, %c0_i32 : i32, i32
  }
  func.func @transform_1(%arg0: i32) -> (i32, i32) {
    %c0_i32 = arith.constant 0 : i32
    %c0_i32_0 = arith.constant 0 : i32
    %c0_i32_1 = arith.constant 0 : i32
    return %c0_i32, %c0_i32_0 : i32, i32
  }
  func.func @transform_2(%arg0: i32) -> (i32, i32) {
    %c0_i32 = arith.constant 0 : i32
    %c0_i32_0 = arith.constant 0 : i32
    return %arg0, %c0_i32 : i32, i32
  }
}

module attributes {stable_mosaic.version = 11 : i64} {
  func.func @_matmul_relu_kernel(%arg0: i32, %arg1: memref<512x288xbf16, #tpu.memory_space<vmem>>, %arg2: memref<288x128xbf16, #tpu.memory_space<vmem>>, %arg3: memref<512x128xf32, #tpu.memory_space<vmem>>) attributes {dimension_semantics = [#tpu.dimension_semantics<arbitrary>], iteration_bounds = array<i64: 1>, scalar_prefetch = 0 : i64, scratch_operands = 0 : i64, tpu.core_type = #tpu.core_type<tc>, window_params = [{transform_indices = @transform_0, window_bounds = array<i64: 512, 288>}, {pipeline_mode = #tpu.pipeline_mode<synchronous>, transform_indices = @transform_1, window_bounds = array<i64: 288, 128>}, {transform_indices = @transform_2, window_bounds = array<i64: 512, 128>}]} {
    %c0 = arith.constant 0 : index
    %c0_0 = arith.constant 0 : index
    %0 = vector.load %arg1[%c0, %c0_0] : memref<512x288xbf16, #tpu.memory_space<vmem>>, vector<512x288xbf16>
    %c0_1 = arith.constant 0 : index
    %c0_2 = arith.constant 0 : index
    %1 = vector.load %arg2[%c0_1, %c0_2] : memref<288x128xbf16, #tpu.memory_space<vmem>>, vector<288x128xbf16>
    %cst = arith.constant dense<0.000000e+00> : vector<512x128xf32>
    %2 = tpu.matmul %0, %1, %cst {dimension_numbers = #tpu.dot_dimension_numbers<[1], [0], [0], [1], [0, 0, 1, 1], [], []>} : vector<512x288xbf16>, vector<288x128xbf16>, vector<512x128xf32> -> vector<512x128xf32>
    %cst_3 = arith.constant 0.000000e+00 : f32
    %3 = vector.broadcast %cst_3 : f32 to vector<512x128xf32>
    %4 = arith.maximumf %2, %3 : vector<512x128xf32>
    %c0_4 = arith.constant 0 : index
    %c0_5 = arith.constant 0 : index
    %5 = vector.load %arg3[%c0_4, %c0_5] : memref<512x128xf32, #tpu.memory_space<vmem>>, vector<512x128xf32>
    tpu.vector_store %arg3[%c0_4, %c0_5], %4 {strides = array<i32>} : memref<512x128xf32, #tpu.memory_space<vmem>>, vector<512x128xf32>,
    return
  }
  func.func @transform_0(%arg0: i32) -> (i32, i32) {
    %c0_i32 = arith.constant 0 : i32
    %c0_i32_0 = arith.constant 0 : i32
    return %arg0, %c0_i32 : i32, i32
  }
  func.func @transform_1(%arg0: i32) -> (i32, i32) {
    %c0_i32 = arith.constant 0 : i32
    %c0_i32_0 = arith.constant 0 : i32
    %c0_i32_1 = arith.constant 0 : i32
    return %c0_i32, %c0_i32_0 : i32, i32
  }
  func.func @transform_2(%arg0: i32) -> (i32, i32) {
    %c0_i32 = arith.constant 0 : i32
    %c0_i32_0 = arith.constant 0 : i32
    return %arg0, %c0_i32 : i32, i32
  }
}

module attributes {stable_mosaic.version = 11 : i64} {
  func.func @_matmul_relu_bn_kernel(%arg0: i32, %arg1: memref<72x576xbf16, #tpu.memory_space<vmem>>, %arg2: memref<576x128xbf16, #tpu.memory_space<vmem>>, %arg3: memref<72x128xbf16, #tpu.memory_space<vmem>>) attributes {dimension_semantics = [#tpu.dimension_semantics<arbitrary>], iteration_bounds = array<i64: 1>, scalar_prefetch = 0 : i64, scratch_operands = 0 : i64, tpu.core_type = #tpu.core_type<tc>, window_params = [{pipeline_mode = #tpu.pipeline_mode<synchronous>, transform_indices = @transform_0, window_bounds = array<i64: 72, 576>}, {pipeline_mode = #tpu.pipeline_mode<synchronous>, transform_indices = @transform_1, window_bounds = array<i64: 576, 128>}, {pipeline_mode = #tpu.pipeline_mode<synchronous>, transform_indices = @transform_2, window_bounds = array<i64: 72, 128>}]} {
    %c0 = arith.constant 0 : index
    %c0_0 = arith.constant 0 : index
    %0 = vector.load %arg1[%c0, %c0_0] : memref<72x576xbf16, #tpu.memory_space<vmem>>, vector<72x576xbf16>
    %c0_1 = arith.constant 0 : index
    %c0_2 = arith.constant 0 : index
    %1 = vector.load %arg2[%c0_1, %c0_2] : memref<576x128xbf16, #tpu.memory_space<vmem>>, vector<576x128xbf16>
    %cst = arith.constant dense<0.000000e+00> : vector<72x128xf32>
    %2 = tpu.matmul %0, %1, %cst {dimension_numbers = #tpu.dot_dimension_numbers<[1], [0], [0], [1], [0, 0, 1, 1], [], []>} : vector<72x576xbf16>, vector<576x128xbf16>, vector<72x128xf32> -> vector<72x128xf32>
    %cst_3 = arith.constant 0.000000e+00 : f32
    %3 = vector.broadcast %cst_3 : f32 to vector<72x128xf32>
    %4 = arith.maximumf %2, %3 : vector<72x128xf32>
    %cst_4 = arith.constant dense<0.000000e+00> : vector<128xf32>
    %5 = vector.multi_reduction <add>, %4, %cst_4 [0] : vector<72x128xf32> to vector<128xf32>
    %6 = vector.shape_cast %5 : vector<128xf32> to vector<1x128xf32>
    %cst_5 = arith.constant 7.200000e+01 : f32
    %7 = vector.broadcast %cst_5 : f32 to vector<1x128xf32>
    %8 = arith.divf %6, %7 : vector<1x128xf32>
    %9 = vector.broadcast %8 : vector<1x128xf32> to vector<72x128xf32>
    %10 = arith.subf %4, %9 : vector<72x128xf32>
    %11 = arith.mulf %10, %10 : vector<72x128xf32>
    %cst_6 = arith.constant dense<0.000000e+00> : vector<128xf32>
    %12 = vector.multi_reduction <add>, %11, %cst_6 [0] : vector<72x128xf32> to vector<128xf32>
    %13 = vector.shape_cast %12 : vector<128xf32> to vector<1x128xf32>
    %cst_7 = arith.constant 7.200000e+01 : f32
    %14 = vector.broadcast %cst_7 : f32 to vector<1x128xf32>
    %15 = arith.divf %13, %14 : vector<1x128xf32>
    %16 = vector.broadcast %8 : vector<1x128xf32> to vector<72x128xf32>
    %17 = arith.subf %4, %16 : vector<72x128xf32>
    %cst_8 = arith.constant 9.99999974E-6 : f32
    %18 = vector.broadcast %cst_8 : f32 to vector<1x128xf32>
    %19 = arith.addf %15, %18 : vector<1x128xf32>
    %20 = math.rsqrt %19 : vector<1x128xf32>
    %21 = vector.broadcast %20 : vector<1x128xf32> to vector<72x128xf32>
    %22 = arith.mulf %17, %21 : vector<72x128xf32>
    %23 = arith.truncf %22 : vector<72x128xf32> to vector<72x128xbf16>
    %c0_9 = arith.constant 0 : index
    %c0_10 = arith.constant 0 : index
    %24 = vector.load %arg3[%c0_9, %c0_10] : memref<72x128xbf16, #tpu.memory_space<vmem>>, vector<72x128xbf16>
    tpu.vector_store %arg3[%c0_9, %c0_10], %23 {strides = array<i32>} : memref<72x128xbf16, #tpu.memory_space<vmem>>, vector<72x128xbf16>,
    return
  }
  func.func @transform_0(%arg0: i32) -> (i32, i32) {
    %c0_i32 = arith.constant 0 : i32
    %c0_i32_0 = arith.constant 0 : i32
    %c0_i32_1 = arith.constant 0 : i32
    return %c0_i32, %c0_i32_0 : i32, i32
  }
  func.func @transform_1(%arg0: i32) -> (i32, i32) {
    %c0_i32 = arith.constant 0 : i32
    %c0_i32_0 = arith.constant 0 : i32
    %c0_i32_1 = arith.constant 0 : i32
    return %c0_i32, %c0_i32_0 : i32, i32
  }
  func.func @transform_2(%arg0: i32) -> (i32, i32) {
    %c0_i32 = arith.constant 0 : i32
    %c0_i32_0 = arith.constant 0 : i32
    %c0_i32_1 = arith.constant 0 : i32
    return %c0_i32, %c0_i32_0 : i32, i32
  }
}

module attributes {stable_mosaic.version = 11 : i64} {
  func.func @_matmul_relu_bn_kernel(%arg0: i32, %arg1: memref<72x1152xbf16, #tpu.memory_space<vmem>>, %arg2: memref<1152x128xbf16, #tpu.memory_space<vmem>>, %arg3: memref<72x128xbf16, #tpu.memory_space<vmem>>) attributes {dimension_semantics = [#tpu.dimension_semantics<arbitrary>], iteration_bounds = array<i64: 1>, scalar_prefetch = 0 : i64, scratch_operands = 0 : i64, tpu.core_type = #tpu.core_type<tc>, window_params = [{pipeline_mode = #tpu.pipeline_mode<synchronous>, transform_indices = @transform_0, window_bounds = array<i64: 72, 1152>}, {pipeline_mode = #tpu.pipeline_mode<synchronous>, transform_indices = @transform_1, window_bounds = array<i64: 1152, 128>}, {pipeline_mode = #tpu.pipeline_mode<synchronous>, transform_indices = @transform_2, window_bounds = array<i64: 72, 128>}]} {
    %c0 = arith.constant 0 : index
    %c0_0 = arith.constant 0 : index
    %0 = vector.load %arg1[%c0, %c0_0] : memref<72x1152xbf16, #tpu.memory_space<vmem>>, vector<72x1152xbf16>
    %c0_1 = arith.constant 0 : index
    %c0_2 = arith.constant 0 : index
    %1 = vector.load %arg2[%c0_1, %c0_2] : memref<1152x128xbf16, #tpu.memory_space<vmem>>, vector<1152x128xbf16>
    %cst = arith.constant dense<0.000000e+00> : vector<72x128xf32>
    %2 = tpu.matmul %0, %1, %cst {dimension_numbers = #tpu.dot_dimension_numbers<[1], [0], [0], [1], [0, 0, 1, 1], [], []>} : vector<72x1152xbf16>, vector<1152x128xbf16>, vector<72x128xf32> -> vector<72x128xf32>
    %cst_3 = arith.constant 0.000000e+00 : f32
    %3 = vector.broadcast %cst_3 : f32 to vector<72x128xf32>
    %4 = arith.maximumf %2, %3 : vector<72x128xf32>
    %cst_4 = arith.constant dense<0.000000e+00> : vector<128xf32>
    %5 = vector.multi_reduction <add>, %4, %cst_4 [0] : vector<72x128xf32> to vector<128xf32>
    %6 = vector.shape_cast %5 : vector<128xf32> to vector<1x128xf32>
    %cst_5 = arith.constant 7.200000e+01 : f32
    %7 = vector.broadcast %cst_5 : f32 to vector<1x128xf32>
    %8 = arith.divf %6, %7 : vector<1x128xf32>
    %9 = vector.broadcast %8 : vector<1x128xf32> to vector<72x128xf32>
    %10 = arith.subf %4, %9 : vector<72x128xf32>
    %11 = arith.mulf %10, %10 : vector<72x128xf32>
    %cst_6 = arith.constant dense<0.000000e+00> : vector<128xf32>
    %12 = vector.multi_reduction <add>, %11, %cst_6 [0] : vector<72x128xf32> to vector<128xf32>
    %13 = vector.shape_cast %12 : vector<128xf32> to vector<1x128xf32>
    %cst_7 = arith.constant 7.200000e+01 : f32
    %14 = vector.broadcast %cst_7 : f32 to vector<1x128xf32>
    %15 = arith.divf %13, %14 : vector<1x128xf32>
    %16 = vector.broadcast %8 : vector<1x128xf32> to vector<72x128xf32>
    %17 = arith.subf %4, %16 : vector<72x128xf32>
    %cst_8 = arith.constant 9.99999974E-6 : f32
    %18 = vector.broadcast %cst_8 : f32 to vector<1x128xf32>
    %19 = arith.addf %15, %18 : vector<1x128xf32>
    %20 = math.rsqrt %19 : vector<1x128xf32>
    %21 = vector.broadcast %20 : vector<1x128xf32> to vector<72x128xf32>
    %22 = arith.mulf %17, %21 : vector<72x128xf32>
    %23 = arith.truncf %22 : vector<72x128xf32> to vector<72x128xbf16>
    %c0_9 = arith.constant 0 : index
    %c0_10 = arith.constant 0 : index
    %24 = vector.load %arg3[%c0_9, %c0_10] : memref<72x128xbf16, #tpu.memory_space<vmem>>, vector<72x128xbf16>
    tpu.vector_store %arg3[%c0_9, %c0_10], %23 {strides = array<i32>} : memref<72x128xbf16, #tpu.memory_space<vmem>>, vector<72x128xbf16>,
    return
  }
  func.func @transform_0(%arg0: i32) -> (i32, i32) {
    %c0_i32 = arith.constant 0 : i32
    %c0_i32_0 = arith.constant 0 : i32
    %c0_i32_1 = arith.constant 0 : i32
    return %c0_i32, %c0_i32_0 : i32, i32
  }
  func.func @transform_1(%arg0: i32) -> (i32, i32) {
    %c0_i32 = arith.constant 0 : i32
    %c0_i32_0 = arith.constant 0 : i32
    %c0_i32_1 = arith.constant 0 : i32
    return %c0_i32, %c0_i32_0 : i32, i32
  }
  func.func @transform_2(%arg0: i32) -> (i32, i32) {
    %c0_i32 = arith.constant 0 : i32
    %c0_i32_0 = arith.constant 0 : i32
    %c0_i32_1 = arith.constant 0 : i32
    return %c0_i32, %c0_i32_0 : i32, i32
  }
}

module attributes {stable_mosaic.version = 11 : i64} {
  func.func @_matmul_relu_bn_kernel(%arg0: i32, %arg1: memref<32x1152xbf16, #tpu.memory_space<vmem>>, %arg2: memref<1152x128xbf16, #tpu.memory_space<vmem>>, %arg3: memref<32x128xbf16, #tpu.memory_space<vmem>>) attributes {dimension_semantics = [#tpu.dimension_semantics<arbitrary>], iteration_bounds = array<i64: 1>, scalar_prefetch = 0 : i64, scratch_operands = 0 : i64, tpu.core_type = #tpu.core_type<tc>, window_params = [{pipeline_mode = #tpu.pipeline_mode<synchronous>, transform_indices = @transform_0, window_bounds = array<i64: 32, 1152>}, {pipeline_mode = #tpu.pipeline_mode<synchronous>, transform_indices = @transform_1, window_bounds = array<i64: 1152, 128>}, {pipeline_mode = #tpu.pipeline_mode<synchronous>, transform_indices = @transform_2, window_bounds = array<i64: 32, 128>}]} {
    %c0 = arith.constant 0 : index
    %c0_0 = arith.constant 0 : index
    %0 = vector.load %arg1[%c0, %c0_0] : memref<32x1152xbf16, #tpu.memory_space<vmem>>, vector<32x1152xbf16>
    %c0_1 = arith.constant 0 : index
    %c0_2 = arith.constant 0 : index
    %1 = vector.load %arg2[%c0_1, %c0_2] : memref<1152x128xbf16, #tpu.memory_space<vmem>>, vector<1152x128xbf16>
    %cst = arith.constant dense<0.000000e+00> : vector<32x128xf32>
    %2 = tpu.matmul %0, %1, %cst {dimension_numbers = #tpu.dot_dimension_numbers<[1], [0], [0], [1], [0, 0, 1, 1], [], []>} : vector<32x1152xbf16>, vector<1152x128xbf16>, vector<32x128xf32> -> vector<32x128xf32>
    %cst_3 = arith.constant 0.000000e+00 : f32
    %3 = vector.broadcast %cst_3 : f32 to vector<32x128xf32>
    %4 = arith.maximumf %2, %3 : vector<32x128xf32>
    %cst_4 = arith.constant dense<0.000000e+00> : vector<128xf32>
    %5 = vector.multi_reduction <add>, %4, %cst_4 [0] : vector<32x128xf32> to vector<128xf32>
    %6 = vector.shape_cast %5 : vector<128xf32> to vector<1x128xf32>
    %cst_5 = arith.constant 3.200000e+01 : f32
    %7 = vector.broadcast %cst_5 : f32 to vector<1x128xf32>
    %8 = arith.divf %6, %7 : vector<1x128xf32>
    %9 = vector.broadcast %8 : vector<1x128xf32> to vector<32x128xf32>
    %10 = arith.subf %4, %9 : vector<32x128xf32>
    %11 = arith.mulf %10, %10 : vector<32x128xf32>
    %cst_6 = arith.constant dense<0.000000e+00> : vector<128xf32>
    %12 = vector.multi_reduction <add>, %11, %cst_6 [0] : vector<32x128xf32> to vector<128xf32>
    %13 = vector.shape_cast %12 : vector<128xf32> to vector<1x128xf32>
    %cst_7 = arith.constant 3.200000e+01 : f32
    %14 = vector.broadcast %cst_7 : f32 to vector<1x128xf32>
    %15 = arith.divf %13, %14 : vector<1x128xf32>
    %16 = vector.broadcast %8 : vector<1x128xf32> to vector<32x128xf32>
    %17 = arith.subf %4, %16 : vector<32x128xf32>
    %cst_8 = arith.constant 9.99999974E-6 : f32
    %18 = vector.broadcast %cst_8 : f32 to vector<1x128xf32>
    %19 = arith.addf %15, %18 : vector<1x128xf32>
    %20 = math.rsqrt %19 : vector<1x128xf32>
    %21 = vector.broadcast %20 : vector<1x128xf32> to vector<32x128xf32>
    %22 = arith.mulf %17, %21 : vector<32x128xf32>
    %23 = arith.truncf %22 : vector<32x128xf32> to vector<32x128xbf16>
    %c0_9 = arith.constant 0 : index
    %c0_10 = arith.constant 0 : index
    %24 = vector.load %arg3[%c0_9, %c0_10] : memref<32x128xbf16, #tpu.memory_space<vmem>>, vector<32x128xbf16>
    tpu.vector_store %arg3[%c0_9, %c0_10], %23 {strides = array<i32>} : memref<32x128xbf16, #tpu.memory_space<vmem>>, vector<32x128xbf16>,
    return
  }
  func.func @transform_0(%arg0: i32) -> (i32, i32) {
    %c0_i32 = arith.constant 0 : i32
    %c0_i32_0 = arith.constant 0 : i32
    %c0_i32_1 = arith.constant 0 : i32
    return %c0_i32, %c0_i32_0 : i32, i32
  }
  func.func @transform_1(%arg0: i32) -> (i32, i32) {
    %c0_i32 = arith.constant 0 : i32
    %c0_i32_0 = arith.constant 0 : i32
    %c0_i32_1 = arith.constant 0 : i32
    return %c0_i32, %c0_i32_0 : i32, i32
  }
  func.func @transform_2(%arg0: i32) -> (i32, i32) {
    %c0_i32 = arith.constant 0 : i32
    %c0_i32_0 = arith.constant 0 : i32
    %c0_i32_1 = arith.constant 0 : i32
    return %c0_i32, %c0_i32_0 : i32, i32
  }
}

module attributes {stable_mosaic.version = 11 : i64} {
  func.func @_head_kernel(%arg0: i32, %arg1: memref<2x2048xbf16, #tpu.memory_space<vmem>>, %arg2: memref<2048x256xbf16, #tpu.memory_space<vmem>>, %arg3: memref<1x256xf32, #tpu.memory_space<vmem>>, %arg4: memref<256x128xbf16, #tpu.memory_space<vmem>>, %arg5: memref<1x128xf32, #tpu.memory_space<vmem>>, %arg6: memref<2x128xf32, #tpu.memory_space<vmem>>) attributes {dimension_semantics = [#tpu.dimension_semantics<arbitrary>], iteration_bounds = array<i64: 1>, scalar_prefetch = 0 : i64, scratch_operands = 0 : i64, tpu.core_type = #tpu.core_type<tc>, window_params = [{pipeline_mode = #tpu.pipeline_mode<synchronous>, transform_indices = @transform_0, window_bounds = array<i64: 2, 2048>}, {pipeline_mode = #tpu.pipeline_mode<synchronous>, transform_indices = @transform_1, window_bounds = array<i64: 2048, 256>}, {pipeline_mode = #tpu.pipeline_mode<synchronous>, transform_indices = @transform_2, window_bounds = array<i64: 1, 256>}, {pipeline_mode = #tpu.pipeline_mode<synchronous>, transform_indices = @transform_3, window_bounds = array<i64: 256, 128>}, {pipeline_mode = #tpu.pipeline_mode<synchronous>, transform_indices = @transform_4, window_bounds = array<i64: 1, 128>}, {pipeline_mode = #tpu.pipeline_mode<synchronous>, transform_indices = @transform_5, window_bounds = array<i64: 2, 128>}]} {
    %c0 = arith.constant 0 : index
    %c0_0 = arith.constant 0 : index
    %0 = vector.load %arg1[%c0, %c0_0] : memref<2x2048xbf16, #tpu.memory_space<vmem>>, vector<2x2048xbf16>
    %c0_1 = arith.constant 0 : index
    %c0_2 = arith.constant 0 : index
    %1 = vector.load %arg2[%c0_1, %c0_2] : memref<2048x256xbf16, #tpu.memory_space<vmem>>, vector<2048x256xbf16>
    %cst = arith.constant dense<0.000000e+00> : vector<2x256xf32>
    %2 = tpu.matmul %0, %1, %cst {dimension_numbers = #tpu.dot_dimension_numbers<[1], [0], [0], [1], [0, 0, 1, 1], [], []>} : vector<2x2048xbf16>, vector<2048x256xbf16>, vector<2x256xf32> -> vector<2x256xf32>
    %c0_3 = arith.constant 0 : index
    %c0_4 = arith.constant 0 : index
    %3 = vector.load %arg3[%c0_3, %c0_4] : memref<1x256xf32, #tpu.memory_space<vmem>>, vector<1x256xf32>
    %4 = vector.broadcast %3 : vector<1x256xf32> to vector<2x256xf32>
    %5 = arith.addf %2, %4 : vector<2x256xf32>
    %cst_5 = arith.constant 0.000000e+00 : f32
    %6 = vector.broadcast %cst_5 : f32 to vector<2x256xf32>
    %7 = arith.maximumf %5, %6 : vector<2x256xf32>
    %cst_6 = arith.constant dense<0.000000e+00> : vector<256xf32>
    %8 = vector.multi_reduction <add>, %7, %cst_6 [0] : vector<2x256xf32> to vector<256xf32>
    %9 = vector.shape_cast %8 : vector<256xf32> to vector<1x256xf32>
    %cst_7 = arith.constant 2.000000e+00 : f32
    %10 = vector.broadcast %cst_7 : f32 to vector<1x256xf32>
    %11 = arith.divf %9, %10 : vector<1x256xf32>
    %12 = vector.broadcast %11 : vector<1x256xf32> to vector<2x256xf32>
    %13 = arith.subf %7, %12 : vector<2x256xf32>
    %14 = arith.mulf %13, %13 : vector<2x256xf32>
    %cst_8 = arith.constant dense<0.000000e+00> : vector<256xf32>
    %15 = vector.multi_reduction <add>, %14, %cst_8 [0] : vector<2x256xf32> to vector<256xf32>
    %16 = vector.shape_cast %15 : vector<256xf32> to vector<1x256xf32>
    %cst_9 = arith.constant 2.000000e+00 : f32
    %17 = vector.broadcast %cst_9 : f32 to vector<1x256xf32>
    %18 = arith.divf %16, %17 : vector<1x256xf32>
    %19 = vector.broadcast %11 : vector<1x256xf32> to vector<2x256xf32>
    %20 = arith.subf %7, %19 : vector<2x256xf32>
    %cst_10 = arith.constant 9.99999974E-6 : f32
    %21 = vector.broadcast %cst_10 : f32 to vector<1x256xf32>
    %22 = arith.addf %18, %21 : vector<1x256xf32>
    %23 = math.rsqrt %22 : vector<1x256xf32>
    %24 = vector.broadcast %23 : vector<1x256xf32> to vector<2x256xf32>
    %25 = arith.mulf %20, %24 : vector<2x256xf32>
    %26 = arith.truncf %25 : vector<2x256xf32> to vector<2x256xbf16>
    %c0_11 = arith.constant 0 : index
    %c0_12 = arith.constant 0 : index
    %27 = vector.load %arg4[%c0_11, %c0_12] : memref<256x128xbf16, #tpu.memory_space<vmem>>, vector<256x128xbf16>
    %cst_13 = arith.constant dense<0.000000e+00> : vector<2x128xf32>
    %28 = tpu.matmul %26, %27, %cst_13 {dimension_numbers = #tpu.dot_dimension_numbers<[1], [0], [0], [1], [0, 0, 1, 1], [], []>} : vector<2x256xbf16>, vector<256x128xbf16>, vector<2x128xf32> -> vector<2x128xf32>
    %c0_14 = arith.constant 0 : index
    %c0_15 = arith.constant 0 : index
    %29 = vector.load %arg5[%c0_14, %c0_15] : memref<1x128xf32, #tpu.memory_space<vmem>>, vector<1x128xf32>
    %30 = vector.broadcast %29 : vector<1x128xf32> to vector<2x128xf32>
    %31 = arith.addf %28, %30 : vector<2x128xf32>
    %32 = tpu.iota {dimensions = array<i32: 1>} : vector<2x128xi32>
    %c10_i32 = arith.constant 10 : i32
    %33 = vector.broadcast %c10_i32 : i32 to vector<2x128xi32>
    %34 = arith.cmpi slt, %32, %33 : vector<2x128xi32>
    %cst_16 = arith.constant -1.000000e+30 : f32
    %35 = vector.broadcast %cst_16 : f32 to vector<2x128xf32>
    %36 = arith.select %34, %31, %35 : vector<2x128xi1>, vector<2x128xf32>
    %cst_17 = arith.constant dense<0xFF800000> : vector<2xf32>
    %37 = vector.multi_reduction <maximumf>, %36, %cst_17 [1] : vector<2x128xf32> to vector<2xf32>
    %38 = vector.shape_cast %37 : vector<2xf32> to vector<2x1xf32>
    %39 = vector.broadcast %38 : vector<2x1xf32> to vector<2x128xf32>
    %40 = arith.subf %36, %39 : vector<2x128xf32>
    %41 = math.exp %40 : vector<2x128xf32>
    %cst_18 = arith.constant dense<0.000000e+00> : vector<2xf32>
    %42 = vector.multi_reduction <add>, %41, %cst_18 [1] : vector<2x128xf32> to vector<2xf32>
    %43 = vector.shape_cast %42 : vector<2xf32> to vector<2x1xf32>
    %44 = math.log %43 : vector<2x1xf32>
    %45 = arith.addf %44, %38 : vector<2x1xf32>
    %46 = vector.broadcast %45 : vector<2x1xf32> to vector<2x128xf32>
    %47 = arith.subf %31, %46 : vector<2x128xf32>
    %c0_19 = arith.constant 0 : index
    %c0_20 = arith.constant 0 : index
    %48 = vector.load %arg6[%c0_19, %c0_20] : memref<2x128xf32, #tpu.memory_space<vmem>>, vector<2x128xf32>
    tpu.vector_store %arg6[%c0_19, %c0_20], %47 {strides = array<i32>} : memref<2x128xf32, #tpu.memory_space<vmem>>, vector<2x128xf32>,
    return
  }
  func.func @transform_0(%arg0: i32) -> (i32, i32) {
    %c0_i32 = arith.constant 0 : i32
    %c0_i32_0 = arith.constant 0 : i32
    %c0_i32_1 = arith.constant 0 : i32
    return %c0_i32, %c0_i32_0 : i32, i32
  }
  func.func @transform_1(%arg0: i32) -> (i32, i32) {
    %c0_i32 = arith.constant 0 : i32
    %c0_i32_0 = arith.constant 0 : i32
    %c0_i32_1 = arith.constant 0 : i32
    return %c0_i32, %c0_i32_0 : i32, i32
  }
  func.func @transform_2(%arg0: i32) -> (i32, i32) {
    %c0_i32 = arith.constant 0 : i32
    %c0_i32_0 = arith.constant 0 : i32
    %c0_i32_1 = arith.constant 0 : i32
    return %c0_i32, %c0_i32_0 : i32, i32
  }
  func.func @transform_3(%arg0: i32) -> (i32, i32) {
    %c0_i32 = arith.constant 0 : i32
    %c0_i32_0 = arith.constant 0 : i32
    %c0_i32_1 = arith.constant 0 : i32
    return %c0_i32, %c0_i32_0 : i32, i32
  }
  func.func @transform_4(%arg0: i32) -> (i32, i32) {
    %c0_i32 = arith.constant 0 : i32
    %c0_i32_0 = arith.constant 0 : i32
    %c0_i32_1 = arith.constant 0 : i32
    return %c0_i32, %c0_i32_0 : i32, i32
  }
  func.func @transform_5(%arg0: i32) -> (i32, i32) {
    %c0_i32 = arith.constant 0 : i32
    %c0_i32_0 = arith.constant 0 : i32
    %c0_i32_1 = arith.constant 0 : i32
    return %c0_i32, %c0_i32_0 : i32, i32
  }
}

</mosaic_0001>

<bundles_post_ra>
// kernel: baseline_forward.6
= control target key start
LH: loop header
LB: loop body
LE: loop exit
PB: predicated region body
PF: predicated region fallthrough
CT: control target
= control target key end

     0   :  { %vm1648_vm0 = vcmask 1043456   ;;  %vm1649_vm1 = vcmask 1044480   ;;  %v4115_v2 = vmov 65535   ;;  %vm1161_vm2 = vcmask 203776   ;;  %s5760_s1 = inlined_call_operand.vmem [shape: bf16[25,128], index: 1, kind: input, shape index: {}]   ;;  %s5761_s0 = inlined_call_operand.vmem [shape: bf16[2592,25], index: 0, kind: input, shape index: {}]   ;;  %s5762_s2 = inlined_call_operand.vmem [shape: f32[2592,128], index: 2, kind: output, shape index: {}]  }
   0x1   :  { %v3780_v0 = vld [vmem:[%s5760_s1 + $0x8] sm:$0xf]  ;;  %v4107_v1 = vld [vmem:[%s5760_s1 + $0x8] sm:$0x10]  ;;  %v1650_v3 = vsel %vm1648_vm0, 4294967295, %v4115_v2  ;;  %v4106_v7 = vld [vmem:[%s5760_s1] sm:$0xff] }
   0x2   :  { %v3781_v4 = vor.u32 %v4107_v1, %v3780_v0  ;;  %v1651_v5 = vsel %vm1649_vm1, %v1650_v3, 0  ;;  %v3944_v8 = vld [vmem:[%s5761_s0] sm:$0xff]  ;;  %v3985_v9 = vld [vmem:[%s5761_s0 + $0x148] sm:$0xff]  ;;  %v4026_v10 = vld [vmem:[%s5761_s0 + $0x290] sm:$0xff] }
   0x3   :  { %v4067_v11 = vld [vmem:[%s5761_s0 + $0x3d8] sm:$0xff]  ;;  %v3945_v12 = vld [vmem:[%s5761_s0 + $0x8] sm:$0xff]  ;;  %v3986_v13 = vld [vmem:[%s5761_s0 + $0x150] sm:$0xff] }
   0x4   :  { %v1653_v6 = vand.u32 %v3781_v4, %v1651_v5  ;;  %v4027_v14 = vld [vmem:[%s5761_s0 + $0x298] sm:$0xff]  ;;  %v4068_v15 = vld [vmem:[%s5761_s0 + $0x3e0] sm:$0xff]  ;;  %v3946_v16 = vld [vmem:[%s5761_s0 + $0x10] sm:$0xff] }
   0x5   :  { %v3987_v17 = vld [vmem:[%s5761_s0 + $0x158] sm:$0xff]  ;;  %v4028_v18 = vld [vmem:[%s5761_s0 + $0x2a0] sm:$0xff]  ;;  %v4069_v19 = vld [vmem:[%s5761_s0 + $0x3e8] sm:$0xff] }
   0x6   :  { %1661 = vmatpush.bf16.msra.mxu0 %v1653_v6  ;;  %4108 = vmatpush.bf16.msra.mxu1 %v1653_v6  ;;  %v3947_v20 = vld [vmem:[%s5761_s0 + $0x18] sm:$0xff]  ;;  %v3988_v21 = vld [vmem:[%s5761_s0 + $0x160] sm:$0xff]  ;;  %v4029_v22 = vld [vmem:[%s5761_s0 + $0x2a8] sm:$0xff] }
   0x7   :  { %4109 = vmatpush.bf16.msra.mxu2 %v1653_v6  ;;  %4110 = vmatpush.bf16.msra.mxu3 %v1653_v6  ;;  %v4070_v23 = vld [vmem:[%s5761_s0 + $0x3f0] sm:$0xff]  ;;  %v3948_v24 = vld [vmem:[%s5761_s0 + $0x20] sm:$0xff]  ;;  %v3989_v25 = vld [vmem:[%s5761_s0 + $0x168] sm:$0xff] }
   0x8   :  { %v4030_v26 = vld [vmem:[%s5761_s0 + $0x2b0] sm:$0xff]  ;;  %v4071_v27 = vld [vmem:[%s5761_s0 + $0x3f8] sm:$0xff]  ;;  %v3949_v28 = vld [vmem:[%s5761_s0 + $0x28] sm:$0xff] }
   0x9   :  { %v3990_v29 = vld [vmem:[%s5761_s0 + $0x170] sm:$0xff]  ;;  %v4031_v30 = vld [vmem:[%s5761_s0 + $0x2b8] sm:$0xff]  ;;  %v4072_v31 = vld [vmem:[%s5761_s0 + $0x400] sm:$0xff] }
   0xa   :  { %1662 = vmatpush.bf16.msra.mxu0 %v4106_v7  ;;  %4111 = vmatpush.bf16.msra.mxu1 %v4106_v7  ;;  %v3950_v32 = vld [vmem:[%s5761_s0 + $0x30] sm:$0xff]  ;;  %v3991_v33 = vld [vmem:[%s5761_s0 + $0x178] sm:$0xff]  ;;  %v4032_v34 = vld [vmem:[%s5761_s0 + $0x2c0] sm:$0xff] }
   0xb   :  { %4112 = vmatpush.bf16.msra.mxu2 %v4106_v7  ;;  %4113 = vmatpush.bf16.msra.mxu3 %v4106_v7  ;;  %v4073_v35 = vld [vmem:[%s5761_s0 + $0x408] sm:$0xff]  ;;  %v3951_v36 = vld [vmem:[%s5761_s0 + $0x38] sm:$0xff]  ;;  %v3992_v37 = vld [vmem:[%s5761_s0 + $0x180] sm:$0xff] }
   0xc   :  { %v4033_v38 = vld [vmem:[%s5761_s0 + $0x2c8] sm:$0xff]  ;;  %v4074_v39 = vld [vmem:[%s5761_s0 + $0x410] sm:$0xff]  ;;  %v3952_v40 = vld [vmem:[%s5761_s0 + $0x40] sm:$0xff] }
   0xd   :  { %3782 = vmatmul.msk.bf16.vlgmr.msra.gmra.mxu0 %vm1161_vm2, %v3944_v8  ;;  %3823 = vmatmul.msk.bf16.vlgmr.msra.gmra.mxu1 %vm1161_vm2, %v3985_v9  ;;  %v3993_v41 = vld [vmem:[%s5761_s0 + $0x188] sm:$0xff]  ;;  %v4034_v44 = vld [vmem:[%s5761_s0 + $0x2d0] sm:$0xff]  ;;  %v4075_v45 = vld [vmem:[%s5761_s0 + $0x418] sm:$0xff] }
   0xe   :  { %3864 = vmatmul.msk.bf16.vlgmr.msra.gmra.mxu2 %vm1161_vm2, %v4026_v10  ;;  %3905 = vmatmul.msk.bf16.vlgmr.msra.gmra.mxu3 %vm1161_vm2, %v4067_v11  ;;  %v3953_v57 = vld [vmem:[%s5761_s0 + $0x48] sm:$0xff]  ;;  %v3994_v58 = vld [vmem:[%s5761_s0 + $0x190] sm:$0xff]  ;;  %v4035_v63 = vld [vmem:[%s5761_s0 + $0x2d8] sm:$0xff] }
   0xf   :  { %v4076_v0 = vld [vmem:[%s5761_s0 + $0x420] sm:$0xff] }
  0x1d   :  { %3783 = vmatmul.msk.bf16.gmra.mxu0 %vm1161_vm2, %v3945_v12  ;;  %3824 = vmatmul.msk.bf16.gmra.mxu1 %vm1161_vm2, %v3986_v13  ;;  %v3954_v13 = vld [vmem:[%s5761_s0 + $0x50] sm:$0xff] }
  0x1e   :  { %3865 = vmatmul.msk.bf16.gmra.mxu2 %vm1161_vm2, %v4027_v14  ;;  %3906 = vmatmul.msk.bf16.gmra.mxu3 %vm1161_vm2, %v4068_v15  ;;  %v3995_v14 = vld [vmem:[%s5761_s0 + $0x198] sm:$0xff] }
  0x2d   :  { %3784 = vmatmul.msk.bf16.gmra.mxu0 %vm1161_vm2, %v3946_v16  ;;  %3825 = vmatmul.msk.bf16.gmra.mxu1 %vm1161_vm2, %v3987_v17 }
  0x2e   :  { %3866 = vmatmul.msk.bf16.gmra.mxu2 %vm1161_vm2, %v4028_v18  ;;  %3907 = vmatmul.msk.bf16.gmra.mxu3 %vm1161_vm2, %v4069_v19  ;;  %v4036_v19 = vld [vmem:[%s5761_s0 + $0x2e0] sm:$0xff] }
  0x3d   :  { %3785 = vmatmul.msk.bf16.gmra.mxu0 %vm1161_vm2, %v3947_v20  ;;  %3826 = vmatmul.msk.bf16.gmra.mxu1 %vm1161_vm2, %v3988_v21  ;;  %v4077_v20 = vld [vmem:[%s5761_s0 + $0x428] sm:$0xff] }
  0x3e   :  { %3867 = vmatmul.msk.bf16.gmra.mxu2 %vm1161_vm2, %v4029_v22  ;;  %3908 = vmatmul.msk.bf16.gmra.mxu3 %vm1161_vm2, %v4070_v23 }
  0x4d   :  { %3786 = vmatmul.msk.bf16.gmra.mxu0 %vm1161_vm2, %v3948_v24  ;;  %3827 = vmatmul.msk.bf16.gmra.mxu1 %vm1161_vm2, %v3989_v25 }
  0x4e   :  { %3868 = vmatmul.msk.bf16.gmra.mxu2 %vm1161_vm2, %v4030_v26  ;;  %3909 = vmatmul.msk.bf16.gmra.mxu3 %vm1161_vm2, %v4071_v27 }
  0x5d   :  { %3787 = vmatmul.msk.bf16.gmra.mxu0 %vm1161_vm2, %v3949_v28  ;;  %3828 = vmatmul.msk.bf16.gmra.mxu1 %vm1161_vm2, %v3990_v29 }
  0x5e   :  { %3869 = vmatmul.msk.bf16.gmra.mxu2 %vm1161_vm2, %v4031_v30  ;;  %3910 = vmatmul.msk.bf16.gmra.mxu3 %vm1161_vm2, %v4072_v31 }
  0x6d   :  { %3788 = vmatmul.msk.bf16.gmra.mxu0 %vm1161_vm2, %v3950_v32  ;;  %3829 = vmatmul.msk.bf16.gmra.mxu1 %vm1161_vm2, %v3991_v33  ;;  %v3955_v33 = vld [vmem:[%s5761_s0 + $0x58] sm:$0xff] }
  0x6e   :  { %3870 = vmatmul.msk.bf16.gmra.mxu2 %vm1161_vm2, %v4032_v34  ;;  %3911 = vmatmul.msk.bf16.gmra.mxu3 %vm1161_vm2, %v4073_v35  ;;  %v3996_v34 = vld [vmem:[%s5761_s0 + $0x1a0] sm:$0xff] }
  0x7d   :  { %3789 = vmatmul.msk.bf16.gmra.mxu0 %vm1161_vm2, %v3951_v36  ;;  %3830 = vmatmul.msk.bf16.gmra.mxu1 %vm1161_vm2, %v3992_v37 }
  0x7e   :  { %3871 = vmatmul.msk.bf16.gmra.mxu2 %vm1161_vm2, %v4033_v38  ;;  %3912 = vmatmul.msk.bf16.gmra.mxu3 %vm1161_vm2, %v4074_v39  ;;  %v4037_v39 = vld [vmem:[%s5761_s0 + $0x2e8] sm:$0xff] }
  0x8a   :  { %v1664_v42 = vpop.f32.mrf.mxu0  ;;  %v1869_v43 = vpop.f32.mrf.mxu1 }
  0x8b   :  { %v2474_v46 = vmax.f32 %v1664_v42, 0.0  ;;  %v2556_v47 = vmax.f32 %v1869_v43, 0.0 }
  0x8d   :  { %2798 = vst [vmem:[%s5762_s2] sm:$0xff] %v2474_v46  ;;  %3790 = vmatmul.msk.bf16.gmra.mxu0 %vm1161_vm2, %v3952_v40  ;;  %3831 = vmatmul.msk.bf16.gmra.mxu1 %vm1161_vm2, %v3993_v41  ;;  %v4078_v40 = vld [vmem:[%s5761_s0 + $0x430] sm:$0xff] }
  0x8e   :  { %2880 = vst [vmem:[%s5762_s2 + $0x290] sm:$0xff] %v2556_v47  ;;  %3872 = vmatmul.msk.bf16.gmra.mxu2 %vm1161_vm2, %v4034_v44  ;;  %3913 = vmatmul.msk.bf16.gmra.mxu3 %vm1161_vm2, %v4075_v45 }
  0x91   :  { %v2074_v48 = vpop.f32.mrf.mxu2  ;;  %v2279_v49 = vpop.f32.mrf.mxu3 }
  0x92   :  { %v2638_v50 = vmax.f32 %v2074_v48, 0.0  ;;  %v1666_v51 = vpop.f32.mrf.mxu0  ;;  %v1871_v52 = vpop.f32.mrf.mxu1  ;;  %v2720_v55 = vmax.f32 %v2279_v49, 0.0 }
  0x93   :  { %v2475_v53 = vmax.f32 %v1666_v51, 0.0  ;;  %v2557_v54 = vmax.f32 %v1871_v52, 0.0 }
  0x94   :  { %2962 = vst [vmem:[%s5762_s2 + $0x520] sm:$0xff] %v2638_v50 }
  0x95   :  { %2799 = vst [vmem:[%s5762_s2 + $0x8] sm:$0xff] %v2475_v53  ;;  %v3956_v53 = vld [vmem:[%s5761_s0 + $0x60] sm:$0xff] }
  0x96   :  { %2881 = vst [vmem:[%s5762_s2 + $0x298] sm:$0xff] %v2557_v54  ;;  %v3997_v54 = vld [vmem:[%s5761_s0 + $0x1a8] sm:$0xff] }
  0x97   :  { %3044 = vst [vmem:[%s5762_s2 + $0x7b0] sm:$0xff] %v2720_v55 }
  0x99   :  { %v2076_v56 = vpop.f32.mrf.mxu2  ;;  %v2281_v59 = vpop.f32.mrf.mxu3 }
  0x9a   :  { %v2639_v60 = vmax.f32 %v2076_v56, 0.0  ;;  %v1669_v61 = vpop.f32.mrf.mxu0  ;;  %v1874_v62 = vpop.f32.mrf.mxu1  ;;  %v2721_v3 = vmax.f32 %v2281_v59, 0.0  ;;  %v4038_v59 = vld [vmem:[%s5761_s0 + $0x2f0] sm:$0xff] }
  0x9b   :  { %v2476_v1 = vmax.f32 %v1669_v61, 0.0  ;;  %v2558_v2 = vmax.f32 %v1874_v62, 0.0 }
  0x9c   :  { %2963 = vst [vmem:[%s5762_s2 + $0x528] sm:$0xff] %v2639_v60  ;;  %v4079_v60 = vld [vmem:[%s5761_s0 + $0x438] sm:$0xff] }
  0x9d   :  { %2800 = vst [vmem:[%s5762_s2 + $0x10] sm:$0xff] %v2476_v1  ;;  %3791 = vmatmul.msk.bf16.gmra.mxu0 %vm1161_vm2, %v3953_v57  ;;  %3832 = vmatmul.msk.bf16.gmra.mxu1 %vm1161_vm2, %v3994_v58 }
  0x9e   :  { %2882 = vst [vmem:[%s5762_s2 + $0x2a0] sm:$0xff] %v2558_v2  ;;  %3873 = vmatmul.msk.bf16.gmra.mxu2 %vm1161_vm2, %v4035_v63  ;;  %3914 = vmatmul.msk.bf16.gmra.mxu3 %vm1161_vm2, %v4076_v0 }
  0x9f   :  { %3045 = vst [vmem:[%s5762_s2 + $0x7b8] sm:$0xff] %v2721_v3 }
  0xa1   :  { %v2079_v4 = vpop.f32.mrf.mxu2  ;;  %v2284_v5 = vpop.f32.mrf.mxu3 }
  0xa2   :  { %v2640_v6 = vmax.f32 %v2079_v4, 0.0  ;;  %v1671_v7 = vpop.f32.mrf.mxu0  ;;  %v1876_v8 = vpop.f32.mrf.mxu1  ;;  %v2722_v11 = vmax.f32 %v2284_v5, 0.0 }
  0xa3   :  { %v2477_v9 = vmax.f32 %v1671_v7, 0.0  ;;  %v2559_v10 = vmax.f32 %v1876_v8, 0.0 }
  0xa4   :  { %2964 = vst [vmem:[%s5762_s2 + $0x530] sm:$0xff] %v2640_v6 }
  0xa5   :  { %2801 = vst [vmem:[%s5762_s2 + $0x18] sm:$0xff] %v2477_v9  ;;  %v3957_v9 = vld [vmem:[%s5761_s0 + $0x68] sm:$0xff] }
  0xa6   :  { %2883 = vst [vmem:[%s5762_s2 + $0x2a8] sm:$0xff] %v2559_v10  ;;  %v3998_v10 = vld [vmem:[%s5761_s0 + $0x1b0] sm:$0xff] }
  0xa7   :  { %3046 = vst [vmem:[%s5762_s2 + $0x7c0] sm:$0xff] %v2722_v11 }
  0xa9   :  { %v2081_v12 = vpop.f32.mrf.mxu2  ;;  %v2286_v15 = vpop.f32.mrf.mxu3 }
  0xaa   :  { %v2641_v16 = vmax.f32 %v2081_v12, 0.0  ;;  %v1674_v17 = vpop.f32.mrf.mxu0  ;;  %v1879_v18 = vpop.f32.mrf.mxu1  ;;  %v2723_v23 = vmax.f32 %v2286_v15, 0.0  ;;  %v4039_v15 = vld [vmem:[%s5761_s0 + $0x2f8] sm:$0xff] }
  0xab   :  { %v2478_v21 = vmax.f32 %v1674_v17, 0.0  ;;  %v2560_v22 = vmax.f32 %v1879_v18, 0.0 }
  0xac   :  { %2965 = vst [vmem:[%s5762_s2 + $0x538] sm:$0xff] %v2641_v16  ;;  %v4080_v16 = vld [vmem:[%s5761_s0 + $0x440] sm:$0xff] }
  0xad   :  { %2802 = vst [vmem:[%s5762_s2 + $0x20] sm:$0xff] %v2478_v21  ;;  %3792 = vmatmul.msk.bf16.gmra.mxu0 %vm1161_vm2, %v3954_v13  ;;  %3833 = vmatmul.msk.bf16.gmra.mxu1 %vm1161_vm2, %v3995_v14 }
  0xae   :  { %2884 = vst [vmem:[%s5762_s2 + $0x2b0] sm:$0xff] %v2560_v22  ;;  %3874 = vmatmul.msk.bf16.gmra.mxu2 %vm1161_vm2, %v4036_v19  ;;  %3915 = vmatmul.msk.bf16.gmra.mxu3 %vm1161_vm2, %v4077_v20 }
  0xaf   :  { %3047 = vst [vmem:[%s5762_s2 + $0x7c8] sm:$0xff] %v2723_v23 }
  0xb1   :  { %v2084_v24 = vpop.f32.mrf.mxu2  ;;  %v2289_v25 = vpop.f32.mrf.mxu3 }
  0xb2   :  { %v2642_v26 = vmax.f32 %v2084_v24, 0.0  ;;  %v1676_v27 = vpop.f32.mrf.mxu0  ;;  %v1881_v28 = vpop.f32.mrf.mxu1  ;;  %v2724_v31 = vmax.f32 %v2289_v25, 0.0 }
  0xb3   :  { %v2479_v29 = vmax.f32 %v1676_v27, 0.0  ;;  %v2561_v30 = vmax.f32 %v1881_v28, 0.0 }
  0xb4   :  { %2966 = vst [vmem:[%s5762_s2 + $0x540] sm:$0xff] %v2642_v26 }
  0xb5   :  { %2803 = vst [vmem:[%s5762_s2 + $0x28] sm:$0xff] %v2479_v29  ;;  %v3958_v29 = vld [vmem:[%s5761_s0 + $0x70] sm:$0xff] }
  0xb6   :  { %2885 = vst [vmem:[%s5762_s2 + $0x2b8] sm:$0xff] %v2561_v30  ;;  %v3999_v30 = vld [vmem:[%s5761_s0 + $0x1b8] sm:$0xff] }
  0xb7   :  { %3048 = vst [vmem:[%s5762_s2 + $0x7d0] sm:$0xff] %v2724_v31 }
  0xb9   :  { %v2086_v32 = vpop.f32.mrf.mxu2  ;;  %v2291_v35 = vpop.f32.mrf.mxu3 }
  0xba   :  { %v2643_v36 = vmax.f32 %v2086_v32, 0.0  ;;  %v1679_v37 = vpop.f32.mrf.mxu0  ;;  %v1884_v38 = vpop.f32.mrf.mxu1  ;;  %v2725_v43 = vmax.f32 %v2291_v35, 0.0  ;;  %v4040_v35 = vld [vmem:[%s5761_s0 + $0x300] sm:$0xff] }
  0xbb   :  { %v2480_v41 = vmax.f32 %v1679_v37, 0.0  ;;  %v2562_v42 = vmax.f32 %v1884_v38, 0.0 }
  0xbc   :  { %2967 = vst [vmem:[%s5762_s2 + $0x548] sm:$0xff] %v2643_v36  ;;  %v4081_v36 = vld [vmem:[%s5761_s0 + $0x448] sm:$0xff] }
  0xbd   :  { %2804 = vst [vmem:[%s5762_s2 + $0x30] sm:$0xff] %v2480_v41  ;;  %3793 = vmatmul.msk.bf16.gmra.mxu0 %vm1161_vm2, %v3955_v33  ;;  %3834 = vmatmul.msk.bf16.gmra.mxu1 %vm1161_vm2, %v3996_v34 }
  0xbe   :  { %2886 = vst [vmem:[%s5762_s2 + $0x2c0] sm:$0xff] %v2562_v42  ;;  %3875 = vmatmul.msk.bf16.gmra.mxu2 %vm1161_vm2, %v4037_v39  ;;  %3916 = vmatmul.msk.bf16.gmra.mxu3 %vm1161_vm2, %v4078_v40 }
  0xbf   :  { %3049 = vst [vmem:[%s5762_s2 + $0x7d8] sm:$0xff] %v2725_v43 }
  0xc1   :  { %v2089_v44 = vpop.f32.mrf.mxu2  ;;  %v2294_v45 = vpop.f32.mrf.mxu3 }
  0xc2   :  { %v2644_v46 = vmax.f32 %v2089_v44, 0.0  ;;  %v1681_v47 = vpop.f32.mrf.mxu0  ;;  %v1886_v48 = vpop.f32.mrf.mxu1  ;;  %v2726_v51 = vmax.f32 %v2294_v45, 0.0 }
  0xc3   :  { %v2481_v49 = vmax.f32 %v1681_v47, 0.0  ;;  %v2563_v50 = vmax.f32 %v1886_v48, 0.0 }
  0xc4   :  { %2968 = vst [vmem:[%s5762_s2 + $0x550] sm:$0xff] %v2644_v46 }
  0xc5   :  { %2805 = vst [vmem:[%s5762_s2 + $0x38] sm:$0xff] %v2481_v49  ;;  %v3959_v49 = vld [vmem:[%s5761_s0 + $0x78] sm:$0xff] }
  0xc6   :  { %2887 = vst [vmem:[%s5762_s2 + $0x2c8] sm:$0xff] %v2563_v50  ;;  %v4000_v50 = vld [vmem:[%s5761_s0 + $0x1c0] sm:$0xff] }
  0xc7   :  { %3050 = vst [vmem:[%s5762_s2 + $0x7e0] sm:$0xff] %v2726_v51 }
  0xc9   :  { %v2091_v52 = vpop.f32.mrf.mxu2  ;;  %v2296_v55 = vpop.f32.mrf.mxu3 }
  0xca   :  { %v2645_v56 = vmax.f32 %v2091_v52, 0.0  ;;  %v1684_v57 = vpop.f32.mrf.mxu0  ;;  %v1889_v58 = vpop.f32.mrf.mxu1  ;;  %v2727_v63 = vmax.f32 %v2296_v55, 0.0  ;;  %v4041_v55 = vld [vmem:[%s5761_s0 + $0x308] sm:$0xff] }
  0xcb   :  { %v2482_v61 = vmax.f32 %v1684_v57, 0.0  ;;  %v2564_v62 = vmax.f32 %v1889_v58, 0.0 }
  0xcc   :  { %2969 = vst [vmem:[%s5762_s2 + $0x558] sm:$0xff] %v2645_v56  ;;  %v4082_v56 = vld [vmem:[%s5761_s0 + $0x450] sm:$0xff] }
  0xcd   :  { %2806 = vst [vmem:[%s5762_s2 + $0x40] sm:$0xff] %v2482_v61  ;;  %3794 = vmatmul.msk.bf16.gmra.mxu0 %vm1161_vm2, %v3956_v53  ;;  %3835 = vmatmul.msk.bf16.gmra.mxu1 %vm1161_vm2, %v3997_v54 }
  0xce   :  { %2888 = vst [vmem:[%s5762_s2 + $0x2d0] sm:$0xff] %v2564_v62  ;;  %3876 = vmatmul.msk.bf16.gmra.mxu2 %vm1161_vm2, %v4038_v59  ;;  %3917 = vmatmul.msk.bf16.gmra.mxu3 %vm1161_vm2, %v4079_v60 }
  0xcf   :  { %3051 = vst [vmem:[%s5762_s2 + $0x7e8] sm:$0xff] %v2727_v63 }
  0xd1   :  { %v2094_v0 = vpop.f32.mrf.mxu2  ;;  %v2299_v1 = vpop.f32.mrf.mxu3 }
  0xd2   :  { %v2646_v2 = vmax.f32 %v2094_v0, 0.0  ;;  %v1686_v3 = vpop.f32.mrf.mxu0  ;;  %v1891_v4 = vpop.f32.mrf.mxu1  ;;  %v2728_v7 = vmax.f32 %v2299_v1, 0.0 }
  0xd3   :  { %v2483_v5 = vmax.f32 %v1686_v3, 0.0  ;;  %v2565_v6 = vmax.f32 %v1891_v4, 0.0 }
  0xd4   :  { %2970 = vst [vmem:[%s5762_s2 + $0x560] sm:$0xff] %v2646_v2 }
  0xd5   :  { %2807 = vst [vmem:[%s5762_s2 + $0x48] sm:$0xff] %v2483_v5  ;;  %v3960_v5 = vld [vmem:[%s5761_s0 + $0x80] sm:$0xff] }
  0xd6   :  { %2889 = vst [vmem:[%s5762_s2 + $0x2d8] sm:$0xff] %v2565_v6  ;;  %v4001_v6 = vld [vmem:[%s5761_s0 + $0x1c8] sm:$0xff] }
  0xd7   :  { %3052 = vst [vmem:[%s5762_s2 + $0x7f0] sm:$0xff] %v2728_v7 }
  0xd9   :  { %v2096_v8 = vpop.f32.mrf.mxu2  ;;  %v2301_v11 = vpop.f32.mrf.mxu3 }
  0xda   :  { %v2647_v12 = vmax.f32 %v2096_v8, 0.0  ;;  %v1689_v13 = vpop.f32.mrf.mxu0  ;;  %v1894_v14 = vpop.f32.mrf.mxu1  ;;  %v2729_v19 = vmax.f32 %v2301_v11, 0.0  ;;  %v4042_v11 = vld [vmem:[%s5761_s0 + $0x310] sm:$0xff] }
  0xdb   :  { %v2484_v17 = vmax.f32 %v1689_v13, 0.0  ;;  %v2566_v18 = vmax.f32 %v1894_v14, 0.0 }
  0xdc   :  { %2971 = vst [vmem:[%s5762_s2 + $0x568] sm:$0xff] %v2647_v12  ;;  %v4083_v12 = vld [vmem:[%s5761_s0 + $0x458] sm:$0xff] }
  0xdd   :  { %2808 = vst [vmem:[%s5762_s2 + $0x50] sm:$0xff] %v2484_v17  ;;  %3795 = vmatmul.msk.bf16.gmra.mxu0 %vm1161_vm2, %v3957_v9  ;;  %3836 = vmatmul.msk.bf16.gmra.mxu1 %vm1161_vm2, %v3998_v10 }
  0xde   :  { %2890 = vst [vmem:[%s5762_s2 + $0x2e0] sm:$0xff] %v2566_v18  ;;  %3877 = vmatmul.msk.bf16.gmra.mxu2 %vm1161_vm2, %v4039_v15  ;;  %3918 = vmatmul.msk.bf16.gmra.mxu3 %vm1161_vm2, %v4080_v16 }
  0xdf   :  { %3053 = vst [vmem:[%s5762_s2 + $0x7f8] sm:$0xff] %v2729_v19 }
  0xe1   :  { %v2099_v20 = vpop.f32.mrf.mxu2  ;;  %v2304_v21 = vpop.f32.mrf.mxu3 }
  0xe2   :  { %v2648_v22 = vmax.f32 %v2099_v20, 0.0  ;;  %v1691_v23 = vpop.f32.mrf.mxu0  ;;  %v1896_v24 = vpop.f32.mrf.mxu1  ;;  %v2730_v27 = vmax.f32 %v2304_v21, 0.0 }
  0xe3   :  { %v2485_v25 = vmax.f32 %v1691_v23, 0.0  ;;  %v2567_v26 = vmax.f32 %v1896_v24, 0.0 }
  0xe4   :  { %2972 = vst [vmem:[%s5762_s2 + $0x570] sm:$0xff] %v2648_v22 }
  0xe5   :  { %2809 = vst [vmem:[%s5762_s2 + $0x58] sm:$0xff] %v2485_v25  ;;  %v3961_v25 = vld [vmem:[%s5761_s0 + $0x88] sm:$0xff] }
  0xe6   :  { %2891 = vst [vmem:[%s5762_s2 + $0x2e8] sm:$0xff] %v2567_v26  ;;  %v4002_v26 = vld [vmem:[%s5761_s0 + $0x1d0] sm:$0xff] }
  0xe7   :  { %3054 = vst [vmem:[%s5762_s2 + $0x800] sm:$0xff] %v2730_v27 }
  0xe9   :  { %v2101_v28 = vpop.f32.mrf.mxu2  ;;  %v2306_v31 = vpop.f32.mrf.mxu3 }
  0xea   :  { %v2649_v32 = vmax.f32 %v2101_v28, 0.0  ;;  %v1694_v33 = vpop.f32.mrf.mxu0  ;;  %v1899_v34 = vpop.f32.mrf.mxu1  ;;  %v2731_v39 = vmax.f32 %v2306_v31, 0.0  ;;  %v4043_v31 = vld [vmem:[%s5761_s0 + $0x318] sm:$0xff] }
  0xeb   :  { %v2486_v37 = vmax.f32 %v1694_v33, 0.0  ;;  %v2568_v38 = vmax.f32 %v1899_v34, 0.0 }
  0xec   :  { %2973 = vst [vmem:[%s5762_s2 + $0x578] sm:$0xff] %v2649_v32  ;;  %v4084_v32 = vld [vmem:[%s5761_s0 + $0x460] sm:$0xff] }
  0xed   :  { %2810 = vst [vmem:[%s5762_s2 + $0x60] sm:$0xff] %v2486_v37  ;;  %3796 = vmatmul.msk.bf16.gmra.mxu0 %vm1161_vm2, %v3958_v29  ;;  %3837 = vmatmul.msk.bf16.gmra.mxu1 %vm1161_vm2, %v3999_v30 }
  0xee   :  { %2892 = vst [vmem:[%s5762_s2 + $0x2f0] sm:$0xff] %v2568_v38  ;;  %3878 = vmatmul.msk.bf16.gmra.mxu2 %vm1161_vm2, %v4040_v35  ;;  %3919 = vmatmul.msk.bf16.gmra.mxu3 %vm1161_vm2, %v4081_v36 }
  0xef   :  { %3055 = vst [vmem:[%s5762_s2 + $0x808] sm:$0xff] %v2731_v39 }
  0xf1   :  { %v2104_v40 = vpop.f32.mrf.mxu2  ;;  %v2309_v41 = vpop.f32.mrf.mxu3 }
  0xf2   :  { %v2650_v42 = vmax.f32 %v2104_v40, 0.0  ;;  %v1696_v43 = vpop.f32.mrf.mxu0  ;;  %v1901_v44 = vpop.f32.mrf.mxu1  ;;  %v2732_v47 = vmax.f32 %v2309_v41, 0.0 }
  0xf3   :  { %v2487_v45 = vmax.f32 %v1696_v43, 0.0  ;;  %v2569_v46 = vmax.f32 %v1901_v44, 0.0 }
  0xf4   :  { %2974 = vst [vmem:[%s5762_s2 + $0x580] sm:$0xff] %v2650_v42 }
  0xf5   :  { %2811 = vst [vmem:[%s5762_s2 + $0x68] sm:$0xff] %v2487_v45  ;;  %v3962_v45 = vld [vmem:[%s5761_s0 + $0x90] sm:$0xff] }
  0xf6   :  { %2893 = vst [vmem:[%s5762_s2 + $0x2f8] sm:$0xff] %v2569_v46  ;;  %v4003_v46 = vld [vmem:[%s5761_s0 + $0x1d8] sm:$0xff] }
  0xf7   :  { %3056 = vst [vmem:[%s5762_s2 + $0x810] sm:$0xff] %v2732_v47 }
  0xf9   :  { %v2106_v48 = vpop.f32.mrf.mxu2  ;;  %v2311_v51 = vpop.f32.mrf.mxu3 }
  0xfa   :  { %v2651_v52 = vmax.f32 %v2106_v48, 0.0  ;;  %v1699_v53 = vpop.f32.mrf.mxu0  ;;  %v1904_v54 = vpop.f32.mrf.mxu1  ;;  %v2733_v59 = vmax.f32 %v2311_v51, 0.0  ;;  %v4044_v51 = vld [vmem:[%s5761_s0 + $0x320] sm:$0xff] }
  0xfb   :  { %v2488_v57 = vmax.f32 %v1699_v53, 0.0  ;;  %v2570_v58 = vmax.f32 %v1904_v54, 0.0 }
  0xfc   :  { %2975 = vst [vmem:[%s5762_s2 + $0x588] sm:$0xff] %v2651_v52  ;;  %v4085_v52 = vld [vmem:[%s5761_s0 + $0x468] sm:$0xff] }
  0xfd   :  { %2812 = vst [vmem:[%s5762_s2 + $0x70] sm:$0xff] %v2488_v57  ;;  %3797 = vmatmul.msk.bf16.gmra.mxu0 %vm1161_vm2, %v3959_v49  ;;  %3838 = vmatmul.msk.bf16.gmra.mxu1 %vm1161_vm2, %v4000_v50 }
  0xfe   :  { %2894 = vst [vmem:[%s5762_s2 + $0x300] sm:$0xff] %v2570_v58  ;;  %3879 = vmatmul.msk.bf16.gmra.mxu2 %vm1161_vm2, %v4041_v55  ;;  %3920 = vmatmul.msk.bf16.gmra.mxu3 %vm1161_vm2, %v4082_v56 }
  0xff   :  { %3057 = vst [vmem:[%s5762_s2 + $0x818] sm:$0xff] %v2733_v59 }
 0x101   :  { %v2109_v60 = vpop.f32.mrf.mxu2  ;;  %v2314_v61 = vpop.f32.mrf.mxu3 }
 0x102   :  { %v2652_v62 = vmax.f32 %v2109_v60, 0.0  ;;  %v1701_v63 = vpop.f32.mrf.mxu0  ;;  %v1906_v0 = vpop.f32.mrf.mxu1  ;;  %v2734_v3 = vmax.f32 %v2314_v61, 0.0 }
 0x103   :  { %v2489_v1 = vmax.f32 %v1701_v63, 0.0  ;;  %v2571_v2 = vmax.f32 %v1906_v0, 0.0 }
 0x104   :  { %2976 = vst [vmem:[%s5762_s2 + $0x590] sm:$0xff] %v2652_v62 }
 0x105   :  { %2813 = vst [vmem:[%s5762_s2 + $0x78] sm:$0xff] %v2489_v1  ;;  %v3963_v1 = vld [vmem:[%s5761_s0 + $0x98] sm:$0xff] }
 0x106   :  { %2895 = vst [vmem:[%s5762_s2 + $0x308] sm:$0xff] %v2571_v2  ;;  %v4004_v2 = vld [vmem:[%s5761_s0 + $0x1e0] sm:$0xff] }
 0x107   :  { %3058 = vst [vmem:[%s5762_s2 + $0x820] sm:$0xff] %v2734_v3 }
 0x109   :  { %v2111_v4 = vpop.f32.mrf.mxu2  ;;  %v2316_v7 = vpop.f32.mrf.mxu3 }
 0x10a   :  { %v2653_v8 = vmax.f32 %v2111_v4, 0.0  ;;  %v1704_v9 = vpop.f32.mrf.mxu0  ;;  %v1909_v10 = vpop.f32.mrf.mxu1  ;;  %v2735_v15 = vmax.f32 %v2316_v7, 0.0  ;;  %v4045_v7 = vld [vmem:[%s5761_s0 + $0x328] sm:$0xff] }
 0x10b   :  { %v2490_v13 = vmax.f32 %v1704_v9, 0.0  ;;  %v2572_v14 = vmax.f32 %v1909_v10, 0.0 }
 0x10c   :  { %2977 = vst [vmem:[%s5762_s2 + $0x598] sm:$0xff] %v2653_v8  ;;  %v4086_v8 = vld [vmem:[%s5761_s0 + $0x470] sm:$0xff] }
 0x10d   :  { %2814 = vst [vmem:[%s5762_s2 + $0x80] sm:$0xff] %v2490_v13  ;;  %3798 = vmatmul.msk.bf16.gmra.mxu0 %vm1161_vm2, %v3960_v5  ;;  %3839 = vmatmul.msk.bf16.gmra.mxu1 %vm1161_vm2, %v4001_v6 }
 0x10e   :  { %2896 = vst [vmem:[%s5762_s2 + $0x310] sm:$0xff] %v2572_v14  ;;  %3880 = vmatmul.msk.bf16.gmra.mxu2 %vm1161_vm2, %v4042_v11  ;;  %3921 = vmatmul.msk.bf16.gmra.mxu3 %vm1161_vm2, %v4083_v12 }
 0x10f   :  { %3059 = vst [vmem:[%s5762_s2 + $0x828] sm:$0xff] %v2735_v15 }
 0x111   :  { %v2114_v16 = vpop.f32.mrf.mxu2  ;;  %v2319_v17 = vpop.f32.mrf.mxu3 }
 0x112   :  { %v2654_v18 = vmax.f32 %v2114_v16, 0.0  ;;  %v1706_v19 = vpop.f32.mrf.mxu0  ;;  %v1911_v20 = vpop.f32.mrf.mxu1  ;;  %v2736_v23 = vmax.f32 %v2319_v17, 0.0 }
 0x113   :  { %v2491_v21 = vmax.f32 %v1706_v19, 0.0  ;;  %v2573_v22 = vmax.f32 %v1911_v20, 0.0 }
 0x114   :  { %2978 = vst [vmem:[%s5762_s2 + $0x5a0] sm:$0xff] %v2654_v18 }
 0x115   :  { %2815 = vst [vmem:[%s5762_s2 + $0x88] sm:$0xff] %v2491_v21  ;;  %v3964_v21 = vld [vmem:[%s5761_s0 + $0xa0] sm:$0xff] }
 0x116   :  { %2897 = vst [vmem:[%s5762_s2 + $0x318] sm:$0xff] %v2573_v22  ;;  %v4005_v22 = vld [vmem:[%s5761_s0 + $0x1e8] sm:$0xff] }
 0x117   :  { %3060 = vst [vmem:[%s5762_s2 + $0x830] sm:$0xff] %v2736_v23 }
 0x119   :  { %v2116_v24 = vpop.f32.mrf.mxu2  ;;  %v2321_v27 = vpop.f32.mrf.mxu3 }
 0x11a   :  { %v2655_v28 = vmax.f32 %v2116_v24, 0.0  ;;  %v1709_v29 = vpop.f32.mrf.mxu0  ;;  %v1914_v30 = vpop.f32.mrf.mxu1  ;;  %v2737_v35 = vmax.f32 %v2321_v27, 0.0  ;;  %v4046_v27 = vld [vmem:[%s5761_s0 + $0x330] sm:$0xff] }
 0x11b   :  { %v2492_v33 = vmax.f32 %v1709_v29, 0.0  ;;  %v2574_v34 = vmax.f32 %v1914_v30, 0.0 }
 0x11c   :  { %2979 = vst [vmem:[%s5762_s2 + $0x5a8] sm:$0xff] %v2655_v28  ;;  %v4087_v28 = vld [vmem:[%s5761_s0 + $0x478] sm:$0xff] }
 0x11d   :  { %2816 = vst [vmem:[%s5762_s2 + $0x90] sm:$0xff] %v2492_v33  ;;  %3799 = vmatmul.msk.bf16.gmra.mxu0 %vm1161_vm2, %v3961_v25  ;;  %3840 = vmatmul.msk.bf16.gmra.mxu1 %vm1161_vm2, %v4002_v26 }
 0x11e   :  { %2898 = vst [vmem:[%s5762_s2 + $0x320] sm:$0xff] %v2574_v34  ;;  %3881 = vmatmul.msk.bf16.gmra.mxu2 %vm1161_vm2, %v4043_v31  ;;  %3922 = vmatmul.msk.bf16.gmra.mxu3 %vm1161_vm2, %v4084_v32 }
 0x11f   :  { %3061 = vst [vmem:[%s5762_s2 + $0x838] sm:$0xff] %v2737_v35 }
 0x121   :  { %v2119_v36 = vpop.f32.mrf.mxu2  ;;  %v2324_v37 = vpop.f32.mrf.mxu3 }
 0x122   :  { %v2656_v38 = vmax.f32 %v2119_v36, 0.0  ;;  %v1711_v39 = vpop.f32.mrf.mxu0  ;;  %v1916_v40 = vpop.f32.mrf.mxu1  ;;  %v2738_v43 = vmax.f32 %v2324_v37, 0.0 }
 0x123   :  { %v2493_v41 = vmax.f32 %v1711_v39, 0.0  ;;  %v2575_v42 = vmax.f32 %v1916_v40, 0.0 }
 0x124   :  { %2980 = vst [vmem:[%s5762_s2 + $0x5b0] sm:$0xff] %v2656_v38 }
 0x125   :  { %2817 = vst [vmem:[%s5762_s2 + $0x98] sm:$0xff] %v2493_v41  ;;  %v3965_v41 = vld [vmem:[%s5761_s0 + $0xa8] sm:$0xff] }
 0x126   :  { %2899 = vst [vmem:[%s5762_s2 + $0x328] sm:$0xff] %v2575_v42  ;;  %v4006_v42 = vld [vmem:[%s5761_s0 + $0x1f0] sm:$0xff] }
 0x127   :  { %3062 = vst [vmem:[%s5762_s2 + $0x840] sm:$0xff] %v2738_v43 }
 0x129   :  { %v2121_v44 = vpop.f32.mrf.mxu2  ;;  %v2326_v47 = vpop.f32.mrf.mxu3 }
 0x12a   :  { %v2657_v48 = vmax.f32 %v2121_v44, 0.0  ;;  %v1714_v49 = vpop.f32.mrf.mxu0  ;;  %v1919_v50 = vpop.f32.mrf.mxu1  ;;  %v2739_v55 = vmax.f32 %v2326_v47, 0.0  ;;  %v4047_v47 = vld [vmem:[%s5761_s0 + $0x338] sm:$0xff] }
 0x12b   :  { %v2494_v53 = vmax.f32 %v1714_v49, 0.0  ;;  %v2576_v54 = vmax.f32 %v1919_v50, 0.0 }
 0x12c   :  { %2981 = vst [vmem:[%s5762_s2 + $0x5b8] sm:$0xff] %v2657_v48  ;;  %v4088_v48 = vld [vmem:[%s5761_s0 + $0x480] sm:$0xff] }
 0x12d   :  { %2818 = vst [vmem:[%s5762_s2 + $0xa0] sm:$0xff] %v2494_v53  ;;  %3800 = vmatmul.msk.bf16.gmra.mxu0 %vm1161_vm2, %v3962_v45  ;;  %3841 = vmatmul.msk.bf16.gmra.mxu1 %vm1161_vm2, %v4003_v46 }
 0x12e   :  { %2900 = vst [vmem:[%s5762_s2 + $0x330] sm:$0xff] %v2576_v54  ;;  %3882 = vmatmul.msk.bf16.gmra.mxu2 %vm1161_vm2, %v4044_v51  ;;  %3923 = vmatmul.msk.bf16.gmra.mxu3 %vm1161_vm2, %v4085_v52 }
 0x12f   :  { %3063 = vst [vmem:[%s5762_s2 + $0x848] sm:$0xff] %v2739_v55 }
 0x131   :  { %v2124_v56 = vpop.f32.mrf.mxu2  ;;  %v2329_v57 = vpop.f32.mrf.mxu3 }
 0x132   :  { %v2658_v58 = vmax.f32 %v2124_v56, 0.0  ;;  %v1716_v59 = vpop.f32.mrf.mxu0  ;;  %v1921_v60 = vpop.f32.mrf.mxu1  ;;  %v2740_v63 = vmax.f32 %v2329_v57, 0.0 }
 0x133   :  { %v2495_v61 = vmax.f32 %v1716_v59, 0.0  ;;  %v2577_v62 = vmax.f32 %v1921_v60, 0.0 }
 0x134   :  { %2982 = vst [vmem:[%s5762_s2 + $0x5c0] sm:$0xff] %v2658_v58 }
 0x135   :  { %2819 = vst [vmem:[%s5762_s2 + $0xa8] sm:$0xff] %v2495_v61  ;;  %v3966_v61 = vld [vmem:[%s5761_s0 + $0xb0] sm:$0xff] }
 0x136   :  { %2901 = vst [vmem:[%s5762_s2 + $0x338] sm:$0xff] %v2577_v62  ;;  %v4007_v62 = vld [vmem:[%s5761_s0 + $0x1f8] sm:$0xff] }
 0x137   :  { %3064 = vst [vmem:[%s5762_s2 + $0x850] sm:$0xff] %v2740_v63 }
 0x139   :  { %v2126_v0 = vpop.f32.mrf.mxu2  ;;  %v2331_v3 = vpop.f32.mrf.mxu3 }
 0x13a   :  { %v2659_v4 = vmax.f32 %v2126_v0, 0.0  ;;  %v1719_v5 = vpop.f32.mrf.mxu0  ;;  %v1924_v6 = vpop.f32.mrf.mxu1  ;;  %v2741_v11 = vmax.f32 %v2331_v3, 0.0  ;;  %v4048_v3 = vld [vmem:[%s5761_s0 + $0x340] sm:$0xff] }
 0x13b   :  { %v2496_v9 = vmax.f32 %v1719_v5, 0.0  ;;  %v2578_v10 = vmax.f32 %v1924_v6, 0.0 }
 0x13c   :  { %2983 = vst [vmem:[%s5762_s2 + $0x5c8] sm:$0xff] %v2659_v4  ;;  %v4089_v4 = vld [vmem:[%s5761_s0 + $0x488] sm:$0xff] }
 0x13d   :  { %2820 = vst [vmem:[%s5762_s2 + $0xb0] sm:$0xff] %v2496_v9  ;;  %3801 = vmatmul.msk.bf16.gmra.mxu0 %vm1161_vm2, %v3963_v1  ;;  %3842 = vmatmul.msk.bf16.gmra.mxu1 %vm1161_vm2, %v4004_v2 }
 0x13e   :  { %2902 = vst [vmem:[%s5762_s2 + $0x340] sm:$0xff] %v2578_v10  ;;  %3883 = vmatmul.msk.bf16.gmra.mxu2 %vm1161_vm2, %v4045_v7  ;;  %3924 = vmatmul.msk.bf16.gmra.mxu3 %vm1161_vm2, %v4086_v8 }
 0x13f   :  { %3065 = vst [vmem:[%s5762_s2 + $0x858] sm:$0xff] %v2741_v11 }
 0x141   :  { %v2129_v12 = vpop.f32.mrf.mxu2  ;;  %v2334_v13 = vpop.f32.mrf.mxu3 }
 0x142   :  { %v2660_v14 = vmax.f32 %v2129_v12, 0.0  ;;  %v1721_v15 = vpop.f32.mrf.mxu0  ;;  %v1926_v16 = vpop.f32.mrf.mxu1  ;;  %v2742_v19 = vmax.f32 %v2334_v13, 0.0 }
 0x143   :  { %v2497_v17 = vmax.f32 %v1721_v15, 0.0  ;;  %v2579_v18 = vmax.f32 %v1926_v16, 0.0 }
 0x144   :  { %2984 = vst [vmem:[%s5762_s2 + $0x5d0] sm:$0xff] %v2660_v14 }
 0x145   :  { %2821 = vst [vmem:[%s5762_s2 + $0xb8] sm:$0xff] %v2497_v17  ;;  %v3967_v17 = vld [vmem:[%s5761_s0 + $0xb8] sm:$0xff] }
 0x146   :  { %2903 = vst [vmem:[%s5762_s2 + $0x348] sm:$0xff] %v2579_v18  ;;  %v4008_v18 = vld [vmem:[%s5761_s0 + $0x200] sm:$0xff] }
 0x147   :  { %3066 = vst [vmem:[%s5762_s2 + $0x860] sm:$0xff] %v2742_v19 }
 0x149   :  { %v2131_v20 = vpop.f32.mrf.mxu2  ;;  %v2336_v23 = vpop.f32.mrf.mxu3 }
 0x14a   :  { %v2661_v24 = vmax.f32 %v2131_v20, 0.0  ;;  %v1724_v25 = vpop.f32.mrf.mxu0  ;;  %v1929_v26 = vpop.f32.mrf.mxu1  ;;  %v2743_v31 = vmax.f32 %v2336_v23, 0.0  ;;  %v4049_v23 = vld [vmem:[%s5761_s0 + $0x348] sm:$0xff] }
 0x14b   :  { %v2498_v29 = vmax.f32 %v1724_v25, 0.0  ;;  %v2580_v30 = vmax.f32 %v1929_v26, 0.0 }
 0x14c   :  { %2985 = vst [vmem:[%s5762_s2 + $0x5d8] sm:$0xff] %v2661_v24  ;;  %v4090_v24 = vld [vmem:[%s5761_s0 + $0x490] sm:$0xff] }
 0x14d   :  { %2822 = vst [vmem:[%s5762_s2 + $0xc0] sm:$0xff] %v2498_v29  ;;  %3802 = vmatmul.msk.bf16.gmra.mxu0 %vm1161_vm2, %v3964_v21  ;;  %3843 = vmatmul.msk.bf16.gmra.mxu1 %vm1161_vm2, %v4005_v22 }
 0x14e   :  { %2904 = vst [vmem:[%s5762_s2 + $0x350] sm:$0xff] %v2580_v30  ;;  %3884 = vmatmul.msk.bf16.gmra.mxu2 %vm1161_vm2, %v4046_v27  ;;  %3925 = vmatmul.msk.bf16.gmra.mxu3 %vm1161_vm2, %v4087_v28 }
 0x14f   :  { %3067 = vst [vmem:[%s5762_s2 + $0x868] sm:$0xff] %v2743_v31 }
 0x151   :  { %v2134_v32 = vpop.f32.mrf.mxu2  ;;  %v2339_v33 = vpop.f32.mrf.mxu3 }
 0x152   :  { %v2662_v34 = vmax.f32 %v2134_v32, 0.0  ;;  %v1726_v35 = vpop.f32.mrf.mxu0  ;;  %v1931_v36 = vpop.f32.mrf.mxu1  ;;  %v2744_v39 = vmax.f32 %v2339_v33, 0.0 }
 0x153   :  { %v2499_v37 = vmax.f32 %v1726_v35, 0.0  ;;  %v2581_v38 = vmax.f32 %v1931_v36, 0.0 }
 0x154   :  { %2986 = vst [vmem:[%s5762_s2 + $0x5e0] sm:$0xff] %v2662_v34 }
 0x155   :  { %2823 = vst [vmem:[%s5762_s2 + $0xc8] sm:$0xff] %v2499_v37  ;;  %v3968_v37 = vld [vmem:[%s5761_s0 + $0xc0] sm:$0xff] }
 0x156   :  { %2905 = vst [vmem:[%s5762_s2 + $0x358] sm:$0xff] %v2581_v38  ;;  %v4009_v38 = vld [vmem:[%s5761_s0 + $0x208] sm:$0xff] }
 0x157   :  { %3068 = vst [vmem:[%s5762_s2 + $0x870] sm:$0xff] %v2744_v39 }
 0x159   :  { %v2136_v40 = vpop.f32.mrf.mxu2  ;;  %v2341_v43 = vpop.f32.mrf.mxu3 }
 0x15a   :  { %v2663_v44 = vmax.f32 %v2136_v40, 0.0  ;;  %v1729_v45 = vpop.f32.mrf.mxu0  ;;  %v1934_v46 = vpop.f32.mrf.mxu1  ;;  %v2745_v51 = vmax.f32 %v2341_v43, 0.0  ;;  %v4050_v43 = vld [vmem:[%s5761_s0 + $0x350] sm:$0xff] }
 0x15b   :  { %v2500_v49 = vmax.f32 %v1729_v45, 0.0  ;;  %v2582_v50 = vmax.f32 %v1934_v46, 0.0 }
 0x15c   :  { %2987 = vst [vmem:[%s5762_s2 + $0x5e8] sm:$0xff] %v2663_v44  ;;  %v4091_v44 = vld [vmem:[%s5761_s0 + $0x498] sm:$0xff] }
 0x15d   :  { %2824 = vst [vmem:[%s5762_s2 + $0xd0] sm:$0xff] %v2500_v49  ;;  %3803 = vmatmul.msk.bf16.gmra.mxu0 %vm1161_vm2, %v3965_v41  ;;  %3844 = vmatmul.msk.bf16.gmra.mxu1 %vm1161_vm2, %v4006_v42 }
 0x15e   :  { %2906 = vst [vmem:[%s5762_s2 + $0x360] sm:$0xff] %v2582_v50  ;;  %3885 = vmatmul.msk.bf16.gmra.mxu2 %vm1161_vm2, %v4047_v47  ;;  %3926 = vmatmul.msk.bf16.gmra.mxu3 %vm1161_vm2, %v4088_v48 }
 0x15f   :  { %3069 = vst [vmem:[%s5762_s2 + $0x878] sm:$0xff] %v2745_v51 }
 0x161   :  { %v2139_v52 = vpop.f32.mrf.mxu2  ;;  %v2344_v53 = vpop.f32.mrf.mxu3 }
 0x162   :  { %v2664_v54 = vmax.f32 %v2139_v52, 0.0  ;;  %v1731_v55 = vpop.f32.mrf.mxu0  ;;  %v1936_v56 = vpop.f32.mrf.mxu1  ;;  %v2746_v59 = vmax.f32 %v2344_v53, 0.0 }
 0x163   :  { %v2501_v57 = vmax.f32 %v1731_v55, 0.0  ;;  %v2583_v58 = vmax.f32 %v1936_v56, 0.0 }
 0x164   :  { %2988 = vst [vmem:[%s5762_s2 + $0x5f0] sm:$0xff] %v2664_v54 }
 0x165   :  { %2825 = vst [vmem:[%s5762_s2 + $0xd8] sm:$0xff] %v2501_v57  ;;  %v3969_v57 = vld [vmem:[%s5761_s0 + $0xc8] sm:$0xff] }
 0x166   :  { %2907 = vst [vmem:[%s5762_s2 + $0x368] sm:$0xff] %v2583_v58  ;;  %v4010_v58 = vld [vmem:[%s5761_s0 + $0x210] sm:$0xff] }
 0x167   :  { %3070 = vst [vmem:[%s5762_s2 + $0x880] sm:$0xff] %v2746_v59 }
 0x169   :  { %v2141_v60 = vpop.f32.mrf.mxu2  ;;  %v2346_v63 = vpop.f32.mrf.mxu3 }
 0x16a   :  { %v2665_v0 = vmax.f32 %v2141_v60, 0.0  ;;  %v1734_v1 = vpop.f32.mrf.mxu0  ;;  %v1939_v2 = vpop.f32.mrf.mxu1  ;;  %v2747_v7 = vmax.f32 %v2346_v63, 0.0  ;;  %v4051_v63 = vld [vmem:[%s5761_s0 + $0x358] sm:$0xff] }
 0x16b   :  { %v2502_v5 = vmax.f32 %v1734_v1, 0.0  ;;  %v2584_v6 = vmax.f32 %v1939_v2, 0.0 }
 0x16c   :  { %2989 = vst [vmem:[%s5762_s2 + $0x5f8] sm:$0xff] %v2665_v0  ;;  %v4092_v0 = vld [vmem:[%s5761_s0 + $0x4a0] sm:$0xff] }
 0x16d   :  { %2826 = vst [vmem:[%s5762_s2 + $0xe0] sm:$0xff] %v2502_v5  ;;  %3804 = vmatmul.msk.bf16.gmra.mxu0 %vm1161_vm2, %v3966_v61  ;;  %3845 = vmatmul.msk.bf16.gmra.mxu1 %vm1161_vm2, %v4007_v62 }
 0x16e   :  { %2908 = vst [vmem:[%s5762_s2 + $0x370] sm:$0xff] %v2584_v6  ;;  %3886 = vmatmul.msk.bf16.gmra.mxu2 %vm1161_vm2, %v4048_v3  ;;  %3927 = vmatmul.msk.bf16.gmra.mxu3 %vm1161_vm2, %v4089_v4 }
 0x16f   :  { %3071 = vst [vmem:[%s5762_s2 + $0x888] sm:$0xff] %v2747_v7 }
 0x171   :  { %v2144_v8 = vpop.f32.mrf.mxu2  ;;  %v2349_v9 = vpop.f32.mrf.mxu3 }
 0x172   :  { %v2666_v10 = vmax.f32 %v2144_v8, 0.0  ;;  %v1736_v11 = vpop.f32.mrf.mxu0  ;;  %v1941_v12 = vpop.f32.mrf.mxu1  ;;  %v2748_v15 = vmax.f32 %v2349_v9, 0.0 }
 0x173   :  { %v2503_v13 = vmax.f32 %v1736_v11, 0.0  ;;  %v2585_v14 = vmax.f32 %v1941_v12, 0.0 }
 0x174   :  { %2990 = vst [vmem:[%s5762_s2 + $0x600] sm:$0xff] %v2666_v10 }
 0x175   :  { %2827 = vst [vmem:[%s5762_s2 + $0xe8] sm:$0xff] %v2503_v13  ;;  %v3970_v13 = vld [vmem:[%s5761_s0 + $0xd0] sm:$0xff] }
 0x176   :  { %2909 = vst [vmem:[%s5762_s2 + $0x378] sm:$0xff] %v2585_v14  ;;  %v4011_v14 = vld [vmem:[%s5761_s0 + $0x218] sm:$0xff] }
 0x177   :  { %3072 = vst [vmem:[%s5762_s2 + $0x890] sm:$0xff] %v2748_v15 }
 0x179   :  { %v2146_v16 = vpop.f32.mrf.mxu2  ;;  %v2351_v19 = vpop.f32.mrf.mxu3 }
 0x17a   :  { %v2667_v20 = vmax.f32 %v2146_v16, 0.0  ;;  %v1739_v21 = vpop.f32.mrf.mxu0  ;;  %v1944_v22 = vpop.f32.mrf.mxu1  ;;  %v2749_v27 = vmax.f32 %v2351_v19, 0.0  ;;  %v4052_v19 = vld [vmem:[%s5761_s0 + $0x360] sm:$0xff] }
 0x17b   :  { %v2504_v25 = vmax.f32 %v1739_v21, 0.0  ;;  %v2586_v26 = vmax.f32 %v1944_v22, 0.0 }
 0x17c   :  { %2991 = vst [vmem:[%s5762_s2 + $0x608] sm:$0xff] %v2667_v20  ;;  %v4093_v20 = vld [vmem:[%s5761_s0 + $0x4a8] sm:$0xff] }
 0x17d   :  { %2828 = vst [vmem:[%s5762_s2 + $0xf0] sm:$0xff] %v2504_v25  ;;  %3805 = vmatmul.msk.bf16.gmra.mxu0 %vm1161_vm2, %v3967_v17  ;;  %3846 = vmatmul.msk.bf16.gmra.mxu1 %vm1161_vm2, %v4008_v18 }
 0x17e   :  { %2910 = vst [vmem:[%s5762_s2 + $0x380] sm:$0xff] %v2586_v26  ;;  %3887 = vmatmul.msk.bf16.gmra.mxu2 %vm1161_vm2, %v4049_v23  ;;  %3928 = vmatmul.msk.bf16.gmra.mxu3 %vm1161_vm2, %v4090_v24 }
 0x17f   :  { %3073 = vst [vmem:[%s5762_s2 + $0x898] sm:$0xff] %v2749_v27 }
 0x181   :  { %v2149_v28 = vpop.f32.mrf.mxu2  ;;  %v2354_v29 = vpop.f32.mrf.mxu3 }
 0x182   :  { %v2668_v30 = vmax.f32 %v2149_v28, 0.0  ;;  %v1741_v31 = vpop.f32.mrf.mxu0  ;;  %v1946_v32 = vpop.f32.mrf.mxu1  ;;  %v2750_v35 = vmax.f32 %v2354_v29, 0.0 }
 0x183   :  { %v2505_v33 = vmax.f32 %v1741_v31, 0.0  ;;  %v2587_v34 = vmax.f32 %v1946_v32, 0.0 }
 0x184   :  { %2992 = vst [vmem:[%s5762_s2 + $0x610] sm:$0xff] %v2668_v30 }
 0x185   :  { %2829 = vst [vmem:[%s5762_s2 + $0xf8] sm:$0xff] %v2505_v33  ;;  %v3971_v33 = vld [vmem:[%s5761_s0 + $0xd8] sm:$0xff] }
 0x186   :  { %2911 = vst [vmem:[%s5762_s2 + $0x388] sm:$0xff] %v2587_v34  ;;  %v4012_v34 = vld [vmem:[%s5761_s0 + $0x220] sm:$0xff] }
 0x187   :  { %3074 = vst [vmem:[%s5762_s2 + $0x8a0] sm:$0xff] %v2750_v35 }
 0x189   :  { %v2151_v36 = vpop.f32.mrf.mxu2  ;;  %v2356_v39 = vpop.f32.mrf.mxu3 }
 0x18a   :  { %v2669_v40 = vmax.f32 %v2151_v36, 0.0  ;;  %v1744_v41 = vpop.f32.mrf.mxu0  ;;  %v1949_v42 = vpop.f32.mrf.mxu1  ;;  %v2751_v47 = vmax.f32 %v2356_v39, 0.0  ;;  %v4053_v39 = vld [vmem:[%s5761_s0 + $0x368] sm:$0xff] }
 0x18b   :  { %v2506_v45 = vmax.f32 %v1744_v41, 0.0  ;;  %v2588_v46 = vmax.f32 %v1949_v42, 0.0 }
 0x18c   :  { %2993 = vst [vmem:[%s5762_s2 + $0x618] sm:$0xff] %v2669_v40  ;;  %v4094_v40 = vld [vmem:[%s5761_s0 + $0x4b0] sm:$0xff] }
 0x18d   :  { %2830 = vst [vmem:[%s5762_s2 + $0x100] sm:$0xff] %v2506_v45  ;;  %3806 = vmatmul.msk.bf16.gmra.mxu0 %vm1161_vm2, %v3968_v37  ;;  %3847 = vmatmul.msk.bf16.gmra.mxu1 %vm1161_vm2, %v4009_v38 }
 0x18e   :  { %2912 = vst [vmem:[%s5762_s2 + $0x390] sm:$0xff] %v2588_v46  ;;  %3888 = vmatmul.msk.bf16.gmra.mxu2 %vm1161_vm2, %v4050_v43  ;;  %3929 = vmatmul.msk.bf16.gmra.mxu3 %vm1161_vm2, %v4091_v44 }
 0x18f   :  { %3075 = vst [vmem:[%s5762_s2 + $0x8a8] sm:$0xff] %v2751_v47 }
 0x191   :  { %v2154_v48 = vpop.f32.mrf.mxu2  ;;  %v2359_v49 = vpop.f32.mrf.mxu3 }
 0x192   :  { %v2670_v50 = vmax.f32 %v2154_v48, 0.0  ;;  %v1746_v51 = vpop.f32.mrf.mxu0  ;;  %v1951_v52 = vpop.f32.mrf.mxu1  ;;  %v2752_v55 = vmax.f32 %v2359_v49, 0.0 }
 0x193   :  { %v2507_v53 = vmax.f32 %v1746_v51, 0.0  ;;  %v2589_v54 = vmax.f32 %v1951_v52, 0.0 }
 0x194   :  { %2994 = vst [vmem:[%s5762_s2 + $0x620] sm:$0xff] %v2670_v50 }
 0x195   :  { %2831 = vst [vmem:[%s5762_s2 + $0x108] sm:$0xff] %v2507_v53  ;;  %v3972_v53 = vld [vmem:[%s5761_s0 + $0xe0] sm:$0xff] }
 0x196   :  { %2913 = vst [vmem:[%s5762_s2 + $0x398] sm:$0xff] %v2589_v54  ;;  %v4013_v54 = vld [vmem:[%s5761_s0 + $0x228] sm:$0xff] }
 0x197   :  { %3076 = vst [vmem:[%s5762_s2 + $0x8b0] sm:$0xff] %v2752_v55 }
 0x199   :  { %v2156_v56 = vpop.f32.mrf.mxu2  ;;  %v2361_v59 = vpop.f32.mrf.mxu3 }
 0x19a   :  { %v2671_v60 = vmax.f32 %v2156_v56, 0.0  ;;  %v1749_v61 = vpop.f32.mrf.mxu0  ;;  %v1954_v62 = vpop.f32.mrf.mxu1  ;;  %v2753_v3 = vmax.f32 %v2361_v59, 0.0  ;;  %v4054_v59 = vld [vmem:[%s5761_s0 + $0x370] sm:$0xff] }
 0x19b   :  { %v2508_v1 = vmax.f32 %v1749_v61, 0.0  ;;  %v2590_v2 = vmax.f32 %v1954_v62, 0.0 }
 0x19c   :  { %2995 = vst [vmem:[%s5762_s2 + $0x628] sm:$0xff] %v2671_v60  ;;  %v4095_v60 = vld [vmem:[%s5761_s0 + $0x4b8] sm:$0xff] }
 0x19d   :  { %2832 = vst [vmem:[%s5762_s2 + $0x110] sm:$0xff] %v2508_v1  ;;  %3807 = vmatmul.msk.bf16.gmra.mxu0 %vm1161_vm2, %v3969_v57  ;;  %3848 = vmatmul.msk.bf16.gmra.mxu1 %vm1161_vm2, %v4010_v58 }
 0x19e   :  { %2914 = vst [vmem:[%s5762_s2 + $0x3a0] sm:$0xff] %v2590_v2  ;;  %3889 = vmatmul.msk.bf16.gmra.mxu2 %vm1161_vm2, %v4051_v63  ;;  %3930 = vmatmul.msk.bf16.gmra.mxu3 %vm1161_vm2, %v4092_v0 }
 0x19f   :  { %3077 = vst [vmem:[%s5762_s2 + $0x8b8] sm:$0xff] %v2753_v3 }
 0x1a1   :  { %v2159_v4 = vpop.f32.mrf.mxu2  ;;  %v2364_v5 = vpop.f32.mrf.mxu3 }
 0x1a2   :  { %v2672_v6 = vmax.f32 %v2159_v4, 0.0  ;;  %v1751_v7 = vpop.f32.mrf.mxu0  ;;  %v1956_v8 = vpop.f32.mrf.mxu1  ;;  %v2754_v11 = vmax.f32 %v2364_v5, 0.0 }
 0x1a3   :  { %v2509_v9 = vmax.f32 %v1751_v7, 0.0  ;;  %v2591_v10 = vmax.f32 %v1956_v8, 0.0 }
 0x1a4   :  { %2996 = vst [vmem:[%s5762_s2 + $0x630] sm:$0xff] %v2672_v6 }
 0x1a5   :  { %2833 = vst [vmem:[%s5762_s2 + $0x118] sm:$0xff] %v2509_v9  ;;  %v3973_v9 = vld [vmem:[%s5761_s0 + $0xe8] sm:$0xff] }
 0x1a6   :  { %2915 = vst [vmem:[%s5762_s2 + $0x3a8] sm:$0xff] %v2591_v10  ;;  %v4014_v10 = vld [vmem:[%s5761_s0 + $0x230] sm:$0xff] }
 0x1a7   :  { %3078 = vst [vmem:[%s5762_s2 + $0x8c0] sm:$0xff] %v2754_v11 }
 0x1a9   :  { %v2161_v12 = vpop.f32.mrf.mxu2  ;;  %v2366_v15 = vpop.f32.mrf.mxu3 }
 0x1aa   :  { %v2673_v16 = vmax.f32 %v2161_v12, 0.0  ;;  %v1754_v17 = vpop.f32.mrf.mxu0  ;;  %v1959_v18 = vpop.f32.mrf.mxu1  ;;  %v2755_v23 = vmax.f32 %v2366_v15, 0.0  ;;  %v4055_v15 = vld [vmem:[%s5761_s0 + $0x378] sm:$0xff] }
 0x1ab   :  { %v2510_v21 = vmax.f32 %v1754_v17, 0.0  ;;  %v2592_v22 = vmax.f32 %v1959_v18, 0.0 }
 0x1ac   :  { %2997 = vst [vmem:[%s5762_s2 + $0x638] sm:$0xff] %v2673_v16  ;;  %v4096_v16 = vld [vmem:[%s5761_s0 + $0x4c0] sm:$0xff] }
 0x1ad   :  { %2834 = vst [vmem:[%s5762_s2 + $0x120] sm:$0xff] %v2510_v21  ;;  %3808 = vmatmul.msk.bf16.gmra.mxu0 %vm1161_vm2, %v3970_v13  ;;  %3849 = vmatmul.msk.bf16.gmra.mxu1 %vm1161_vm2, %v4011_v14 }
 0x1ae   :  { %2916 = vst [vmem:[%s5762_s2 + $0x3b0] sm:$0xff] %v2592_v22  ;;  %3890 = vmatmul.msk.bf16.gmra.mxu2 %vm1161_vm2, %v4052_v19  ;;  %3931 = vmatmul.msk.bf16.gmra.mxu3 %vm1161_vm2, %v4093_v20 }
 0x1af   :  { %3079 = vst [vmem:[%s5762_s2 + $0x8c8] sm:$0xff] %v2755_v23 }
 0x1b1   :  { %v2164_v24 = vpop.f32.mrf.mxu2  ;;  %v2369_v25 = vpop.f32.mrf.mxu3 }
 0x1b2   :  { %v2674_v26 = vmax.f32 %v2164_v24, 0.0  ;;  %v1756_v27 = vpop.f32.mrf.mxu0  ;;  %v1961_v28 = vpop.f32.mrf.mxu1  ;;  %v2756_v31 = vmax.f32 %v2369_v25, 0.0 }
 0x1b3   :  { %v2511_v29 = vmax.f32 %v1756_v27, 0.0  ;;  %v2593_v30 = vmax.f32 %v1961_v28, 0.0 }
 0x1b4   :  { %2998 = vst [vmem:[%s5762_s2 + $0x640] sm:$0xff] %v2674_v26 }
 0x1b5   :  { %2835 = vst [vmem:[%s5762_s2 + $0x128] sm:$0xff] %v2511_v29  ;;  %v3974_v29 = vld [vmem:[%s5761_s0 + $0xf0] sm:$0xff] }
 0x1b6   :  { %2917 = vst [vmem:[%s5762_s2 + $0x3b8] sm:$0xff] %v2593_v30  ;;  %v4015_v30 = vld [vmem:[%s5761_s0 + $0x238] sm:$0xff] }
 0x1b7   :  { %3080 = vst [vmem:[%s5762_s2 + $0x8d0] sm:$0xff] %v2756_v31 }
 0x1b9   :  { %v2166_v32 = vpop.f32.mrf.mxu2  ;;  %v2371_v35 = vpop.f32.mrf.mxu3 }
 0x1ba   :  { %v2675_v36 = vmax.f32 %v2166_v32, 0.0  ;;  %v1759_v37 = vpop.f32.mrf.mxu0  ;;  %v1964_v38 = vpop.f32.mrf.mxu1  ;;  %v2757_v43 = vmax.f32 %v2371_v35, 0.0  ;;  %v4056_v35 = vld [vmem:[%s5761_s0 + $0x380] sm:$0xff] }
 0x1bb   :  { %v2512_v41 = vmax.f32 %v1759_v37, 0.0  ;;  %v2594_v42 = vmax.f32 %v1964_v38, 0.0 }
 0x1bc   :  { %2999 = vst [vmem:[%s5762_s2 + $0x648] sm:$0xff] %v2675_v36  ;;  %v4097_v36 = vld [vmem:[%s5761_s0 + $0x4c8] sm:$0xff] }
 0x1bd   :  { %2836 = vst [vmem:[%s5762_s2 + $0x130] sm:$0xff] %v2512_v41  ;;  %3809 = vmatmul.msk.bf16.gmra.mxu0 %vm1161_vm2, %v3971_v33  ;;  %3850 = vmatmul.msk.bf16.gmra.mxu1 %vm1161_vm2, %v4012_v34 }
 0x1be   :  { %2918 = vst [vmem:[%s5762_s2 + $0x3c0] sm:$0xff] %v2594_v42  ;;  %3891 = vmatmul.msk.bf16.gmra.mxu2 %vm1161_vm2, %v4053_v39  ;;  %3932 = vmatmul.msk.bf16.gmra.mxu3 %vm1161_vm2, %v4094_v40 }
 0x1bf   :  { %3081 = vst [vmem:[%s5762_s2 + $0x8d8] sm:$0xff] %v2757_v43 }
 0x1c1   :  { %v2169_v44 = vpop.f32.mrf.mxu2  ;;  %v2374_v45 = vpop.f32.mrf.mxu3 }
 0x1c2   :  { %v2676_v46 = vmax.f32 %v2169_v44, 0.0  ;;  %v1761_v47 = vpop.f32.mrf.mxu0  ;;  %v1966_v48 = vpop.f32.mrf.mxu1  ;;  %v2758_v51 = vmax.f32 %v2374_v45, 0.0 }
 0x1c3   :  { %v2513_v49 = vmax.f32 %v1761_v47, 0.0  ;;  %v2595_v50 = vmax.f32 %v1966_v48, 0.0 }
 0x1c4   :  { %3000 = vst [vmem:[%s5762_s2 + $0x650] sm:$0xff] %v2676_v46 }
 0x1c5   :  { %2837 = vst [vmem:[%s5762_s2 + $0x138] sm:$0xff] %v2513_v49  ;;  %v3975_v49 = vld [vmem:[%s5761_s0 + $0xf8] sm:$0xff] }
 0x1c6   :  { %2919 = vst [vmem:[%s5762_s2 + $0x3c8] sm:$0xff] %v2595_v50  ;;  %v4016_v50 = vld [vmem:[%s5761_s0 + $0x240] sm:$0xff] }
 0x1c7   :  { %3082 = vst [vmem:[%s5762_s2 + $0x8e0] sm:$0xff] %v2758_v51 }
 0x1c9   :  { %v2171_v52 = vpop.f32.mrf.mxu2  ;;  %v2376_v55 = vpop.f32.mrf.mxu3 }
 0x1ca   :  { %v2677_v56 = vmax.f32 %v2171_v52, 0.0  ;;  %v1764_v57 = vpop.f32.mrf.mxu0  ;;  %v1969_v58 = vpop.f32.mrf.mxu1  ;;  %v2759_v63 = vmax.f32 %v2376_v55, 0.0  ;;  %v4057_v55 = vld [vmem:[%s5761_s0 + $0x388] sm:$0xff] }
 0x1cb   :  { %v2514_v61 = vmax.f32 %v1764_v57, 0.0  ;;  %v2596_v62 = vmax.f32 %v1969_v58, 0.0 }
 0x1cc   :  { %3001 = vst [vmem:[%s5762_s2 + $0x658] sm:$0xff] %v2677_v56  ;;  %v4098_v56 = vld [vmem:[%s5761_s0 + $0x4d0] sm:$0xff] }
 0x1cd   :  { %2838 = vst [vmem:[%s5762_s2 + $0x140] sm:$0xff] %v2514_v61  ;;  %3810 = vmatmul.msk.bf16.gmra.mxu0 %vm1161_vm2, %v3972_v53  ;;  %3851 = vmatmul.msk.bf16.gmra.mxu1 %vm1161_vm2, %v4013_v54 }
 0x1ce   :  { %2920 = vst [vmem:[%s5762_s2 + $0x3d0] sm:$0xff] %v2596_v62  ;;  %3892 = vmatmul.msk.bf16.gmra.mxu2 %vm1161_vm2, %v4054_v59  ;;  %3933 = vmatmul.msk.bf16.gmra.mxu3 %vm1161_vm2, %v4095_v60 }
 0x1cf   :  { %3083 = vst [vmem:[%s5762_s2 + $0x8e8] sm:$0xff] %v2759_v63 }
 0x1d1   :  { %v2174_v0 = vpop.f32.mrf.mxu2  ;;  %v2379_v1 = vpop.f32.mrf.mxu3 }
 0x1d2   :  { %v2678_v2 = vmax.f32 %v2174_v0, 0.0  ;;  %v1766_v3 = vpop.f32.mrf.mxu0  ;;  %v1971_v4 = vpop.f32.mrf.mxu1  ;;  %v2760_v7 = vmax.f32 %v2379_v1, 0.0 }
 0x1d3   :  { %v2515_v5 = vmax.f32 %v1766_v3, 0.0  ;;  %v2597_v6 = vmax.f32 %v1971_v4, 0.0 }
 0x1d4   :  { %3002 = vst [vmem:[%s5762_s2 + $0x660] sm:$0xff] %v2678_v2 }
 0x1d5   :  { %2839 = vst [vmem:[%s5762_s2 + $0x148] sm:$0xff] %v2515_v5  ;;  %v3976_v5 = vld [vmem:[%s5761_s0 + $0x100] sm:$0xff] }
 0x1d6   :  { %2921 = vst [vmem:[%s5762_s2 + $0x3d8] sm:$0xff] %v2597_v6  ;;  %v4017_v6 = vld [vmem:[%s5761_s0 + $0x248] sm:$0xff] }
 0x1d7   :  { %3084 = vst [vmem:[%s5762_s2 + $0x8f0] sm:$0xff] %v2760_v7 }
 0x1d9   :  { %v2176_v8 = vpop.f32.mrf.mxu2  ;;  %v2381_v11 = vpop.f32.mrf.mxu3 }
 0x1da   :  { %v2679_v12 = vmax.f32 %v2176_v8, 0.0  ;;  %v1769_v13 = vpop.f32.mrf.mxu0  ;;  %v1974_v14 = vpop.f32.mrf.mxu1  ;;  %v2761_v19 = vmax.f32 %v2381_v11, 0.0  ;;  %v4058_v11 = vld [vmem:[%s5761_s0 + $0x390] sm:$0xff] }
 0x1db   :  { %v2516_v17 = vmax.f32 %v1769_v13, 0.0  ;;  %v2598_v18 = vmax.f32 %v1974_v14, 0.0 }
 0x1dc   :  { %3003 = vst [vmem:[%s5762_s2 + $0x668] sm:$0xff] %v2679_v12  ;;  %v4099_v12 = vld [vmem:[%s5761_s0 + $0x4d8] sm:$0xff] }
 0x1dd   :  { %2840 = vst [vmem:[%s5762_s2 + $0x150] sm:$0xff] %v2516_v17  ;;  %3811 = vmatmul.msk.bf16.gmra.mxu0 %vm1161_vm2, %v3973_v9  ;;  %3852 = vmatmul.msk.bf16.gmra.mxu1 %vm1161_vm2, %v4014_v10 }
 0x1de   :  { %2922 = vst [vmem:[%s5762_s2 + $0x3e0] sm:$0xff] %v2598_v18  ;;  %3893 = vmatmul.msk.bf16.gmra.mxu2 %vm1161_vm2, %v4055_v15  ;;  %3934 = vmatmul.msk.bf16.gmra.mxu3 %vm1161_vm2, %v4096_v16 }
 0x1df   :  { %3085 = vst [vmem:[%s5762_s2 + $0x8f8] sm:$0xff] %v2761_v19 }
 0x1e1   :  { %v2179_v20 = vpop.f32.mrf.mxu2  ;;  %v2384_v21 = vpop.f32.mrf.mxu3 }
 0x1e2   :  { %v2680_v22 = vmax.f32 %v2179_v20, 0.0  ;;  %v1771_v23 = vpop.f32.mrf.mxu0  ;;  %v1976_v24 = vpop.f32.mrf.mxu1  ;;  %v2762_v27 = vmax.f32 %v2384_v21, 0.0 }
 0x1e3   :  { %v2517_v25 = vmax.f32 %v1771_v23, 0.0  ;;  %v2599_v26 = vmax.f32 %v1976_v24, 0.0 }
 0x1e4   :  { %3004 = vst [vmem:[%s5762_s2 + $0x670] sm:$0xff] %v2680_v22 }
 0x1e5   :  { %2841 = vst [vmem:[%s5762_s2 + $0x158] sm:$0xff] %v2517_v25  ;;  %v3977_v25 = vld [vmem:[%s5761_s0 + $0x108] sm:$0xff] }
 0x1e6   :  { %2923 = vst [vmem:[%s5762_s2 + $0x3e8] sm:$0xff] %v2599_v26  ;;  %v4018_v26 = vld [vmem:[%s5761_s0 + $0x250] sm:$0xff] }
 0x1e7   :  { %3086 = vst [vmem:[%s5762_s2 + $0x900] sm:$0xff] %v2762_v27 }
 0x1e9   :  { %v2181_v28 = vpop.f32.mrf.mxu2  ;;  %v2386_v31 = vpop.f32.mrf.mxu3 }
 0x1ea   :  { %v2681_v32 = vmax.f32 %v2181_v28, 0.0  ;;  %v1774_v33 = vpop.f32.mrf.mxu0  ;;  %v1979_v34 = vpop.f32.mrf.mxu1  ;;  %v2763_v39 = vmax.f32 %v2386_v31, 0.0  ;;  %v4059_v31 = vld [vmem:[%s5761_s0 + $0x398] sm:$0xff] }
 0x1eb   :  { %v2518_v37 = vmax.f32 %v1774_v33, 0.0  ;;  %v2600_v38 = vmax.f32 %v1979_v34, 0.0 }
 0x1ec   :  { %3005 = vst [vmem:[%s5762_s2 + $0x678] sm:$0xff] %v2681_v32  ;;  %v4100_v32 = vld [vmem:[%s5761_s0 + $0x4e0] sm:$0xff] }
 0x1ed   :  { %2842 = vst [vmem:[%s5762_s2 + $0x160] sm:$0xff] %v2518_v37  ;;  %3812 = vmatmul.msk.bf16.gmra.mxu0 %vm1161_vm2, %v3974_v29  ;;  %3853 = vmatmul.msk.bf16.gmra.mxu1 %vm1161_vm2, %v4015_v30 }
 0x1ee   :  { %2924 = vst [vmem:[%s5762_s2 + $0x3f0] sm:$0xff] %v2600_v38  ;;  %3894 = vmatmul.msk.bf16.gmra.mxu2 %vm1161_vm2, %v4056_v35  ;;  %3935 = vmatmul.msk.bf16.gmra.mxu3 %vm1161_vm2, %v4097_v36 }
 0x1ef   :  { %3087 = vst [vmem:[%s5762_s2 + $0x908] sm:$0xff] %v2763_v39 }
 0x1f1   :  { %v2184_v40 = vpop.f32.mrf.mxu2  ;;  %v2389_v41 = vpop.f32.mrf.mxu3 }
 0x1f2   :  { %v2682_v42 = vmax.f32 %v2184_v40, 0.0  ;;  %v1776_v43 = vpop.f32.mrf.mxu0  ;;  %v1981_v44 = vpop.f32.mrf.mxu1  ;;  %v2764_v47 = vmax.f32 %v2389_v41, 0.0 }
 0x1f3   :  { %v2519_v45 = vmax.f32 %v1776_v43, 0.0  ;;  %v2601_v46 = vmax.f32 %v1981_v44, 0.0 }
 0x1f4   :  { %3006 = vst [vmem:[%s5762_s2 + $0x680] sm:$0xff] %v2682_v42 }
 0x1f5   :  { %2843 = vst [vmem:[%s5762_s2 + $0x168] sm:$0xff] %v2519_v45  ;;  %v3978_v45 = vld [vmem:[%s5761_s0 + $0x110] sm:$0xff] }
 0x1f6   :  { %2925 = vst [vmem:[%s5762_s2 + $0x3f8] sm:$0xff] %v2601_v46  ;;  %v4019_v46 = vld [vmem:[%s5761_s0 + $0x258] sm:$0xff] }
 0x1f7   :  { %3088 = vst [vmem:[%s5762_s2 + $0x910] sm:$0xff] %v2764_v47 }
 0x1f9   :  { %v2186_v48 = vpop.f32.mrf.mxu2  ;;  %v2391_v51 = vpop.f32.mrf.mxu3 }
 0x1fa   :  { %v2683_v52 = vmax.f32 %v2186_v48, 0.0  ;;  %v1779_v53 = vpop.f32.mrf.mxu0  ;;  %v1984_v54 = vpop.f32.mrf.mxu1  ;;  %v2765_v59 = vmax.f32 %v2391_v51, 0.0  ;;  %v4060_v51 = vld [vmem:[%s5761_s0 + $0x3a0] sm:$0xff] }
 0x1fb   :  { %v2520_v57 = vmax.f32 %v1779_v53, 0.0  ;;  %v2602_v58 = vmax.f32 %v1984_v54, 0.0 }
 0x1fc   :  { %3007 = vst [vmem:[%s5762_s2 + $0x688] sm:$0xff] %v2683_v52  ;;  %v4101_v52 = vld [vmem:[%s5761_s0 + $0x4e8] sm:$0xff] }
 0x1fd   :  { %2844 = vst [vmem:[%s5762_s2 + $0x170] sm:$0xff] %v2520_v57  ;;  %3813 = vmatmul.msk.bf16.gmra.mxu0 %vm1161_vm2, %v3975_v49  ;;  %3854 = vmatmul.msk.bf16.gmra.mxu1 %vm1161_vm2, %v4016_v50 }
 0x1fe   :  { %2926 = vst [vmem:[%s5762_s2 + $0x400] sm:$0xff] %v2602_v58  ;;  %3895 = vmatmul.msk.bf16.gmra.mxu2 %vm1161_vm2, %v4057_v55  ;;  %3936 = vmatmul.msk.bf16.gmra.mxu3 %vm1161_vm2, %v4098_v56 }
 0x1ff   :  { %3089 = vst [vmem:[%s5762_s2 + $0x918] sm:$0xff] %v2765_v59 }
 0x201   :  { %v2189_v60 = vpop.f32.mrf.mxu2  ;;  %v2394_v61 = vpop.f32.mrf.mxu3 }
 0x202   :  { %v2684_v62 = vmax.f32 %v2189_v60, 0.0  ;;  %v1781_v63 = vpop.f32.mrf.mxu0  ;;  %v1986_v0 = vpop.f32.mrf.mxu1  ;;  %v2766_v3 = vmax.f32 %v2394_v61, 0.0 }
 0x203   :  { %v2521_v1 = vmax.f32 %v1781_v63, 0.0  ;;  %v2603_v2 = vmax.f32 %v1986_v0, 0.0 }
 0x204   :  { %3008 = vst [vmem:[%s5762_s2 + $0x690] sm:$0xff] %v2684_v62 }
 0x205   :  { %2845 = vst [vmem:[%s5762_s2 + $0x178] sm:$0xff] %v2521_v1  ;;  %v3979_v1 = vld [vmem:[%s5761_s0 + $0x118] sm:$0xff] }
 0x206   :  { %2927 = vst [vmem:[%s5762_s2 + $0x408] sm:$0xff] %v2603_v2  ;;  %v4020_v2 = vld [vmem:[%s5761_s0 + $0x260] sm:$0xff] }
 0x207   :  { %3090 = vst [vmem:[%s5762_s2 + $0x920] sm:$0xff] %v2766_v3 }
 0x209   :  { %v2191_v4 = vpop.f32.mrf.mxu2  ;;  %v2396_v7 = vpop.f32.mrf.mxu3 }
 0x20a   :  { %v2685_v8 = vmax.f32 %v2191_v4, 0.0  ;;  %v1784_v9 = vpop.f32.mrf.mxu0  ;;  %v1989_v10 = vpop.f32.mrf.mxu1  ;;  %v2767_v15 = vmax.f32 %v2396_v7, 0.0  ;;  %v4061_v7 = vld [vmem:[%s5761_s0 + $0x3a8] sm:$0xff] }
 0x20b   :  { %v2522_v13 = vmax.f32 %v1784_v9, 0.0  ;;  %v2604_v14 = vmax.f32 %v1989_v10, 0.0 }
 0x20c   :  { %3009 = vst [vmem:[%s5762_s2 + $0x698] sm:$0xff] %v2685_v8  ;;  %v4102_v8 = vld [vmem:[%s5761_s0 + $0x4f0] sm:$0xff] }
 0x20d   :  { %2846 = vst [vmem:[%s5762_s2 + $0x180] sm:$0xff] %v2522_v13  ;;  %3814 = vmatmul.msk.bf16.gmra.mxu0 %vm1161_vm2, %v3976_v5  ;;  %3855 = vmatmul.msk.bf16.gmra.mxu1 %vm1161_vm2, %v4017_v6 }
 0x20e   :  { %2928 = vst [vmem:[%s5762_s2 + $0x410] sm:$0xff] %v2604_v14  ;;  %3896 = vmatmul.msk.bf16.gmra.mxu2 %vm1161_vm2, %v4058_v11  ;;  %3937 = vmatmul.msk.bf16.gmra.mxu3 %vm1161_vm2, %v4099_v12 }
 0x20f   :  { %3091 = vst [vmem:[%s5762_s2 + $0x928] sm:$0xff] %v2767_v15 }
 0x211   :  { %v2194_v16 = vpop.f32.mrf.mxu2  ;;  %v2399_v17 = vpop.f32.mrf.mxu3 }
 0x212   :  { %v2686_v18 = vmax.f32 %v2194_v16, 0.0  ;;  %v1786_v19 = vpop.f32.mrf.mxu0  ;;  %v1991_v20 = vpop.f32.mrf.mxu1  ;;  %v2768_v23 = vmax.f32 %v2399_v17, 0.0 }
 0x213   :  { %v2523_v21 = vmax.f32 %v1786_v19, 0.0  ;;  %v2605_v22 = vmax.f32 %v1991_v20, 0.0 }
 0x214   :  { %3010 = vst [vmem:[%s5762_s2 + $0x6a0] sm:$0xff] %v2686_v18 }
 0x215   :  { %2847 = vst [vmem:[%s5762_s2 + $0x188] sm:$0xff] %v2523_v21  ;;  %v3980_v21 = vld [vmem:[%s5761_s0 + $0x120] sm:$0xff] }
 0x216   :  { %2929 = vst [vmem:[%s5762_s2 + $0x418] sm:$0xff] %v2605_v22  ;;  %v4021_v22 = vld [vmem:[%s5761_s0 + $0x268] sm:$0xff] }
 0x217   :  { %3092 = vst [vmem:[%s5762_s2 + $0x930] sm:$0xff] %v2768_v23 }
 0x219   :  { %v2196_v24 = vpop.f32.mrf.mxu2  ;;  %v2401_v27 = vpop.f32.mrf.mxu3 }
 0x21a   :  { %v2687_v28 = vmax.f32 %v2196_v24, 0.0  ;;  %v1789_v29 = vpop.f32.mrf.mxu0  ;;  %v1994_v30 = vpop.f32.mrf.mxu1  ;;  %v2769_v35 = vmax.f32 %v2401_v27, 0.0  ;;  %v4062_v27 = vld [vmem:[%s5761_s0 + $0x3b0] sm:$0xff] }
 0x21b   :  { %v2524_v33 = vmax.f32 %v1789_v29, 0.0  ;;  %v2606_v34 = vmax.f32 %v1994_v30, 0.0 }
 0x21c   :  { %3011 = vst [vmem:[%s5762_s2 + $0x6a8] sm:$0xff] %v2687_v28  ;;  %v4103_v28 = vld [vmem:[%s5761_s0 + $0x4f8] sm:$0xff] }
 0x21d   :  { %2848 = vst [vmem:[%s5762_s2 + $0x190] sm:$0xff] %v2524_v33  ;;  %3815 = vmatmul.msk.bf16.gmra.mxu0 %vm1161_vm2, %v3977_v25  ;;  %3856 = vmatmul.msk.bf16.gmra.mxu1 %vm1161_vm2, %v4018_v26 }
 0x21e   :  { %2930 = vst [vmem:[%s5762_s2 + $0x420] sm:$0xff] %v2606_v34  ;;  %3897 = vmatmul.msk.bf16.gmra.mxu2 %vm1161_vm2, %v4059_v31  ;;  %3938 = vmatmul.msk.bf16.gmra.mxu3 %vm1161_vm2, %v4100_v32 }
 0x21f   :  { %3093 = vst [vmem:[%s5762_s2 + $0x938] sm:$0xff] %v2769_v35 }
 0x221   :  { %v2199_v36 = vpop.f32.mrf.mxu2  ;;  %v2404_v37 = vpop.f32.mrf.mxu3 }
 0x222   :  { %v2688_v38 = vmax.f32 %v2199_v36, 0.0  ;;  %v1791_v39 = vpop.f32.mrf.mxu0  ;;  %v1996_v40 = vpop.f32.mrf.mxu1  ;;  %v2770_v43 = vmax.f32 %v2404_v37, 0.0 }
 0x223   :  { %v2525_v41 = vmax.f32 %v1791_v39, 0.0  ;;  %v2607_v42 = vmax.f32 %v1996_v40, 0.0 }
 0x224   :  { %3012 = vst [vmem:[%s5762_s2 + $0x6b0] sm:$0xff] %v2688_v38 }
 0x225   :  { %2849 = vst [vmem:[%s5762_s2 + $0x198] sm:$0xff] %v2525_v41  ;;  %v3981_v41 = vld [vmem:[%s5761_s0 + $0x128] sm:$0xff] }
 0x226   :  { %2931 = vst [vmem:[%s5762_s2 + $0x428] sm:$0xff] %v2607_v42  ;;  %v4022_v42 = vld [vmem:[%s5761_s0 + $0x270] sm:$0xff] }
 0x227   :  { %3094 = vst [vmem:[%s5762_s2 + $0x940] sm:$0xff] %v2770_v43 }
 0x229   :  { %v2201_v44 = vpop.f32.mrf.mxu2  ;;  %v2406_v47 = vpop.f32.mrf.mxu3 }
 0x22a   :  { %v2689_v48 = vmax.f32 %v2201_v44, 0.0  ;;  %v1794_v49 = vpop.f32.mrf.mxu0  ;;  %v1999_v50 = vpop.f32.mrf.mxu1  ;;  %v2771_v55 = vmax.f32 %v2406_v47, 0.0  ;;  %v4063_v47 = vld [vmem:[%s5761_s0 + $0x3b8] sm:$0xff] }
 0x22b   :  { %v2526_v53 = vmax.f32 %v1794_v49, 0.0  ;;  %v2608_v54 = vmax.f32 %v1999_v50, 0.0 }
 0x22c   :  { %3013 = vst [vmem:[%s5762_s2 + $0x6b8] sm:$0xff] %v2689_v48  ;;  %v4104_v48 = vld [vmem:[%s5761_s0 + $0x500] sm:$0xff] }
 0x22d   :  { %2850 = vst [vmem:[%s5762_s2 + $0x1a0] sm:$0xff] %v2526_v53  ;;  %3816 = vmatmul.msk.bf16.gmra.mxu0 %vm1161_vm2, %v3978_v45  ;;  %3857 = vmatmul.msk.bf16.gmra.mxu1 %vm1161_vm2, %v4019_v46 }
 0x22e   :  { %2932 = vst [vmem:[%s5762_s2 + $0x430] sm:$0xff] %v2608_v54  ;;  %3898 = vmatmul.msk.bf16.gmra.mxu2 %vm1161_vm2, %v4060_v51  ;;  %3939 = vmatmul.msk.bf16.gmra.mxu3 %vm1161_vm2, %v4101_v52 }
 0x22f   :  { %3095 = vst [vmem:[%s5762_s2 + $0x948] sm:$0xff] %v2771_v55 }
 0x231   :  { %v2204_v56 = vpop.f32.mrf.mxu2  ;;  %v2409_v57 = vpop.f32.mrf.mxu3 }
 0x232   :  { %v2690_v58 = vmax.f32 %v2204_v56, 0.0  ;;  %v1796_v59 = vpop.f32.mrf.mxu0  ;;  %v2001_v60 = vpop.f32.mrf.mxu1  ;;  %v2772_v63 = vmax.f32 %v2409_v57, 0.0 }
 0x233   :  { %v2527_v61 = vmax.f32 %v1796_v59, 0.0  ;;  %v2609_v62 = vmax.f32 %v2001_v60, 0.0 }
 0x234   :  { %3014 = vst [vmem:[%s5762_s2 + $0x6c0] sm:$0xff] %v2690_v58 }
 0x235   :  { %2851 = vst [vmem:[%s5762_s2 + $0x1a8] sm:$0xff] %v2527_v61  ;;  %v3982_v61 = vld [vmem:[%s5761_s0 + $0x130] sm:$0xff] }
 0x236   :  { %2933 = vst [vmem:[%s5762_s2 + $0x438] sm:$0xff] %v2609_v62  ;;  %v4023_v62 = vld [vmem:[%s5761_s0 + $0x278] sm:$0xff] }
 0x237   :  { %3096 = vst [vmem:[%s5762_s2 + $0x950] sm:$0xff] %v2772_v63 }
 0x239   :  { %v2206_v0 = vpop.f32.mrf.mxu2  ;;  %v2411_v3 = vpop.f32.mrf.mxu3 }
 0x23a   :  { %v2691_v4 = vmax.f32 %v2206_v0, 0.0  ;;  %v1799_v5 = vpop.f32.mrf.mxu0  ;;  %v2004_v6 = vpop.f32.mrf.mxu1  ;;  %v2773_v11 = vmax.f32 %v2411_v3, 0.0  ;;  %v4064_v3 = vld [vmem:[%s5761_s0 + $0x3c0] sm:$0xff] }
 0x23b   :  { %v2528_v9 = vmax.f32 %v1799_v5, 0.0  ;;  %v2610_v10 = vmax.f32 %v2004_v6, 0.0 }
 0x23c   :  { %3015 = vst [vmem:[%s5762_s2 + $0x6c8] sm:$0xff] %v2691_v4  ;;  %v4105_v4 = vld [vmem:[%s5761_s0 + $0x508] sm:$0xff] }
 0x23d   :  { %2852 = vst [vmem:[%s5762_s2 + $0x1b0] sm:$0xff] %v2528_v9  ;;  %3817 = vmatmul.msk.bf16.gmra.mxu0 %vm1161_vm2, %v3979_v1  ;;  %3858 = vmatmul.msk.bf16.gmra.mxu1 %vm1161_vm2, %v4020_v2 }
 0x23e   :  { %2934 = vst [vmem:[%s5762_s2 + $0x440] sm:$0xff] %v2610_v10  ;;  %3899 = vmatmul.msk.bf16.gmra.mxu2 %vm1161_vm2, %v4061_v7  ;;  %3940 = vmatmul.msk.bf16.gmra.mxu3 %vm1161_vm2, %v4102_v8 }
 0x23f   :  { %3097 = vst [vmem:[%s5762_s2 + $0x958] sm:$0xff] %v2773_v11 }
 0x241   :  { %v2209_v12 = vpop.f32.mrf.mxu2  ;;  %v2414_v13 = vpop.f32.mrf.mxu3 }
 0x242   :  { %v2692_v14 = vmax.f32 %v2209_v12, 0.0  ;;  %v1801_v15 = vpop.f32.mrf.mxu0  ;;  %v2006_v16 = vpop.f32.mrf.mxu1  ;;  %v2774_v19 = vmax.f32 %v2414_v13, 0.0 }
 0x243   :  { %v2529_v17 = vmax.f32 %v1801_v15, 0.0  ;;  %v2611_v18 = vmax.f32 %v2006_v16, 0.0 }
 0x244   :  { %3016 = vst [vmem:[%s5762_s2 + $0x6d0] sm:$0xff] %v2692_v14 }
 0x245   :  { %2853 = vst [vmem:[%s5762_s2 + $0x1b8] sm:$0xff] %v2529_v17  ;;  %v3983_v17 = vld [vmem:[%s5761_s0 + $0x138] sm:$0xff] }
 0x246   :  { %2935 = vst [vmem:[%s5762_s2 + $0x448] sm:$0xff] %v2611_v18  ;;  %v4024_v18 = vld [vmem:[%s5761_s0 + $0x280] sm:$0xff] }
 0x247   :  { %3098 = vst [vmem:[%s5762_s2 + $0x960] sm:$0xff] %v2774_v19 }
 0x249   :  { %v2211_v20 = vpop.f32.mrf.mxu2  ;;  %v2416_v23 = vpop.f32.mrf.mxu3 }
 0x24a   :  { %v2693_v24 = vmax.f32 %v2211_v20, 0.0  ;;  %v1804_v25 = vpop.f32.mrf.mxu0  ;;  %v2009_v26 = vpop.f32.mrf.mxu1  ;;  %v2775_v31 = vmax.f32 %v2416_v23, 0.0  ;;  %v4065_v23 = vld [vmem:[%s5761_s0 + $0x3c8] sm:$0xff] }
 0x24b   :  { %v2530_v29 = vmax.f32 %v1804_v25, 0.0  ;;  %v2612_v30 = vmax.f32 %v2009_v26, 0.0 }
 0x24c   :  { %3017 = vst [vmem:[%s5762_s2 + $0x6d8] sm:$0xff] %v2693_v24 }
 0x24d   :  { %2854 = vst [vmem:[%s5762_s2 + $0x1c0] sm:$0xff] %v2530_v29  ;;  %3818 = vmatmul.msk.bf16.gmra.mxu0 %vm1161_vm2, %v3980_v21  ;;  %3859 = vmatmul.msk.bf16.gmra.mxu1 %vm1161_vm2, %v4021_v22 }
 0x24e   :  { %2936 = vst [vmem:[%s5762_s2 + $0x450] sm:$0xff] %v2612_v30  ;;  %3900 = vmatmul.msk.bf16.gmra.mxu2 %vm1161_vm2, %v4062_v27  ;;  %3941 = vmatmul.msk.bf16.gmra.mxu3 %vm1161_vm2, %v4103_v28 }
 0x24f   :  { %3099 = vst [vmem:[%s5762_s2 + $0x968] sm:$0xff] %v2775_v31 }
 0x251   :  { %v2214_v32 = vpop.f32.mrf.mxu2  ;;  %v2419_v33 = vpop.f32.mrf.mxu3 }
 0x252   :  { %v2694_v34 = vmax.f32 %v2214_v32, 0.0  ;;  %v1806_v35 = vpop.f32.mrf.mxu0  ;;  %v2011_v36 = vpop.f32.mrf.mxu1  ;;  %v2776_v39 = vmax.f32 %v2419_v33, 0.0 }
 0x253   :  { %v2531_v37 = vmax.f32 %v1806_v35, 0.0  ;;  %v2613_v38 = vmax.f32 %v2011_v36, 0.0  ;;  %v3984_v36 = vld [vmem:[%s5761_s0 + $0x140] sm:$0xff] }
 0x254   :  { %3018 = vst [vmem:[%s5762_s2 + $0x6e0] sm:$0xff] %v2694_v34 }
 0x255   :  { %2855 = vst [vmem:[%s5762_s2 + $0x1c8] sm:$0xff] %v2531_v37  ;;  %v4025_v37 = vld [vmem:[%s5761_s0 + $0x288] sm:$0xff] }
 0x256   :  { %2937 = vst [vmem:[%s5762_s2 + $0x458] sm:$0xff] %v2613_v38 }
 0x257   :  { %3100 = vst [vmem:[%s5762_s2 + $0x970] sm:$0xff] %v2776_v39 }
 0x259   :  { %v2216_v40 = vpop.f32.mrf.mxu2  ;;  %v2421_v43 = vpop.f32.mrf.mxu3 }
 0x25a   :  { %v2695_v44 = vmax.f32 %v2216_v40, 0.0  ;;  %v1809_v45 = vpop.f32.mrf.mxu0  ;;  %v2014_v46 = vpop.f32.mrf.mxu1  ;;  %v2777_v51 = vmax.f32 %v2421_v43, 0.0 }
 0x25b   :  { %v2532_v49 = vmax.f32 %v1809_v45, 0.0  ;;  %v2614_v50 = vmax.f32 %v2014_v46, 0.0 }
 0x25c   :  { %3019 = vst [vmem:[%s5762_s2 + $0x6e8] sm:$0xff] %v2695_v44 }
 0x25d   :  { %2856 = vst [vmem:[%s5762_s2 + $0x1d0] sm:$0xff] %v2532_v49  ;;  %3819 = vmatmul.msk.bf16.gmra.mxu0 %vm1161_vm2, %v3981_v41  ;;  %3860 = vmatmul.msk.bf16.gmra.mxu1 %vm1161_vm2, %v4022_v42  ;;  %v4066_v42 = vld [vmem:[%s5761_s0 + $0x3d0] sm:$0xff] }
 0x25e   :  { %2938 = vst [vmem:[%s5762_s2 + $0x460] sm:$0xff] %v2614_v50  ;;  %3901 = vmatmul.msk.bf16.gmra.mxu2 %vm1161_vm2, %v4063_v47  ;;  %3942 = vmatmul.msk.bf16.gmra.mxu3 %vm1161_vm2, %v4104_v48 }
 0x25f   :  { %3101 = vst [vmem:[%s5762_s2 + $0x978] sm:$0xff] %v2777_v51 }
 0x261   :  { %v2219_v52 = vpop.f32.mrf.mxu2  ;;  %v2424_v53 = vpop.f32.mrf.mxu3 }
 0x262   :  { %v2696_v54 = vmax.f32 %v2219_v52, 0.0  ;;  %v1811_v55 = vpop.f32.mrf.mxu0  ;;  %v2016_v56 = vpop.f32.mrf.mxu1  ;;  %v2778_v59 = vmax.f32 %v2424_v53, 0.0 }
 0x263   :  { %v2533_v57 = vmax.f32 %v1811_v55, 0.0  ;;  %v2615_v58 = vmax.f32 %v2016_v56, 0.0 }
 0x264   :  { %3020 = vst [vmem:[%s5762_s2 + $0x6f0] sm:$0xff] %v2696_v54 }
 0x265   :  { %2857 = vst [vmem:[%s5762_s2 + $0x1d8] sm:$0xff] %v2533_v57 }
 0x266   :  { %2939 = vst [vmem:[%s5762_s2 + $0x468] sm:$0xff] %v2615_v58 }
 0x267   :  { %3102 = vst [vmem:[%s5762_s2 + $0x980] sm:$0xff] %v2778_v59 }
 0x269   :  { %v2221_v60 = vpop.f32.mrf.mxu2  ;;  %v2426_v63 = vpop.f32.mrf.mxu3 }
 0x26a   :  { %v2697_v0 = vmax.f32 %v2221_v60, 0.0  ;;  %v1814_v1 = vpop.f32.mrf.mxu0  ;;  %v2019_v2 = vpop.f32.mrf.mxu1  ;;  %v2779_v7 = vmax.f32 %v2426_v63, 0.0 }
 0x26b   :  { %v2534_v5 = vmax.f32 %v1814_v1, 0.0  ;;  %v2616_v6 = vmax.f32 %v2019_v2, 0.0 }
 0x26c   :  { %3021 = vst [vmem:[%s5762_s2 + $0x6f8] sm:$0xff] %v2697_v0 }
 0x26d   :  { %2858 = vst [vmem:[%s5762_s2 + $0x1e0] sm:$0xff] %v2534_v5  ;;  %3820 = vmatmul.msk.bf16.gmra.mxu0 %vm1161_vm2, %v3982_v61  ;;  %3861 = vmatmul.msk.bf16.gmra.mxu1 %vm1161_vm2, %v4023_v62 }
 0x26e   :  { %2940 = vst [vmem:[%s5762_s2 + $0x470] sm:$0xff] %v2616_v6  ;;  %3902 = vmatmul.msk.bf16.gmra.mxu2 %vm1161_vm2, %v4064_v3  ;;  %3943 = vmatmul.msk.bf16.gmra.mxu3 %vm1161_vm2, %v4105_v4 }
 0x26f   :  { %3103 = vst [vmem:[%s5762_s2 + $0x988] sm:$0xff] %v2779_v7 }
 0x271   :  { %v2224_v8 = vpop.f32.mrf.mxu2  ;;  %v2429_v9 = vpop.f32.mrf.mxu3 }
 0x272   :  { %v2698_v10 = vmax.f32 %v2224_v8, 0.0  ;;  %v1816_v11 = vpop.f32.mrf.mxu0  ;;  %v2021_v12 = vpop.f32.mrf.mxu1  ;;  %v2780_v15 = vmax.f32 %v2429_v9, 0.0 }
 0x273   :  { %v2535_v13 = vmax.f32 %v1816_v11, 0.0  ;;  %v2617_v14 = vmax.f32 %v2021_v12, 0.0 }
 0x274   :  { %3022 = vst [vmem:[%s5762_s2 + $0x700] sm:$0xff] %v2698_v10 }
 0x275   :  { %2859 = vst [vmem:[%s5762_s2 + $0x1e8] sm:$0xff] %v2535_v13 }
 0x276   :  { %2941 = vst [vmem:[%s5762_s2 + $0x478] sm:$0xff] %v2617_v14 }
 0x277   :  { %3104 = vst [vmem:[%s5762_s2 + $0x990] sm:$0xff] %v2780_v15 }
 0x279   :  { %v2226_v16 = vpop.f32.mrf.mxu2  ;;  %v2431_v19 = vpop.f32.mrf.mxu3 }
 0x27a   :  { %v2699_v20 = vmax.f32 %v2226_v16, 0.0  ;;  %v1819_v21 = vpop.f32.mrf.mxu0  ;;  %v2024_v22 = vpop.f32.mrf.mxu1  ;;  %v2781_v26 = vmax.f32 %v2431_v19, 0.0 }
 0x27b   :  { %v2536_v24 = vmax.f32 %v1819_v21, 0.0  ;;  %v2618_v25 = vmax.f32 %v2024_v22, 0.0 }
 0x27c   :  { %3023 = vst [vmem:[%s5762_s2 + $0x708] sm:$0xff] %v2699_v20 }
 0x27d   :  { %2860 = vst [vmem:[%s5762_s2 + $0x1f0] sm:$0xff] %v2536_v24  ;;  %3821 = vmatmul.msk.bf16.gmra.mxu0 %vm1161_vm2, %v3983_v17  ;;  %3862 = vmatmul.msk.bf16.gmra.mxu1 %vm1161_vm2, %v4024_v18 }
 0x27e   :  { %2942 = vst [vmem:[%s5762_s2 + $0x480] sm:$0xff] %v2618_v25  ;;  %3903 = vmatmul.msk.bf16.gmra.mxu2 %vm1161_vm2, %v4065_v23 }
 0x27f   :  { %3105 = vst [vmem:[%s5762_s2 + $0x998] sm:$0xff] %v2781_v26 }
 0x281   :  { %v2229_v27 = vpop.f32.mrf.mxu2  ;;  %v2434_v28 = vpop.f32.mrf.mxu3 }
 0x282   :  { %v2700_v29 = vmax.f32 %v2229_v27, 0.0  ;;  %v1821_v30 = vpop.f32.mrf.mxu0  ;;  %v2026_v31 = vpop.f32.mrf.mxu1  ;;  %v2782_v34 = vmax.f32 %v2434_v28, 0.0 }
 0x283   :  { %v2537_v32 = vmax.f32 %v1821_v30, 0.0  ;;  %v2619_v33 = vmax.f32 %v2026_v31, 0.0 }
 0x284   :  { %3024 = vst [vmem:[%s5762_s2 + $0x710] sm:$0xff] %v2700_v29 }
 0x285   :  { %2861 = vst [vmem:[%s5762_s2 + $0x1f8] sm:$0xff] %v2537_v32 }
 0x286   :  { %2943 = vst [vmem:[%s5762_s2 + $0x488] sm:$0xff] %v2619_v33 }
 0x287   :  { %3106 = vst [vmem:[%s5762_s2 + $0x9a0] sm:$0xff] %v2782_v34 }
 0x289   :  { %v2231_v35 = vpop.f32.mrf.mxu2  ;;  %v2436_v38 = vpop.f32.mrf.mxu3 }
 0x28a   :  { %v2701_v39 = vmax.f32 %v2231_v35, 0.0  ;;  %v1824_v40 = vpop.f32.mrf.mxu0  ;;  %v2029_v41 = vpop.f32.mrf.mxu1  ;;  %v2783_v45 = vmax.f32 %v2436_v38, 0.0 }
 0x28b   :  { %v2538_v43 = vmax.f32 %v1824_v40, 0.0  ;;  %v2620_v44 = vmax.f32 %v2029_v41, 0.0 }
 0x28c   :  { %3025 = vst [vmem:[%s5762_s2 + $0x718] sm:$0xff] %v2701_v39 }
 0x28d   :  { %2862 = vst [vmem:[%s5762_s2 + $0x200] sm:$0xff] %v2538_v43  ;;  %3822 = vmatmul.msk.bf16.gmra.mxu0 %vm1161_vm2, %v3984_v36  ;;  %3863 = vmatmul.msk.bf16.gmra.mxu1 %vm1161_vm2, %v4025_v37 }
 0x28e   :  { %2944 = vst [vmem:[%s5762_s2 + $0x490] sm:$0xff] %v2620_v44  ;;  %3904 = vmatmul.msk.bf16.gmra.mxu2 %vm1161_vm2, %v4066_v42 }
 0x28f   :  { %3107 = vst [vmem:[%s5762_s2 + $0x9a8] sm:$0xff] %v2783_v45 }
 0x291   :  { %v2234_v46 = vpop.f32.mrf.mxu2  ;;  %v2439_v47 = vpop.f32.mrf.mxu3 }
 0x292   :  { %v2702_v48 = vmax.f32 %v2234_v46, 0.0  ;;  %v1826_v49 = vpop.f32.mrf.mxu0  ;;  %v2031_v50 = vpop.f32.mrf.mxu1  ;;  %v2784_v53 = vmax.f32 %v2439_v47, 0.0 }
 0x293   :  { %v2539_v51 = vmax.f32 %v1826_v49, 0.0  ;;  %v2621_v52 = vmax.f32 %v2031_v50, 0.0 }
 0x294   :  { %3026 = vst [vmem:[%s5762_s2 + $0x720] sm:$0xff] %v2702_v48 }
 0x295   :  { %2863 = vst [vmem:[%s5762_s2 + $0x208] sm:$0xff] %v2539_v51 }
 0x296   :  { %2945 = vst [vmem:[%s5762_s2 + $0x498] sm:$0xff] %v2621_v52 }
 0x297   :  { %3108 = vst [vmem:[%s5762_s2 + $0x9b0] sm:$0xff] %v2784_v53 }
 0x299   :  { %v2236_v54 = vpop.f32.mrf.mxu2  ;;  %v2441_v55 = vpop.f32.mrf.mxu3 }
 0x29a   :  { %v2703_v56 = vmax.f32 %v2236_v54, 0.0  ;;  %v1829_v57 = vpop.f32.mrf.mxu0  ;;  %v2034_v58 = vpop.f32.mrf.mxu1  ;;  %v2785_v61 = vmax.f32 %v2441_v55, 0.0 }
 0x29b   :  { %v2540_v59 = vmax.f32 %v1829_v57, 0.0  ;;  %v2622_v60 = vmax.f32 %v2034_v58, 0.0 }
 0x29c   :  { %3027 = vst [vmem:[%s5762_s2 + $0x728] sm:$0xff] %v2703_v56 }
 0x29d   :  { %2864 = vst [vmem:[%s5762_s2 + $0x210] sm:$0xff] %v2540_v59 }
 0x29e   :  { %2946 = vst [vmem:[%s5762_s2 + $0x4a0] sm:$0xff] %v2622_v60 }
 0x29f   :  { %3109 = vst [vmem:[%s5762_s2 + $0x9b8] sm:$0xff] %v2785_v61 }
 0x2a1   :  { %v2239_v62 = vpop.f32.mrf.mxu2  ;;  %v2444_v63 = vpop.f32.mrf.mxu3 }
 0x2a2   :  { %v2704_v0 = vmax.f32 %v2239_v62, 0.0  ;;  %v1831_v1 = vpop.f32.mrf.mxu0  ;;  %v2036_v2 = vpop.f32.mrf.mxu1  ;;  %v2786_v5 = vmax.f32 %v2444_v63, 0.0 }
 0x2a3   :  { %v2541_v3 = vmax.f32 %v1831_v1, 0.0  ;;  %v2623_v4 = vmax.f32 %v2036_v2, 0.0 }
 0x2a4   :  { %3028 = vst [vmem:[%s5762_s2 + $0x730] sm:$0xff] %v2704_v0 }
 0x2a5   :  { %2865 = vst [vmem:[%s5762_s2 + $0x218] sm:$0xff] %v2541_v3 }
 0x2a6   :  { %2947 = vst [vmem:[%s5762_s2 + $0x4a8] sm:$0xff] %v2623_v4 }
 0x2a7   :  { %3110 = vst [vmem:[%s5762_s2 + $0x9c0] sm:$0xff] %v2786_v5 }
 0x2a9   :  { %v2241_v6 = vpop.f32.mrf.mxu2  ;;  %v2446_v7 = vpop.f32.mrf.mxu3 }
 0x2aa   :  { %v2705_v8 = vmax.f32 %v2241_v6, 0.0  ;;  %v1834_v9 = vpop.f32.mrf.mxu0  ;;  %v2039_v10 = vpop.f32.mrf.mxu1  ;;  %v2787_v13 = vmax.f32 %v2446_v7, 0.0 }
 0x2ab   :  { %v2542_v11 = vmax.f32 %v1834_v9, 0.0  ;;  %v2624_v12 = vmax.f32 %v2039_v10, 0.0 }
 0x2ac   :  { %3029 = vst [vmem:[%s5762_s2 + $0x738] sm:$0xff] %v2705_v8 }
 0x2ad   :  { %2866 = vst [vmem:[%s5762_s2 + $0x220] sm:$0xff] %v2542_v11 }
 0x2ae   :  { %2948 = vst [vmem:[%s5762_s2 + $0x4b0] sm:$0xff] %v2624_v12 }
 0x2af   :  { %3111 = vst [vmem:[%s5762_s2 + $0x9c8] sm:$0xff] %v2787_v13 }
 0x2b1   :  { %v2244_v14 = vpop.f32.mrf.mxu2  ;;  %v2449_v15 = vpop.f32.mrf.mxu3 }
 0x2b2   :  { %v2706_v16 = vmax.f32 %v2244_v14, 0.0  ;;  %v1836_v17 = vpop.f32.mrf.mxu0  ;;  %v2041_v18 = vpop.f32.mrf.mxu1  ;;  %v2788_v21 = vmax.f32 %v2449_v15, 0.0 }
 0x2b3   :  { %v2543_v19 = vmax.f32 %v1836_v17, 0.0  ;;  %v2625_v20 = vmax.f32 %v2041_v18, 0.0 }
 0x2b4   :  { %3030 = vst [vmem:[%s5762_s2 + $0x740] sm:$0xff] %v2706_v16 }
 0x2b5   :  { %2867 = vst [vmem:[%s5762_s2 + $0x228] sm:$0xff] %v2543_v19 }
 0x2b6   :  { %2949 = vst [vmem:[%s5762_s2 + $0x4b8] sm:$0xff] %v2625_v20 }
 0x2b7   :  { %3112 = vst [vmem:[%s5762_s2 + $0x9d0] sm:$0xff] %v2788_v21 }
 0x2b9   :  { %v2246_v22 = vpop.f32.mrf.mxu2  ;;  %v2451_v23 = vpop.f32.mrf.mxu3 }
 0x2ba   :  { %v2707_v24 = vmax.f32 %v2246_v22, 0.0  ;;  %v1839_v25 = vpop.f32.mrf.mxu0  ;;  %v2044_v26 = vpop.f32.mrf.mxu1  ;;  %v2789_v29 = vmax.f32 %v2451_v23, 0.0 }
 0x2bb   :  { %v2544_v27 = vmax.f32 %v1839_v25, 0.0  ;;  %v2626_v28 = vmax.f32 %v2044_v26, 0.0 }
 0x2bc   :  { %3031 = vst [vmem:[%s5762_s2 + $0x748] sm:$0xff] %v2707_v24 }
 0x2bd   :  { %2868 = vst [vmem:[%s5762_s2 + $0x230] sm:$0xff] %v2544_v27 }
 0x2be   :  { %2950 = vst [vmem:[%s5762_s2 + $0x4c0] sm:$0xff] %v2626_v28 }
 0x2bf   :  { %3113 = vst [vmem:[%s5762_s2 + $0x9d8] sm:$0xff] %v2789_v29 }
 0x2c1   :  { %v2249_v30 = vpop.f32.mrf.mxu2  ;;  %v2454_v31 = vpop.f32.mrf.mxu3 }
 0x2c2   :  { %v2708_v32 = vmax.f32 %v2249_v30, 0.0  ;;  %v1841_v33 = vpop.f32.mrf.mxu0  ;;  %v2046_v34 = vpop.f32.mrf.mxu1  ;;  %v2790_v37 = vmax.f32 %v2454_v31, 0.0 }
 0x2c3   :  { %v2545_v35 = vmax.f32 %v1841_v33, 0.0  ;;  %v2627_v36 = vmax.f32 %v2046_v34, 0.0 }
 0x2c4   :  { %3032 = vst [vmem:[%s5762_s2 + $0x750] sm:$0xff] %v2708_v32 }
 0x2c5   :  { %2869 = vst [vmem:[%s5762_s2 + $0x238] sm:$0xff] %v2545_v35 }
 0x2c6   :  { %2951 = vst [vmem:[%s5762_s2 + $0x4c8] sm:$0xff] %v2627_v36 }
 0x2c7   :  { %3114 = vst [vmem:[%s5762_s2 + $0x9e0] sm:$0xff] %v2790_v37 }
 0x2c9   :  { %v2251_v38 = vpop.f32.mrf.mxu2  ;;  %v2456_v39 = vpop.f32.mrf.mxu3 }
 0x2ca   :  { %v2709_v40 = vmax.f32 %v2251_v38, 0.0  ;;  %v1844_v41 = vpop.f32.mrf.mxu0  ;;  %v2049_v42 = vpop.f32.mrf.mxu1  ;;  %v2791_v45 = vmax.f32 %v2456_v39, 0.0 }
 0x2cb   :  { %v2546_v43 = vmax.f32 %v1844_v41, 0.0  ;;  %v2628_v44 = vmax.f32 %v2049_v42, 0.0 }
 0x2cc   :  { %3033 = vst [vmem:[%s5762_s2 + $0x758] sm:$0xff] %v2709_v40 }
 0x2cd   :  { %2870 = vst [vmem:[%s5762_s2 + $0x240] sm:$0xff] %v2546_v43 }
 0x2ce   :  { %2952 = vst [vmem:[%s5762_s2 + $0x4d0] sm:$0xff] %v2628_v44 }
 0x2cf   :  { %3115 = vst [vmem:[%s5762_s2 + $0x9e8] sm:$0xff] %v2791_v45 }
 0x2d1   :  { %v2254_v46 = vpop.f32.mrf.mxu2  ;;  %v2459_v47 = vpop.f32.mrf.mxu3 }
 0x2d2   :  { %v2710_v48 = vmax.f32 %v2254_v46, 0.0  ;;  %v1846_v49 = vpop.f32.mrf.mxu0  ;;  %v2051_v50 = vpop.f32.mrf.mxu1  ;;  %v2792_v53 = vmax.f32 %v2459_v47, 0.0 }
 0x2d3   :  { %v2547_v51 = vmax.f32 %v1846_v49, 0.0  ;;  %v2629_v52 = vmax.f32 %v2051_v50, 0.0 }
 0x2d4   :  { %3034 = vst [vmem:[%s5762_s2 + $0x760] sm:$0xff] %v2710_v48 }
 0x2d5   :  { %2871 = vst [vmem:[%s5762_s2 + $0x248] sm:$0xff] %v2547_v51 }
 0x2d6   :  { %2953 = vst [vmem:[%s5762_s2 + $0x4d8] sm:$0xff] %v2629_v52 }
 0x2d7   :  { %3116 = vst [vmem:[%s5762_s2 + $0x9f0] sm:$0xff] %v2792_v53 }
 0x2d9   :  { %v2256_v54 = vpop.f32.mrf.mxu2  ;;  %v2461_v55 = vpop.f32.mrf.mxu3 }
 0x2da   :  { %v2711_v56 = vmax.f32 %v2256_v54, 0.0  ;;  %v1849_v57 = vpop.f32.mrf.mxu0  ;;  %v2054_v58 = vpop.f32.mrf.mxu1  ;;  %v2793_v61 = vmax.f32 %v2461_v55, 0.0 }
 0x2db   :  { %v2548_v59 = vmax.f32 %v1849_v57, 0.0  ;;  %v2630_v60 = vmax.f32 %v2054_v58, 0.0 }
 0x2dc   :  { %3035 = vst [vmem:[%s5762_s2 + $0x768] sm:$0xff] %v2711_v56 }
 0x2dd   :  { %2872 = vst [vmem:[%s5762_s2 + $0x250] sm:$0xff] %v2548_v59 }
 0x2de   :  { %2954 = vst [vmem:[%s5762_s2 + $0x4e0] sm:$0xff] %v2630_v60 }
 0x2df   :  { %3117 = vst [vmem:[%s5762_s2 + $0x9f8] sm:$0xff] %v2793_v61 }
 0x2e1   :  { %v2259_v62 = vpop.f32.mrf.mxu2  ;;  %v2464_v63 = vpop.f32.mrf.mxu3 }
 0x2e2   :  { %v2712_v0 = vmax.f32 %v2259_v62, 0.0  ;;  %v1851_v1 = vpop.f32.mrf.mxu0  ;;  %v2056_v2 = vpop.f32.mrf.mxu1  ;;  %v2794_v5 = vmax.f32 %v2464_v63, 0.0 }
 0x2e3   :  { %v2549_v3 = vmax.f32 %v1851_v1, 0.0  ;;  %v2631_v4 = vmax.f32 %v2056_v2, 0.0 }
 0x2e4   :  { %3036 = vst [vmem:[%s5762_s2 + $0x770] sm:$0xff] %v2712_v0 }
 0x2e5   :  { %2873 = vst [vmem:[%s5762_s2 + $0x258] sm:$0xff] %v2549_v3 }
 0x2e6   :  { %2955 = vst [vmem:[%s5762_s2 + $0x4e8] sm:$0xff] %v2631_v4 }
 0x2e7   :  { %3118 = vst [vmem:[%s5762_s2 + $0xa00] sm:$0xff] %v2794_v5 }
 0x2e9   :  { %v2261_v6 = vpop.f32.mrf.mxu2  ;;  %v2466_v7 = vpop.f32.mrf.mxu3 }
 0x2ea   :  { %v2713_v8 = vmax.f32 %v2261_v6, 0.0  ;;  %v1854_v9 = vpop.f32.mrf.mxu0  ;;  %v2059_v10 = vpop.f32.mrf.mxu1  ;;  %v2795_v13 = vmax.f32 %v2466_v7, 0.0 }
 0x2eb   :  { %v2550_v11 = vmax.f32 %v1854_v9, 0.0  ;;  %v2632_v12 = vmax.f32 %v2059_v10, 0.0 }
 0x2ec   :  { %3037 = vst [vmem:[%s5762_s2 + $0x778] sm:$0xff] %v2713_v8 }
 0x2ed   :  { %2874 = vst [vmem:[%s5762_s2 + $0x260] sm:$0xff] %v2550_v11 }
 0x2ee   :  { %2956 = vst [vmem:[%s5762_s2 + $0x4f0] sm:$0xff] %v2632_v12 }
 0x2ef   :  { %3119 = vst [vmem:[%s5762_s2 + $0xa08] sm:$0xff] %v2795_v13 }
 0x2f1   :  { %v2264_v14 = vpop.f32.mrf.mxu2  ;;  %v2469_v15 = vpop.f32.mrf.mxu3 }
 0x2f2   :  { %v2714_v16 = vmax.f32 %v2264_v14, 0.0  ;;  %v1856_v17 = vpop.f32.mrf.mxu0  ;;  %v2061_v18 = vpop.f32.mrf.mxu1  ;;  %v2796_v21 = vmax.f32 %v2469_v15, 0.0 }
 0x2f3   :  { %v2551_v19 = vmax.f32 %v1856_v17, 0.0  ;;  %v2633_v20 = vmax.f32 %v2061_v18, 0.0 }
 0x2f4   :  { %3038 = vst [vmem:[%s5762_s2 + $0x780] sm:$0xff] %v2714_v16 }
 0x2f5   :  { %2875 = vst [vmem:[%s5762_s2 + $0x268] sm:$0xff] %v2551_v19 }
 0x2f6   :  { %2957 = vst [vmem:[%s5762_s2 + $0x4f8] sm:$0xff] %v2633_v20 }
 0x2f7   :  { %3120 = vst [vmem:[%s5762_s2 + $0xa10] sm:$0xff] %v2796_v21 }
 0x2f9   :  { %v2266_v22 = vpop.f32.mrf.mxu2  ;;  %v2471_v23 = vpop.f32.mrf.mxu3 }
 0x2fa   :  { %v2715_v24 = vmax.f32 %v2266_v22, 0.0  ;;  %v1859_v25 = vpop.f32.mrf.mxu0  ;;  %v2064_v26 = vpop.f32.mrf.mxu1  ;;  %v2797_v29 = vmax.f32 %v2471_v23, 0.0 }
 0x2fb   :  { %v2552_v27 = vmax.f32 %v1859_v25, 0.0  ;;  %v2634_v28 = vmax.f32 %v2064_v26, 0.0 }
 0x2fc   :  { %3039 = vst [vmem:[%s5762_s2 + $0x788] sm:$0xff] %v2715_v24 }
 0x2fd   :  { %2876 = vst [vmem:[%s5762_s2 + $0x270] sm:$0xff] %v2552_v27 }
 0x2fe   :  { %2958 = vst [vmem:[%s5762_s2 + $0x500] sm:$0xff] %v2634_v28 }
 0x2ff   :  { %3121 = vst [vmem:[%s5762_s2 + $0xa18] sm:$0xff] %v2797_v29 }
 0x301   :  { %v2269_v30 = vpop.f32.mrf.mxu2 }
 0x302   :  { %v2716_v31 = vmax.f32 %v2269_v30, 0.0  ;;  %v1861_v32 = vpop.f32.mrf.mxu0  ;;  %v2066_v33 = vpop.f32.mrf.mxu1 }
 0x303   :  { %v2553_v34 = vmax.f32 %v1861_v32, 0.0  ;;  %v2635_v35 = vmax.f32 %v2066_v33, 0.0 }
 0x304   :  { %3040 = vst [vmem:[%s5762_s2 + $0x790] sm:$0xff] %v2716_v31 }
 0x305   :  { %2877 = vst [vmem:[%s5762_s2 + $0x278] sm:$0xff] %v2553_v34 }
 0x306   :  { %2959 = vst [vmem:[%s5762_s2 + $0x508] sm:$0xff] %v2635_v35 }
 0x309   :  { %v2271_v36 = vpop.f32.mrf.mxu2 }
 0x30a   :  { %v2717_v37 = vmax.f32 %v2271_v36, 0.0  ;;  %v1864_v38 = vpop.f32.mrf.mxu0  ;;  %v2069_v39 = vpop.f32.mrf.mxu1 }
 0x30b   :  { %v2554_v40 = vmax.f32 %v1864_v38, 0.0  ;;  %v2636_v41 = vmax.f32 %v2069_v39, 0.0 }
 0x30c   :  { %3041 = vst [vmem:[%s5762_s2 + $0x798] sm:$0xff] %v2717_v37 }
 0x30d   :  { %2878 = vst [vmem:[%s5762_s2 + $0x280] sm:$0xff] %v2554_v40 }
 0x30e   :  { %2960 = vst [vmem:[%s5762_s2 + $0x510] sm:$0xff] %v2636_v41 }
 0x311   :  { %v2274_v42 = vpop.f32.mrf.mxu2 }
 0x312   :  { %v2718_v43 = vmax.f32 %v2274_v42, 0.0  ;;  %v1866_v44 = vpop.f32.mrf.mxu0  ;;  %v2071_v45 = vpop.f32.mrf.mxu1 }
 0x313   :  { %v2555_v46 = vmax.f32 %v1866_v44, 0.0  ;;  %v2637_v47 = vmax.f32 %v2071_v45, 0.0 }
 0x314   :  { %3042 = vst [vmem:[%s5762_s2 + $0x7a0] sm:$0xff] %v2718_v43 }
 0x315   :  { %2879 = vst [vmem:[%s5762_s2 + $0x288] sm:$0xff] %v2555_v46 }
 0x316   :  { %2961 = vst [vmem:[%s5762_s2 + $0x518] sm:$0xff] %v2637_v47 }
 0x319   :  { %v2276_v48 = vpop.f32.mrf.mxu2 }
 0x31a   :  { %v2719_v49 = vmax.f32 %v2276_v48, 0.0 }
 0x31c   :  { %3043 = vst [vmem:[%s5762_s2 + $0x7a8] sm:$0xff] %v2719_v49 }

// kernel: baseline_forward.7
= control target key start
LH: loop header
LB: loop body
LE: loop exit
PB: predicated region body
PF: predicated region fallthrough
CT: control target
= control target key end

     0   :  { %vm764_vm0 = vcmask 261120   ;;  %s3093_s1 = inlined_call_operand.vmem [shape: bf16[288,128], index: 1, kind: input, shape index: {}]   ;;  %s3094_s0 = inlined_call_operand.vmem [shape: bf16[512,288], index: 0, kind: input, shape index: {}]   ;;  %s3095_s2 = inlined_call_operand.vmem [shape: f32[512,128], index: 2, kind: output, shape index: {}]  }
   0x1   :  { %v2091_v0 = vld [vmem:[%s3093_s1 + $0x38] sm:$0xff]  ;;  %v2144_v2 = vld [vmem:[%s3093_s1 + $0x88] sm:$0xff]  ;;  %v2090_v3 = vld [vmem:[%s3093_s1 + $0x30] sm:$0xff] }
   0x2   :  { %v2099_v1 = vld [vmem:[%s3093_s1 + $0x78] sm:$0xff]  ;;  %861 = vmatpush.bf16.msra.mxu0 %v2091_v0  ;;  %2102 = vmatpush.bf16.msra.mxu3 %v2091_v0  ;;  %v2098_v4 = vld [vmem:[%s3093_s1 + $0x70] sm:$0xff]  ;;  %v2156_v5 = vld [vmem:[%s3093_s1 + $0x80] sm:$0xff] }
   0x3   :  { %1030 = vmatpush.bf16.msra.mxu1 %v2099_v1  ;;  %1205 = vmatpush.bf16.msra.mxu2 %v2144_v2  ;;  %v1510_v6 = vld [vmem:[%s3094_s0 + $0x8] sm:$0xf]  ;;  %v1990_v7 = vld [vmem:[%s3094_s0 + $0x10] sm:$0xf0]  ;;  %v2088_v11 = vld [vmem:[%s3093_s1 + $0x20] sm:$0xff] }
   0x4   :  { %v1511_v8 = vor.u32 %v1990_v7, %v1510_v6  ;;  %v2089_v9 = vld [vmem:[%s3093_s1 + $0x28] sm:$0xff]  ;;  %v2096_v12 = vld [vmem:[%s3093_s1 + $0x60] sm:$0xff]  ;;  %v2087_v13 = vld [vmem:[%s3093_s1 + $0x18] sm:$0xff] }
   0x5   :  { %v2097_v10 = vld [vmem:[%s3093_s1 + $0x68] sm:$0xff]  ;;  %v2095_v14 = vld [vmem:[%s3093_s1 + $0x58] sm:$0xff]  ;;  %v2086_v15 = vld [vmem:[%s3093_s1 + $0x10] sm:$0xff] }
   0x6   :  { %862 = vmatpush.bf16.msra.mxu0 %v2090_v3  ;;  %2103 = vmatpush.bf16.msra.mxu3 %v2090_v3  ;;  %v2094_v16 = vld [vmem:[%s3093_s1 + $0x50] sm:$0xff]  ;;  %v1522_v17 = vld [vmem:[%s3094_s0 + $0x20] sm:$0xf]  ;;  %v1993_v18 = vld [vmem:[%s3094_s0 + $0x28] sm:$0xf0] }
   0x7   :  { %1031 = vmatpush.bf16.msra.mxu1 %v2098_v4  ;;  %1206 = vmatpush.bf16.msra.mxu2 %v2156_v5  ;;  %v1523_v19 = vor.u32 %v1993_v18, %v1522_v17  ;;  %v2085_v20 = vld [vmem:[%s3093_s1 + $0x8] sm:$0xff]  ;;  %v2084_v22 = vld [vmem:[%s3093_s1] sm:$0xff]  ;;  %v1504_v29 = vld [vmem:[%s3094_s0 + $0xc] sm:$0xf0] }
   0x8   :  { %v2093_v21 = vld [vmem:[%s3093_s1 + $0x48] sm:$0xff]  ;;  %v2092_v23 = vld [vmem:[%s3093_s1 + $0x40] sm:$0xff]  ;;  %v1534_v33 = vld [vmem:[%s3094_s0 + $0x38] sm:$0xf] }
   0x9   :  { %v1502_v24 = vld [vmem:[%s3094_s0] sm:$0xf]  ;;  %v1989_v25 = vld [vmem:[%s3094_s0 + $0x8] sm:$0xf0]  ;;  %v1988_v28 = vld [vmem:[%s3094_s0 + $0x4] sm:$0xf] }
   0xa   :  { %1956 = vmatmul.msk.bf16.vlgmr.msra.gmra.mxu2 %vm764_vm0, %v1511_v8  ;;  %863 = vmatpush.bf16.msra.mxu0 %v2089_v9  ;;  %v1790_v26 = vld [vmem:[%s3094_s0 + $0x240] sm:$0xf]  ;;  %v2061_v27 = vld [vmem:[%s3094_s0 + $0x248] sm:$0xf0]  ;;  %v1503_v30 = vor.u32 %v1989_v25, %v1502_v24  ;;  %v1507_v32 = vor.u32 %v1988_v28, %v1504_v29  ;;  %v1996_v34 = vld [vmem:[%s3094_s0 + $0x40] sm:$0xf0] }
   0xb   :  { %2104 = vmatpush.bf16.msra.mxu3 %v2089_v9  ;;  %1032 = vmatpush.bf16.msra.mxu1 %v2097_v10  ;;  %v1791_v31 = vor.u32 %v2061_v27, %v1790_v26  ;;  %v1535_v35 = vor.u32 %v1996_v34, %v1534_v33  ;;  %v1514_v36 = vld [vmem:[%s3094_s0 + $0x18] sm:$0xf]  ;;  %v1992_v37 = vld [vmem:[%s3094_s0 + $0x20] sm:$0xf0]  ;;  %v1991_v40 = vld [vmem:[%s3094_s0 + $0x1c] sm:$0xf] }
   0xc   :  { %v1802_v38 = vld [vmem:[%s3094_s0 + $0x258] sm:$0xf]  ;;  %v2064_v39 = vld [vmem:[%s3094_s0 + $0x260] sm:$0xf0]  ;;  %v1516_v41 = vld [vmem:[%s3094_s0 + $0x24] sm:$0xf0]  ;;  %v1515_v42 = vor.u32 %v1992_v37, %v1514_v36 }
   0xd   :  { %v1803_v43 = vor.u32 %v2064_v39, %v1802_v38  ;;  %v1519_v44 = vor.u32 %v1991_v40, %v1516_v41  ;;  %v1546_v45 = vld [vmem:[%s3094_s0 + $0x50] sm:$0xf]  ;;  %v1999_v46 = vld [vmem:[%s3094_s0 + $0x58] sm:$0xf0]  ;;  %v1994_v52 = vld [vmem:[%s3094_s0 + $0x34] sm:$0xf] }
   0xe   :  { %864 = vmatpush.bf16.msra.mxu0 %v2088_v11  ;;  %v1547_v47 = vor.u32 %v1999_v46, %v1546_v45  ;;  %v1526_v48 = vld [vmem:[%s3094_s0 + $0x30] sm:$0xf]  ;;  %v1995_v49 = vld [vmem:[%s3094_s0 + $0x38] sm:$0xf0]  ;;  %v1528_v53 = vld [vmem:[%s3094_s0 + $0x3c] sm:$0xf0] }
   0xf   :  { %2105 = vmatpush.bf16.msra.mxu3 %v2088_v11  ;;  %1033 = vmatpush.bf16.msra.mxu1 %v2096_v12  ;;  %v1814_v50 = vld [vmem:[%s3094_s0 + $0x270] sm:$0xf]  ;;  %v2067_v51 = vld [vmem:[%s3094_s0 + $0x278] sm:$0xf0]  ;;  %v1527_v54 = vor.u32 %v1995_v49, %v1526_v48  ;;  %v1531_v56 = vor.u32 %v1994_v52, %v1528_v53  ;;  %v1558_v57 = vld [vmem:[%s3094_s0 + $0x68] sm:$0xf] }
  0x10   :  { %v1815_v55 = vor.u32 %v2067_v51, %v1814_v50  ;;  %v2002_v58 = vld [vmem:[%s3094_s0 + $0x70] sm:$0xf0]  ;;  %v1538_v60 = vld [vmem:[%s3094_s0 + $0x48] sm:$0xf]  ;;  %v1997_v0 = vld [vmem:[%s3094_s0 + $0x4c] sm:$0xf] }
  0x11   :  { %v1559_v59 = vor.u32 %v2002_v58, %v1558_v57  ;;  %v1998_v61 = vld [vmem:[%s3094_s0 + $0x50] sm:$0xf0]  ;;  %v1826_v62 = vld [vmem:[%s3094_s0 + $0x288] sm:$0xf]  ;;  %v2005_v6 = vld [vmem:[%s3094_s0 + $0x88] sm:$0xf0] }
  0x12   :  { %865 = vmatpush.bf16.msra.mxu0 %v2087_v13  ;;  %v2070_v63 = vld [vmem:[%s3094_s0 + $0x290] sm:$0xf0]  ;;  %v1550_v8 = vld [vmem:[%s3094_s0 + $0x60] sm:$0xf]  ;;  %v2001_v9 = vld [vmem:[%s3094_s0 + $0x68] sm:$0xf0] }
  0x13   :  { %2106 = vmatpush.bf16.msra.mxu3 %v2087_v13  ;;  %1034 = vmatpush.bf16.msra.mxu1 %v2095_v14  ;;  %v1827_v3 = vor.u32 %v2070_v63, %v1826_v62  ;;  %v2073_v11 = vld [vmem:[%s3094_s0 + $0x2a8] sm:$0xf0]  ;;  %v1552_v13 = vld [vmem:[%s3094_s0 + $0x6c] sm:$0xf0]  ;;  %v1582_v17 = vld [vmem:[%s3094_s0 + $0x98] sm:$0xf] }
  0x14   :  { %v2008_v18 = vld [vmem:[%s3094_s0 + $0xa0] sm:$0xf0]  ;;  %v2003_v24 = vld [vmem:[%s3094_s0 + $0x7c] sm:$0xf]  ;;  %v1564_v25 = vld [vmem:[%s3094_s0 + $0x84] sm:$0xf0] }
  0x15   :  { %v1567_v28 = vor.u32 %v2003_v24, %v1564_v25  ;;  %v1594_v29 = vld [vmem:[%s3094_s0 + $0xb0] sm:$0xf]  ;;  %v2007_v33 = vld [vmem:[%s3094_s0 + $0x98] sm:$0xf0]  ;;  %v2006_v36 = vld [vmem:[%s3094_s0 + $0x94] sm:$0xf] }
  0x16   :  { %866 = vmatpush.bf16.msra.mxu0 %v2086_v15  ;;  %v1862_v34 = vld [vmem:[%s3094_s0 + $0x2d0] sm:$0xf]  ;;  %v1576_v37 = vld [vmem:[%s3094_s0 + $0x9c] sm:$0xf0]  ;;  %v1606_v41 = vld [vmem:[%s3094_s0 + $0xc8] sm:$0xf] }
  0x17   :  { %2107 = vmatpush.bf16.msra.mxu3 %v2086_v15  ;;  %1035 = vmatpush.bf16.msra.mxu1 %v2094_v16  ;;  %v1579_v40 = vor.u32 %v2006_v36, %v1576_v37  ;;  %v2010_v45 = vld [vmem:[%s3094_s0 + $0xb0] sm:$0xf0]  ;;  %v1874_v46 = vld [vmem:[%s3094_s0 + $0x2e8] sm:$0xf]  ;;  %v2009_v48 = vld [vmem:[%s3094_s0 + $0xac] sm:$0xf] }
  0x18   :  { %v1588_v49 = vld [vmem:[%s3094_s0 + $0xb4] sm:$0xf0]  ;;  %v1598_v58 = vld [vmem:[%s3094_s0 + $0xc0] sm:$0xf]  ;;  %v2060_v62 = vld [vmem:[%s3094_s0 + $0x244] sm:$0xf] }
  0x19   :  { %v1591_v53 = vor.u32 %v2009_v48, %v1588_v49  ;;  %v1792_v63 = vld [vmem:[%s3094_s0 + $0x24c] sm:$0xf0]  ;;  %v2066_v48 = vld [vmem:[%s3094_s0 + $0x274] sm:$0xf]  ;;  %v1816_v49 = vld [vmem:[%s3094_s0 + $0x27c] sm:$0xf0] }
  0x1a   :  { %1957 = vmatmul.msk.bf16.gmra.mxu2 %vm764_vm0, %v1523_v19  ;;  %867 = vmatpush.bf16.msra.mxu0 %v2085_v20  ;;  %v1583_v19 = vor.u32 %v2008_v18, %v1582_v17  ;;  %v1610_v18 = vld [vmem:[%s3094_s0 + $0xd8] sm:$0xf] }
  0x1b   :  { %2108 = vmatpush.bf16.msra.mxu3 %v2085_v20  ;;  %1036 = vmatpush.bf16.msra.mxu1 %v2093_v21  ;;  %v1562_v20 = vld [vmem:[%s3094_s0 + $0x78] sm:$0xf] }
  0x1e   :  { %868 = vmatpush.bf16.msra.mxu0 %v2084_v22 }
  0x1f   :  { %2109 = vmatpush.bf16.msra.mxu3 %v2084_v22  ;;  %1037 = vmatpush.bf16.msra.mxu1 %v2092_v23  ;;  %v1850_v22 = vld [vmem:[%s3094_s0 + $0x2b8] sm:$0xf] }
  0x21   :  { %869 = vmatmul.bf16.vlgmr.msra.gmra.mxu0 %v1503_v30  ;;  %v2011_v30 = vld [vmem:[%s3094_s0 + $0xb8] sm:$0xf0] }
  0x22   :  { %989 = vmatmul.bf16.vlgmr.msra.gmra.mxu3 %v1791_v31  ;;  %1038 = vmatmul.bf16.vlgmr.msra.gmra.mxu1 %v1507_v32  ;;  %v1595_v31 = vor.u32 %v2011_v30, %v1594_v29  ;;  %v1574_v32 = vld [vmem:[%s3094_s0 + $0x90] sm:$0xf] }
  0x23   :  { %2110 = vmatpush.bf16.msrb.mxu3 %v2099_v1  ;;  %v1540_v1 = vld [vmem:[%s3094_s0 + $0x54] sm:$0xf0]  ;;  %v1575_v38 = vor.u32 %v2007_v33, %v1574_v32 }
  0x27   :  { %2111 = vmatpush.bf16.msrb.mxu3 %v2098_v4  ;;  %v1543_v4 = vor.u32 %v1997_v0, %v1540_v1 }
  0x2a   :  { %1958 = vmatmul.msk.bf16.gmra.mxu2 %vm764_vm0, %v1535_v35  ;;  %v2079_v35 = vld [vmem:[%s3094_s0 + $0x2d8] sm:$0xf0] }
  0x2b   :  { %2112 = vmatpush.bf16.msrb.mxu3 %v2097_v10  ;;  %v1838_v10 = vld [vmem:[%s3094_s0 + $0x2a0] sm:$0xf]  ;;  %v1863_v39 = vor.u32 %v2079_v35, %v1862_v34  ;;  %v1642_v34 = vld [vmem:[%s3094_s0 + $0x110] sm:$0xf]  ;;  %v2023_v35 = vld [vmem:[%s3094_s0 + $0x118] sm:$0xf0] }
  0x2c   :  { %v1839_v15 = vor.u32 %v2073_v11, %v1838_v10 }
  0x2f   :  { %2113 = vmatpush.bf16.msrb.mxu3 %v2096_v12  ;;  %v2000_v12 = vld [vmem:[%s3094_s0 + $0x64] sm:$0xf] }
  0x31   :  { %874 = vmatmul.bf16.gmra.mxu0 %v1515_v42  ;;  %v2014_v42 = vld [vmem:[%s3094_s0 + $0xd0] sm:$0xf0] }
  0x32   :  { %994 = vmatmul.bf16.gmra.mxu3 %v1803_v43  ;;  %1043 = vmatmul.bf16.gmra.mxu1 %v1519_v44  ;;  %v1607_v43 = vor.u32 %v2014_v42, %v1606_v41  ;;  %v1586_v44 = vld [vmem:[%s3094_s0 + $0xa8] sm:$0xf] }
  0x33   :  { %2114 = vmatpush.bf16.msrb.mxu3 %v2095_v14  ;;  %v1551_v14 = vor.u32 %v2001_v9, %v1550_v8  ;;  %v1587_v51 = vor.u32 %v2010_v45, %v1586_v44  ;;  %v1630_v8 = vld [vmem:[%s3094_s0 + $0xf8] sm:$0xf]  ;;  %v2020_v9 = vld [vmem:[%s3094_s0 + $0x100] sm:$0xf0]  ;;  %v1622_v44 = vld [vmem:[%s3094_s0 + $0xf0] sm:$0xf] }
  0x34   :  { %v2019_v45 = vld [vmem:[%s3094_s0 + $0xf8] sm:$0xf0] }
  0x37   :  { %2115 = vmatpush.bf16.msrb.mxu3 %v2094_v16  ;;  %v1555_v16 = vor.u32 %v2000_v12, %v1552_v13 }
  0x3a   :  { %1959 = vmatmul.msk.bf16.gmra.mxu2 %vm764_vm0, %v1547_v47  ;;  %v2082_v47 = vld [vmem:[%s3094_s0 + $0x2f0] sm:$0xf0] }
  0x3b   :  { %2116 = vmatpush.bf16.msrb.mxu3 %v2093_v21  ;;  %v2004_v21 = vld [vmem:[%s3094_s0 + $0x80] sm:$0xf0]  ;;  %v1875_v52 = vor.u32 %v2082_v47, %v1874_v46  ;;  %v2018_v46 = vld [vmem:[%s3094_s0 + $0xf4] sm:$0xf]  ;;  %v1624_v47 = vld [vmem:[%s3094_s0 + $0xfc] sm:$0xf0] }
  0x3c   :  { %v1563_v26 = vor.u32 %v2004_v21, %v1562_v20  ;;  %v2015_v20 = vld [vmem:[%s3094_s0 + $0xdc] sm:$0xf]  ;;  %v1612_v21 = vld [vmem:[%s3094_s0 + $0xe4] sm:$0xf0] }
  0x3d   :  { %v1615_v29 = vor.u32 %v2015_v20, %v1612_v21 }
  0x3f   :  { %2117 = vmatpush.bf16.msrb.mxu3 %v2092_v23  ;;  %v2076_v23 = vld [vmem:[%s3094_s0 + $0x2c0] sm:$0xf0] }
  0x40   :  { %v1851_v27 = vor.u32 %v2076_v23, %v1850_v22  ;;  %v2063_v22 = vld [vmem:[%s3094_s0 + $0x25c] sm:$0xf]  ;;  %v1804_v23 = vld [vmem:[%s3094_s0 + $0x264] sm:$0xf0] }
  0x41   :  { %879 = vmatmul.bf16.gmra.mxu0 %v1527_v54  ;;  %v1618_v54 = vld [vmem:[%s3094_s0 + $0xe0] sm:$0xf]  ;;  %v1807_v30 = vor.u32 %v2063_v22, %v1804_v23 }
  0x42   :  { %999 = vmatmul.bf16.gmra.mxu3 %v1815_v55  ;;  %1048 = vmatmul.bf16.gmra.mxu1 %v1531_v56  ;;  %v2017_v55 = vld [vmem:[%s3094_s0 + $0xe8] sm:$0xf0]  ;;  %v1666_v23 = vld [vmem:[%s3094_s0 + $0x140] sm:$0xf] }
  0x43   :  { %2118 = vmatpush.bf16.msra.mxu3 %v2144_v2  ;;  %v1539_v2 = vor.u32 %v1998_v61, %v1538_v60  ;;  %v1619_v57 = vor.u32 %v2017_v55, %v1618_v54  ;;  %v2012_v60 = vld [vmem:[%s3094_s0 + $0xc4] sm:$0xf]  ;;  %v1600_v61 = vld [vmem:[%s3094_s0 + $0xcc] sm:$0xf0]  ;;  %v1627_v55 = vor.u32 %v2018_v46, %v1624_v47 }
  0x47   :  { %2119 = vmatpush.bf16.msra.mxu3 %v2156_v5  ;;  %v1570_v5 = vld [vmem:[%s3094_s0 + $0x80] sm:$0xf] }
  0x48   :  { %v1571_v7 = vor.u32 %v2005_v6, %v1570_v5 }
  0x4a   :  { %1960 = vmatmul.msk.bf16.gmra.mxu2 %vm764_vm0, %v1559_v59  ;;  %v2013_v59 = vld [vmem:[%s3094_s0 + $0xc8] sm:$0xf0] }
  0x4b   :  { %v1599_v1 = vor.u32 %v2013_v59, %v1598_v58 }
  0x51   :  { %884 = vmatmul.bf16.gmra.mxu0 %v1539_v2 }
  0x52   :  { %1004 = vmatmul.bf16.gmra.mxu3 %v1827_v3  ;;  %1053 = vmatmul.bf16.gmra.mxu1 %v1543_v4  ;;  %v1603_v3 = vor.u32 %v2012_v60, %v1600_v61  ;;  %v1795_v4 = vor.u32 %v2060_v62, %v1792_v63  ;;  %v1654_v60 = vld [vmem:[%s3094_s0 + $0x128] sm:$0xf]  ;;  %v2026_v61 = vld [vmem:[%s3094_s0 + $0x130] sm:$0xf0] }
  0x5a   :  { %1961 = vmatmul.msk.bf16.gmra.mxu2 %vm764_vm0, %v1571_v7 }
  0x61   :  { %889 = vmatmul.bf16.gmra.mxu0 %v1551_v14  ;;  %v1631_v14 = vor.u32 %v2020_v9, %v1630_v8  ;;  %v2021_v8 = vld [vmem:[%s3094_s0 + $0x10c] sm:$0xf]  ;;  %v1636_v9 = vld [vmem:[%s3094_s0 + $0x114] sm:$0xf0] }
  0x62   :  { %1009 = vmatmul.bf16.gmra.mxu3 %v1839_v15  ;;  %1058 = vmatmul.bf16.gmra.mxu1 %v1555_v16 }
  0x6a   :  { %1962 = vmatmul.msk.bf16.gmra.mxu2 %vm764_vm0, %v1583_v19  ;;  %v2016_v19 = vld [vmem:[%s3094_s0 + $0xe0] sm:$0xf0] }
  0x71   :  { %894 = vmatmul.bf16.gmra.mxu0 %v1563_v26 }
  0x72   :  { %1014 = vmatmul.bf16.gmra.mxu3 %v1851_v27  ;;  %1063 = vmatmul.bf16.gmra.mxu1 %v1567_v28  ;;  %v1611_v27 = vor.u32 %v2016_v19, %v1610_v18  ;;  %v1639_v18 = vor.u32 %v2021_v8, %v1636_v9 }
  0x7a   :  { %1963 = vmatmul.msk.bf16.gmra.mxu2 %vm764_vm0, %v1595_v31 }
  0x81   :  { %899 = vmatmul.bf16.gmra.mxu0 %v1575_v38 }
  0x82   :  { %1019 = vmatmul.bf16.gmra.mxu3 %v1863_v39  ;;  %1068 = vmatmul.bf16.gmra.mxu1 %v1579_v40  ;;  %v1643_v40 = vor.u32 %v2023_v35, %v1642_v34  ;;  %v1646_v34 = vld [vmem:[%s3094_s0 + $0x120] sm:$0xf]  ;;  %v2025_v35 = vld [vmem:[%s3094_s0 + $0x128] sm:$0xf0] }
  0x8a   :  { %1964 = vmatmul.msk.bf16.gmra.mxu2 %vm764_vm0, %v1607_v43 }
  0x8d   :  { %v1208_v50 = vpop.f32.mrf.mxu2 }
  0x91   :  { %904 = vmatmul.bf16.gmra.mxu0 %v1587_v51 }
  0x92   :  { %1024 = vmatmul.bf16.gmra.mxu3 %v1875_v52  ;;  %1073 = vmatmul.bf16.gmra.mxu1 %v1591_v53  ;;  %v1623_v53 = vor.u32 %v2019_v45, %v1622_v44  ;;  %v1647_v44 = vor.u32 %v2025_v35, %v1646_v34  ;;  %v1864_v34 = vld [vmem:[%s3094_s0 + $0x2dc] sm:$0xf0] }
  0x95   :  { %v1210_v56 = vpop.f32.mrf.mxu2 }
  0x9a   :  { %1965 = vmatmul.msk.bf16.gmra.mxu2 %vm764_vm0, %v1619_v57 }
  0x9d   :  { %v1213_v0 = vpop.f32.mrf.mxu2 }
  0x9e   :  { %v870_v2 = vpop.f32.mrf.mxu0 }
  0x9f   :  { %v1039_v5 = vpop.f32.mrf.mxu1 }
  0xa0   :  { %v1040_v6 = vadd.f32 %v1039_v5, %v870_v2  ;;  %v1655_v2 = vor.u32 %v2026_v61, %v1654_v60 }
  0xa1   :  { %909 = vmatmul.bf16.gmra.mxu0 %v1599_v1 }
  0xa2   :  { %v1209_v7 = vadd.f32 %v1208_v50, %v1040_v6  ;;  %1078 = vmatmul.bf16.gmra.mxu1 %v1603_v3  ;;  %1158 = vmatmul.bf16.vlgmr.msrb.gmra.mxu3 %v1795_v4  ;;  %v1634_v6 = vld [vmem:[%s3094_s0 + $0x108] sm:$0xf] }
  0xa4   :  { %v1368_v10 = vmax.f32 %v1209_v7, 0.0  ;;  %v2022_v7 = vld [vmem:[%s3094_s0 + $0x110] sm:$0xf0] }
  0xa5   :  { %v2435_v11 = vpop.f32.mrf.mxu3  ;;  %v1215_v12 = vpop.f32.mrf.mxu2 }
  0xa6   :  { %1432 = vst [vmem:[%s3095_s2] sm:$0xff] %v1368_v10  ;;  %v872_v13 = vpop.f32.mrf.mxu0  ;;  %v2069_v10 = vld [vmem:[%s3094_s0 + $0x28c] sm:$0xf] }
  0xa7   :  { %v1041_v15 = vpop.f32.mrf.mxu1 }
  0xa8   :  { %v1042_v16 = vadd.f32 %v1041_v15, %v872_v13 }
  0xaa   :  { %v1211_v17 = vadd.f32 %v1210_v56, %v1042_v16  ;;  %1966 = vmatmul.msk.bf16.gmra.mxu2 %vm764_vm0, %v1631_v14  ;;  %v1819_v56 = vor.u32 %v2066_v48, %v1816_v49  ;;  %v1635_v16 = vor.u32 %v2022_v7, %v1634_v6 }
  0xac   :  { %v1369_v24 = vmax.f32 %v1211_v17, 0.0 }
  0xad   :  { %v2459_v25 = vpop.f32.mrf.mxu3  ;;  %v1218_v26 = vpop.f32.mrf.mxu2 }
  0xae   :  { %1433 = vst [vmem:[%s3095_s2 + $0x8] sm:$0xff] %v1369_v24  ;;  %v875_v28 = vpop.f32.mrf.mxu0  ;;  %v2029_v24 = vld [vmem:[%s3094_s0 + $0x148] sm:$0xf0] }
  0xaf   :  { %v1044_v31 = vpop.f32.mrf.mxu1 }
  0xb0   :  { %v1045_v32 = vadd.f32 %v1044_v31, %v875_v28 }
  0xb1   :  { %914 = vmatmul.bf16.gmra.mxu0 %v1611_v27 }
  0xb2   :  { %v1214_v33 = vadd.f32 %v1213_v0, %v1045_v32  ;;  %1083 = vmatmul.bf16.gmra.mxu1 %v1615_v29  ;;  %1163 = vmatmul.bf16.gmra.mxu3 %v1807_v30  ;;  %v1667_v30 = vor.u32 %v2029_v24, %v1666_v23 }
  0xb4   :  { %v1370_v36 = vmax.f32 %v1214_v33, 0.0 }
  0xb5   :  { %v2470_v37 = vpop.f32.mrf.mxu3  ;;  %v1220_v38 = vpop.f32.mrf.mxu2 }
  0xb6   :  { %1434 = vst [vmem:[%s3095_s2 + $0x10] sm:$0xff] %v1370_v36  ;;  %v877_v39 = vpop.f32.mrf.mxu0  ;;  %v2024_v36 = vld [vmem:[%s3094_s0 + $0x124] sm:$0xf] }
  0xb7   :  { %v1046_v41 = vpop.f32.mrf.mxu1 }
  0xb8   :  { %v1047_v42 = vadd.f32 %v1046_v41, %v877_v39  ;;  %v2072_v39 = vld [vmem:[%s3094_s0 + $0x2a4] sm:$0xf] }
  0xba   :  { %v1216_v43 = vadd.f32 %v1215_v12, %v1047_v42  ;;  %1967 = vmatmul.msk.bf16.gmra.mxu2 %vm764_vm0, %v1643_v40  ;;  %v1828_v12 = vld [vmem:[%s3094_s0 + $0x294] sm:$0xf0]  ;;  %v1840_v40 = vld [vmem:[%s3094_s0 + $0x2ac] sm:$0xf0] }
  0xbb   :  { %v1831_v19 = vor.u32 %v2069_v10, %v1828_v12  ;;  %v1843_v47 = vor.u32 %v2072_v39, %v1840_v40 }
  0xbc   :  { %v1371_v50 = vmax.f32 %v1216_v43, 0.0 }
  0xbd   :  { %v2494_v51 = vpop.f32.mrf.mxu3  ;;  %v1223_v52 = vpop.f32.mrf.mxu2 }
  0xbe   :  { %1435 = vst [vmem:[%s3095_s2 + $0x18] sm:$0xff] %v1371_v50  ;;  %v880_v54 = vpop.f32.mrf.mxu0 }
  0xbf   :  { %v1049_v57 = vpop.f32.mrf.mxu1 }
  0xc0   :  { %v1050_v58 = vadd.f32 %v1049_v57, %v880_v54 }
  0xc1   :  { %919 = vmatmul.bf16.gmra.mxu0 %v1623_v53  ;;  %v2032_v53 = vld [vmem:[%s3094_s0 + $0x160] sm:$0xf0] }
  0xc2   :  { %v1219_v59 = vadd.f32 %v1218_v26, %v1050_v58  ;;  %1088 = vmatmul.bf16.gmra.mxu1 %v1627_v55  ;;  %1168 = vmatmul.bf16.gmra.mxu3 %v1819_v56 }
  0xc4   :  { %v1372_v62 = vmax.f32 %v1219_v59, 0.0 }
  0xc5   :  { %v2505_v63 = vpop.f32.mrf.mxu3  ;;  %v1225_v0 = vpop.f32.mrf.mxu2 }
  0xc6   :  { %1436 = vst [vmem:[%s3095_s2 + $0x20] sm:$0xff] %v1372_v62  ;;  %v882_v1 = vpop.f32.mrf.mxu0  ;;  %v1658_v62 = vld [vmem:[%s3094_s0 + $0x138] sm:$0xf] }
  0xc7   :  { %v1051_v3 = vpop.f32.mrf.mxu1 }
  0xc8   :  { %v1052_v4 = vadd.f32 %v1051_v3, %v882_v1  ;;  %v2027_v1 = vld [vmem:[%s3094_s0 + $0x13c] sm:$0xf] }
  0xc9   :  { %v2075_v3 = vld [vmem:[%s3094_s0 + $0x2bc] sm:$0xf] }
  0xca   :  { %v1221_v5 = vadd.f32 %v1220_v38, %v1052_v4  ;;  %1968 = vmatmul.msk.bf16.gmra.mxu2 %vm764_vm0, %v1655_v2  ;;  %v1648_v38 = vld [vmem:[%s3094_s0 + $0x12c] sm:$0xf0]  ;;  %v1660_v2 = vld [vmem:[%s3094_s0 + $0x144] sm:$0xf0] }
  0xcb   :  { %v1651_v46 = vor.u32 %v2024_v36, %v1648_v38  ;;  %v1852_v4 = vld [vmem:[%s3094_s0 + $0x2c4] sm:$0xf0]  ;;  %v1663_v10 = vor.u32 %v2027_v1, %v1660_v2  ;;  %v1876_v1 = vld [vmem:[%s3094_s0 + $0x2f4] sm:$0xf0] }
  0xcc   :  { %v1373_v13 = vmax.f32 %v1221_v5, 0.0  ;;  %v1855_v12 = vor.u32 %v2075_v3, %v1852_v4 }
  0xcd   :  { %v2529_v14 = vpop.f32.mrf.mxu3  ;;  %v1228_v15 = vpop.f32.mrf.mxu2 }
  0xce   :  { %1437 = vst [vmem:[%s3095_s2 + $0x28] sm:$0xff] %v1373_v13  ;;  %v885_v17 = vpop.f32.mrf.mxu0 }
  0xcf   :  { %v1054_v20 = vpop.f32.mrf.mxu1 }
  0xd0   :  { %v1055_v21 = vadd.f32 %v1054_v20, %v885_v17  ;;  %v1690_v17 = vld [vmem:[%s3094_s0 + $0x170] sm:$0xf] }
  0xd1   :  { %924 = vmatmul.bf16.gmra.mxu0 %v1635_v16 }
  0xd2   :  { %v1224_v22 = vadd.f32 %v1223_v52, %v1055_v21  ;;  %1093 = vmatmul.bf16.gmra.mxu1 %v1639_v18  ;;  %1173 = vmatmul.bf16.gmra.mxu3 %v1831_v19  ;;  %v1678_v52 = vld [vmem:[%s3094_s0 + $0x158] sm:$0xf]  ;;  %v2035_v18 = vld [vmem:[%s3094_s0 + $0x178] sm:$0xf0] }
  0xd3   :  { %v1679_v58 = vor.u32 %v2032_v53, %v1678_v52  ;;  %v1691_v23 = vor.u32 %v2035_v18, %v1690_v17 }
  0xd4   :  { %v1374_v26 = vmax.f32 %v1224_v22, 0.0 }
  0xd5   :  { %v2540_v27 = vpop.f32.mrf.mxu3  ;;  %v1230_v28 = vpop.f32.mrf.mxu2 }
  0xd6   :  { %1438 = vst [vmem:[%s3095_s2 + $0x30] sm:$0xff] %v1374_v26  ;;  %v887_v29 = vpop.f32.mrf.mxu0 }
  0xd7   :  { %v1056_v31 = vpop.f32.mrf.mxu1 }
  0xd8   :  { %v1057_v32 = vadd.f32 %v1056_v31, %v887_v29  ;;  %v1670_v29 = vld [vmem:[%s3094_s0 + $0x150] sm:$0xf]  ;;  %v2030_v31 = vld [vmem:[%s3094_s0 + $0x154] sm:$0xf] }
  0xda   :  { %v1226_v33 = vadd.f32 %v1225_v0, %v1057_v32  ;;  %1969 = vmatmul.msk.bf16.gmra.mxu2 %vm764_vm0, %v1667_v30  ;;  %v2028_v0 = vld [vmem:[%s3094_s0 + $0x140] sm:$0xf0]  ;;  %v2031_v30 = vld [vmem:[%s3094_s0 + $0x158] sm:$0xf0]  ;;  %v1672_v32 = vld [vmem:[%s3094_s0 + $0x15c] sm:$0xf0] }
  0xdb   :  { %v1659_v8 = vor.u32 %v2028_v0, %v1658_v62  ;;  %v1671_v39 = vor.u32 %v2031_v30, %v1670_v29  ;;  %v1684_v62 = vld [vmem:[%s3094_s0 + $0x174] sm:$0xf0]  ;;  %v2081_v0 = vld [vmem:[%s3094_s0 + $0x2ec] sm:$0xf]  ;;  %v2036_v30 = vld [vmem:[%s3094_s0 + $0x184] sm:$0xf] }
  0xdc   :  { %v1375_v41 = vmax.f32 %v1226_v33, 0.0  ;;  %v2078_v33 = vld [vmem:[%s3094_s0 + $0x2d4] sm:$0xf]  ;;  %v2037_v29 = vld [vmem:[%s3094_s0 + $0x188] sm:$0xf0] }
  0xdd   :  { %v2564_v42 = vpop.f32.mrf.mxu3  ;;  %v1233_v43 = vpop.f32.mrf.mxu2 }
  0xde   :  { %1439 = vst [vmem:[%s3095_s2 + $0x38] sm:$0xff] %v1375_v41  ;;  %v890_v45 = vpop.f32.mrf.mxu0  ;;  %v1675_v41 = vor.u32 %v2030_v31, %v1672_v32  ;;  %v1696_v31 = vld [vmem:[%s3094_s0 + $0x18c] sm:$0xf0]  ;;  %v1822_v32 = vld [vmem:[%s3094_s0 + $0x278] sm:$0xf] }
  0xdf   :  { %v1059_v48 = vpop.f32.mrf.mxu1 }
  0xe0   :  { %v1060_v49 = vadd.f32 %v1059_v48, %v890_v45  ;;  %v2038_v48 = vld [vmem:[%s3094_s0 + $0x190] sm:$0xf0] }
  0xe1   :  { %929 = vmatmul.bf16.gmra.mxu0 %v1647_v44 }
  0xe2   :  { %v1229_v50 = vadd.f32 %v1228_v15, %v1060_v49  ;;  %1098 = vmatmul.bf16.gmra.mxu1 %v1651_v46  ;;  %1178 = vmatmul.bf16.gmra.mxu3 %v1843_v47  ;;  %v1702_v47 = vld [vmem:[%s3094_s0 + $0x188] sm:$0xf] }
  0xe4   :  { %v1376_v54 = vmax.f32 %v1229_v50, 0.0 }
  0xe5   :  { %v2575_v55 = vpop.f32.mrf.mxu3  ;;  %v1235_v56 = vpop.f32.mrf.mxu2 }
  0xe6   :  { %1440 = vst [vmem:[%s3095_s2 + $0x40] sm:$0xff] %v1376_v54  ;;  %v892_v57 = vpop.f32.mrf.mxu0  ;;  %v1703_v54 = vor.u32 %v2038_v48, %v1702_v47  ;;  %v1726_v47 = vld [vmem:[%s3094_s0 + $0x1b8] sm:$0xf]  ;;  %v2044_v48 = vld [vmem:[%s3094_s0 + $0x1c0] sm:$0xf0] }
  0xe7   :  { %v1061_v59 = vpop.f32.mrf.mxu1 }
  0xe8   :  { %v1062_v60 = vadd.f32 %v1061_v59, %v892_v57  ;;  %v1682_v59 = vld [vmem:[%s3094_s0 + $0x168] sm:$0xf] }
  0xea   :  { %v1231_v61 = vadd.f32 %v1230_v28, %v1062_v60  ;;  %1970 = vmatmul.msk.bf16.gmra.mxu2 %vm764_vm0, %v1679_v58  ;;  %v2034_v60 = vld [vmem:[%s3094_s0 + $0x170] sm:$0xf0] }
  0xec   :  { %v1377_v5 = vmax.f32 %v1231_v61, 0.0  ;;  %v2033_v61 = vld [vmem:[%s3094_s0 + $0x16c] sm:$0xf] }
  0xed   :  { %v2599_v6 = vpop.f32.mrf.mxu3  ;;  %v1238_v7 = vpop.f32.mrf.mxu2 }
  0xee   :  { %1441 = vst [vmem:[%s3095_s2 + $0x48] sm:$0xff] %v1377_v5  ;;  %v895_v9 = vpop.f32.mrf.mxu0  ;;  %v1683_v5 = vor.u32 %v2034_v60, %v1682_v59  ;;  %v1706_v60 = vld [vmem:[%s3094_s0 + $0x198] sm:$0xf] }
  0xef   :  { %v1064_v13 = vpop.f32.mrf.mxu1 }
  0xf0   :  { %v1065_v15 = vadd.f32 %v1064_v13, %v895_v9  ;;  %v1879_v9 = vor.u32 %v2081_v0, %v1876_v1  ;;  %v1708_v0 = vld [vmem:[%s3094_s0 + $0x1a4] sm:$0xf0]  ;;  %v1834_v1 = vld [vmem:[%s3094_s0 + $0x290] sm:$0xf] }
  0xf1   :  { %934 = vmatmul.bf16.gmra.mxu0 %v1659_v8  ;;  %v1687_v8 = vor.u32 %v2033_v61, %v1684_v62  ;;  %v2040_v61 = vld [vmem:[%s3094_s0 + $0x1a0] sm:$0xf0]  ;;  %v2039_v62 = vld [vmem:[%s3094_s0 + $0x19c] sm:$0xf] }
  0xf2   :  { %v1234_v16 = vadd.f32 %v1233_v43, %v1065_v15  ;;  %1103 = vmatmul.bf16.gmra.mxu1 %v1663_v10  ;;  %1183 = vmatmul.bf16.gmra.mxu3 %v1855_v12  ;;  %v1867_v43 = vor.u32 %v2078_v33, %v1864_v34  ;;  %v1714_v15 = vld [vmem:[%s3094_s0 + $0x1a0] sm:$0xf]  ;;  %v2068_v33 = vld [vmem:[%s3094_s0 + $0x280] sm:$0xf0] }
  0xf4   :  { %v1378_v19 = vmax.f32 %v1234_v16, 0.0  ;;  %v2041_v16 = vld [vmem:[%s3094_s0 + $0x1a8] sm:$0xf0] }
  0xf5   :  { %v2610_v20 = vpop.f32.mrf.mxu3  ;;  %v1240_v21 = vpop.f32.mrf.mxu2 }
  0xf6   :  { %1442 = vst [vmem:[%s3095_s2 + $0x50] sm:$0xff] %v1378_v19  ;;  %v897_v22 = vpop.f32.mrf.mxu0 }
  0xf7   :  { %v1066_v24 = vpop.f32.mrf.mxu1 }
  0xf8   :  { %v1067_v26 = vadd.f32 %v1066_v24, %v897_v22  ;;  %v1715_v22 = vor.u32 %v2041_v16, %v1714_v15 }
  0xfa   :  { %v1236_v28 = vadd.f32 %v1235_v56, %v1067_v26  ;;  %1971 = vmatmul.msk.bf16.gmra.mxu2 %vm764_vm0, %v1691_v23 }
  0xfc   :  { %v1379_v35 = vmax.f32 %v1236_v28, 0.0  ;;  %v1694_v28 = vld [vmem:[%s3094_s0 + $0x180] sm:$0xf] }
  0xfd   :  { %v2634_v36 = vpop.f32.mrf.mxu3  ;;  %v1243_v38 = vpop.f32.mrf.mxu2 }
  0xfe   :  { %1443 = vst [vmem:[%s3095_s2 + $0x58] sm:$0xff] %v1379_v35  ;;  %v900_v40 = vpop.f32.mrf.mxu0 }
  0xff   :  { %v1069_v44 = vpop.f32.mrf.mxu1 }
 0x100   :  { %v1070_v45 = vadd.f32 %v1069_v44, %v900_v40 }
 0x101   :  { %939 = vmatmul.bf16.gmra.mxu0 %v1671_v39  ;;  %v1695_v39 = vor.u32 %v2037_v29, %v1694_v28 }
 0x102   :  { %v1239_v46 = vadd.f32 %v1238_v7, %v1070_v45  ;;  %1108 = vmatmul.bf16.gmra.mxu1 %v1675_v41  ;;  %1188 = vmatmul.bf16.gmra.mxu3 %v1867_v43  ;;  %v1699_v41 = vor.u32 %v2036_v30, %v1696_v31  ;;  %v1823_v43 = vor.u32 %v2068_v33, %v1822_v32  ;;  %v1718_v31 = vld [vmem:[%s3094_s0 + $0x1b0] sm:$0xf]  ;;  %v2043_v32 = vld [vmem:[%s3094_s0 + $0x1b8] sm:$0xf0]  ;;  %v2042_v33 = vld [vmem:[%s3094_s0 + $0x1b4] sm:$0xf] }
 0x104   :  { %v1380_v49 = vmax.f32 %v1239_v46, 0.0 }
 0x105   :  { %v2645_v50 = vpop.f32.mrf.mxu3  ;;  %v1245_v52 = vpop.f32.mrf.mxu2 }
 0x106   :  { %1444 = vst [vmem:[%s3095_s2 + $0x60] sm:$0xff] %v1380_v49  ;;  %v902_v53 = vpop.f32.mrf.mxu0 }
 0x107   :  { %v1071_v56 = vpop.f32.mrf.mxu1 }
 0x108   :  { %v1072_v57 = vadd.f32 %v1071_v56, %v902_v53  ;;  %v1727_v56 = vor.u32 %v2044_v48, %v1726_v47 }
 0x10a   :  { %v1241_v58 = vadd.f32 %v1240_v21, %v1072_v57  ;;  %1972 = vmatmul.msk.bf16.gmra.mxu2 %vm764_vm0, %v1703_v54 }
 0x10c   :  { %v1381_v2 = vmax.f32 %v1241_v58, 0.0 }
 0x10d   :  { %v2669_v3 = vpop.f32.mrf.mxu3  ;;  %v1248_v4 = vpop.f32.mrf.mxu2 }
 0x10e   :  { %1445 = vst [vmem:[%s3095_s2 + $0x68] sm:$0xff] %v1381_v2  ;;  %v905_v7 = vpop.f32.mrf.mxu0  ;;  %v2071_v2 = vld [vmem:[%s3094_s0 + $0x298] sm:$0xf0] }
 0x10f   :  { %v1074_v10 = vpop.f32.mrf.mxu1 }
 0x110   :  { %v1075_v12 = vadd.f32 %v1074_v10, %v905_v7  ;;  %v1711_v10 = vor.u32 %v2039_v62, %v1708_v0 }
 0x111   :  { %944 = vmatmul.bf16.gmra.mxu0 %v1683_v5 }
 0x112   :  { %v1244_v13 = vadd.f32 %v1243_v38, %v1075_v12  ;;  %1113 = vmatmul.bf16.gmra.mxu1 %v1687_v8  ;;  %1193 = vmatmul.bf16.gmra.mxu3 %v1879_v9  ;;  %v1707_v8 = vor.u32 %v2040_v61, %v1706_v60  ;;  %v1835_v12 = vor.u32 %v2071_v2, %v1834_v1  ;;  %v1730_v2 = vld [vmem:[%s3094_s0 + $0x1c8] sm:$0xf] }
 0x114   :  { %v1382_v17 = vmax.f32 %v1244_v13, 0.0 }
 0x115   :  { %v2680_v18 = vpop.f32.mrf.mxu3  ;;  %v1250_v19 = vpop.f32.mrf.mxu2 }
 0x116   :  { %1446 = vst [vmem:[%s3095_s2 + $0x70] sm:$0xff] %v1382_v17  ;;  %v907_v21 = vpop.f32.mrf.mxu0  ;;  %v1738_v17 = vld [vmem:[%s3094_s0 + $0x1d0] sm:$0xf] }
 0x117   :  { %v1076_v23 = vpop.f32.mrf.mxu1 }
 0x118   :  { %v1077_v24 = vadd.f32 %v1076_v23, %v907_v21 }
 0x11a   :  { %v1246_v26 = vadd.f32 %v1245_v52, %v1077_v24  ;;  %1973 = vmatmul.msk.bf16.gmra.mxu2 %vm764_vm0, %v1715_v22 }
 0x11c   :  { %v1383_v34 = vmax.f32 %v1246_v26, 0.0 }
 0x11d   :  { %v2704_v35 = vpop.f32.mrf.mxu3  ;;  %v1253_v38 = vpop.f32.mrf.mxu2 }
 0x11e   :  { %1447 = vst [vmem:[%s3095_s2 + $0x78] sm:$0xff] %v1383_v34  ;;  %v910_v40 = vpop.f32.mrf.mxu0  ;;  %v1720_v34 = vld [vmem:[%s3094_s0 + $0x1bc] sm:$0xf0] }
 0x11f   :  { %v1079_v44 = vpop.f32.mrf.mxu1 }
 0x120   :  { %v1080_v45 = vadd.f32 %v1079_v44, %v910_v40  ;;  %v1719_v44 = vor.u32 %v2043_v32, %v1718_v31 }
 0x121   :  { %949 = vmatmul.bf16.gmra.mxu0 %v1695_v39  ;;  %v2074_v39 = vld [vmem:[%s3094_s0 + $0x2b0] sm:$0xf0] }
 0x122   :  { %v1249_v46 = vadd.f32 %v1248_v4, %v1080_v45  ;;  %1118 = vmatmul.bf16.gmra.mxu1 %v1699_v41  ;;  %1982 = vmatmul.msk.bf16.vlgmr.msra.gmra.mxu3 %vm764_vm0, %v1823_v43 }
 0x124   :  { %v1384_v49 = vmax.f32 %v1249_v46, 0.0  ;;  %v1723_v46 = vor.u32 %v2042_v33, %v1720_v34 }
 0x125   :  { %v2716_v52 = vpop.f32.mrf.mxu3  ;;  %v1255_v53 = vpop.f32.mrf.mxu2 }
 0x126   :  { %1448 = vst [vmem:[%s3095_s2 + $0x80] sm:$0xff] %v1384_v49  ;;  %v912_v54 = vpop.f32.mrf.mxu0 }
 0x127   :  { %v1081_v57 = vpop.f32.mrf.mxu1 }
 0x128   :  { %v1082_v58 = vadd.f32 %v1081_v57, %v912_v54  ;;  %v1750_v54 = vld [vmem:[%s3094_s0 + $0x1e8] sm:$0xf] }
 0x12a   :  { %v1251_v59 = vadd.f32 %v1250_v19, %v1082_v58  ;;  %1974 = vmatmul.msk.bf16.gmra.mxu2 %vm764_vm0, %v1727_v56  ;;  %v2047_v19 = vld [vmem:[%s3094_s0 + $0x1d8] sm:$0xf0]  ;;  %v2050_v56 = vld [vmem:[%s3094_s0 + $0x1f0] sm:$0xf0] }
 0x12b   :  { %v1739_v26 = vor.u32 %v2047_v19, %v1738_v17  ;;  %v1751_v61 = vor.u32 %v2050_v56, %v1750_v54 }
 0x12c   :  { %v1385_v4 = vmax.f32 %v1251_v59, 0.0 }
 0x12d   :  { %v2740_v5 = vpop.f32.mrf.mxu3  ;;  %v1258_v7 = vpop.f32.mrf.mxu2 }
 0x12e   :  { %1449 = vst [vmem:[%s3095_s2 + $0x88] sm:$0xff] %v1385_v4  ;;  %v915_v9 = vpop.f32.mrf.mxu0  ;;  %v2046_v4 = vld [vmem:[%s3094_s0 + $0x1d0] sm:$0xf0] }
 0x12f   :  { %v1084_v13 = vpop.f32.mrf.mxu1 }
 0x130   :  { %v1085_v15 = vadd.f32 %v1084_v13, %v915_v9  ;;  %v1858_v9 = vld [vmem:[%s3094_s0 + $0x2c0] sm:$0xf] }
 0x131   :  { %954 = vmatmul.bf16.gmra.mxu0 %v1707_v8  ;;  %v1732_v8 = vld [vmem:[%s3094_s0 + $0x1d4] sm:$0xf0] }
 0x132   :  { %v1254_v16 = vadd.f32 %v1253_v38, %v1085_v15  ;;  %1123 = vmatmul.bf16.gmra.mxu1 %v1711_v10  ;;  %1983 = vmatmul.msk.bf16.gmra.mxu3 %vm764_vm0, %v1835_v12  ;;  %v1846_v38 = vld [vmem:[%s3094_s0 + $0x2a8] sm:$0xf]  ;;  %v2077_v10 = vld [vmem:[%s3094_s0 + $0x2c8] sm:$0xf0] }
 0x133   :  { %v1847_v47 = vor.u32 %v2074_v39, %v1846_v38 }
 0x134   :  { %v1386_v21 = vmax.f32 %v1254_v16, 0.0  ;;  %v1731_v16 = vor.u32 %v2046_v4, %v1730_v2  ;;  %v2056_v2 = vld [vmem:[%s3094_s0 + $0x220] sm:$0xf0] }
 0x135   :  { %v2752_v22 = vpop.f32.mrf.mxu3  ;;  %v1260_v23 = vpop.f32.mrf.mxu2 }
 0x136   :  { %1450 = vst [vmem:[%s3095_s2 + $0x90] sm:$0xff] %v1386_v21  ;;  %v917_v24 = vpop.f32.mrf.mxu0  ;;  %v1859_v21 = vor.u32 %v2077_v10, %v1858_v9 }
 0x137   :  { %v1086_v28 = vpop.f32.mrf.mxu1 }
 0x138   :  { %v1087_v29 = vadd.f32 %v1086_v28, %v917_v24  ;;  %v1762_v28 = vld [vmem:[%s3094_s0 + $0x200] sm:$0xf] }
 0x13a   :  { %v1256_v30 = vadd.f32 %v1255_v53, %v1087_v29  ;;  %1975 = vmatmul.msk.bf16.gmra.mxu2 %vm764_vm0, %v1739_v26  ;;  %v2053_v29 = vld [vmem:[%s3094_s0 + $0x208] sm:$0xf0] }
 0x13b   :  { %v1763_v34 = vor.u32 %v2053_v29, %v1762_v28 }
 0x13c   :  { %v1387_v40 = vmax.f32 %v1256_v30, 0.0 }
 0x13d   :  { %v2776_v41 = vpop.f32.mrf.mxu3  ;;  %v1263_v43 = vpop.f32.mrf.mxu2 }
 0x13e   :  { %1451 = vst [vmem:[%s3095_s2 + $0x98] sm:$0xff] %v1387_v40  ;;  %v920_v45 = vpop.f32.mrf.mxu0 }
 0x13f   :  { %v1089_v48 = vpop.f32.mrf.mxu1 }
 0x140   :  { %v1090_v49 = vadd.f32 %v1089_v48, %v920_v45  ;;  %v2048_v45 = vld [vmem:[%s3094_s0 + $0x1e4] sm:$0xf] }
 0x141   :  { %959 = vmatmul.bf16.gmra.mxu0 %v1719_v44  ;;  %v2049_v44 = vld [vmem:[%s3094_s0 + $0x1e8] sm:$0xf0]  ;;  %v2080_v48 = vld [vmem:[%s3094_s0 + $0x2e0] sm:$0xf0] }
 0x142   :  { %v1259_v53 = vadd.f32 %v1258_v7, %v1090_v49  ;;  %1128 = vmatmul.bf16.gmra.mxu1 %v1723_v46  ;;  %1984 = vmatmul.msk.bf16.gmra.mxu3 %vm764_vm0, %v1847_v47  ;;  %v2045_v7 = vld [vmem:[%s3094_s0 + $0x1cc] sm:$0xf]  ;;  %v1744_v46 = vld [vmem:[%s3094_s0 + $0x1ec] sm:$0xf0]  ;;  %v1870_v47 = vld [vmem:[%s3094_s0 + $0x2d8] sm:$0xf] }
 0x143   :  { %v1735_v19 = vor.u32 %v2045_v7, %v1732_v8 }
 0x144   :  { %v1388_v57 = vmax.f32 %v1259_v53, 0.0 }
 0x145   :  { %v2788_v58 = vpop.f32.mrf.mxu3  ;;  %v1265_v59 = vpop.f32.mrf.mxu2 }
 0x146   :  { %1452 = vst [vmem:[%s3095_s2 + $0xa0] sm:$0xff] %v1388_v57  ;;  %v922_v60 = vpop.f32.mrf.mxu0 }
 0x147   :  { %v1091_v62 = vpop.f32.mrf.mxu1 }
 0x148   :  { %v1092_v0 = vadd.f32 %v1091_v62, %v922_v60  ;;  %v1871_v60 = vor.u32 %v2080_v48, %v1870_v47 }
 0x14a   :  { %v1261_v1 = vadd.f32 %v1260_v23, %v1092_v0  ;;  %1976 = vmatmul.msk.bf16.gmra.mxu2 %vm764_vm0, %v1751_v61 }
 0x14c   :  { %v1389_v12 = vmax.f32 %v1261_v1, 0.0  ;;  %v1774_v1 = vld [vmem:[%s3094_s0 + $0x218] sm:$0xf] }
 0x14d   :  { %v2812_v13 = vpop.f32.mrf.mxu3  ;;  %v1268_v15 = vpop.f32.mrf.mxu2  ;;  %v1775_v10 = vor.u32 %v2056_v2, %v1774_v1 }
 0x14e   :  { %1453 = vst [vmem:[%s3095_s2 + $0xa8] sm:$0xff] %v1389_v12  ;;  %v925_v17 = vpop.f32.mrf.mxu0 }
 0x14f   :  { %v1094_v23 = vpop.f32.mrf.mxu1 }
 0x150   :  { %v1095_v24 = vadd.f32 %v1094_v23, %v925_v17  ;;  %v1754_v17 = vld [vmem:[%s3094_s0 + $0x1f8] sm:$0xf]  ;;  %v1756_v23 = vld [vmem:[%s3094_s0 + $0x204] sm:$0xf0] }
 0x151   :  { %964 = vmatmul.bf16.gmra.mxu0 %v1731_v16 }
 0x152   :  { %v1264_v26 = vadd.f32 %v1263_v43, %v1095_v24  ;;  %1133 = vmatmul.bf16.gmra.mxu1 %v1735_v19  ;;  %1985 = vmatmul.msk.bf16.gmra.mxu3 %vm764_vm0, %v1859_v21  ;;  %v1742_v43 = vld [vmem:[%s3094_s0 + $0x1e0] sm:$0xf]  ;;  %v2052_v19 = vld [vmem:[%s3094_s0 + $0x200] sm:$0xf0]  ;;  %v2051_v21 = vld [vmem:[%s3094_s0 + $0x1fc] sm:$0xf] }
 0x153   :  { %v1743_v56 = vor.u32 %v2049_v44, %v1742_v43  ;;  %v1882_v24 = vld [vmem:[%s3094_s0 + $0x2f0] sm:$0xf] }
 0x154   :  { %v1390_v30 = vmax.f32 %v1264_v26, 0.0  ;;  %v2083_v26 = vld [vmem:[%s3094_s0 + $0x2f8] sm:$0xf0]  ;;  %v1786_v44 = vld [vmem:[%s3094_s0 + $0x230] sm:$0xf] }
 0x155   :  { %v2824_v31 = vpop.f32.mrf.mxu3  ;;  %v1270_v32 = vpop.f32.mrf.mxu2 }
 0x156   :  { %1454 = vst [vmem:[%s3095_s2 + $0xb0] sm:$0xff] %v1390_v30  ;;  %v927_v33 = vpop.f32.mrf.mxu0 }
 0x157   :  { %v1096_v38 = vpop.f32.mrf.mxu1 }
 0x158   :  { %v1097_v39 = vadd.f32 %v1096_v38, %v927_v33  ;;  %v1883_v38 = vor.u32 %v2083_v26, %v1882_v24 }
 0x15a   :  { %v1266_v40 = vadd.f32 %v1265_v59, %v1097_v39  ;;  %1977 = vmatmul.msk.bf16.gmra.mxu2 %vm764_vm0, %v1763_v34  ;;  %v1747_v59 = vor.u32 %v2048_v45, %v1744_v46  ;;  %v1759_v34 = vor.u32 %v2051_v21, %v1756_v23  ;;  %v2059_v45 = vld [vmem:[%s3094_s0 + $0x238] sm:$0xf0] }
 0x15c   :  { %v1391_v49 = vmax.f32 %v1266_v40, 0.0 }
 0x15d   :  { %v2848_v53 = vpop.f32.mrf.mxu3  ;;  %v1273_v54 = vpop.f32.mrf.mxu2 }
 0x15e   :  { %1455 = vst [vmem:[%s3095_s2 + $0xb8] sm:$0xff] %v1391_v49  ;;  %v930_v57 = vpop.f32.mrf.mxu0 }
 0x15f   :  { %v1099_v61 = vpop.f32.mrf.mxu1 }
 0x160   :  { %v1100_v62 = vadd.f32 %v1099_v61, %v930_v57  ;;  %v2055_v61 = vld [vmem:[%s3094_s0 + $0x218] sm:$0xf0] }
 0x161   :  { %969 = vmatmul.bf16.gmra.mxu0 %v1743_v56 }
 0x162   :  { %v1269_v0 = vadd.f32 %v1268_v15, %v1100_v62  ;;  %1138 = vmatmul.bf16.gmra.mxu1 %v1747_v59  ;;  %1986 = vmatmul.msk.bf16.gmra.mxu3 %vm764_vm0, %v1871_v60  ;;  %v1766_v60 = vld [vmem:[%s3094_s0 + $0x210] sm:$0xf]  ;;  %v2054_v62 = vld [vmem:[%s3094_s0 + $0x214] sm:$0xf] }
 0x164   :  { %v1392_v4 = vmax.f32 %v1269_v0, 0.0  ;;  %v1768_v0 = vld [vmem:[%s3094_s0 + $0x21c] sm:$0xf0] }
 0x165   :  { %v2860_v7 = vpop.f32.mrf.mxu3  ;;  %v1275_v8 = vpop.f32.mrf.mxu2 }
 0x166   :  { %1456 = vst [vmem:[%s3095_s2 + $0xc0] sm:$0xff] %v1392_v4  ;;  %v932_v9 = vpop.f32.mrf.mxu0 }
 0x167   :  { %v1101_v12 = vpop.f32.mrf.mxu1 }
 0x168   :  { %v1102_v15 = vadd.f32 %v1101_v12, %v932_v9 }
 0x16a   :  { %v1271_v16 = vadd.f32 %v1270_v32, %v1102_v15  ;;  %1978 = vmatmul.msk.bf16.gmra.mxu2 %vm764_vm0, %v1775_v10  ;;  %v1755_v32 = vor.u32 %v2052_v19, %v1754_v17  ;;  %v1771_v10 = vor.u32 %v2054_v62, %v1768_v0  ;;  %v1798_v17 = vld [vmem:[%s3094_s0 + $0x248] sm:$0xf]  ;;  %v2062_v19 = vld [vmem:[%s3094_s0 + $0x250] sm:$0xf0] }
 0x16c   :  { %v1393_v28 = vmax.f32 %v1271_v16, 0.0 }
 0x16d   :  { %v2884_v29 = vpop.f32.mrf.mxu3  ;;  %v1278_v30 = vpop.f32.mrf.mxu2 }
 0x16e   :  { %1457 = vst [vmem:[%s3095_s2 + $0xc8] sm:$0xff] %v1393_v28  ;;  %v935_v33 = vpop.f32.mrf.mxu0  ;;  %v1799_v28 = vor.u32 %v2062_v19, %v1798_v17 }
 0x16f   :  { %v1104_v39 = vpop.f32.mrf.mxu1 }
 0x170   :  { %v1105_v40 = vadd.f32 %v1104_v39, %v935_v33  ;;  %v2057_v39 = vld [vmem:[%s3094_s0 + $0x22c] sm:$0xf] }
 0x171   :  { %974 = vmatmul.bf16.gmra.mxu0 %v1755_v32 }
 0x172   :  { %v1274_v43 = vadd.f32 %v1273_v54, %v1105_v40  ;;  %1143 = vmatmul.bf16.gmra.mxu1 %v1759_v34  ;;  %1987 = vmatmul.msk.bf16.gmra.mxu3 %vm764_vm0, %v1883_v38  ;;  %v1787_v54 = vor.u32 %v2059_v45, %v1786_v44  ;;  %v1778_v34 = vld [vmem:[%s3094_s0 + $0x228] sm:$0xf]  ;;  %v2058_v38 = vld [vmem:[%s3094_s0 + $0x230] sm:$0xf0]  ;;  %v1780_v40 = vld [vmem:[%s3094_s0 + $0x234] sm:$0xf0] }
 0x174   :  { %v1394_v46 = vmax.f32 %v1274_v43, 0.0 }
 0x175   :  { %v2896_v47 = vpop.f32.mrf.mxu3  ;;  %v1280_v48 = vpop.f32.mrf.mxu2 }
 0x176   :  { %1458 = vst [vmem:[%s3095_s2 + $0xd0] sm:$0xff] %v1394_v46  ;;  %v937_v49 = vpop.f32.mrf.mxu0  ;;  %v1779_v46 = vor.u32 %v2058_v38, %v1778_v34 }
 0x177   :  { %v1106_v56 = vpop.f32.mrf.mxu1 }
 0x178   :  { %v1107_v57 = vadd.f32 %v1106_v56, %v937_v49  ;;  %v1783_v49 = vor.u32 %v2057_v39, %v1780_v40 }
 0x17a   :  { %v1276_v59 = vadd.f32 %v1275_v8, %v1107_v57  ;;  %1979 = vmatmul.msk.bf16.gmra.mxu2 %vm764_vm0, %v1787_v54  ;;  %v1767_v8 = vor.u32 %v2055_v61, %v1766_v60  ;;  %v2065_v60 = vld [vmem:[%s3094_s0 + $0x268] sm:$0xf0] }
 0x17c   :  { %v1395_v1 = vmax.f32 %v1276_v59, 0.0  ;;  %v1810_v59 = vld [vmem:[%s3094_s0 + $0x260] sm:$0xf] }
 0x17d   :  { %v2914_v2 = vpop.f32.mrf.mxu3  ;;  %v1283_v4 = vpop.f32.mrf.mxu2 }
 0x17e   :  { %1459 = vst [vmem:[%s3095_s2 + $0xd8] sm:$0xff] %v1395_v1  ;;  %v940_v9 = vpop.f32.mrf.mxu0 }
 0x17f   :  { %v1109_v12 = vpop.f32.mrf.mxu1 }
 0x180   :  { %v1110_v15 = vadd.f32 %v1109_v12, %v940_v9 }
 0x181   :  { %979 = vmatmul.bf16.gmra.mxu0 %v1767_v8  ;;  %v1811_v8 = vor.u32 %v2065_v60, %v1810_v59 }
 0x182   :  { %v1279_v16 = vadd.f32 %v1278_v30, %v1110_v15  ;;  %1148 = vmatmul.bf16.gmra.mxu1 %v1771_v10 }
 0x184   :  { %v1396_v21 = vmax.f32 %v1279_v16, 0.0 }
 0x185   :  { %v2925_v23 = vpop.f32.mrf.mxu3  ;;  %v1285_v24 = vpop.f32.mrf.mxu2 }
 0x186   :  { %1460 = vst [vmem:[%s3095_s2 + $0xe0] sm:$0xff] %v1396_v21  ;;  %v942_v26 = vpop.f32.mrf.mxu0 }
 0x187   :  { %v1111_v30 = vpop.f32.mrf.mxu1 }
 0x188   :  { %v1112_v32 = vadd.f32 %v1111_v30, %v942_v26 }
 0x18a   :  { %v1281_v33 = vadd.f32 %v1280_v48, %v1112_v32  ;;  %1980 = vmatmul.msk.bf16.gmra.mxu2 %vm764_vm0, %v1799_v28  ;;  %v1170_v28 = vadd.f32 %v2788_v58, %v2505_v63  ;;  %v1172_v63 = vadd.f32 %v2812_v13, %v2529_v14  ;;  %v1175_v14 = vadd.f32 %v2824_v31, %v2540_v27 }
 0x18b   :  { %v1177_v27 = vadd.f32 %v2848_v53, %v2564_v42  ;;  %v1180_v42 = vadd.f32 %v2860_v7, %v2575_v55  ;;  %v1182_v55 = vadd.f32 %v2884_v29, %v2599_v6  ;;  %v1185_v6 = vadd.f32 %v2896_v47, %v2610_v20 }
 0x18c   :  { %v1397_v43 = vmax.f32 %v1281_v33, 0.0  ;;  %v1187_v20 = vadd.f32 %v2914_v2, %v2634_v36  ;;  %v1190_v36 = vadd.f32 %v2925_v23, %v2645_v50 }
 0x18d   :  { %v2943_v44 = vpop.f32.mrf.mxu3  ;;  %v1288_v45 = vpop.f32.mrf.mxu2 }
 0x18e   :  { %1461 = vst [vmem:[%s3095_s2 + $0xe8] sm:$0xff] %v1397_v43  ;;  %v945_v48 = vpop.f32.mrf.mxu0  ;;  %v1192_v50 = vadd.f32 %v2943_v44, %v2669_v3 }
 0x18f   :  { %v1114_v54 = vpop.f32.mrf.mxu1 }
 0x190   :  { %v1115_v56 = vadd.f32 %v1114_v54, %v945_v48 }
 0x191   :  { %984 = vmatmul.bf16.gmra.mxu0 %v1779_v46 }
 0x192   :  { %v1284_v57 = vadd.f32 %v1283_v4, %v1115_v56  ;;  %1153 = vmatmul.bf16.gmra.mxu1 %v1783_v49 }
 0x194   :  { %v1398_v61 = vmax.f32 %v1284_v57, 0.0 }
 0x195   :  { %v2954_v62 = vpop.f32.mrf.mxu3  ;;  %v1290_v0 = vpop.f32.mrf.mxu2 }
 0x196   :  { %1462 = vst [vmem:[%s3095_s2 + $0xf0] sm:$0xff] %v1398_v61  ;;  %v947_v1 = vpop.f32.mrf.mxu0  ;;  %v1195_v3 = vadd.f32 %v2954_v62, %v2680_v18 }
 0x197   :  { %v1116_v4 = vpop.f32.mrf.mxu1 }
 0x198   :  { %v1117_v9 = vadd.f32 %v1116_v4, %v947_v1 }
 0x19a   :  { %v1286_v10 = vadd.f32 %v1285_v24, %v1117_v9  ;;  %1981 = vmatmul.msk.bf16.gmra.mxu2 %vm764_vm0, %v1811_v8 }
 0x19c   :  { %v1399_v12 = vmax.f32 %v1286_v10, 0.0 }
 0x19d   :  { %v2960_v15 = vpop.f32.mrf.mxu3  ;;  %v1293_v16 = vpop.f32.mrf.mxu2 }
 0x19e   :  { %1463 = vst [vmem:[%s3095_s2 + $0xf8] sm:$0xff] %v1399_v12  ;;  %v950_v17 = vpop.f32.mrf.mxu0  ;;  %v1197_v18 = vadd.f32 %v2960_v15, %v2704_v35 }
 0x19f   :  { %v1119_v19 = vpop.f32.mrf.mxu1 }
 0x1a0   :  { %v1120_v21 = vadd.f32 %v1119_v19, %v950_v17 }
 0x1a2   :  { %v1289_v26 = vadd.f32 %v1288_v45, %v1120_v21 }
 0x1a4   :  { %v1400_v30 = vmax.f32 %v1289_v26, 0.0 }
 0x1a5   :  { %v1295_v32 = vpop.f32.mrf.mxu2  ;;  %v1338_v24 = vpop.f32.mrf.mxu3 }
 0x1a6   :  { %1464 = vst [vmem:[%s3095_s2 + $0x100] sm:$0xff] %v1400_v30  ;;  %v1339_v33 = vadd.f32 %v1338_v24, %v1170_v28  ;;  %v952_v34 = vpop.f32.mrf.mxu0 }
 0x1a7   :  { %v1121_v38 = vpop.f32.mrf.mxu1 }
 0x1a8   :  { %v1420_v39 = vmax.f32 %v1339_v33, 0.0  ;;  %v1122_v40 = vadd.f32 %v1121_v38, %v952_v34 }
 0x1aa   :  { %1484 = vst [vmem:[%s3095_s2 + $0x1a0] sm:$0xff] %v1420_v39  ;;  %v1291_v43 = vadd.f32 %v1290_v0, %v1122_v40 }
 0x1ac   :  { %v1401_v58 = vmax.f32 %v1291_v43, 0.0 }
 0x1ad   :  { %v1298_v45 = vpop.f32.mrf.mxu2  ;;  %v1340_v46 = vpop.f32.mrf.mxu3 }
 0x1ae   :  { %1465 = vst [vmem:[%s3095_s2 + $0x108] sm:$0xff] %v1401_v58  ;;  %v1341_v48 = vadd.f32 %v1340_v46, %v1172_v63  ;;  %v955_v49 = vpop.f32.mrf.mxu0 }
 0x1af   :  { %v1124_v54 = vpop.f32.mrf.mxu1 }
 0x1b0   :  { %v1421_v56 = vmax.f32 %v1341_v48, 0.0  ;;  %v1125_v57 = vadd.f32 %v1124_v54, %v955_v49 }
 0x1b2   :  { %1485 = vst [vmem:[%s3095_s2 + $0x1a8] sm:$0xff] %v1421_v56  ;;  %v1294_v59 = vadd.f32 %v1293_v16, %v1125_v57 }
 0x1b4   :  { %v1402_v13 = vmax.f32 %v1294_v59, 0.0 }
 0x1b5   :  { %v1300_v60 = vpop.f32.mrf.mxu2  ;;  %v1343_v61 = vpop.f32.mrf.mxu3 }
 0x1b6   :  { %1466 = vst [vmem:[%s3095_s2 + $0x110] sm:$0xff] %v1402_v13  ;;  %v1344_v0 = vadd.f32 %v1343_v61, %v1175_v14  ;;  %v957_v1 = vpop.f32.mrf.mxu0 }
 0x1b7   :  { %v1126_v8 = vpop.f32.mrf.mxu1 }
 0x1b8   :  { %v1422_v4 = vmax.f32 %v1344_v0, 0.0  ;;  %v1127_v9 = vadd.f32 %v1126_v8, %v957_v1 }
 0x1ba   :  { %1486 = vst [vmem:[%s3095_s2 + $0x1b0] sm:$0xff] %v1422_v4  ;;  %v1296_v10 = vadd.f32 %v1295_v32, %v1127_v9 }
 0x1bc   :  { %v1403_v31 = vmax.f32 %v1296_v10, 0.0 }
 0x1bd   :  { %v1303_v12 = vpop.f32.mrf.mxu2  ;;  %v1345_v16 = vpop.f32.mrf.mxu3 }
 0x1be   :  { %1467 = vst [vmem:[%s3095_s2 + $0x118] sm:$0xff] %v1403_v31  ;;  %v1346_v17 = vadd.f32 %v1345_v16, %v1177_v27  ;;  %v960_v19 = vpop.f32.mrf.mxu0 }
 0x1bf   :  { %v1129_v21 = vpop.f32.mrf.mxu1 }
 0x1c0   :  { %v1423_v26 = vmax.f32 %v1346_v17, 0.0  ;;  %v1130_v28 = vadd.f32 %v1129_v21, %v960_v19 }
 0x1c2   :  { %1487 = vst [vmem:[%s3095_s2 + $0x1b8] sm:$0xff] %v1423_v26  ;;  %v1299_v30 = vadd.f32 %v1298_v45, %v1130_v28 }
 0x1c4   :  { %v1404_v53 = vmax.f32 %v1299_v30, 0.0 }
 0x1c5   :  { %v1305_v32 = vpop.f32.mrf.mxu2  ;;  %v1348_v24 = vpop.f32.mrf.mxu3 }
 0x1c6   :  { %1468 = vst [vmem:[%s3095_s2 + $0x120] sm:$0xff] %v1404_v53  ;;  %v1349_v33 = vadd.f32 %v1348_v24, %v1180_v42  ;;  %v962_v34 = vpop.f32.mrf.mxu0 }
 0x1c7   :  { %v1131_v38 = vpop.f32.mrf.mxu1 }
 0x1c8   :  { %v1424_v39 = vmax.f32 %v1349_v33, 0.0  ;;  %v1132_v40 = vadd.f32 %v1131_v38, %v962_v34 }
 0x1ca   :  { %1488 = vst [vmem:[%s3095_s2 + $0x1c0] sm:$0xff] %v1424_v39  ;;  %v1301_v43 = vadd.f32 %v1300_v60, %v1132_v40 }
 0x1cc   :  { %v1405_v7 = vmax.f32 %v1301_v43, 0.0 }
 0x1cd   :  { %v1308_v63 = vpop.f32.mrf.mxu2  ;;  %v1350_v58 = vpop.f32.mrf.mxu3 }
 0x1ce   :  { %1469 = vst [vmem:[%s3095_s2 + $0x128] sm:$0xff] %v1405_v7  ;;  %v1351_v45 = vadd.f32 %v1350_v58, %v1182_v55  ;;  %v965_v46 = vpop.f32.mrf.mxu0 }
 0x1cf   :  { %v1134_v48 = vpop.f32.mrf.mxu1 }
 0x1d0   :  { %v1425_v49 = vmax.f32 %v1351_v45, 0.0  ;;  %v1135_v54 = vadd.f32 %v1134_v48, %v965_v46 }
 0x1d2   :  { %1489 = vst [vmem:[%s3095_s2 + $0x1c8] sm:$0xff] %v1425_v49  ;;  %v1304_v56 = vadd.f32 %v1303_v12, %v1135_v54 }
 0x1d4   :  { %v1406_v29 = vmax.f32 %v1304_v56, 0.0 }
 0x1d5   :  { %v1310_v57 = vpop.f32.mrf.mxu2  ;;  %v1353_v59 = vpop.f32.mrf.mxu3 }
 0x1d6   :  { %1470 = vst [vmem:[%s3095_s2 + $0x130] sm:$0xff] %v1406_v29  ;;  %v1354_v14 = vadd.f32 %v1353_v59, %v1185_v6  ;;  %v967_v13 = vpop.f32.mrf.mxu0 }
 0x1d7   :  { %v1136_v60 = vpop.f32.mrf.mxu1 }
 0x1d8   :  { %v1426_v61 = vmax.f32 %v1354_v14, 0.0  ;;  %v1137_v0 = vadd.f32 %v1136_v60, %v967_v13 }
 0x1da   :  { %1490 = vst [vmem:[%s3095_s2 + $0x1d0] sm:$0xff] %v1426_v61  ;;  %v1306_v1 = vadd.f32 %v1305_v32, %v1137_v0 }
 0x1dc   :  { %v1407_v47 = vmax.f32 %v1306_v1, 0.0 }
 0x1dd   :  { %v1313_v8 = vpop.f32.mrf.mxu2  ;;  %v1355_v4 = vpop.f32.mrf.mxu3 }
 0x1de   :  { %1471 = vst [vmem:[%s3095_s2 + $0x138] sm:$0xff] %v1407_v47  ;;  %v1356_v9 = vadd.f32 %v1355_v4, %v1187_v20  ;;  %v970_v10 = vpop.f32.mrf.mxu0  ;;  %v1160_v20 = vadd.f32 %v2716_v52, %v2435_v11 }
 0x1df   :  { %v1139_v27 = vpop.f32.mrf.mxu1 }
 0x1e0   :  { %v1427_v31 = vmax.f32 %v1356_v9, 0.0  ;;  %v1140_v12 = vadd.f32 %v1139_v27, %v970_v10 }
 0x1e2   :  { %1491 = vst [vmem:[%s3095_s2 + $0x1d8] sm:$0xff] %v1427_v31  ;;  %v1309_v16 = vadd.f32 %v1308_v63, %v1140_v12 }
 0x1e4   :  { %v1408_v2 = vmax.f32 %v1309_v16, 0.0  ;;  %v1162_v16 = vadd.f32 %v2740_v5, %v2459_v25 }
 0x1e5   :  { %v1315_v17 = vpop.f32.mrf.mxu2  ;;  %v1358_v19 = vpop.f32.mrf.mxu3 }
 0x1e6   :  { %1472 = vst [vmem:[%s3095_s2 + $0x140] sm:$0xff] %v1408_v2  ;;  %v1359_v21 = vadd.f32 %v1358_v19, %v1190_v36  ;;  %v972_v26 = vpop.f32.mrf.mxu0 }
 0x1e7   :  { %v1141_v28 = vpop.f32.mrf.mxu1 }
 0x1e8   :  { %v1428_v30 = vmax.f32 %v1359_v21, 0.0  ;;  %v1142_v42 = vadd.f32 %v1141_v28, %v972_v26  ;;  %v1165_v28 = vadd.f32 %v2752_v22, %v2470_v37 }
 0x1ea   :  { %1492 = vst [vmem:[%s3095_s2 + $0x1e0] sm:$0xff] %v1428_v30  ;;  %v1311_v53 = vadd.f32 %v1310_v57, %v1142_v42 }
 0x1ec   :  { %v1409_v23 = vmax.f32 %v1311_v53, 0.0  ;;  %v1167_v53 = vadd.f32 %v2776_v41, %v2494_v51 }
 0x1ed   :  { %v1318_v32 = vpop.f32.mrf.mxu2  ;;  %v1360_v24 = vpop.f32.mrf.mxu3 }
 0x1ee   :  { %1473 = vst [vmem:[%s3095_s2 + $0x148] sm:$0xff] %v1409_v23  ;;  %v1361_v33 = vadd.f32 %v1360_v24, %v1192_v50  ;;  %v975_v34 = vpop.f32.mrf.mxu0 }
 0x1ef   :  { %v1144_v38 = vpop.f32.mrf.mxu1 }
 0x1f0   :  { %v1429_v39 = vmax.f32 %v1361_v33, 0.0  ;;  %v1145_v40 = vadd.f32 %v1144_v38, %v975_v34 }
 0x1f2   :  { %1493 = vst [vmem:[%s3095_s2 + $0x1e8] sm:$0xff] %v1429_v39  ;;  %v1314_v43 = vadd.f32 %v1313_v8, %v1145_v40 }
 0x1f4   :  { %v1410_v44 = vmax.f32 %v1314_v43, 0.0 }
 0x1f5   :  { %v1320_v55 = vpop.f32.mrf.mxu2  ;;  %v1363_v7 = vpop.f32.mrf.mxu3 }
 0x1f6   :  { %1474 = vst [vmem:[%s3095_s2 + $0x150] sm:$0xff] %v1410_v44  ;;  %v1364_v63 = vadd.f32 %v1363_v7, %v1195_v3  ;;  %v977_v58 = vpop.f32.mrf.mxu0 }
 0x1f7   :  { %v1146_v45 = vpop.f32.mrf.mxu1 }
 0x1f8   :  { %v1430_v46 = vmax.f32 %v1364_v63, 0.0  ;;  %v1147_v48 = vadd.f32 %v1146_v45, %v977_v58 }
 0x1fa   :  { %1494 = vst [vmem:[%s3095_s2 + $0x1f0] sm:$0xff] %v1430_v46  ;;  %v1316_v49 = vadd.f32 %v1315_v17, %v1147_v48 }
 0x1fc   :  { %v1411_v62 = vmax.f32 %v1316_v49, 0.0 }
 0x1fd   :  { %v1323_v54 = vpop.f32.mrf.mxu2  ;;  %v1365_v56 = vpop.f32.mrf.mxu3 }
 0x1fe   :  { %1475 = vst [vmem:[%s3095_s2 + $0x158] sm:$0xff] %v1411_v62  ;;  %v1366_v6 = vadd.f32 %v1365_v56, %v1197_v18  ;;  %v980_v29 = vpop.f32.mrf.mxu0 }
 0x1ff   :  { %v1149_v57 = vpop.f32.mrf.mxu1 }
 0x200   :  { %v1431_v59 = vmax.f32 %v1366_v6, 0.0  ;;  %v1150_v14 = vadd.f32 %v1149_v57, %v980_v29 }
 0x202   :  { %1495 = vst [vmem:[%s3095_s2 + $0x1f8] sm:$0xff] %v1431_v59  ;;  %v1319_v13 = vadd.f32 %v1318_v32, %v1150_v14 }
 0x204   :  { %v1412_v60 = vmax.f32 %v1319_v13, 0.0 }
 0x205   :  { %v1325_v61 = vpop.f32.mrf.mxu2 }
 0x206   :  { %1476 = vst [vmem:[%s3095_s2 + $0x160] sm:$0xff] %v1412_v60  ;;  %v982_v35 = vpop.f32.mrf.mxu0 }
 0x207   :  { %v1151_v15 = vpop.f32.mrf.mxu1 }
 0x208   :  { %v1152_v0 = vadd.f32 %v1151_v15, %v982_v35 }
 0x20a   :  { %v1321_v1 = vadd.f32 %v1320_v55, %v1152_v0 }
 0x20c   :  { %v1413_v47 = vmax.f32 %v1321_v1, 0.0 }
 0x20d   :  { %v1328_v8 = vpop.f32.mrf.mxu2 }
 0x20e   :  { %1477 = vst [vmem:[%s3095_s2 + $0x168] sm:$0xff] %v1413_v47  ;;  %v1329_v4 = vadd.f32 %v1328_v8, %v1160_v20  ;;  %v985_v9 = vpop.f32.mrf.mxu0 }
 0x20f   :  { %v1154_v10 = vpop.f32.mrf.mxu1 }
 0x210   :  { %v1416_v27 = vmax.f32 %v1329_v4, 0.0  ;;  %v1155_v31 = vadd.f32 %v1154_v10, %v985_v9 }
 0x212   :  { %1480 = vst [vmem:[%s3095_s2 + $0x180] sm:$0xff] %v1416_v27  ;;  %v1324_v12 = vadd.f32 %v1323_v54, %v1155_v31 }
 0x214   :  { %v1414_v11 = vmax.f32 %v1324_v12, 0.0 }
 0x215   :  { %v1330_v52 = vpop.f32.mrf.mxu2 }
 0x216   :  { %1478 = vst [vmem:[%s3095_s2 + $0x170] sm:$0xff] %v1414_v11  ;;  %v1331_v36 = vadd.f32 %v1330_v52, %v1162_v16  ;;  %v987_v2 = vpop.f32.mrf.mxu0 }
 0x217   :  { %v1156_v17 = vpop.f32.mrf.mxu1 }
 0x218   :  { %v1417_v19 = vmax.f32 %v1331_v36, 0.0  ;;  %v1157_v21 = vadd.f32 %v1156_v17, %v987_v2 }
 0x21a   :  { %1481 = vst [vmem:[%s3095_s2 + $0x188] sm:$0xff] %v1417_v19  ;;  %v1326_v26 = vadd.f32 %v1325_v61, %v1157_v21 }
 0x21c   :  { %v1415_v25 = vmax.f32 %v1326_v26, 0.0 }
 0x21d   :  { %v1333_v5 = vpop.f32.mrf.mxu2 }
 0x21e   :  { %1479 = vst [vmem:[%s3095_s2 + $0x178] sm:$0xff] %v1415_v25  ;;  %v1334_v30 = vadd.f32 %v1333_v5, %v1165_v28 }
 0x220   :  { %v1418_v42 = vmax.f32 %v1334_v30, 0.0 }
 0x222   :  { %1482 = vst [vmem:[%s3095_s2 + $0x190] sm:$0xff] %v1418_v42 }
 0x225   :  { %v1335_v50 = vpop.f32.mrf.mxu2 }
 0x226   :  { %v1336_v23 = vadd.f32 %v1335_v50, %v1167_v53 }
 0x228   :  { %v1419_v32 = vmax.f32 %v1336_v23, 0.0 }
 0x22a   :  { %1483 = vst [vmem:[%s3095_s2 + $0x198] sm:$0xff] %v1419_v32 }

// kernel: baseline_forward.8
= control target key start
LH: loop header
LB: loop body
LE: loop exit
PB: predicated region body
PF: predicated region fallthrough
CT: control target
= control target key end

     0   :  { %vm444_vm0 = vcmask 523264   ;;  %s1377_s1 = inlined_call_operand.vmem [shape: bf16[576,128], index: 1, kind: input, shape index: {}]   ;;  %s1378_s0 = inlined_call_operand.vmem [shape: bf16[72,576], index: 0, kind: input, shape index: {}]   ;;  %s1379_s2 = inlined_call_operand.vmem [shape: bf16[72,128], index: 2, kind: output, shape index: {}]  }
   0x1   :  { %v987_v0 = vld [vmem:[%s1377_s1 + $0x38] sm:$0xff]  ;;  %v986_v1 = vld [vmem:[%s1377_s1 + $0x30] sm:$0xff]  ;;  %v985_v4 = vld [vmem:[%s1377_s1 + $0x28] sm:$0xff] }
   0x2   :  { %460 = vmatpush.bf16.msra.mxu0 %v987_v0  ;;  %1039 = vmatpush.bf16.msra.mxu1 %v987_v0  ;;  %v1011_v2 = vld [vmem:[%s1377_s1 + $0xf8] sm:$0xff]  ;;  %v1010_v3 = vld [vmem:[%s1377_s1 + $0xf0] sm:$0xff]  ;;  %v1009_v5 = vld [vmem:[%s1377_s1 + $0xe8] sm:$0xff] }
   0x3   :  { %1040 = vmatpush.bf16.msra.mxu2 %v987_v0  ;;  %559 = vmatpush.bf16.msra.mxu3 %v1011_v2  ;;  %v984_v6 = vld [vmem:[%s1377_s1 + $0x20] sm:$0xff]  ;;  %v983_v8 = vld [vmem:[%s1377_s1 + $0x18] sm:$0xff]  ;;  %v982_v10 = vld [vmem:[%s1377_s1 + $0x10] sm:$0xff] }
   0x4   :  { %v1008_v7 = vld [vmem:[%s1377_s1 + $0xe0] sm:$0xff]  ;;  %v1007_v9 = vld [vmem:[%s1377_s1 + $0xd8] sm:$0xff]  ;;  %v1006_v11 = vld [vmem:[%s1377_s1 + $0xd0] sm:$0xff] }
   0x5   :  { %v981_v12 = vld [vmem:[%s1377_s1 + $0x8] sm:$0xff]  ;;  %v1118_v13 = vld [vmem:[%s1378_s0 + $0xa0] sm:$0xff]  ;;  %v962_v17 = vld [vmem:[%s1378_s0 + $0x10] sm:$0xf0] }
   0x6   :  { %461 = vmatpush.bf16.msra.mxu0 %v986_v1  ;;  %1041 = vmatpush.bf16.msra.mxu1 %v986_v1  ;;  %v1005_v14 = vld [vmem:[%s1377_s1 + $0xc8] sm:$0xff]  ;;  %v980_v15 = vld [vmem:[%s1377_s1] sm:$0xff]  ;;  %v773_v18 = vld [vmem:[%s1378_s0 + $0x50] sm:$0xf]  ;;  %v178_v20 = vunpack.c.l.b16 %v1118_v13 }
   0x7   :  { %1042 = vmatpush.bf16.msra.mxu2 %v986_v1  ;;  %560 = vmatpush.bf16.msra.mxu3 %v1010_v3  ;;  %v733_v16 = vld [vmem:[%s1378_s0] sm:$0xf]  ;;  %v972_v19 = vld [vmem:[%s1378_s0 + $0x60] sm:$0xf0]  ;;  %v995_v21 = vld [vmem:[%s1377_s1 + $0x78] sm:$0xff] }
   0x8   :  { %v1003_v22 = vld [vmem:[%s1377_s1 + $0xb8] sm:$0xff]  ;;  %v734_v24 = vor.u32 %v962_v17, %v733_v16  ;;  %v774_v25 = vor.u32 %v972_v19, %v773_v18  ;;  %v203_v26 = vpack.c.b16 %v178_v20, %v178_v20  ;;  %v1004_v27 = vld [vmem:[%s1377_s1 + $0xc0] sm:$0xff]  ;;  %v961_v28 = vld [vmem:[%s1378_s0 + $0xc] sm:$0xf] }
   0x9   :  { %v1015_v23 = vld [vmem:[%s1377_s1 + $0x118] sm:$0xff]  ;;  %v743_v29 = vld [vmem:[%s1378_s0 + $0x1c] sm:$0xf0]  ;;  %v994_v30 = vld [vmem:[%s1377_s1 + $0x70] sm:$0xff] }
   0xa   :  { %462 = vmatpush.bf16.msra.mxu0 %v985_v4  ;;  %1043 = vmatpush.bf16.msra.mxu1 %v985_v4  ;;  %v1002_v31 = vld [vmem:[%s1377_s1 + $0xb0] sm:$0xff]  ;;  %v746_v33 = vor.u32 %v961_v28, %v743_v29  ;;  %v993_v34 = vld [vmem:[%s1377_s1 + $0x68] sm:$0xff]  ;;  %v992_v37 = vld [vmem:[%s1377_s1 + $0x60] sm:$0xff] }
   0xb   :  { %1044 = vmatpush.bf16.msra.mxu2 %v985_v4  ;;  %561 = vmatpush.bf16.msra.mxu3 %v1009_v5  ;;  %v1014_v32 = vld [vmem:[%s1377_s1 + $0x110] sm:$0xff]  ;;  %v1001_v35 = vld [vmem:[%s1377_s1 + $0xa8] sm:$0xff]  ;;  %v1000_v38 = vld [vmem:[%s1377_s1 + $0xa0] sm:$0xff] }
   0xc   :  { %v1013_v36 = vld [vmem:[%s1377_s1 + $0x108] sm:$0xff]  ;;  %v1012_v39 = vld [vmem:[%s1377_s1 + $0x100] sm:$0xff]  ;;  %v967_v41 = vld [vmem:[%s1378_s0 + $0x38] sm:$0xf0] }
   0xd   :  { %v753_v40 = vld [vmem:[%s1378_s0 + $0x28] sm:$0xf]  ;;  %v793_v42 = vld [vmem:[%s1378_s0 + $0x78] sm:$0xf]  ;;  %v977_v43 = vld [vmem:[%s1378_s0 + $0x88] sm:$0xf0] }
   0xe   :  { %463 = vmatpush.bf16.msra.mxu0 %v984_v6  ;;  %1045 = vmatpush.bf16.msra.mxu1 %v984_v6  ;;  %v991_v44 = vld [vmem:[%s1377_s1 + $0x58] sm:$0xff]  ;;  %v754_v46 = vor.u32 %v967_v41, %v753_v40  ;;  %v794_v47 = vor.u32 %v977_v43, %v793_v42  ;;  %v966_v48 = vld [vmem:[%s1378_s0 + $0x34] sm:$0xf]  ;;  %v763_v49 = vld [vmem:[%s1378_s0 + $0x44] sm:$0xf0]  ;;  %v179_v41 = vunpack.c.h.b16 %v1118_v13 }
   0xf   :  { %1046 = vmatpush.bf16.msra.mxu2 %v984_v6  ;;  %562 = vmatpush.bf16.msra.mxu3 %v1008_v7  ;;  %v999_v45 = vld [vmem:[%s1377_s1 + $0x98] sm:$0xff]  ;;  %v990_v50 = vld [vmem:[%s1377_s1 + $0x50] sm:$0xff]  ;;  %v766_v52 = vor.u32 %v966_v48, %v763_v49  ;;  %v989_v53 = vld [vmem:[%s1377_s1 + $0x48] sm:$0xff] }
  0x10   :  { %v998_v51 = vld [vmem:[%s1377_s1 + $0x90] sm:$0xff]  ;;  %v997_v54 = vld [vmem:[%s1377_s1 + $0x88] sm:$0xff]  ;;  %v988_v55 = vld [vmem:[%s1377_s1 + $0x40] sm:$0xff] }
  0x11   :  { %v996_v56 = vld [vmem:[%s1377_s1 + $0x80] sm:$0xff]  ;;  %v741_v57 = vld [vmem:[%s1378_s0 + $0x8] sm:$0xf]  ;;  %v963_v58 = vld [vmem:[%s1378_s0 + $0x18] sm:$0xf0] }
  0x12   :  { %464 = vmatpush.bf16.msra.mxu0 %v983_v8  ;;  %1047 = vmatpush.bf16.msra.mxu1 %v983_v8  ;;  %v960_v59 = vld [vmem:[%s1378_s0 + $0x4] sm:$0xf]  ;;  %v735_v60 = vld [vmem:[%s1378_s0 + $0x14] sm:$0xf0]  ;;  %v749_v61 = vld [vmem:[%s1378_s0 + $0x10] sm:$0xf]  ;;  %v742_v63 = vor.u32 %v963_v58, %v741_v57 }
  0x13   :  { %1048 = vmatpush.bf16.msra.mxu2 %v983_v8  ;;  %563 = vmatpush.bf16.msra.mxu3 %v1007_v9  ;;  %v964_v62 = vld [vmem:[%s1378_s0 + $0x20] sm:$0xf0]  ;;  %v738_v0 = vor.u32 %v960_v59, %v735_v60  ;;  %v971_v2 = vld [vmem:[%s1378_s0 + $0x5c] sm:$0xf]  ;;  %v783_v3 = vld [vmem:[%s1378_s0 + $0x6c] sm:$0xf0] }
  0x14   :  { %v750_v1 = vor.u32 %v964_v62, %v749_v61  ;;  %v786_v4 = vor.u32 %v971_v2, %v783_v3  ;;  %v761_v5 = vld [vmem:[%s1378_s0 + $0x30] sm:$0xf]  ;;  %v968_v6 = vld [vmem:[%s1378_s0 + $0x40] sm:$0xf0]  ;;  %v965_v7 = vld [vmem:[%s1378_s0 + $0x2c] sm:$0xf] }
  0x15   :  { %v755_v8 = vld [vmem:[%s1378_s0 + $0x3c] sm:$0xf0]  ;;  %v769_v9 = vld [vmem:[%s1378_s0 + $0x38] sm:$0xf]  ;;  %v973_v19 = vld [vmem:[%s1378_s0 + $0x68] sm:$0xf0] }
  0x16   :  { %465 = vmatpush.bf16.msra.mxu0 %v982_v10  ;;  %1049 = vmatpush.bf16.msra.mxu1 %v982_v10  ;;  %v803_v16 = vld [vmem:[%s1378_s0 + $0x94] sm:$0xf0]  ;;  %v970_v20 = vld [vmem:[%s1378_s0 + $0x54] sm:$0xf] }
  0x17   :  { %1050 = vmatpush.bf16.msra.mxu2 %v982_v10  ;;  %564 = vmatpush.bf16.msra.mxu3 %v1006_v11  ;;  %v969_v10 = vld [vmem:[%s1378_s0 + $0x48] sm:$0xf0]  ;;  %v762_v11 = vor.u32 %v968_v6, %v761_v5  ;;  %v781_v18 = vld [vmem:[%s1378_s0 + $0x58] sm:$0xf] }
  0x1a   :  { %466 = vmatpush.bf16.msra.mxu0 %v981_v12  ;;  %1051 = vmatpush.bf16.msra.mxu1 %v981_v12 }
  0x1b   :  { %1052 = vmatpush.bf16.msra.mxu2 %v981_v12  ;;  %565 = vmatpush.bf16.msra.mxu3 %v1005_v14  ;;  %v758_v12 = vor.u32 %v965_v7, %v755_v8  ;;  %v770_v14 = vor.u32 %v969_v10, %v769_v9 }
  0x1e   :  { %467 = vmatpush.bf16.msra.mxu0 %v980_v15  ;;  %1053 = vmatpush.bf16.msra.mxu1 %v980_v15 }
  0x1f   :  { %1054 = vmatpush.bf16.msra.mxu2 %v980_v15  ;;  %566 = vmatpush.bf16.msra.mxu3 %v1004_v27  ;;  %v976_v15 = vld [vmem:[%s1378_s0 + $0x84] sm:$0xf] }
  0x20   :  { %v806_v17 = vor.u32 %v976_v15, %v803_v16 }
  0x21   :  { %468 = vmatmul.bf16.vlgmr.msra.gmra.mxu0 %v734_v24  ;;  %478 = vmatmul.bf16.vlgmr.msra.gmra.mxu1 %v774_v25  ;;  %v37_v24 = vld [vmem:[%s1378_s0 + $0xa8] sm:$0xff]  ;;  %v782_v25 = vor.u32 %v973_v19, %v781_v18 }
  0x22   :  { %493 = vmatpush.bf16.msrb.mxu1 %v995_v21  ;;  %596 = vmatpush.bf16.msrb.mxu0 %v1015_v23  ;;  %v775_v21 = vld [vmem:[%s1378_s0 + $0x64] sm:$0xf0]  ;;  %v974_v23 = vld [vmem:[%s1378_s0 + $0x70] sm:$0xf0]  ;;  %v181_v28 = vunpack.c.h.b16 %v37_v24  ;;  %v180_v40 = vunpack.c.l.b16 %v37_v24 }
  0x23   :  { %526 = vmatpush.bf16.msrb.mxu2 %v1003_v22  ;;  %567 = vmatmul.bf16.vlgmr.msra.gmra.mxu3 %v746_v33  ;;  %v789_v22 = vld [vmem:[%s1378_s0 + $0x60] sm:$0xf]  ;;  %v795_v33 = vld [vmem:[%s1378_s0 + $0x8c] sm:$0xf0] }
  0x24   :  { %488 = vmatmul.bf16.vlgmr.msra.gmra.mxu2 %v203_v26  ;;  %v778_v26 = vor.u32 %v970_v20, %v775_v21  ;;  %v790_v27 = vor.u32 %v974_v23, %v789_v22  ;;  %v206_v29 = vpack.c.b16 %v181_v28, %v181_v28  ;;  %v205_v43 = vpack.c.b16 %v180_v40, %v180_v40 }
  0x26   :  { %494 = vmatpush.bf16.msrb.mxu1 %v994_v30  ;;  %597 = vmatpush.bf16.msrb.mxu0 %v1014_v32  ;;  %v801_v30 = vld [vmem:[%s1378_s0 + $0x80] sm:$0xf]  ;;  %v975_v32 = vld [vmem:[%s1378_s0 + $0x7c] sm:$0xf] }
  0x27   :  { %527 = vmatpush.bf16.msrb.mxu2 %v1002_v31  ;;  %v978_v31 = vld [vmem:[%s1378_s0 + $0x90] sm:$0xf0] }
  0x2a   :  { %495 = vmatpush.bf16.msrb.mxu1 %v993_v34  ;;  %598 = vmatpush.bf16.msrb.mxu0 %v1013_v36  ;;  %v809_v34 = vld [vmem:[%s1378_s0 + $0x88] sm:$0xf]  ;;  %v802_v36 = vor.u32 %v978_v31, %v801_v30 }
  0x2b   :  { %528 = vmatpush.bf16.msrb.mxu2 %v1001_v35  ;;  %v979_v35 = vld [vmem:[%s1378_s0 + $0x98] sm:$0xf0] }
  0x2e   :  { %496 = vmatpush.bf16.msrb.mxu1 %v992_v37  ;;  %599 = vmatpush.bf16.msrb.mxu0 %v1012_v39  ;;  %v798_v37 = vor.u32 %v975_v32, %v795_v33  ;;  %v38_v39 = vld [vmem:[%s1378_s0 + $0xb0] sm:$0xf] }
  0x2f   :  { %529 = vmatpush.bf16.msrb.mxu2 %v1000_v38  ;;  %v810_v38 = vor.u32 %v979_v35, %v809_v34  ;;  %v182_v42 = vunpack.c.l.b16 %v38_v39 }
  0x31   :  { %473 = vmatmul.bf16.gmra.mxu0 %v754_v46  ;;  %483 = vmatmul.bf16.gmra.mxu1 %v794_v47 }
  0x32   :  { %497 = vmatpush.bf16.msrb.mxu1 %v991_v44  ;;  %v204_v44 = vpack.c.b16 %v179_v41, %v179_v41 }
  0x33   :  { %530 = vmatpush.bf16.msrb.mxu2 %v999_v45  ;;  %572 = vmatmul.bf16.gmra.mxu3 %v766_v52  ;;  %v207_v45 = vpack.c.b16 %v182_v42, %v182_v42 }
  0x36   :  { %498 = vmatpush.bf16.msrb.mxu1 %v990_v50 }
  0x37   :  { %531 = vmatpush.bf16.msrb.mxu2 %v998_v51 }
  0x3a   :  { %499 = vmatpush.bf16.msrb.mxu1 %v989_v53 }
  0x3b   :  { %532 = vmatpush.bf16.msrb.mxu2 %v997_v54 }
  0x3e   :  { %500 = vmatpush.bf16.msrb.mxu1 %v988_v55 }
  0x3f   :  { %533 = vmatpush.bf16.msrb.mxu2 %v996_v56 }
  0x41   :  { %501 = vmatmul.bf16.vlgmr.msrb.gmra.mxu1 %v738_v0  ;;  %955 = vmatmul.msk.bf16.vlgmr.msrb.gmra.mxu0 %vm444_vm0, %v750_v1 }
  0x42   :  { %534 = vmatmul.bf16.vlgmr.msrb.gmra.mxu2 %v742_v63 }
  0x43   :  { %577 = vmatmul.bf16.gmra.mxu3 %v786_v4 }
  0x51   :  { %506 = vmatmul.bf16.gmra.mxu1 %v758_v12  ;;  %956 = vmatmul.msk.bf16.gmra.mxu0 %vm444_vm0, %v770_v14 }
  0x52   :  { %539 = vmatmul.bf16.gmra.mxu2 %v762_v11 }
  0x53   :  { %582 = vmatmul.bf16.gmra.mxu3 %v806_v17 }
  0x61   :  { %511 = vmatmul.bf16.gmra.mxu1 %v778_v26  ;;  %957 = vmatmul.msk.bf16.gmra.mxu0 %vm444_vm0, %v790_v27 }
  0x62   :  { %544 = vmatmul.bf16.gmra.mxu2 %v782_v25 }
  0x63   :  { %587 = vmatmul.bf16.gmra.mxu3 %v206_v29 }
  0x71   :  { %516 = vmatmul.bf16.gmra.mxu1 %v798_v37  ;;  %958 = vmatmul.msk.bf16.gmra.mxu0 %vm444_vm0, %v810_v38 }
  0x72   :  { %549 = vmatmul.bf16.gmra.mxu2 %v802_v36 }
  0x81   :  { %521 = vmatmul.bf16.gmra.mxu1 %v204_v44  ;;  %959 = vmatmul.msk.bf16.gmra.mxu0 %vm444_vm0, %v207_v45 }
  0x82   :  { %554 = vmatmul.bf16.gmra.mxu2 %v205_v43 }
  0x9e   :  { %v469_v46 = vpop.f32.mrf.mxu0  ;;  %v479_v47 = vpop.f32.mrf.mxu1 }
  0xa6   :  { %v471_v49 = vpop.f32.mrf.mxu0  ;;  %v481_v50 = vpop.f32.mrf.mxu1 }
  0xa7   :  { %v1322_v48 = vpop.f32.mrf.mxu2  ;;  %v568_v51 = vpop.f32.mrf.mxu3 }
  0xae   :  { %v474_v53 = vpop.f32.mrf.mxu0  ;;  %v1324_v54 = vpop.f32.mrf.mxu1 }
  0xaf   :  { %v491_v52 = vpop.f32.mrf.mxu2  ;;  %v570_v13 = vpop.f32.mrf.mxu3 }
  0xb6   :  { %v476_v55 = vpop.f32.mrf.mxu0  ;;  %v1326_v56 = vpop.f32.mrf.mxu1 }
  0xb7   :  { %v573_v57 = vpop.f32.mrf.mxu3 }
  0xbe   :  { %v502_v58 = vpop.f32.mrf.mxu1  ;;  %v601_v59 = vpop.f32.mrf.mxu0 }
  0xbf   :  { %v503_v60 = vadd.f32 %v502_v58, %v469_v46  ;;  %v575_v61 = vpop.f32.mrf.mxu3 }
  0xc5   :  { %v535_v62 = vpop.f32.mrf.mxu2 }
  0xc6   :  { %v536_v63 = vadd.f32 %v535_v62, %v503_v60  ;;  %v504_v1 = vpop.f32.mrf.mxu1  ;;  %v603_v2 = vpop.f32.mrf.mxu0 }
  0xc7   :  { %v505_v3 = vadd.f32 %v504_v1, %v471_v49  ;;  %v578_v4 = vpop.f32.mrf.mxu3 }
  0xc8   :  { %v569_v0 = vadd.f32 %v568_v51, %v536_v63 }
  0xca   :  { %v1328_v7 = vadd.f32 %v601_v59, %v569_v0 }
  0xcc   :  { %v625_v15 = vmax.f32 %v1328_v7, 0.0 }
  0xcd   :  { %v537_v5 = vpop.f32.mrf.mxu2 }
  0xce   :  { %v538_v6 = vadd.f32 %v537_v5, %v505_v3  ;;  %v507_v9 = vpop.f32.mrf.mxu1  ;;  %v606_v10 = vpop.f32.mrf.mxu0 }
  0xcf   :  { %v508_v12 = vadd.f32 %v507_v9, %v474_v53  ;;  %v580_v14 = vpop.f32.mrf.mxu3  ;;  %v1060_v9 = vmov 72.0  }
  0xd0   :  { %v571_v8 = vadd.f32 %v570_v13, %v538_v6  ;;  %1056 = vrcp.f32 %v1060_v9 }
  0xd2   :  { %v1330_v11 = vadd.f32 %v603_v2, %v571_v8 }
  0xd4   :  { %v626_v16 = vmax.f32 %v1330_v11, 0.0 }
  0xd5   :  { %v540_v17 = vpop.f32.mrf.mxu2 }
  0xd6   :  { %v634_v18 = vadd.f32 %v626_v16, %v625_v15  ;;  %v541_v19 = vadd.f32 %v540_v17, %v508_v12  ;;  %v509_v21 = vpop.f32.mrf.mxu1  ;;  %v608_v22 = vpop.f32.mrf.mxu0 }
  0xd7   :  { %v510_v24 = vadd.f32 %v509_v21, %v476_v55  ;;  %v583_v25 = vpop.f32.mrf.mxu3 }
  0xd8   :  { %v574_v20 = vadd.f32 %v573_v57, %v541_v19  ;;  %v1057_v19 = vpop.eup %1056 }
  0xd9   :  { %vm653_vm1 = vweird.f32 %v1057_v19 }
  0xda   :  { %v1338_v23 = vadd.f32 %v606_v10, %v574_v20 }
  0xdc   :  { %v627_v26 = vmax.f32 %v1338_v23, 0.0 }
  0xdd   :  { %v542_v27 = vpop.f32.mrf.mxu2 }
  0xde   :  { %v635_v28 = vadd.f32 %v634_v18, %v627_v26  ;;  %v543_v29 = vadd.f32 %v542_v27, %v510_v24  ;;  %v512_v31 = vpop.f32.mrf.mxu1  ;;  %v611_v32 = vpop.f32.mrf.mxu0  ;;  %v649_v24 = vmul.f32 72.0, %v1057_v19 }
  0xdf   :  { %v513_v34 = vadd.f32 %v512_v31, %v479_v47  ;;  %v585_v35 = vpop.f32.mrf.mxu3 }
  0xe0   :  { %v576_v30 = vadd.f32 %v575_v61, %v543_v29  ;;  %v650_v29 = vsub.f32 1.0, %v649_v24 }
  0xe2   :  { %v1343_v33 = vadd.f32 %v608_v22, %v576_v30 }
  0xe4   :  { %v628_v36 = vmax.f32 %v1343_v33, 0.0 }
  0xe5   :  { %v545_v37 = vpop.f32.mrf.mxu2 }
  0xe6   :  { %v636_v38 = vadd.f32 %v635_v28, %v628_v36  ;;  %v546_v39 = vadd.f32 %v545_v37, %v513_v34  ;;  %v514_v41 = vpop.f32.mrf.mxu1  ;;  %v613_v42 = vpop.f32.mrf.mxu0  ;;  %v651_v34 = vmul.f32 %v1057_v19, %v650_v29 }
  0xe7   :  { %v515_v44 = vadd.f32 %v514_v41, %v481_v50  ;;  %v588_v45 = vpop.f32.mrf.mxu3 }
  0xe8   :  { %v579_v40 = vadd.f32 %v578_v4, %v546_v39 }
  0xea   :  { %v1348_v43 = vadd.f32 %v611_v32, %v579_v40 }
  0xec   :  { %v629_v46 = vmax.f32 %v1348_v43, 0.0 }
  0xed   :  { %v547_v49 = vpop.f32.mrf.mxu2 }
  0xee   :  { %v637_v51 = vadd.f32 %v636_v38, %v629_v46  ;;  %v548_v47 = vadd.f32 %v547_v49, %v515_v44  ;;  %v517_v53 = vpop.f32.mrf.mxu1  ;;  %v616_v13 = vpop.f32.mrf.mxu0  ;;  %v652_v38 = vadd.f32 %v1057_v19, %v651_v34 }
  0xef   :  { %v518_v57 = vadd.f32 %v517_v53, %v1324_v54  ;;  %v590_v58 = vpop.f32.mrf.mxu3 }
  0xf0   :  { %v581_v52 = vadd.f32 %v580_v14, %v548_v47  ;;  %v654_v40 = vsel %vm653_vm1, %v1057_v19, %v652_v38 }
  0xf2   :  { %v614_v55 = vadd.f32 %v613_v42, %v581_v52 }
  0xf4   :  { %v630_v59 = vmax.f32 %v614_v55, 0.0 }
  0xf5   :  { %v550_v60 = vpop.f32.mrf.mxu2 }
  0xf6   :  { %v638_v61 = vadd.f32 %v637_v51, %v630_v59  ;;  %v551_v62 = vadd.f32 %v550_v60, %v518_v57  ;;  %v519_v0 = vpop.f32.mrf.mxu1  ;;  %v618_v50 = vpop.f32.mrf.mxu0 }
  0xf7   :  { %v520_v2 = vadd.f32 %v519_v0, %v1326_v56 }
  0xf8   :  { %v584_v63 = vadd.f32 %v583_v25, %v551_v62 }
  0xfa   :  { %v617_v1 = vadd.f32 %v616_v13, %v584_v63 }
  0xfc   :  { %v631_v3 = vmax.f32 %v617_v1, 0.0 }
  0xfd   :  { %v552_v4 = vpop.f32.mrf.mxu2 }
  0xfe   :  { %v639_v5 = vadd.f32 %v638_v61, %v631_v3  ;;  %v553_v6 = vadd.f32 %v552_v4, %v520_v2  ;;  %v522_v10 = vpop.f32.mrf.mxu1  ;;  %v621_v54 = vpop.f32.mrf.mxu0 }
  0xff   :  { %v523_v14 = vadd.f32 %v522_v10, %v1322_v48 }
 0x100   :  { %v586_v8 = vadd.f32 %v585_v35, %v553_v6 }
 0x102   :  { %v619_v12 = vadd.f32 %v618_v50, %v586_v8 }
 0x104   :  { %v632_v17 = vmax.f32 %v619_v12, 0.0 }
 0x105   :  { %v555_v18 = vpop.f32.mrf.mxu2 }
 0x106   :  { %v640_v20 = vadd.f32 %v639_v5, %v632_v17  ;;  %v556_v21 = vadd.f32 %v555_v18, %v523_v14  ;;  %v524_v56 = vpop.f32.mrf.mxu1  ;;  %v623_v25 = vpop.f32.mrf.mxu0 }
 0x108   :  { %v589_v22 = vadd.f32 %v588_v45, %v556_v21 }
 0x10a   :  { %v622_v27 = vadd.f32 %v621_v54, %v589_v22 }
 0x10c   :  { %v633_v28 = vmax.f32 %v622_v27, 0.0 }
 0x10d   :  { %v557_v30 = vpop.f32.mrf.mxu2 }
 0x10e   :  { %v641_v31 = vadd.f32 %v640_v20, %v633_v28 }
 0x110   :  { %v642_v32 = vrot.slane %v641_v31, 4 }
 0x112   :  { %v643_v35 = vadd.f32 %v642_v32, %v641_v31 }
 0x114   :  { %v644_v37 = vrot.slane %v643_v35, 2 }
 0x116   :  { %v645_v48 = vadd.f32 %v644_v37, %v643_v35 }
 0x118   :  { %v646_v39 = vrot.slane %v645_v48, 1 }
 0x11a   :  { %v647_v41 = vadd.f32 %v646_v39, %v645_v48 }
 0x11c   :  { %v655_v42 = vmul.f32 %v654_v40, %v647_v41 }
 0x11e   :  { %v656_v43 = vsub.f32 %v625_v15, %v655_v42  ;;  %v657_v44 = vsub.f32 %v626_v16, %v655_v42  ;;  %v658_v45 = vsub.f32 %v627_v26, %v655_v42  ;;  %v659_v49 = vsub.f32 %v628_v36, %v655_v42 }
 0x11f   :  { %v660_v51 = vsub.f32 %v629_v46, %v655_v42  ;;  %v661_v47 = vsub.f32 %v630_v59, %v655_v42  ;;  %v662_v52 = vsub.f32 %v631_v3, %v655_v42  ;;  %v663_v53 = vsub.f32 %v632_v17, %v655_v42 }
 0x120   :  { %v665_v13 = vmul.f32 %v656_v43, %v656_v43  ;;  %v666_v55 = vmul.f32 %v657_v44, %v657_v44  ;;  %v667_v57 = vmul.f32 %v658_v45, %v658_v45  ;;  %v668_v60 = vmul.f32 %v659_v49, %v659_v49 }
 0x121   :  { %v669_v15 = vmul.f32 %v660_v51, %v660_v51  ;;  %v670_v11 = vmul.f32 %v661_v47, %v661_v47  ;;  %v664_v62 = vsub.f32 %v633_v28, %v655_v42  ;;  %v671_v23 = vmul.f32 %v662_v52, %v662_v52 }
 0x122   :  { %v674_v58 = vadd.f32 %v666_v55, %v665_v13  ;;  %v672_v63 = vmul.f32 %v663_v53, %v663_v53 }
 0x123   :  { %v673_v36 = vmul.f32 %v664_v62, %v664_v62 }
 0x124   :  { %v675_v7 = vadd.f32 %v674_v58, %v667_v57 }
 0x126   :  { %v676_v61 = vadd.f32 %v675_v7, %v668_v60 }
 0x128   :  { %v677_v16 = vadd.f32 %v676_v61, %v669_v15 }
 0x12a   :  { %v678_v26 = vadd.f32 %v677_v16, %v670_v11 }
 0x12c   :  { %v679_v33 = vadd.f32 %v678_v26, %v671_v23 }
 0x12e   :  { %v680_v46 = vadd.f32 %v679_v33, %v672_v63 }
 0x130   :  { %v681_v59 = vadd.f32 %v680_v46, %v673_v36 }
 0x132   :  { %v682_v0 = vrot.slane %v681_v59, 4 }
 0x134   :  { %v683_v50 = vadd.f32 %v682_v0, %v681_v59 }
 0x136   :  { %v684_v1 = vrot.slane %v683_v50, 2 }
 0x138   :  { %v685_v2 = vadd.f32 %v684_v1, %v683_v50 }
 0x13a   :  { %v686_v3 = vrot.slane %v685_v2, 1 }
 0x13c   :  { %v687_v4 = vadd.f32 %v686_v3, %v685_v2 }
 0x13e   :  { %v688_v5 = vmul.f32 %v687_v4, %v654_v40 }
 0x140   :  { %v689_v6 = vadd.f32 1e-05, %v688_v5 }
 0x142   :  { %1058 = vrsqrt.f32 %v689_v6  ;;  %vm696_vm3 = vweird.f32 %v689_v6 }
 0x148   :  { %v1059_v8 = vpop.eup %1058 }
 0x149   :  { %v691_v9 = vmul.f32 %v1059_v8, %v689_v6  ;;  %vm697_vm2 = vweird.f32 %v1059_v8 }
 0x14a   :  { %vm698_vm4 = vmor %vm696_vm3, %vm697_vm2 }
 0x14b   :  { %v692_v10 = vmul.f32 %v1059_v8, %v691_v9 }
 0x14d   :  { %v693_v54 = vmul.f32 0.5, %v692_v10 }
 0x14f   :  { %v694_v12 = vsub.f32 1.5, %v693_v54 }
 0x151   :  { %v695_v14 = vmul.f32 %v1059_v8, %v694_v12 }
 0x153   :  { %v699_v17 = vsel %vm698_vm4, %v1059_v8, %v695_v14 }
 0x154   :  { %v700_v18 = vmul.f32 %v699_v17, %v656_v43  ;;  %v701_v19 = vmul.f32 %v699_v17, %v657_v44  ;;  %v702_v20 = vmul.f32 %v699_v17, %v658_v45  ;;  %v703_v21 = vmul.f32 %v699_v17, %v659_v49 }
 0x155   :  { %v704_v22 = vmul.f32 %v699_v17, %v660_v51  ;;  %v705_v24 = vmul.f32 %v699_v17, %v661_v47  ;;  %v706_v56 = vmul.f32 %v699_v17, %v662_v52  ;;  %v707_v25 = vmul.f32 %v699_v17, %v663_v53 }
 0x156   :  { %v708_v27 = vmul.f32 %v699_v17, %v664_v62  ;;  %v1019_v28 = vpack.c.bf16 %v701_v19, %v700_v18  ;;  %v1024_v29 = vpack.c.bf16 %v703_v21, %v702_v20 }
 0x157   :  { %v1029_v30 = vpack.c.bf16 %v705_v24, %v704_v22  ;;  %v1034_v31 = vpack.c.bf16 %v707_v25, %v706_v56 }
 0x158   :  { %v717_v32 = vpack.c.bf16 %v708_v27, %v708_v27  ;;  %1020 = vst [vmem:[%s1379_s2] sm:$0xff] %v1019_v28  }
 0x159   :  { %1036 = vst [vmem:[%s1379_s2 + $0x8] sm:$0xff] %v1024_v29  }
 0x15a   :  { %1037 = vst [vmem:[%s1379_s2 + $0x10] sm:$0xff] %v1029_v30  }
 0x15b   :  { %1038 = vst [vmem:[%s1379_s2 + $0x18] sm:$0xff] %v1034_v31  }
 0x15c   :  { %726 = vst [vmem:[%s1379_s2 + $0x20] sm:$0xf] %v717_v32 }

// kernel: baseline_forward.9
= control target key start
LH: loop header
LB: loop body
LE: loop exit
PB: predicated region body
PF: predicated region fallthrough
CT: control target
= control target key end

     0   :  { %s2394_s1 = inlined_call_operand.vmem [shape: bf16[1152,128], index: 1, kind: input, shape index: {}]   ;;  %s2395_s0 = inlined_call_operand.vmem [shape: bf16[72,1152], index: 0, kind: input, shape index: {}]   ;;  %s2396_s2 = inlined_call_operand.vmem [shape: bf16[72,128], index: 2, kind: output, shape index: {}]  }
   0x1   :  { %v1726_v0 = vld [vmem:[%s2394_s1 + $0x38] sm:$0xff]  ;;  %v1725_v1 = vld [vmem:[%s2394_s1 + $0x30] sm:$0xff]  ;;  %v1724_v4 = vld [vmem:[%s2394_s1 + $0x28] sm:$0xff] }
   0x2   :  { %848 = vmatpush.bf16.msra.mxu0 %v1726_v0  ;;  %1814 = vmatpush.bf16.msra.mxu1 %v1726_v0  ;;  %v1750_v2 = vld [vmem:[%s2394_s1 + $0xf8] sm:$0xff]  ;;  %v1749_v3 = vld [vmem:[%s2394_s1 + $0xf0] sm:$0xff]  ;;  %v1748_v5 = vld [vmem:[%s2394_s1 + $0xe8] sm:$0xff] }
   0x3   :  { %1815 = vmatpush.bf16.msra.mxu2 %v1726_v0  ;;  %947 = vmatpush.bf16.msra.mxu3 %v1750_v2  ;;  %v1723_v6 = vld [vmem:[%s2394_s1 + $0x20] sm:$0xff]  ;;  %v1722_v8 = vld [vmem:[%s2394_s1 + $0x18] sm:$0xff]  ;;  %v1721_v10 = vld [vmem:[%s2394_s1 + $0x10] sm:$0xff] }
   0x4   :  { %v1747_v7 = vld [vmem:[%s2394_s1 + $0xe0] sm:$0xff]  ;;  %v1746_v9 = vld [vmem:[%s2394_s1 + $0xd8] sm:$0xff]  ;;  %v1745_v11 = vld [vmem:[%s2394_s1 + $0xd0] sm:$0xff] }
   0x5   :  { %v1720_v12 = vld [vmem:[%s2394_s1 + $0x8] sm:$0xff]  ;;  %v1893_v13 = vld [vmem:[%s2395_s0 + $0x120] sm:$0xff]  ;;  %v1325_v18 = vld [vmem:[%s2395_s0 + $0x90] sm:$0xf] }
   0x6   :  { %849 = vmatpush.bf16.msra.mxu0 %v1725_v1  ;;  %1816 = vmatpush.bf16.msra.mxu1 %v1725_v1  ;;  %v1744_v14 = vld [vmem:[%s2394_s1 + $0xc8] sm:$0xff]  ;;  %v1719_v15 = vld [vmem:[%s2394_s1] sm:$0xff]  ;;  %v1705_v19 = vld [vmem:[%s2395_s0 + $0xb0] sm:$0xf0]  ;;  %v317_v20 = vunpack.c.l.b16 %v1893_v13 }
   0x7   :  { %1817 = vmatpush.bf16.msra.mxu2 %v1725_v1  ;;  %948 = vmatpush.bf16.msra.mxu3 %v1749_v3  ;;  %v1253_v16 = vld [vmem:[%s2395_s0] sm:$0xf]  ;;  %v1687_v17 = vld [vmem:[%s2395_s0 + $0x20] sm:$0xf0]  ;;  %v1734_v21 = vld [vmem:[%s2394_s1 + $0x78] sm:$0xff]  ;;  %v1326_v25 = vor.u32 %v1705_v19, %v1325_v18 }
   0x8   :  { %v1742_v22 = vld [vmem:[%s2394_s1 + $0xb8] sm:$0xff]  ;;  %v1254_v24 = vor.u32 %v1687_v17, %v1253_v16  ;;  %v362_v26 = vpack.c.b16 %v317_v20, %v317_v20  ;;  %v1743_v27 = vld [vmem:[%s2394_s1 + $0xc0] sm:$0xff]  ;;  %v1684_v28 = vld [vmem:[%s2395_s0 + $0xc] sm:$0xf] }
   0x9   :  { %v1758_v23 = vld [vmem:[%s2394_s1 + $0x138] sm:$0xff]  ;;  %v1263_v29 = vld [vmem:[%s2395_s0 + $0x2c] sm:$0xf0]  ;;  %v1732_v35 = vld [vmem:[%s2394_s1 + $0x68] sm:$0xff] }
   0xa   :  { %850 = vmatpush.bf16.msra.mxu0 %v1724_v4  ;;  %1818 = vmatpush.bf16.msra.mxu1 %v1724_v4  ;;  %v1733_v30 = vld [vmem:[%s2394_s1 + $0x70] sm:$0xff]  ;;  %v1782_v31 = vld [vmem:[%s2394_s1 + $0x1f8] sm:$0xff]  ;;  %v1266_v34 = vor.u32 %v1684_v28, %v1263_v29  ;;  %v1740_v37 = vld [vmem:[%s2394_s1 + $0xa8] sm:$0xff] }
   0xb   :  { %1819 = vmatpush.bf16.msra.mxu2 %v1724_v4  ;;  %949 = vmatpush.bf16.msra.mxu3 %v1748_v5  ;;  %v1741_v32 = vld [vmem:[%s2394_s1 + $0xb0] sm:$0xff]  ;;  %v1756_v38 = vld [vmem:[%s2394_s1 + $0x128] sm:$0xff]  ;;  %v1731_v39 = vld [vmem:[%s2394_s1 + $0x60] sm:$0xff] }
   0xc   :  { %v1757_v33 = vld [vmem:[%s2394_s1 + $0x130] sm:$0xff]  ;;  %v1739_v40 = vld [vmem:[%s2394_s1 + $0xa0] sm:$0xff]  ;;  %v1289_v42 = vld [vmem:[%s2395_s0 + $0x48] sm:$0xf] }
   0xd   :  { %v1781_v36 = vld [vmem:[%s2394_s1 + $0x1f0] sm:$0xff]  ;;  %v1755_v41 = vld [vmem:[%s2394_s1 + $0x120] sm:$0xff]  ;;  %v1696_v43 = vld [vmem:[%s2395_s0 + $0x68] sm:$0xf0] }
   0xe   :  { %851 = vmatpush.bf16.msra.mxu0 %v1723_v6  ;;  %1820 = vmatpush.bf16.msra.mxu1 %v1723_v6  ;;  %v1361_v44 = vld [vmem:[%s2395_s0 + $0xd8] sm:$0xf]  ;;  %v1714_v45 = vld [vmem:[%s2395_s0 + $0xf8] sm:$0xf0]  ;;  %v1290_v49 = vor.u32 %v1696_v43, %v1289_v42  ;;  %v1693_v51 = vld [vmem:[%s2395_s0 + $0x54] sm:$0xf] }
   0xf   :  { %1821 = vmatpush.bf16.msra.mxu2 %v1723_v6  ;;  %950 = vmatpush.bf16.msra.mxu3 %v1747_v7  ;;  %v1730_v46 = vld [vmem:[%s2394_s1 + $0x58] sm:$0xff]  ;;  %v1362_v50 = vor.u32 %v1714_v45, %v1361_v44  ;;  %v1729_v53 = vld [vmem:[%s2394_s1 + $0x50] sm:$0xff]  ;;  %v1780_v57 = vld [vmem:[%s2394_s1 + $0x1e8] sm:$0xff] }
  0x10   :  { %v1738_v47 = vld [vmem:[%s2394_s1 + $0x98] sm:$0xff]  ;;  %v1737_v54 = vld [vmem:[%s2394_s1 + $0x90] sm:$0xff]  ;;  %v1728_v58 = vld [vmem:[%s2394_s1 + $0x48] sm:$0xff] }
  0x11   :  { %v1754_v48 = vld [vmem:[%s2394_s1 + $0x118] sm:$0xff]  ;;  %v1753_v55 = vld [vmem:[%s2394_s1 + $0x110] sm:$0xff]  ;;  %v1736_v59 = vld [vmem:[%s2394_s1 + $0x88] sm:$0xff] }
  0x12   :  { %852 = vmatpush.bf16.msra.mxu0 %v1722_v8  ;;  %1822 = vmatpush.bf16.msra.mxu1 %v1722_v8  ;;  %v1299_v52 = vld [vmem:[%s2395_s0 + $0x74] sm:$0xf0]  ;;  %v1752_v60 = vld [vmem:[%s2394_s1 + $0x108] sm:$0xff]  ;;  %v1735_v61 = vld [vmem:[%s2394_s1 + $0x80] sm:$0xff] }
  0x13   :  { %1823 = vmatpush.bf16.msra.mxu2 %v1722_v8  ;;  %951 = vmatpush.bf16.msra.mxu3 %v1746_v9  ;;  %v1302_v56 = vor.u32 %v1693_v51, %v1299_v52  ;;  %v1727_v62 = vld [vmem:[%s2394_s1 + $0x40] sm:$0xff]  ;;  %v1261_v63 = vld [vmem:[%s2395_s0 + $0x8] sm:$0xf]  ;;  %v1688_v0 = vld [vmem:[%s2395_s0 + $0x28] sm:$0xf0] }
  0x14   :  { %v1751_v1 = vld [vmem:[%s2394_s1 + $0x100] sm:$0xff]  ;;  %v1774_v2 = vld [vmem:[%s2394_s1 + $0x1b8] sm:$0xff]  ;;  %v1255_v4 = vld [vmem:[%s2395_s0 + $0x24] sm:$0xf0]  ;;  %v1262_v9 = vor.u32 %v1688_v0, %v1261_v63 }
  0x15   :  { %v1683_v3 = vld [vmem:[%s2395_s0 + $0x4] sm:$0xf]  ;;  %v1766_v5 = vld [vmem:[%s2394_s1 + $0x178] sm:$0xff]  ;;  %v1269_v6 = vld [vmem:[%s2395_s0 + $0x10] sm:$0xf] }
  0x16   :  { %853 = vmatpush.bf16.msra.mxu0 %v1721_v10  ;;  %1824 = vmatpush.bf16.msra.mxu1 %v1721_v10  ;;  %v1689_v7 = vld [vmem:[%s2395_s0 + $0x30] sm:$0xf0]  ;;  %v1790_v8 = vld [vmem:[%s2394_s1 + $0x238] sm:$0xff]  ;;  %v1335_v16 = vld [vmem:[%s2395_s0 + $0xbc] sm:$0xf0] }
  0x17   :  { %1825 = vmatpush.bf16.msra.mxu2 %v1721_v10  ;;  %952 = vmatpush.bf16.msra.mxu3 %v1745_v11  ;;  %v1258_v10 = vor.u32 %v1683_v3, %v1255_v4  ;;  %v1270_v11 = vor.u32 %v1689_v7, %v1269_v6  ;;  %v1789_v17 = vld [vmem:[%s2394_s1 + $0x230] sm:$0xff]  ;;  %v1779_v18 = vld [vmem:[%s2394_s1 + $0x1e0] sm:$0xff]  ;;  %v1772_v20 = vld [vmem:[%s2394_s1 + $0x1a8] sm:$0xff] }
  0x18   :  { %v1697_v28 = vld [vmem:[%s2395_s0 + $0x70] sm:$0xf0]  ;;  %v1692_v29 = vld [vmem:[%s2395_s0 + $0x4c] sm:$0xf]  ;;  %v1327_v51 = vld [vmem:[%s2395_s0 + $0xb4] sm:$0xf0] }
  0x19   :  { %v1777_v43 = vld [vmem:[%s2394_s1 + $0x1d0] sm:$0xff]  ;;  %v1768_v45 = vld [vmem:[%s2394_s1 + $0x188] sm:$0xff]  ;;  %v1341_v52 = vld [vmem:[%s2395_s0 + $0xa0] sm:$0xf] }
  0x1a   :  { %854 = vmatpush.bf16.msra.mxu0 %v1720_v12  ;;  %1826 = vmatpush.bf16.msra.mxu1 %v1720_v12  ;;  %v1761_v44 = vld [vmem:[%s2394_s1 + $0x150] sm:$0xff]  ;;  %v1775_v63 = vld [vmem:[%s2394_s1 + $0x1c0] sm:$0xff]  ;;  %v1710_v3 = vld [vmem:[%s2395_s0 + $0xdc] sm:$0xf] }
  0x1b   :  { %1827 = vmatpush.bf16.msra.mxu2 %v1720_v12  ;;  %953 = vmatpush.bf16.msra.mxu3 %v1744_v14  ;;  %v1773_v12 = vld [vmem:[%s2394_s1 + $0x1b0] sm:$0xff]  ;;  %v1759_v0 = vld [vmem:[%s2394_s1 + $0x140] sm:$0xff]  ;;  %v1716_v6 = vld [vmem:[%s2395_s0 + $0x108] sm:$0xf0] }
  0x1c   :  { %v1765_v14 = vld [vmem:[%s2394_s1 + $0x170] sm:$0xff]  ;;  %v1363_v4 = vld [vmem:[%s2395_s0 + $0xfc] sm:$0xf0] }
  0x1e   :  { %855 = vmatpush.bf16.msra.mxu0 %v1719_v15  ;;  %1828 = vmatpush.bf16.msra.mxu1 %v1719_v15 }
  0x1f   :  { %1829 = vmatpush.bf16.msra.mxu2 %v1719_v15  ;;  %954 = vmatpush.bf16.msra.mxu3 %v1743_v27  ;;  %v1702_v15 = vld [vmem:[%s2395_s0 + $0x9c] sm:$0xf]  ;;  %v1297_v27 = vld [vmem:[%s2395_s0 + $0x50] sm:$0xf] }
  0x20   :  { %v1338_v19 = vor.u32 %v1702_v15, %v1335_v16  ;;  %v2205_v15 = vld [vmem:[%s2395_s0 + $0x130] sm:$0xff] }
  0x21   :  { %856 = vmatmul.bf16.vlgmr.msra.gmra.mxu0 %v1254_v24  ;;  %866 = vmatmul.bf16.vlgmr.msra.gmra.mxu1 %v1326_v25  ;;  %v1771_v24 = vld [vmem:[%s2394_s1 + $0x1a0] sm:$0xff] }
  0x22   :  { %881 = vmatpush.bf16.msrb.mxu1 %v1734_v21  ;;  %980 = vmatpush.bf16.msrb.mxu0 %v1758_v23  ;;  %v1764_v21 = vld [vmem:[%s2394_s1 + $0x168] sm:$0xff]  ;;  %v1778_v23 = vld [vmem:[%s2394_s1 + $0x1d8] sm:$0xff]  ;;  %v1763_v25 = vld [vmem:[%s2394_s1 + $0x160] sm:$0xff] }
  0x23   :  { %914 = vmatpush.bf16.msrb.mxu2 %v1742_v22  ;;  %1079 = vmatpush.bf16.msrb.mxu3 %v1782_v31  ;;  %v1788_v22 = vld [vmem:[%s2394_s1 + $0x228] sm:$0xff]  ;;  %v1305_v31 = vld [vmem:[%s2395_s0 + $0x58] sm:$0xf] }
  0x24   :  { %876 = vmatmul.bf16.vlgmr.msra.gmra.mxu2 %v362_v26  ;;  %955 = vmatmul.bf16.vlgmr.msra.gmra.mxu3 %v1266_v34  ;;  %v1787_v26 = vld [vmem:[%s2394_s1 + $0x220] sm:$0xff]  ;;  %v1762_v34 = vld [vmem:[%s2394_s1 + $0x158] sm:$0xff] }
  0x26   :  { %882 = vmatpush.bf16.msrb.mxu1 %v1733_v30  ;;  %981 = vmatpush.bf16.msrb.mxu0 %v1757_v33  ;;  %v1291_v30 = vld [vmem:[%s2395_s0 + $0x6c] sm:$0xf0]  ;;  %v1770_v33 = vld [vmem:[%s2394_s1 + $0x198] sm:$0xff] }
  0x27   :  { %915 = vmatpush.bf16.msrb.mxu2 %v1741_v32  ;;  %1080 = vmatpush.bf16.msrb.mxu3 %v1781_v36  ;;  %v1698_v32 = vld [vmem:[%s2395_s0 + $0x78] sm:$0xf0]  ;;  %v1294_v36 = vor.u32 %v1692_v29, %v1291_v30  ;;  %v1691_v29 = vld [vmem:[%s2395_s0 + $0x40] sm:$0xf0] }
  0x2a   :  { %883 = vmatpush.bf16.msrb.mxu1 %v1732_v35  ;;  %982 = vmatpush.bf16.msrb.mxu0 %v1756_v38  ;;  %v1298_v35 = vor.u32 %v1697_v28, %v1297_v27  ;;  %v1711_v38 = vld [vmem:[%s2395_s0 + $0xe4] sm:$0xf]  ;;  %v1271_v27 = vld [vmem:[%s2395_s0 + $0x34] sm:$0xf0]  ;;  %v1285_v28 = vld [vmem:[%s2395_s0 + $0x20] sm:$0xf] }
  0x2b   :  { %916 = vmatpush.bf16.msrb.mxu2 %v1740_v37  ;;  %1081 = vmatpush.bf16.msrb.mxu3 %v1780_v57  ;;  %v1306_v37 = vor.u32 %v1698_v32, %v1305_v31  ;;  %v1286_v32 = vor.u32 %v1691_v29, %v1285_v28  ;;  %v55_v28 = vld [vmem:[%s2395_s0 + $0x140] sm:$0xf] }
  0x2e   :  { %884 = vmatpush.bf16.msrb.mxu1 %v1731_v39  ;;  %983 = vmatpush.bf16.msrb.mxu0 %v1755_v41  ;;  %v1371_v39 = vld [vmem:[%s2395_s0 + $0x104] sm:$0xf0]  ;;  %v1786_v41 = vld [vmem:[%s2394_s1 + $0x218] sm:$0xff] }
  0x2f   :  { %917 = vmatpush.bf16.msrb.mxu2 %v1739_v40  ;;  %1082 = vmatpush.bf16.msrb.mxu3 %v1779_v18  ;;  %v1769_v40 = vld [vmem:[%s2394_s1 + $0x190] sm:$0xff]  ;;  %v1374_v42 = vor.u32 %v1711_v38, %v1371_v39  ;;  %v321_v18 = vunpack.c.l.b16 %v2205_v15  ;;  %v1694_v38 = vld [vmem:[%s2395_s0 + $0x5c] sm:$0xf]  ;;  %v1307_v39 = vld [vmem:[%s2395_s0 + $0x7c] sm:$0xf0] }
  0x31   :  { %861 = vmatmul.bf16.gmra.mxu0 %v1290_v49  ;;  %871 = vmatmul.bf16.gmra.mxu1 %v1362_v50  ;;  %v1706_v49 = vld [vmem:[%s2395_s0 + $0xb8] sm:$0xf0]  ;;  %v1701_v50 = vld [vmem:[%s2395_s0 + $0x94] sm:$0xf] }
  0x32   :  { %885 = vmatpush.bf16.msrb.mxu1 %v1730_v46  ;;  %984 = vmatpush.bf16.msrb.mxu0 %v1754_v48  ;;  %v1785_v46 = vld [vmem:[%s2394_s1 + $0x210] sm:$0xff]  ;;  %v1333_v48 = vld [vmem:[%s2395_s0 + $0x98] sm:$0xf] }
  0x33   :  { %918 = vmatpush.bf16.msrb.mxu2 %v1738_v47  ;;  %1083 = vmatpush.bf16.msrb.mxu3 %v1778_v23  ;;  %v1776_v47 = vld [vmem:[%s2394_s1 + $0x1c8] sm:$0xff] }
  0x34   :  { %960 = vmatmul.bf16.gmra.mxu3 %v1302_v56  ;;  %v1330_v56 = vor.u32 %v1701_v50, %v1327_v51  ;;  %v1315_v23 = vld [vmem:[%s2395_s0 + $0x84] sm:$0xf0] }
  0x36   :  { %886 = vmatpush.bf16.msrb.mxu1 %v1729_v53  ;;  %985 = vmatpush.bf16.msrb.mxu0 %v1753_v55  ;;  %v1707_v53 = vld [vmem:[%s2395_s0 + $0xc0] sm:$0xf0]  ;;  %v1334_v55 = vor.u32 %v1706_v49, %v1333_v48  ;;  %v1387_v48 = vld [vmem:[%s2395_s0 + $0x114] sm:$0xf0] }
  0x37   :  { %919 = vmatpush.bf16.msrb.mxu2 %v1737_v54  ;;  %1084 = vmatpush.bf16.msrb.mxu3 %v1777_v43  ;;  %v52_v54 = vld [vmem:[%s2395_s0 + $0x128] sm:$0xff]  ;;  %v1342_v57 = vor.u32 %v1707_v53, %v1341_v52  ;;  %v1310_v43 = vor.u32 %v1694_v38, %v1307_v39 }
  0x38   :  { %v319_v16 = vunpack.c.l.b16 %v52_v54  ;;  %v1349_v53 = vld [vmem:[%s2395_s0 + $0xa8] sm:$0xf] }
  0x3a   :  { %887 = vmatpush.bf16.msrb.mxu1 %v1728_v58  ;;  %986 = vmatpush.bf16.msrb.mxu0 %v1752_v60  ;;  %v320_v58 = vunpack.c.h.b16 %v52_v54  ;;  %v1708_v54 = vld [vmem:[%s2395_s0 + $0xc8] sm:$0xf0] }
  0x3b   :  { %920 = vmatpush.bf16.msrb.mxu2 %v1736_v59  ;;  %1085 = vmatpush.bf16.msrb.mxu3 %v1776_v47  ;;  %v1760_v59 = vld [vmem:[%s2394_s1 + $0x148] sm:$0xff]  ;;  %v1713_v47 = vld [vmem:[%s2395_s0 + $0xf4] sm:$0xf] }
  0x3c   :  { %v365_v60 = vpack.c.b16 %v320_v58, %v320_v58  ;;  %v1390_v49 = vor.u32 %v1713_v47, %v1387_v48  ;;  %v1357_v58 = vld [vmem:[%s2395_s0 + $0xb0] sm:$0xf] }
  0x3e   :  { %888 = vmatpush.bf16.msrb.mxu1 %v1727_v62  ;;  %987 = vmatpush.bf16.msrb.mxu0 %v1751_v1  ;;  %v1784_v62 = vld [vmem:[%s2394_s1 + $0x208] sm:$0xff]  ;;  %v1369_v1 = vld [vmem:[%s2395_s0 + $0xe0] sm:$0xf] }
  0x3f   :  { %921 = vmatpush.bf16.msrb.mxu2 %v1735_v61  ;;  %v1767_v61 = vld [vmem:[%s2394_s1 + $0x180] sm:$0xff]  ;;  %1086 = vmatpush.bf16.msrb.mxu3 %v1775_v63 }
  0x41   :  { %889 = vmatmul.bf16.vlgmr.msrb.gmra.mxu1 %v1258_v10  ;;  %988 = vmatmul.bf16.vlgmr.msrb.gmra.mxu0 %v1270_v11  ;;  %v1783_v10 = vld [vmem:[%s2394_s1 + $0x200] sm:$0xff]  ;;  %v1686_v11 = vld [vmem:[%s2395_s0 + $0x1c] sm:$0xf] }
  0x42   :  { %1013 = vmatpush.bf16.msra.mxu1 %v1766_v5  ;;  %1112 = vmatpush.bf16.msra.mxu0 %v1790_v8  ;;  %v1377_v5 = vld [vmem:[%s2395_s0 + $0xe8] sm:$0xf]  ;;  %v1366_v8 = vor.u32 %v1710_v3, %v1363_v4 }
  0x43   :  { %1046 = vmatpush.bf16.msra.mxu2 %v1774_v2  ;;  %v1715_v2 = vld [vmem:[%s2395_s0 + $0x100] sm:$0xf0] }
  0x44   :  { %922 = vmatmul.bf16.vlgmr.msrb.gmra.mxu2 %v1262_v9  ;;  %965 = vmatmul.bf16.gmra.mxu3 %v1338_v19  ;;  %v1370_v7 = vor.u32 %v1715_v2, %v1369_v1  ;;  %v1378_v9 = vor.u32 %v1716_v6, %v1377_v5  ;;  %v364_v19 = vpack.c.b16 %v319_v16, %v319_v16  ;;  %v1718_v16 = vld [vmem:[%s2395_s0 + $0x118] sm:$0xf0] }
  0x46   :  { %1014 = vmatpush.bf16.msra.mxu1 %v1765_v14  ;;  %1113 = vmatpush.bf16.msra.mxu0 %v1789_v17  ;;  %v318_v17 = vunpack.c.h.b16 %v1893_v13  ;;  %v1277_v13 = vld [vmem:[%s2395_s0 + $0x18] sm:$0xf] }
  0x47   :  { %1047 = vmatpush.bf16.msra.mxu2 %v1773_v12  ;;  %v1279_v12 = vld [vmem:[%s2395_s0 + $0x3c] sm:$0xf0] }
  0x48   :  { %v1282_v14 = vor.u32 %v1686_v11, %v1279_v12  ;;  %v1712_v11 = vld [vmem:[%s2395_s0 + $0xec] sm:$0xf]  ;;  %v1379_v12 = vld [vmem:[%s2395_s0 + $0x10c] sm:$0xf0] }
  0x4a   :  { %1015 = vmatpush.bf16.msra.mxu1 %v1764_v21  ;;  %1114 = vmatpush.bf16.msra.mxu0 %v1788_v22  ;;  %v366_v21 = vpack.c.b16 %v321_v18, %v321_v18  ;;  %v1695_v22 = vld [vmem:[%s2395_s0 + $0x64] sm:$0xf]  ;;  %v1382_v18 = vor.u32 %v1712_v11, %v1379_v12 }
  0x4b   :  { %1048 = vmatpush.bf16.msra.mxu2 %v1772_v20  ;;  %v363_v20 = vpack.c.b16 %v318_v17, %v318_v17 }
  0x4e   :  { %1016 = vmatpush.bf16.msra.mxu1 %v1763_v25  ;;  %1115 = vmatpush.bf16.msra.mxu0 %v1787_v26  ;;  %v1690_v25 = vld [vmem:[%s2395_s0 + $0x38] sm:$0xf0]  ;;  %v1685_v26 = vld [vmem:[%s2395_s0 + $0x14] sm:$0xf] }
  0x4f   :  { %1049 = vmatpush.bf16.msra.mxu2 %v1771_v24  ;;  %v1318_v24 = vor.u32 %v1695_v22, %v1315_v23  ;;  %v1278_v30 = vor.u32 %v1690_v25, %v1277_v13  ;;  %v1274_v31 = vor.u32 %v1685_v26, %v1271_v27 }
  0x51   :  { %894 = vmatmul.bf16.gmra.mxu1 %v1294_v36  ;;  %993 = vmatmul.bf16.gmra.mxu0 %v1306_v37  ;;  %v1313_v36 = vld [vmem:[%s2395_s0 + $0x60] sm:$0xf]  ;;  %v1699_v37 = vld [vmem:[%s2395_s0 + $0x80] sm:$0xf0] }
  0x52   :  { %1017 = vmatpush.bf16.msra.mxu1 %v1762_v34  ;;  %1116 = vmatpush.bf16.msra.mxu0 %v1786_v41  ;;  %v1351_v34 = vld [vmem:[%s2395_s0 + $0xcc] sm:$0xf0]  ;;  %v1700_v41 = vld [vmem:[%s2395_s0 + $0x88] sm:$0xf0] }
  0x53   :  { %1050 = vmatpush.bf16.msra.mxu2 %v1770_v33  ;;  %v1704_v33 = vld [vmem:[%s2395_s0 + $0xac] sm:$0xf] }
  0x54   :  { %927 = vmatmul.bf16.gmra.mxu2 %v1298_v35  ;;  %970 = vmatmul.bf16.gmra.mxu3 %v1374_v42  ;;  %v1354_v35 = vor.u32 %v1704_v33, %v1351_v34  ;;  %v1314_v42 = vor.u32 %v1699_v37, %v1313_v36  ;;  %v322_v33 = vunpack.c.h.b16 %v2205_v15  ;;  %v325_v34 = vunpack.c.l.b16 %v55_v28 }
  0x56   :  { %1018 = vmatpush.bf16.msra.mxu1 %v1761_v44  ;;  %1117 = vmatpush.bf16.msra.mxu0 %v1785_v46  ;;  %v367_v39 = vpack.c.b16 %v322_v33, %v322_v33 }
  0x57   :  { %1051 = vmatpush.bf16.msra.mxu2 %v1769_v40  ;;  %v1321_v40 = vld [vmem:[%s2395_s0 + $0x68] sm:$0xf] }
  0x58   :  { %v1322_v44 = vor.u32 %v1700_v41, %v1321_v40  ;;  %v370_v40 = vpack.c.b16 %v325_v34, %v325_v34 }
  0x5a   :  { %1019 = vmatpush.bf16.msra.mxu1 %v1760_v59  ;;  %1118 = vmatpush.bf16.msra.mxu0 %v1784_v62  ;;  %v1709_v59 = vld [vmem:[%s2395_s0 + $0xd0] sm:$0xf0] }
  0x5b   :  { %1052 = vmatpush.bf16.msra.mxu2 %v1768_v45 }
  0x5e   :  { %1020 = vmatpush.bf16.msra.mxu1 %v1759_v0  ;;  %1119 = vmatpush.bf16.msra.mxu0 %v1783_v10  ;;  %v1358_v0 = vor.u32 %v1709_v59, %v1357_v58 }
  0x5f   :  { %1053 = vmatpush.bf16.msra.mxu2 %v1767_v61  ;;  %v1350_v61 = vor.u32 %v1708_v54, %v1349_v53 }
  0x61   :  { %899 = vmatmul.bf16.gmra.mxu1 %v1330_v56  ;;  %998 = vmatmul.bf16.gmra.mxu0 %v1342_v57  ;;  %v1703_v56 = vld [vmem:[%s2395_s0 + $0xa4] sm:$0xf]  ;;  %v1343_v57 = vld [vmem:[%s2395_s0 + $0xc4] sm:$0xf0] }
  0x62   :  { %v1346_v63 = vor.u32 %v1703_v56, %v1343_v57 }
  0x64   :  { %932 = vmatmul.bf16.gmra.mxu2 %v1334_v55  ;;  %975 = vmatmul.bf16.gmra.mxu3 %v365_v60  ;;  %v54_v60 = vld [vmem:[%s2395_s0 + $0x138] sm:$0xff] }
  0x65   :  { %v324_v1 = vunpack.c.h.b16 %v54_v60 }
  0x67   :  { %v369_v5 = vpack.c.b16 %v324_v1, %v324_v1 }
  0x71   :  { %904 = vmatmul.bf16.gmra.mxu1 %v1366_v8  ;;  %1003 = vmatmul.bf16.gmra.mxu0 %v1378_v9  ;;  %v1385_v8 = vld [vmem:[%s2395_s0 + $0xf0] sm:$0xf]  ;;  %v1717_v9 = vld [vmem:[%s2395_s0 + $0x110] sm:$0xf0] }
  0x72   :  { %v1386_v17 = vor.u32 %v1717_v9, %v1385_v8 }
  0x74   :  { %937 = vmatmul.bf16.gmra.mxu2 %v1370_v7  ;;  %1087 = vmatmul.bf16.vlgmr.msrb.gmra.mxu3 %v1282_v14  ;;  %v1393_v14 = vld [vmem:[%s2395_s0 + $0xf8] sm:$0xf] }
  0x81   :  { %909 = vmatmul.bf16.gmra.mxu1 %v363_v20  ;;  %1008 = vmatmul.bf16.gmra.mxu0 %v366_v21 }
  0x84   :  { %942 = vmatmul.bf16.gmra.mxu2 %v364_v19  ;;  %1092 = vmatmul.bf16.gmra.mxu3 %v1318_v24  ;;  %v1394_v19 = vor.u32 %v1718_v16, %v1393_v14 }
  0x91   :  { %1021 = vmatmul.bf16.vlgmr.msra.gmra.mxu1 %v1274_v31  ;;  %1120 = vmatmul.bf16.vlgmr.msra.gmra.mxu0 %v1286_v32 }
  0x94   :  { %1054 = vmatmul.bf16.vlgmr.msra.gmra.mxu2 %v1278_v30  ;;  %1097 = vmatmul.bf16.gmra.mxu3 %v1354_v35  ;;  %v323_v30 = vunpack.c.l.b16 %v54_v60 }
  0x96   :  { %v368_v37 = vpack.c.b16 %v323_v30, %v323_v30 }
  0x9e   :  { %v857_v45 = vpop.f32.mrf.mxu0  ;;  %v2257_v46 = vpop.f32.mrf.mxu1 }
  0xa1   :  { %1026 = vmatmul.bf16.gmra.mxu1 %v1310_v43  ;;  %1125 = vmatmul.bf16.gmra.mxu0 %v1322_v44 }
  0xa4   :  { %1059 = vmatmul.bf16.gmra.mxu2 %v1314_v42  ;;  %1102 = vmatmul.bf16.gmra.mxu3 %v1390_v49 }
  0xa6   :  { %v859_v51 = vpop.f32.mrf.mxu0  ;;  %v2267_v52 = vpop.f32.mrf.mxu1 }
  0xa7   :  { %v2265_v50 = vpop.f32.mrf.mxu2  ;;  %v956_v55 = vpop.f32.mrf.mxu3 }
  0xae   :  { %v862_v2 = vpop.f32.mrf.mxu0  ;;  %v2290_v3 = vpop.f32.mrf.mxu1 }
  0xaf   :  { %v879_v62 = vpop.f32.mrf.mxu2  ;;  %v958_v4 = vpop.f32.mrf.mxu3 }
  0xb1   :  { %1031 = vmatmul.bf16.gmra.mxu1 %v1346_v63  ;;  %1130 = vmatmul.bf16.gmra.mxu0 %v1358_v0 }
  0xb4   :  { %1064 = vmatmul.bf16.gmra.mxu2 %v1350_v61  ;;  %1107 = vmatmul.bf16.gmra.mxu3 %v369_v5 }
  0xb6   :  { %v864_v6 = vpop.f32.mrf.mxu0  ;;  %v2292_v7 = vpop.f32.mrf.mxu1 }
  0xb7   :  { %v961_v10 = vpop.f32.mrf.mxu3 }
  0xbe   :  { %v890_v20 = vpop.f32.mrf.mxu1  ;;  %v989_v21 = vpop.f32.mrf.mxu0 }
  0xbf   :  { %v891_v22 = vadd.f32 %v890_v20, %v857_v45  ;;  %v963_v23 = vpop.f32.mrf.mxu3 }
  0xc1   :  { %1036 = vmatmul.bf16.gmra.mxu1 %v1382_v18  ;;  %1135 = vmatmul.bf16.gmra.mxu0 %v1394_v19 }
  0xc4   :  { %1069 = vmatmul.bf16.gmra.mxu2 %v1386_v17 }
  0xc6   :  { %v892_v26 = vpop.f32.mrf.mxu1  ;;  %v991_v27 = vpop.f32.mrf.mxu0 }
  0xc7   :  { %v923_v24 = vpop.f32.mrf.mxu2  ;;  %v893_v29 = vadd.f32 %v892_v26, %v859_v51  ;;  %v966_v32 = vpop.f32.mrf.mxu3 }
  0xc8   :  { %v924_v13 = vadd.f32 %v923_v24, %v891_v22 }
  0xca   :  { %v957_v25 = vadd.f32 %v956_v55, %v924_v13 }
  0xcc   :  { %v2315_v31 = vadd.f32 %v989_v21, %v957_v25 }
  0xce   :  { %v895_v41 = vpop.f32.mrf.mxu1  ;;  %v994_v42 = vpop.f32.mrf.mxu0 }
  0xcf   :  { %v925_v35 = vpop.f32.mrf.mxu2  ;;  %v896_v43 = vadd.f32 %v895_v41, %v862_v2  ;;  %v968_v45 = vpop.f32.mrf.mxu3 }
  0xd0   :  { %v926_v36 = vadd.f32 %v925_v35, %v893_v29 }
  0xd1   :  { %1041 = vmatmul.bf16.gmra.mxu1 %v367_v39  ;;  %1140 = vmatmul.bf16.gmra.mxu0 %v370_v40 }
  0xd2   :  { %v959_v38 = vadd.f32 %v958_v4, %v926_v36 }
  0xd4   :  { %1074 = vmatmul.bf16.gmra.mxu2 %v368_v37  ;;  %v2318_v44 = vadd.f32 %v991_v27, %v959_v38 }
  0xd6   :  { %v897_v15 = vpop.f32.mrf.mxu1  ;;  %v996_v51 = vpop.f32.mrf.mxu0 }
  0xd7   :  { %v928_v47 = vpop.f32.mrf.mxu2  ;;  %v898_v53 = vadd.f32 %v897_v15, %v864_v6  ;;  %v971_v55 = vpop.f32.mrf.mxu3 }
  0xd8   :  { %v929_v48 = vadd.f32 %v928_v47, %v896_v43 }
  0xda   :  { %v962_v49 = vadd.f32 %v961_v10, %v929_v48 }
  0xdc   :  { %v2320_v54 = vadd.f32 %v994_v42, %v962_v49 }
  0xde   :  { %v900_v59 = vpop.f32.mrf.mxu1  ;;  %v999_v60 = vpop.f32.mrf.mxu0 }
  0xdf   :  { %v930_v56 = vpop.f32.mrf.mxu2  ;;  %v901_v61 = vadd.f32 %v900_v59, %v2257_v46  ;;  %v973_v63 = vpop.f32.mrf.mxu3 }
  0xe0   :  { %v931_v57 = vadd.f32 %v930_v56, %v898_v53 }
  0xe2   :  { %v964_v58 = vadd.f32 %v963_v23, %v931_v57 }
  0xe4   :  { %v2323_v62 = vadd.f32 %v996_v51, %v964_v58 }
  0xe6   :  { %v902_v4 = vpop.f32.mrf.mxu1  ;;  %v1001_v5 = vpop.f32.mrf.mxu0 }
  0xe7   :  { %v933_v0 = vpop.f32.mrf.mxu2  ;;  %v903_v6 = vadd.f32 %v902_v4, %v2267_v52  ;;  %v976_v9 = vpop.f32.mrf.mxu3 }
  0xe8   :  { %v934_v1 = vadd.f32 %v933_v0, %v901_v61 }
  0xea   :  { %v967_v2 = vadd.f32 %v966_v32, %v934_v1 }
  0xec   :  { %v2326_v8 = vadd.f32 %v999_v60, %v967_v2 }
  0xee   :  { %v905_v14 = vpop.f32.mrf.mxu1  ;;  %v1004_v16 = vpop.f32.mrf.mxu0 }
  0xef   :  { %v935_v10 = vpop.f32.mrf.mxu2  ;;  %v906_v46 = vadd.f32 %v905_v14, %v2290_v3  ;;  %v978_v18 = vpop.f32.mrf.mxu3 }
  0xf0   :  { %v936_v11 = vadd.f32 %v935_v10, %v903_v6 }
  0xf2   :  { %v969_v12 = vadd.f32 %v968_v45, %v936_v11 }
  0xf4   :  { %v2329_v17 = vadd.f32 %v1001_v5, %v969_v12 }
  0xf6   :  { %v907_v22 = vpop.f32.mrf.mxu1  ;;  %v1006_v23 = vpop.f32.mrf.mxu0 }
  0xf7   :  { %v938_v19 = vpop.f32.mrf.mxu2  ;;  %v908_v52 = vadd.f32 %v907_v22, %v2292_v7  ;;  %v1088_v13 = vpop.f32.mrf.mxu3 }
  0xf8   :  { %v939_v20 = vadd.f32 %v938_v19, %v906_v46 }
  0xfa   :  { %v972_v21 = vadd.f32 %v971_v55, %v939_v20 }
  0xfc   :  { %v2332_v24 = vadd.f32 %v1004_v16, %v972_v21 }
  0xfe   :  { %v910_v28 = vpop.f32.mrf.mxu1  ;;  %v1009_v29 = vpop.f32.mrf.mxu0 }
  0xff   :  { %v940_v25 = vpop.f32.mrf.mxu2  ;;  %v911_v3 = vadd.f32 %v910_v28, %v2265_v50  ;;  %v1090_v32 = vpop.f32.mrf.mxu3 }
 0x100   :  { %v941_v26 = vadd.f32 %v940_v25, %v908_v52 }
 0x102   :  { %v974_v27 = vadd.f32 %v973_v63, %v941_v26 }
 0x104   :  { %v2335_v30 = vadd.f32 %v1006_v23, %v974_v27 }
 0x106   :  { %v912_v36 = vpop.f32.mrf.mxu1  ;;  %v1011_v37 = vpop.f32.mrf.mxu0 }
 0x107   :  { %v943_v33 = vpop.f32.mrf.mxu2  ;;  %v1093_v7 = vpop.f32.mrf.mxu3 }
 0x108   :  { %v944_v34 = vadd.f32 %v943_v33, %v911_v3 }
 0x10a   :  { %v977_v35 = vadd.f32 %v976_v9, %v944_v34 }
 0x10c   :  { %v2337_v38 = vadd.f32 %v1009_v29, %v977_v35 }
 0x10e   :  { %v1022_v40 = vpop.f32.mrf.mxu1  ;;  %v1121_v41 = vpop.f32.mrf.mxu0 }
 0x10f   :  { %v945_v39 = vpop.f32.mrf.mxu2  ;;  %v1023_v42 = vadd.f32 %v1022_v40, %v2315_v31  ;;  %v1095_v43 = vpop.f32.mrf.mxu3 }
 0x116   :  { %v1024_v48 = vpop.f32.mrf.mxu1  ;;  %v1123_v49 = vpop.f32.mrf.mxu0 }
 0x117   :  { %v1055_v45 = vpop.f32.mrf.mxu2  ;;  %v1025_v15 = vadd.f32 %v1024_v48, %v2318_v44  ;;  %v1098_v51 = vpop.f32.mrf.mxu3 }
 0x118   :  { %v1056_v47 = vadd.f32 %v1055_v45, %v1023_v42 }
 0x11a   :  { %v1089_v50 = vadd.f32 %v1088_v13, %v1056_v47 }
 0x11c   :  { %v2341_v56 = vadd.f32 %v1121_v41, %v1089_v50 }
 0x11e   :  { %v1027_v58 = vpop.f32.mrf.mxu1  ;;  %v1126_v59 = vpop.f32.mrf.mxu0  ;;  %v1145_v63 = vmax.f32 %v2341_v56, 0.0 }
 0x11f   :  { %v1057_v53 = vpop.f32.mrf.mxu2  ;;  %v1028_v31 = vadd.f32 %v1027_v58, %v2320_v54  ;;  %v1100_v61 = vpop.f32.mrf.mxu3  ;;  %v1835_v58 = vmov 72.0  }
 0x120   :  { %v1058_v55 = vadd.f32 %v1057_v53, %v1025_v15  ;;  %1831 = vrcp.f32 %v1835_v58 }
 0x122   :  { %v1091_v57 = vadd.f32 %v1090_v32, %v1058_v55 }
 0x124   :  { %v2343_v60 = vadd.f32 %v1123_v49, %v1091_v57 }
 0x126   :  { %v1146_v0 = vmax.f32 %v2343_v60, 0.0  ;;  %v1029_v5 = vpop.f32.mrf.mxu1  ;;  %v1128_v6 = vpop.f32.mrf.mxu0 }
 0x127   :  { %v1060_v1 = vpop.f32.mrf.mxu2  ;;  %v1030_v10 = vadd.f32 %v1029_v5, %v2323_v62  ;;  %v1103_v54 = vpop.f32.mrf.mxu3 }
 0x128   :  { %v1154_v44 = vadd.f32 %v1146_v0, %v1145_v63  ;;  %v1061_v2 = vadd.f32 %v1060_v1, %v1028_v31 }
 0x12a   :  { %v1094_v4 = vadd.f32 %v1093_v7, %v1061_v2  ;;  %v1832_v2 = vpop.eup %1831 }
 0x12b   :  { %vm1173_vm0 = vweird.f32 %v1832_v2 }
 0x12c   :  { %v2352_v9 = vadd.f32 %v1126_v59, %v1094_v4 }
 0x12e   :  { %v1147_v11 = vmax.f32 %v2352_v9, 0.0  ;;  %v1032_v18 = vpop.f32.mrf.mxu1  ;;  %v1131_v19 = vpop.f32.mrf.mxu0 }
 0x12f   :  { %v1062_v12 = vpop.f32.mrf.mxu2  ;;  %v1033_v21 = vadd.f32 %v1032_v18, %v2326_v8  ;;  %v1105_v22 = vpop.f32.mrf.mxu3 }
 0x130   :  { %v1155_v14 = vadd.f32 %v1154_v44, %v1147_v11  ;;  %v1063_v16 = vadd.f32 %v1062_v12, %v1030_v10  ;;  %v1169_v10 = vmul.f32 72.0, %v1832_v2 }
 0x132   :  { %v1096_v46 = vadd.f32 %v1095_v43, %v1063_v16  ;;  %v1170_v16 = vsub.f32 1.0, %v1169_v10 }
 0x134   :  { %v2358_v20 = vadd.f32 %v1128_v6, %v1096_v46 }
 0x136   :  { %v1148_v23 = vmax.f32 %v2358_v20, 0.0  ;;  %v1034_v26 = vpop.f32.mrf.mxu1  ;;  %v1133_v27 = vpop.f32.mrf.mxu0 }
 0x137   :  { %v1065_v52 = vpop.f32.mrf.mxu2  ;;  %v1035_v29 = vadd.f32 %v1034_v26, %v2329_v17  ;;  %v1108_v3 = vpop.f32.mrf.mxu3 }
 0x138   :  { %v1156_v62 = vadd.f32 %v1155_v14, %v1148_v23  ;;  %v1066_v13 = vadd.f32 %v1065_v52, %v1033_v21  ;;  %v1171_v21 = vmul.f32 %v1832_v2, %v1170_v16 }
 0x13a   :  { %v1099_v25 = vadd.f32 %v1098_v51, %v1066_v13 }
 0x13c   :  { %v2364_v28 = vadd.f32 %v1131_v19, %v1099_v25 }
 0x13e   :  { %v1149_v32 = vmax.f32 %v2364_v28, 0.0  ;;  %v1037_v36 = vpop.f32.mrf.mxu1  ;;  %v1136_v37 = vpop.f32.mrf.mxu0 }
 0x13f   :  { %v1067_v33 = vpop.f32.mrf.mxu2  ;;  %v1038_v39 = vadd.f32 %v1037_v36, %v2332_v24  ;;  %v1110_v40 = vpop.f32.mrf.mxu3 }
 0x140   :  { %v1157_v8 = vadd.f32 %v1156_v62, %v1149_v32  ;;  %v1068_v34 = vadd.f32 %v1067_v33, %v1035_v29  ;;  %v1172_v62 = vadd.f32 %v1832_v2, %v1171_v21 }
 0x142   :  { %v1101_v35 = vadd.f32 %v1100_v61, %v1068_v34  ;;  %v1174_v25 = vsel %vm1173_vm0, %v1832_v2, %v1172_v62 }
 0x144   :  { %v1134_v7 = vadd.f32 %v1133_v27, %v1101_v35 }
 0x146   :  { %v1150_v41 = vmax.f32 %v1134_v7, 0.0  ;;  %v1039_v50 = vpop.f32.mrf.mxu1  ;;  %v1138_v17 = vpop.f32.mrf.mxu0 }
 0x147   :  { %v1070_v42 = vpop.f32.mrf.mxu2  ;;  %v1040_v49 = vadd.f32 %v1039_v50, %v2335_v30 }
 0x148   :  { %v1158_v43 = vadd.f32 %v1157_v8, %v1150_v41  ;;  %v1071_v45 = vadd.f32 %v1070_v42, %v1038_v39 }
 0x14a   :  { %v1104_v47 = vadd.f32 %v1103_v54, %v1071_v45 }
 0x14c   :  { %v1137_v48 = vadd.f32 %v1136_v37, %v1104_v47 }
 0x14e   :  { %v1151_v15 = vmax.f32 %v1137_v48, 0.0  ;;  %v1042_v59 = vpop.f32.mrf.mxu1  ;;  %v1141_v24 = vpop.f32.mrf.mxu0 }
 0x14f   :  { %v1072_v51 = vpop.f32.mrf.mxu2  ;;  %v1043_v61 = vadd.f32 %v1042_v59, %v2337_v38 }
 0x150   :  { %v1159_v53 = vadd.f32 %v1158_v43, %v1151_v15  ;;  %v1073_v55 = vadd.f32 %v1072_v51, %v1040_v49 }
 0x152   :  { %v1106_v57 = vadd.f32 %v1105_v22, %v1073_v55 }
 0x154   :  { %v1139_v31 = vadd.f32 %v1138_v17, %v1106_v57 }
 0x156   :  { %v1152_v1 = vmax.f32 %v1139_v31, 0.0  ;;  %v1044_v30 = vpop.f32.mrf.mxu1  ;;  %v1143_v54 = vpop.f32.mrf.mxu0 }
 0x157   :  { %v1075_v44 = vpop.f32.mrf.mxu2 }
 0x158   :  { %v1160_v4 = vadd.f32 %v1159_v53, %v1152_v1  ;;  %v1076_v5 = vadd.f32 %v1075_v44, %v1043_v61 }
 0x15a   :  { %v1109_v6 = vadd.f32 %v1108_v3, %v1076_v5 }
 0x15c   :  { %v1142_v12 = vadd.f32 %v1141_v24, %v1109_v6 }
 0x15e   :  { %v1153_v14 = vmax.f32 %v1142_v12, 0.0 }
 0x15f   :  { %v1077_v46 = vpop.f32.mrf.mxu2 }
 0x160   :  { %v1161_v18 = vadd.f32 %v1160_v4, %v1153_v14 }
 0x162   :  { %v1162_v19 = vrot.slane %v1161_v18, 4 }
 0x164   :  { %v1163_v22 = vadd.f32 %v1162_v19, %v1161_v18 }
 0x166   :  { %v1164_v52 = vrot.slane %v1163_v22, 2 }
 0x168   :  { %v1165_v38 = vadd.f32 %v1164_v52, %v1163_v22 }
 0x16a   :  { %v1166_v13 = vrot.slane %v1165_v38, 1 }
 0x16c   :  { %v1167_v26 = vadd.f32 %v1166_v13, %v1165_v38 }
 0x16e   :  { %v1175_v27 = vmul.f32 %v1174_v25, %v1167_v26 }
 0x170   :  { %v1176_v28 = vsub.f32 %v1145_v63, %v1175_v27  ;;  %v1177_v29 = vsub.f32 %v1146_v0, %v1175_v27  ;;  %v1178_v3 = vsub.f32 %v1147_v11, %v1175_v27  ;;  %v1179_v33 = vsub.f32 %v1148_v23, %v1175_v27 }
 0x171   :  { %v1180_v8 = vsub.f32 %v1149_v32, %v1175_v27  ;;  %v1181_v34 = vsub.f32 %v1150_v41, %v1175_v27  ;;  %v1182_v35 = vsub.f32 %v1151_v15, %v1175_v27  ;;  %v1183_v36 = vsub.f32 %v1152_v1, %v1175_v27 }
 0x172   :  { %v1184_v37 = vsub.f32 %v1153_v14, %v1175_v27  ;;  %v1185_v7 = vmul.f32 %v1176_v28, %v1176_v28  ;;  %v1186_v39 = vmul.f32 %v1177_v29, %v1177_v29  ;;  %v1187_v40 = vmul.f32 %v1178_v3, %v1178_v3 }
 0x173   :  { %v1188_v56 = vmul.f32 %v1179_v33, %v1179_v33  ;;  %v1189_v43 = vmul.f32 %v1180_v8, %v1180_v8  ;;  %v1190_v0 = vmul.f32 %v1181_v34, %v1181_v34  ;;  %v1191_v9 = vmul.f32 %v1182_v35, %v1182_v35 }
 0x174   :  { %v1194_v42 = vadd.f32 %v1186_v39, %v1185_v7  ;;  %v1192_v47 = vmul.f32 %v1183_v36, %v1183_v36  ;;  %v1193_v23 = vmul.f32 %v1184_v37, %v1184_v37 }
 0x176   :  { %v1195_v63 = vadd.f32 %v1194_v42, %v1187_v40 }
 0x178   :  { %v1196_v60 = vadd.f32 %v1195_v63, %v1188_v56 }
 0x17a   :  { %v1197_v45 = vadd.f32 %v1196_v60, %v1189_v43 }
 0x17c   :  { %v1198_v11 = vadd.f32 %v1197_v45, %v1190_v0 }
 0x17e   :  { %v1199_v20 = vadd.f32 %v1198_v11, %v1191_v9 }
 0x180   :  { %v1200_v32 = vadd.f32 %v1199_v20, %v1192_v47 }
 0x182   :  { %v1201_v41 = vadd.f32 %v1200_v32, %v1193_v23 }
 0x184   :  { %v1202_v50 = vrot.slane %v1201_v41, 4 }
 0x186   :  { %v1203_v17 = vadd.f32 %v1202_v50, %v1201_v41 }
 0x188   :  { %v1204_v48 = vrot.slane %v1203_v17, 2 }
 0x18a   :  { %v1205_v49 = vadd.f32 %v1204_v48, %v1203_v17 }
 0x18c   :  { %v1206_v15 = vrot.slane %v1205_v49, 1 }
 0x18e   :  { %v1207_v51 = vadd.f32 %v1206_v15, %v1205_v49 }
 0x190   :  { %v1208_v53 = vmul.f32 %v1207_v51, %v1174_v25 }
 0x192   :  { %v1209_v55 = vadd.f32 1e-05, %v1208_v53 }
 0x194   :  { %1833 = vrsqrt.f32 %v1209_v55  ;;  %vm1216_vm2 = vweird.f32 %v1209_v55 }
 0x19a   :  { %v1834_v57 = vpop.eup %1833 }
 0x19b   :  { %v1211_v58 = vmul.f32 %v1834_v57, %v1209_v55  ;;  %vm1217_vm1 = vweird.f32 %v1834_v57 }
 0x19c   :  { %vm1218_vm3 = vmor %vm1216_vm2, %vm1217_vm1 }
 0x19d   :  { %v1212_v59 = vmul.f32 %v1834_v57, %v1211_v58 }
 0x19f   :  { %v1213_v24 = vmul.f32 0.5, %v1212_v59 }
 0x1a1   :  { %v1214_v31 = vsub.f32 1.5, %v1213_v24 }
 0x1a3   :  { %v1215_v61 = vmul.f32 %v1834_v57, %v1214_v31 }
 0x1a5   :  { %v1219_v1 = vsel %vm1218_vm3, %v1834_v57, %v1215_v61 }
 0x1a6   :  { %v1220_v44 = vmul.f32 %v1219_v1, %v1176_v28  ;;  %v1221_v2 = vmul.f32 %v1219_v1, %v1177_v29  ;;  %v1222_v4 = vmul.f32 %v1219_v1, %v1178_v3  ;;  %v1223_v5 = vmul.f32 %v1219_v1, %v1179_v33 }
 0x1a7   :  { %v1224_v6 = vmul.f32 %v1219_v1, %v1180_v8  ;;  %v1225_v10 = vmul.f32 %v1219_v1, %v1181_v34  ;;  %v1226_v30 = vmul.f32 %v1219_v1, %v1182_v35  ;;  %v1227_v54 = vmul.f32 %v1219_v1, %v1183_v36 }
 0x1a8   :  { %v1228_v12 = vmul.f32 %v1219_v1, %v1184_v37  ;;  %v1794_v14 = vpack.c.bf16 %v1221_v2, %v1220_v44  ;;  %v1799_v16 = vpack.c.bf16 %v1223_v5, %v1222_v4 }
 0x1a9   :  { %v1804_v46 = vpack.c.bf16 %v1225_v10, %v1224_v6  ;;  %v1809_v18 = vpack.c.bf16 %v1227_v54, %v1226_v30 }
 0x1aa   :  { %v1237_v19 = vpack.c.bf16 %v1228_v12, %v1228_v12  ;;  %1795 = vst [vmem:[%s2396_s2] sm:$0xff] %v1794_v14  }
 0x1ab   :  { %1811 = vst [vmem:[%s2396_s2 + $0x8] sm:$0xff] %v1799_v16  }
 0x1ac   :  { %1812 = vst [vmem:[%s2396_s2 + $0x10] sm:$0xff] %v1804_v46  }
 0x1ad   :  { %1813 = vst [vmem:[%s2396_s2 + $0x18] sm:$0xff] %v1809_v18  }
 0x1ae   :  { %1246 = vst [vmem:[%s2396_s2 + $0x20] sm:$0xf] %v1237_v19 }

// kernel: baseline_forward.10
= control target key start
LH: loop header
LB: loop body
LE: loop exit
PB: predicated region body
PF: predicated region fallthrough
CT: control target
= control target key end

     0   :  { %s1756_s1 = inlined_call_operand.vmem [shape: bf16[1152,128], index: 1, kind: input, shape index: {}]   ;;  %s1757_s0 = inlined_call_operand.vmem [shape: bf16[32,1152], index: 0, kind: input, shape index: {}]   ;;  %s1758_s2 = inlined_call_operand.vmem [shape: bf16[32,128], index: 2, kind: output, shape index: {}]  }
   0x1   :  { %v1321_v0 = vld [vmem:[%s1756_s1 + $0x38] sm:$0xff]  ;;  %v1320_v4 = vld [vmem:[%s1756_s1 + $0x30] sm:$0xff]  ;;  %v1319_v8 = vld [vmem:[%s1756_s1 + $0x28] sm:$0xff] }
   0x2   :  { %v1329_v1 = vld [vmem:[%s1756_s1 + $0x78] sm:$0xff]  ;;  %699 = vmatpush.bf16.msra.mxu0 %v1321_v0  ;;  %v1328_v5 = vld [vmem:[%s1756_s1 + $0x70] sm:$0xff]  ;;  %v1327_v9 = vld [vmem:[%s1756_s1 + $0x68] sm:$0xff] }
   0x3   :  { %v1337_v2 = vld [vmem:[%s1756_s1 + $0xb8] sm:$0xff]  ;;  %718 = vmatpush.bf16.msra.mxu1 %v1329_v1  ;;  %v1336_v6 = vld [vmem:[%s1756_s1 + $0xb0] sm:$0xff]  ;;  %v1335_v10 = vld [vmem:[%s1756_s1 + $0xa8] sm:$0xff] }
   0x4   :  { %v1345_v3 = vld [vmem:[%s1756_s1 + $0xf8] sm:$0xff]  ;;  %737 = vmatpush.bf16.msra.mxu2 %v1337_v2  ;;  %v1344_v7 = vld [vmem:[%s1756_s1 + $0xf0] sm:$0xff]  ;;  %v1343_v11 = vld [vmem:[%s1756_s1 + $0xe8] sm:$0xff] }
   0x5   :  { %756 = vmatpush.bf16.msra.mxu3 %v1345_v3  ;;  %v1318_v12 = vld [vmem:[%s1756_s1 + $0x20] sm:$0xff]  ;;  %v1317_v16 = vld [vmem:[%s1756_s1 + $0x18] sm:$0xff]  ;;  %v1316_v20 = vld [vmem:[%s1756_s1 + $0x10] sm:$0xff] }
   0x6   :  { %700 = vmatpush.bf16.msra.mxu0 %v1320_v4  ;;  %v1326_v13 = vld [vmem:[%s1756_s1 + $0x60] sm:$0xff]  ;;  %v1325_v17 = vld [vmem:[%s1756_s1 + $0x58] sm:$0xff]  ;;  %v1324_v21 = vld [vmem:[%s1756_s1 + $0x50] sm:$0xff] }
   0x7   :  { %719 = vmatpush.bf16.msra.mxu1 %v1328_v5  ;;  %v1334_v14 = vld [vmem:[%s1756_s1 + $0xa0] sm:$0xff]  ;;  %v1333_v18 = vld [vmem:[%s1756_s1 + $0x98] sm:$0xff]  ;;  %v1332_v22 = vld [vmem:[%s1756_s1 + $0x90] sm:$0xff] }
   0x8   :  { %738 = vmatpush.bf16.msra.mxu2 %v1336_v6  ;;  %v1342_v15 = vld [vmem:[%s1756_s1 + $0xe0] sm:$0xff]  ;;  %v1341_v19 = vld [vmem:[%s1756_s1 + $0xd8] sm:$0xff]  ;;  %v1340_v23 = vld [vmem:[%s1756_s1 + $0xd0] sm:$0xff] }
   0x9   :  { %757 = vmatpush.bf16.msra.mxu3 %v1344_v7  ;;  %v1315_v24 = vld [vmem:[%s1756_s1 + $0x8] sm:$0xff]  ;;  %v1314_v28 = vld [vmem:[%s1756_s1] sm:$0xff]  ;;  %v948_v39 = vld [vmem:[%s1757_s0 + $0x2c] sm:$0xf0] }
   0xa   :  { %701 = vmatpush.bf16.msra.mxu0 %v1319_v8  ;;  %v1323_v25 = vld [vmem:[%s1756_s1 + $0x48] sm:$0xff]  ;;  %v1322_v29 = vld [vmem:[%s1756_s1 + $0x40] sm:$0xff]  ;;  %v1353_v40 = vld [vmem:[%s1756_s1 + $0x138] sm:$0xff] }
   0xb   :  { %720 = vmatpush.bf16.msra.mxu1 %v1327_v9  ;;  %v1331_v26 = vld [vmem:[%s1756_s1 + $0x88] sm:$0xff]  ;;  %v1330_v30 = vld [vmem:[%s1756_s1 + $0x80] sm:$0xff]  ;;  %v1361_v41 = vld [vmem:[%s1756_s1 + $0x178] sm:$0xff] }
   0xc   :  { %739 = vmatpush.bf16.msra.mxu2 %v1335_v10  ;;  %v1339_v27 = vld [vmem:[%s1756_s1 + $0xc8] sm:$0xff]  ;;  %v1338_v31 = vld [vmem:[%s1756_s1 + $0xc0] sm:$0xff]  ;;  %v1369_v46 = vld [vmem:[%s1756_s1 + $0x1b8] sm:$0xff] }
   0xd   :  { %758 = vmatpush.bf16.msra.mxu3 %v1343_v11  ;;  %v938_v32 = vld [vmem:[%s1757_s0] sm:$0xf]  ;;  %v1300_v33 = vld [vmem:[%s1757_s0 + $0x20] sm:$0xf0]  ;;  %v940_v35 = vld [vmem:[%s1757_s0 + $0x24] sm:$0xf0] }
   0xe   :  { %702 = vmatpush.bf16.msra.mxu0 %v1318_v12  ;;  %v1296_v34 = vld [vmem:[%s1757_s0 + $0x4] sm:$0xf]  ;;  %v946_v36 = vld [vmem:[%s1757_s0 + $0x8] sm:$0xf]  ;;  %v1301_v37 = vld [vmem:[%s1757_s0 + $0x28] sm:$0xf0]  ;;  %v939_v42 = vor.u32 %v1300_v33, %v938_v32 }
   0xf   :  { %721 = vmatpush.bf16.msra.mxu1 %v1326_v13  ;;  %v1297_v38 = vld [vmem:[%s1757_s0 + $0xc] sm:$0xf]  ;;  %v943_v43 = vor.u32 %v1296_v34, %v940_v35  ;;  %v947_v44 = vor.u32 %v1301_v37, %v946_v36  ;;  %v1377_v47 = vld [vmem:[%s1756_s1 + $0x1f8] sm:$0xff]  ;;  %v1352_v48 = vld [vmem:[%s1756_s1 + $0x130] sm:$0xff] }
  0x10   :  { %740 = vmatpush.bf16.msra.mxu2 %v1334_v14  ;;  %v951_v45 = vor.u32 %v1297_v38, %v948_v39  ;;  %v1360_v49 = vld [vmem:[%s1756_s1 + $0x170] sm:$0xff]  ;;  %v1351_v52 = vld [vmem:[%s1756_s1 + $0x128] sm:$0xff]  ;;  %v1350_v56 = vld [vmem:[%s1756_s1 + $0x120] sm:$0xff] }
  0x11   :  { %759 = vmatpush.bf16.msra.mxu3 %v1342_v15  ;;  %v1368_v50 = vld [vmem:[%s1756_s1 + $0x1b0] sm:$0xff]  ;;  %v1359_v53 = vld [vmem:[%s1756_s1 + $0x168] sm:$0xff]  ;;  %v1358_v57 = vld [vmem:[%s1756_s1 + $0x160] sm:$0xff] }
  0x12   :  { %703 = vmatpush.bf16.msra.mxu0 %v1317_v16  ;;  %v1376_v51 = vld [vmem:[%s1756_s1 + $0x1f0] sm:$0xff]  ;;  %v1367_v54 = vld [vmem:[%s1756_s1 + $0x1a8] sm:$0xff]  ;;  %v1366_v58 = vld [vmem:[%s1756_s1 + $0x1a0] sm:$0xff] }
  0x13   :  { %722 = vmatpush.bf16.msra.mxu1 %v1325_v17  ;;  %v1375_v55 = vld [vmem:[%s1756_s1 + $0x1e8] sm:$0xff]  ;;  %v1374_v59 = vld [vmem:[%s1756_s1 + $0x1e0] sm:$0xff]  ;;  %v976_v63 = vld [vmem:[%s1757_s0 + $0x6c] sm:$0xf0] }
  0x14   :  { %741 = vmatpush.bf16.msra.mxu2 %v1333_v18  ;;  %v974_v60 = vld [vmem:[%s1757_s0 + $0x48] sm:$0xf]  ;;  %v1309_v61 = vld [vmem:[%s1757_s0 + $0x68] sm:$0xf0]  ;;  %v982_v0 = vld [vmem:[%s1757_s0 + $0x50] sm:$0xf] }
  0x15   :  { %760 = vmatpush.bf16.msra.mxu3 %v1341_v19  ;;  %v1305_v62 = vld [vmem:[%s1757_s0 + $0x4c] sm:$0xf]  ;;  %v1310_v1 = vld [vmem:[%s1757_s0 + $0x70] sm:$0xf0]  ;;  %v984_v3 = vld [vmem:[%s1757_s0 + $0x74] sm:$0xf0]  ;;  %v975_v6 = vor.u32 %v1309_v61, %v974_v60 }
  0x16   :  { %704 = vmatpush.bf16.msra.mxu0 %v1316_v20  ;;  %v1306_v2 = vld [vmem:[%s1757_s0 + $0x54] sm:$0xf]  ;;  %v1349_v4 = vld [vmem:[%s1756_s1 + $0x118] sm:$0xff]  ;;  %v979_v7 = vor.u32 %v1305_v62, %v976_v63  ;;  %v983_v8 = vor.u32 %v1310_v1, %v982_v0  ;;  %v1347_v16 = vld [vmem:[%s1756_s1 + $0x108] sm:$0xff] }
  0x17   :  { %723 = vmatpush.bf16.msra.mxu1 %v1324_v21  ;;  %v1357_v5 = vld [vmem:[%s1756_s1 + $0x158] sm:$0xff]  ;;  %v987_v9 = vor.u32 %v1306_v2, %v984_v3  ;;  %v1348_v12 = vld [vmem:[%s1756_s1 + $0x110] sm:$0xff]  ;;  %v1355_v17 = vld [vmem:[%s1756_s1 + $0x148] sm:$0xff] }
  0x18   :  { %742 = vmatpush.bf16.msra.mxu2 %v1332_v22  ;;  %v1365_v10 = vld [vmem:[%s1756_s1 + $0x198] sm:$0xff]  ;;  %v1356_v13 = vld [vmem:[%s1756_s1 + $0x150] sm:$0xff]  ;;  %v1363_v18 = vld [vmem:[%s1756_s1 + $0x188] sm:$0xff] }
  0x19   :  { %761 = vmatpush.bf16.msra.mxu3 %v1340_v23  ;;  %v1373_v11 = vld [vmem:[%s1756_s1 + $0x1d8] sm:$0xff]  ;;  %v1364_v14 = vld [vmem:[%s1756_s1 + $0x190] sm:$0xff]  ;;  %v1371_v19 = vld [vmem:[%s1756_s1 + $0x1c8] sm:$0xff] }
  0x1a   :  { %705 = vmatpush.bf16.msra.mxu0 %v1315_v24  ;;  %v1372_v15 = vld [vmem:[%s1756_s1 + $0x1d0] sm:$0xff]  ;;  %v1346_v20 = vld [vmem:[%s1756_s1 + $0x100] sm:$0xff]  ;;  %v1383_v38 = vld [vmem:[%s1756_s1 + $0x228] sm:$0xff] }
  0x1b   :  { %724 = vmatpush.bf16.msra.mxu1 %v1323_v25  ;;  %v1354_v21 = vld [vmem:[%s1756_s1 + $0x140] sm:$0xff]  ;;  %v954_v24 = vld [vmem:[%s1757_s0 + $0x10] sm:$0xf]  ;;  %v1302_v25 = vld [vmem:[%s1757_s0 + $0x30] sm:$0xf0] }
  0x1c   :  { %743 = vmatpush.bf16.msra.mxu2 %v1331_v26  ;;  %v1362_v22 = vld [vmem:[%s1756_s1 + $0x180] sm:$0xff]  ;;  %v1385_v26 = vld [vmem:[%s1756_s1 + $0x238] sm:$0xff]  ;;  %v955_v33 = vor.u32 %v1302_v25, %v954_v24  ;;  %v1384_v37 = vld [vmem:[%s1756_s1 + $0x230] sm:$0xff] }
  0x1d   :  { %762 = vmatpush.bf16.msra.mxu3 %v1339_v27  ;;  %v1370_v23 = vld [vmem:[%s1756_s1 + $0x1c0] sm:$0xff]  ;;  %v1298_v27 = vld [vmem:[%s1757_s0 + $0x14] sm:$0xf] }
  0x1e   :  { %706 = vmatpush.bf16.msra.mxu0 %v1314_v28  ;;  %v956_v28 = vld [vmem:[%s1757_s0 + $0x34] sm:$0xf0]  ;;  %v964_v32 = vld [vmem:[%s1757_s0 + $0x3c] sm:$0xf0] }
  0x1f   :  { %725 = vmatpush.bf16.msra.mxu1 %v1322_v29  ;;  %v962_v29 = vld [vmem:[%s1757_s0 + $0x18] sm:$0xf]  ;;  %v959_v34 = vor.u32 %v1298_v27, %v956_v28  ;;  %v1382_v39 = vld [vmem:[%s1756_s1 + $0x220] sm:$0xff] }
  0x20   :  { %744 = vmatpush.bf16.msra.mxu2 %v1330_v30  ;;  %v1303_v30 = vld [vmem:[%s1757_s0 + $0x38] sm:$0xf0] }
  0x21   :  { %763 = vmatpush.bf16.msra.mxu3 %v1338_v31  ;;  %707 = vmatmul.bf16.vlgmr.msra.gmra.mxu0 %v939_v42  ;;  %v1299_v31 = vld [vmem:[%s1757_s0 + $0x1c] sm:$0xf]  ;;  %v963_v35 = vor.u32 %v1303_v30, %v962_v29 }
  0x22   :  { %775 = vmatpush.bf16.msrb.mxu0 %v1353_v40  ;;  %726 = vmatmul.bf16.vlgmr.msra.gmra.mxu1 %v943_v43  ;;  %v967_v36 = vor.u32 %v1299_v31, %v964_v32  ;;  %v990_v40 = vld [vmem:[%s1757_s0 + $0x58] sm:$0xf]  ;;  %v1307_v42 = vld [vmem:[%s1757_s0 + $0x5c] sm:$0xf]  ;;  %v992_v43 = vld [vmem:[%s1757_s0 + $0x7c] sm:$0xf0] }
  0x23   :  { %794 = vmatpush.bf16.msrb.mxu1 %v1361_v41  ;;  %745 = vmatmul.bf16.vlgmr.msra.gmra.mxu2 %v947_v44  ;;  %v1311_v41 = vld [vmem:[%s1757_s0 + $0x78] sm:$0xf0]  ;;  %v998_v44 = vld [vmem:[%s1757_s0 + $0x60] sm:$0xf] }
  0x24   :  { %764 = vmatmul.bf16.vlgmr.msra.gmra.mxu3 %v951_v45  ;;  %813 = vmatpush.bf16.msrb.mxu2 %v1369_v46  ;;  %v1312_v45 = vld [vmem:[%s1757_s0 + $0x80] sm:$0xf0]  ;;  %v1381_v46 = vld [vmem:[%s1756_s1 + $0x218] sm:$0xff] }
  0x25   :  { %832 = vmatpush.bf16.msrb.mxu3 %v1377_v47  ;;  %v1308_v47 = vld [vmem:[%s1757_s0 + $0x64] sm:$0xf] }
  0x26   :  { %776 = vmatpush.bf16.msrb.mxu0 %v1352_v48  ;;  %v1000_v48 = vld [vmem:[%s1757_s0 + $0x84] sm:$0xf0] }
  0x27   :  { %795 = vmatpush.bf16.msrb.mxu1 %v1360_v49  ;;  %v991_v49 = vor.u32 %v1311_v41, %v990_v40 }
  0x28   :  { %814 = vmatpush.bf16.msrb.mxu2 %v1368_v50  ;;  %v995_v50 = vor.u32 %v1307_v42, %v992_v43 }
  0x29   :  { %833 = vmatpush.bf16.msrb.mxu3 %v1376_v51  ;;  %v999_v51 = vor.u32 %v1312_v45, %v998_v44 }
  0x2a   :  { %777 = vmatpush.bf16.msrb.mxu0 %v1351_v52  ;;  %v1003_v52 = vor.u32 %v1308_v47, %v1000_v48 }
  0x2b   :  { %796 = vmatpush.bf16.msrb.mxu1 %v1359_v53  ;;  %v1380_v53 = vld [vmem:[%s1756_s1 + $0x210] sm:$0xff] }
  0x2c   :  { %815 = vmatpush.bf16.msrb.mxu2 %v1367_v54  ;;  %v1379_v54 = vld [vmem:[%s1756_s1 + $0x208] sm:$0xff] }
  0x2d   :  { %834 = vmatpush.bf16.msrb.mxu3 %v1375_v55  ;;  %v1378_v55 = vld [vmem:[%s1756_s1 + $0x200] sm:$0xff] }
  0x2e   :  { %778 = vmatpush.bf16.msrb.mxu0 %v1350_v56  ;;  %v970_v56 = vld [vmem:[%s1757_s0 + $0x20] sm:$0xf] }
  0x2f   :  { %797 = vmatpush.bf16.msrb.mxu1 %v1358_v57  ;;  %v1304_v57 = vld [vmem:[%s1757_s0 + $0x40] sm:$0xf0] }
  0x30   :  { %816 = vmatpush.bf16.msrb.mxu2 %v1366_v58  ;;  %v1006_v58 = vld [vmem:[%s1757_s0 + $0x68] sm:$0xf]  ;;  %v971_v60 = vor.u32 %v1304_v57, %v970_v56 }
  0x31   :  { %835 = vmatpush.bf16.msrb.mxu3 %v1374_v59  ;;  %712 = vmatmul.bf16.gmra.mxu0 %v975_v6  ;;  %v1313_v59 = vld [vmem:[%s1757_s0 + $0x88] sm:$0xf0] }
  0x32   :  { %779 = vmatpush.bf16.msrb.mxu0 %v1349_v4  ;;  %731 = vmatmul.bf16.gmra.mxu1 %v979_v7  ;;  %v1007_v61 = vor.u32 %v1313_v59, %v1006_v58 }
  0x33   :  { %798 = vmatpush.bf16.msrb.mxu1 %v1357_v5  ;;  %750 = vmatmul.bf16.gmra.mxu2 %v983_v8 }
  0x34   :  { %769 = vmatmul.bf16.gmra.mxu3 %v987_v9  ;;  %817 = vmatpush.bf16.msrb.mxu2 %v1365_v10 }
  0x35   :  { %836 = vmatpush.bf16.msrb.mxu3 %v1373_v11 }
  0x36   :  { %780 = vmatpush.bf16.msrb.mxu0 %v1348_v12 }
  0x37   :  { %799 = vmatpush.bf16.msrb.mxu1 %v1356_v13 }
  0x38   :  { %818 = vmatpush.bf16.msrb.mxu2 %v1364_v14 }
  0x39   :  { %837 = vmatpush.bf16.msrb.mxu3 %v1372_v15 }
  0x3a   :  { %781 = vmatpush.bf16.msrb.mxu0 %v1347_v16 }
  0x3b   :  { %800 = vmatpush.bf16.msrb.mxu1 %v1355_v17 }
  0x3c   :  { %819 = vmatpush.bf16.msrb.mxu2 %v1363_v18 }
  0x3d   :  { %838 = vmatpush.bf16.msrb.mxu3 %v1371_v19 }
  0x3e   :  { %782 = vmatpush.bf16.msrb.mxu0 %v1346_v20 }
  0x3f   :  { %801 = vmatpush.bf16.msrb.mxu1 %v1354_v21 }
  0x40   :  { %820 = vmatpush.bf16.msrb.mxu2 %v1362_v22 }
  0x41   :  { %839 = vmatpush.bf16.msrb.mxu3 %v1370_v23  ;;  %783 = vmatmul.bf16.vlgmr.msrb.gmra.mxu0 %v955_v33 }
  0x42   :  { %851 = vmatpush.bf16.msra.mxu0 %v1385_v26  ;;  %802 = vmatmul.bf16.vlgmr.msrb.gmra.mxu1 %v959_v34 }
  0x43   :  { %1397 = vmatpush.bf16.msra.mxu1 %v1385_v26  ;;  %821 = vmatmul.bf16.vlgmr.msrb.gmra.mxu2 %v963_v35 }
  0x44   :  { %840 = vmatmul.bf16.vlgmr.msrb.gmra.mxu3 %v967_v36 }
  0x46   :  { %852 = vmatpush.bf16.msra.mxu0 %v1384_v37 }
  0x47   :  { %1398 = vmatpush.bf16.msra.mxu1 %v1384_v37 }
  0x4a   :  { %853 = vmatpush.bf16.msra.mxu0 %v1383_v38 }
  0x4b   :  { %1399 = vmatpush.bf16.msra.mxu1 %v1383_v38 }
  0x4e   :  { %854 = vmatpush.bf16.msra.mxu0 %v1382_v39 }
  0x4f   :  { %1400 = vmatpush.bf16.msra.mxu1 %v1382_v39 }
  0x51   :  { %788 = vmatmul.bf16.gmra.mxu0 %v991_v49 }
  0x52   :  { %855 = vmatpush.bf16.msra.mxu0 %v1381_v46  ;;  %807 = vmatmul.bf16.gmra.mxu1 %v995_v50 }
  0x53   :  { %1401 = vmatpush.bf16.msra.mxu1 %v1381_v46  ;;  %826 = vmatmul.bf16.gmra.mxu2 %v999_v51 }
  0x54   :  { %845 = vmatmul.bf16.gmra.mxu3 %v1003_v52 }
  0x56   :  { %856 = vmatpush.bf16.msra.mxu0 %v1380_v53 }
  0x57   :  { %1402 = vmatpush.bf16.msra.mxu1 %v1380_v53 }
  0x5a   :  { %857 = vmatpush.bf16.msra.mxu0 %v1379_v54 }
  0x5b   :  { %1403 = vmatpush.bf16.msra.mxu1 %v1379_v54  ;;  %v1410_v54 = vmov 32.0  }
  0x5c   :  { %1406 = vrcp.f32 %v1410_v54 }
  0x5e   :  { %858 = vmatpush.bf16.msra.mxu0 %v1378_v55 }
  0x5f   :  { %1404 = vmatpush.bf16.msra.mxu1 %v1378_v55 }
  0x61   :  { %859 = vmatmul.bf16.vlgmr.msra.gmra.mxu0 %v971_v60 }
  0x62   :  { %864 = vmatmul.bf16.vlgmr.msra.gmra.mxu1 %v1007_v61 }
  0x9e   :  { %v708_v62 = vpop.f32.mrf.mxu0 }
  0x9f   :  { %v727_v63 = vpop.f32.mrf.mxu1 }
  0xa0   :  { %v728_v24 = vadd.f32 %v727_v63, %v708_v62  ;;  %v1407_v63 = vpop.eup %1406 }
  0xa1   :  { %vm888_vm0 = vweird.f32 %v1407_v63 }
  0xa6   :  { %v746_v0 = vpop.f32.mrf.mxu2  ;;  %v710_v2 = vpop.f32.mrf.mxu0 }
  0xa7   :  { %v765_v1 = vpop.f32.mrf.mxu3  ;;  %v729_v3 = vpop.f32.mrf.mxu1  ;;  %v747_v25 = vadd.f32 %v746_v0, %v728_v24 }
  0xa8   :  { %v730_v26 = vadd.f32 %v729_v3, %v710_v2 }
  0xa9   :  { %v766_v34 = vadd.f32 %v765_v1, %v747_v25 }
  0xae   :  { %v748_v4 = vpop.f32.mrf.mxu2  ;;  %v713_v6 = vpop.f32.mrf.mxu0 }
  0xaf   :  { %v767_v5 = vpop.f32.mrf.mxu3  ;;  %v732_v7 = vpop.f32.mrf.mxu1  ;;  %v749_v28 = vadd.f32 %v748_v4, %v730_v26 }
  0xb0   :  { %v733_v27 = vadd.f32 %v732_v7, %v713_v6  ;;  %v884_v6 = vmul.f32 32.0, %v1407_v63 }
  0xb1   :  { %v768_v36 = vadd.f32 %v767_v5, %v749_v28 }
  0xb6   :  { %v751_v8 = vpop.f32.mrf.mxu2  ;;  %v715_v10 = vpop.f32.mrf.mxu0 }
  0xb7   :  { %v770_v9 = vpop.f32.mrf.mxu3  ;;  %v734_v11 = vpop.f32.mrf.mxu1  ;;  %v752_v29 = vadd.f32 %v751_v8, %v733_v27 }
  0xb8   :  { %v735_v30 = vadd.f32 %v734_v11, %v715_v10  ;;  %v885_v11 = vsub.f32 1.0, %v884_v6 }
  0xb9   :  { %v771_v37 = vadd.f32 %v770_v9, %v752_v29 }
  0xbe   :  { %v753_v12 = vpop.f32.mrf.mxu2  ;;  %v784_v14 = vpop.f32.mrf.mxu0 }
  0xbf   :  { %v772_v13 = vpop.f32.mrf.mxu3  ;;  %v803_v15 = vpop.f32.mrf.mxu1  ;;  %v754_v35 = vadd.f32 %v753_v12, %v735_v30  ;;  %v785_v38 = vadd.f32 %v784_v14, %v766_v34  ;;  %v886_v14 = vmul.f32 %v1407_v63, %v885_v11 }
  0xc1   :  { %v773_v40 = vadd.f32 %v772_v13, %v754_v35  ;;  %v804_v43 = vadd.f32 %v803_v15, %v785_v38 }
  0xc6   :  { %v822_v16 = vpop.f32.mrf.mxu2  ;;  %v786_v18 = vpop.f32.mrf.mxu0 }
  0xc7   :  { %v841_v17 = vpop.f32.mrf.mxu3  ;;  %v805_v19 = vpop.f32.mrf.mxu1  ;;  %v787_v41 = vadd.f32 %v786_v18, %v768_v36  ;;  %v823_v47 = vadd.f32 %v822_v16, %v804_v43 }
  0xc9   :  { %v806_v48 = vadd.f32 %v805_v19, %v787_v41  ;;  %v842_v55 = vadd.f32 %v841_v17, %v823_v47  ;;  %v887_v17 = vadd.f32 %v1407_v63, %v886_v14 }
  0xce   :  { %v824_v20 = vpop.f32.mrf.mxu2  ;;  %v789_v21 = vpop.f32.mrf.mxu0 }
  0xcf   :  { %v808_v22 = vpop.f32.mrf.mxu1  ;;  %v843_v23 = vpop.f32.mrf.mxu3  ;;  %v790_v42 = vadd.f32 %v789_v21, %v771_v37  ;;  %v825_v51 = vadd.f32 %v824_v20, %v806_v48  ;;  %v889_v20 = vsel %vm888_vm0, %v1407_v63, %v887_v17 }
  0xd1   :  { %v809_v49 = vadd.f32 %v808_v22, %v790_v42  ;;  %v844_v58 = vadd.f32 %v843_v23, %v825_v51 }
  0xd6   :  { %v827_v31 = vpop.f32.mrf.mxu2  ;;  %v791_v32 = vpop.f32.mrf.mxu0 }
  0xd7   :  { %v810_v33 = vpop.f32.mrf.mxu1  ;;  %v846_v39 = vpop.f32.mrf.mxu3  ;;  %v792_v44 = vadd.f32 %v791_v32, %v773_v40  ;;  %v828_v52 = vadd.f32 %v827_v31, %v809_v49 }
  0xd9   :  { %v811_v53 = vadd.f32 %v810_v33, %v792_v44  ;;  %v847_v59 = vadd.f32 %v846_v39, %v828_v52 }
  0xde   :  { %v860_v45 = vpop.f32.mrf.mxu0  ;;  %v829_v50 = vpop.f32.mrf.mxu2 }
  0xdf   :  { %v865_v46 = vpop.f32.mrf.mxu1  ;;  %v830_v56 = vadd.f32 %v829_v50, %v811_v53  ;;  %v848_v57 = vpop.f32.mrf.mxu3  ;;  %v861_v60 = vadd.f32 %v860_v45, %v842_v55 }
  0xe0   :  { %v866_v1 = vadd.f32 %v865_v46, %v847_v59 }
  0xe1   :  { %v849_v0 = vadd.f32 %v848_v57, %v830_v56  ;;  %v870_v3 = vmax.f32 %v861_v60, 0.0 }
  0xe2   :  { %v872_v7 = vmax.f32 %v866_v1, 0.0 }
  0xe6   :  { %v862_v61 = vpop.f32.mrf.mxu0 }
  0xe7   :  { %v867_v62 = vpop.f32.mrf.mxu1  ;;  %v863_v2 = vadd.f32 %v862_v61, %v844_v58 }
  0xe8   :  { %v868_v5 = vadd.f32 %v867_v62, %v849_v0 }
  0xe9   :  { %v871_v4 = vmax.f32 %v863_v2, 0.0 }
  0xea   :  { %v873_v9 = vmax.f32 %v868_v5, 0.0 }
  0xeb   :  { %v874_v8 = vadd.f32 %v871_v4, %v870_v3 }
  0xed   :  { %v875_v10 = vadd.f32 %v874_v8, %v872_v7 }
  0xef   :  { %v876_v12 = vadd.f32 %v875_v10, %v873_v9 }
  0xf1   :  { %v877_v13 = vrot.slane %v876_v12, 4 }
  0xf3   :  { %v878_v15 = vadd.f32 %v877_v13, %v876_v12 }
  0xf5   :  { %v879_v16 = vrot.slane %v878_v15, 2 }
  0xf7   :  { %v880_v18 = vadd.f32 %v879_v16, %v878_v15 }
  0xf9   :  { %v881_v19 = vrot.slane %v880_v18, 1 }
  0xfb   :  { %v882_v21 = vadd.f32 %v881_v19, %v880_v18 }
  0xfd   :  { %v890_v22 = vmul.f32 %v889_v20, %v882_v21 }
  0xff   :  { %v891_v23 = vsub.f32 %v870_v3, %v890_v22  ;;  %v892_v24 = vsub.f32 %v871_v4, %v890_v22  ;;  %v893_v25 = vsub.f32 %v872_v7, %v890_v22  ;;  %v894_v26 = vsub.f32 %v873_v9, %v890_v22 }
 0x101   :  { %v895_v27 = vmul.f32 %v891_v23, %v891_v23  ;;  %v896_v28 = vmul.f32 %v892_v24, %v892_v24  ;;  %v897_v29 = vmul.f32 %v893_v25, %v893_v25  ;;  %v898_v31 = vmul.f32 %v894_v26, %v894_v26 }
 0x103   :  { %v899_v30 = vadd.f32 %v896_v28, %v895_v27 }
 0x105   :  { %v900_v32 = vadd.f32 %v899_v30, %v897_v29 }
 0x107   :  { %v901_v33 = vadd.f32 %v900_v32, %v898_v31 }
 0x109   :  { %v902_v34 = vrot.slane %v901_v33, 4 }
 0x10b   :  { %v903_v35 = vadd.f32 %v902_v34, %v901_v33 }
 0x10d   :  { %v904_v36 = vrot.slane %v903_v35, 2 }
 0x10f   :  { %v905_v37 = vadd.f32 %v904_v36, %v903_v35 }
 0x111   :  { %v906_v38 = vrot.slane %v905_v37, 1 }
 0x113   :  { %v907_v39 = vadd.f32 %v906_v38, %v905_v37 }
 0x115   :  { %v908_v40 = vmul.f32 %v907_v39, %v889_v20 }
 0x117   :  { %v909_v41 = vadd.f32 1e-05, %v908_v40 }
 0x119   :  { %1408 = vrsqrt.f32 %v909_v41  ;;  %vm916_vm2 = vweird.f32 %v909_v41 }
 0x11f   :  { %v1409_v42 = vpop.eup %1408 }
 0x120   :  { %v911_v43 = vmul.f32 %v1409_v42, %v909_v41  ;;  %vm917_vm1 = vweird.f32 %v1409_v42 }
 0x121   :  { %vm918_vm3 = vmor %vm916_vm2, %vm917_vm1 }
 0x122   :  { %v912_v44 = vmul.f32 %v1409_v42, %v911_v43 }
 0x124   :  { %v913_v45 = vmul.f32 0.5, %v912_v44 }
 0x126   :  { %v914_v46 = vsub.f32 1.5, %v913_v45 }
 0x128   :  { %v915_v47 = vmul.f32 %v1409_v42, %v914_v46 }
 0x12a   :  { %v919_v48 = vsel %vm918_vm3, %v1409_v42, %v915_v47 }
 0x12b   :  { %v920_v49 = vmul.f32 %v919_v48, %v891_v23  ;;  %v921_v50 = vmul.f32 %v919_v48, %v892_v24  ;;  %v922_v51 = vmul.f32 %v919_v48, %v893_v25  ;;  %v923_v52 = vmul.f32 %v919_v48, %v894_v26 }
 0x12d   :  { %v1389_v53 = vpack.c.bf16 %v921_v50, %v920_v49  ;;  %v1394_v54 = vpack.c.bf16 %v923_v52, %v922_v51 }
 0x12f   :  { %1390 = vst [vmem:[%s1758_s2] sm:$0xff] %v1389_v53  }
 0x130   :  { %1396 = vst [vmem:[%s1758_s2 + $0x8] sm:$0xff] %v1394_v54  }

// kernel: baseline_forward.11
= control target key start
LH: loop header
LB: loop body
LE: loop exit
PB: predicated region body
PF: predicated region fallthrough
CT: control target
= control target key end

     0   :  { %s5403_s0 = inlined_call_operand.vmem [shape: bf16[2,2048], index: 0, kind: input, shape index: {}]   ;;  %s5404_s1 = inlined_call_operand.vmem [shape: bf16[2048,256], index: 1, kind: input, shape index: {}]   ;;  %s5405_s2 = inlined_call_operand.vmem [shape: f32[1,256], index: 2, kind: input, shape index: {}]   ;;  %s5406_s3 = inlined_call_operand.vmem [shape: bf16[256,128], index: 3, kind: input, shape index: {}]   ;;  %s5407_s4 = inlined_call_operand.vmem [shape: f32[1,128], index: 4, kind: input, shape index: {}]   ;;  %s5408_s5 = inlined_call_operand.hbm [shape: f32[2,128], index: 5, kind: output, shape index: {}]  }
   0x1   :  { %v2339_v0 = vld [vmem:[%s5404_s1 + $0x70] sm:$0xf]  ;;  %v3384_v1 = vld [vmem:[%s5404_s1 + $0x74] sm:$0xf0]  ;;  %v2331_v11 = vld [vmem:[%s5404_s1 + $0x60] sm:$0xf] }
   0x2   :  { %v2403_v2 = vld [vmem:[%s5404_s1 + $0xf0] sm:$0xf]  ;;  %v2340_v3 = vor.u32 %v3384_v1, %v2339_v0  ;;  %v3400_v4 = vld [vmem:[%s5404_s1 + $0xf4] sm:$0xf0]  ;;  %v3382_v13 = vld [vmem:[%s5404_s1 + $0x64] sm:$0xf0] }
   0x3   :  { %v2467_v5 = vld [vmem:[%s5404_s1 + $0x170] sm:$0xf]  ;;  %v3416_v6 = vld [vmem:[%s5404_s1 + $0x174] sm:$0xf0]  ;;  %v2404_v7 = vor.u32 %v3400_v4, %v2403_v2  ;;  %v2395_v14 = vld [vmem:[%s5404_s1 + $0xe0] sm:$0xf]  ;;  %v2332_v16 = vor.u32 %v3382_v13, %v2331_v11 }
   0x4   :  { %v2468_v8 = vor.u32 %v3416_v6, %v2467_v5  ;;  %v2531_v9 = vld [vmem:[%s5404_s1 + $0x1f0] sm:$0xf]  ;;  %v3432_v10 = vld [vmem:[%s5404_s1 + $0x1f4] sm:$0xf0]  ;;  %1601 = vmatpush.bf16.msra.mxu0 %v2340_v3  ;;  %v3398_v15 = vld [vmem:[%s5404_s1 + $0xe4] sm:$0xf0] }
   0x5   :  { %v2532_v12 = vor.u32 %v3432_v10, %v2531_v9  ;;  %1614 = vmatpush.bf16.msra.mxu1 %v2404_v7  ;;  %v2396_v17 = vor.u32 %v3398_v15, %v2395_v14  ;;  %v2459_v18 = vld [vmem:[%s5404_s1 + $0x160] sm:$0xf]  ;;  %v3414_v19 = vld [vmem:[%s5404_s1 + $0x164] sm:$0xf0]  ;;  %v2323_v23 = vld [vmem:[%s5404_s1 + $0x50] sm:$0xf] }
   0x6   :  { %1627 = vmatpush.bf16.msra.mxu2 %v2468_v8  ;;  %v2523_v20 = vld [vmem:[%s5404_s1 + $0x1e0] sm:$0xf]  ;;  %v2460_v21 = vor.u32 %v3414_v19, %v2459_v18  ;;  %v3430_v22 = vld [vmem:[%s5404_s1 + $0x1e4] sm:$0xf0]  ;;  %v3380_v24 = vld [vmem:[%s5404_s1 + $0x54] sm:$0xf0] }
   0x7   :  { %1640 = vmatpush.bf16.msra.mxu3 %v2532_v12  ;;  %v2524_v25 = vor.u32 %v3430_v22, %v2523_v20  ;;  %v2387_v26 = vld [vmem:[%s5404_s1 + $0xd0] sm:$0xf]  ;;  %v3396_v27 = vld [vmem:[%s5404_s1 + $0xd4] sm:$0xf0]  ;;  %v2324_v29 = vor.u32 %v3380_v24, %v2323_v23  ;;  %v2315_v35 = vld [vmem:[%s5404_s1 + $0x40] sm:$0xf] }
   0x8   :  { %v2451_v28 = vld [vmem:[%s5404_s1 + $0x150] sm:$0xf]  ;;  %1602 = vmatpush.bf16.msra.mxu0 %v2332_v16  ;;  %v3412_v30 = vld [vmem:[%s5404_s1 + $0x154] sm:$0xf0]  ;;  %v2388_v33 = vor.u32 %v3396_v27, %v2387_v26  ;;  %v3378_v36 = vld [vmem:[%s5404_s1 + $0x44] sm:$0xf0] }
   0x9   :  { %v2515_v31 = vld [vmem:[%s5404_s1 + $0x1d0] sm:$0xf]  ;;  %v3428_v32 = vld [vmem:[%s5404_s1 + $0x1d4] sm:$0xf0]  ;;  %1615 = vmatpush.bf16.msra.mxu1 %v2396_v17  ;;  %v2452_v34 = vor.u32 %v3412_v30, %v2451_v28  ;;  %v2379_v37 = vld [vmem:[%s5404_s1 + $0xc0] sm:$0xf]  ;;  %v2316_v44 = vor.u32 %v3378_v36, %v2315_v35 }
   0xa   :  { %1628 = vmatpush.bf16.msra.mxu2 %v2460_v21  ;;  %v2516_v38 = vor.u32 %v3428_v32, %v2515_v31  ;;  %v3394_v39 = vld [vmem:[%s5404_s1 + $0xc4] sm:$0xf0]  ;;  %v2443_v40 = vld [vmem:[%s5404_s1 + $0x140] sm:$0xf]  ;;  %v2307_v47 = vld [vmem:[%s5404_s1 + $0x30] sm:$0xf] }
   0xb   :  { %1641 = vmatpush.bf16.msra.mxu3 %v2524_v25  ;;  %v3410_v41 = vld [vmem:[%s5404_s1 + $0x144] sm:$0xf0]  ;;  %v2507_v42 = vld [vmem:[%s5404_s1 + $0x1c0] sm:$0xf]  ;;  %v2380_v45 = vor.u32 %v3394_v39, %v2379_v37  ;;  %v3376_v48 = vld [vmem:[%s5404_s1 + $0x34] sm:$0xf0] }
   0xc   :  { %v3426_v43 = vld [vmem:[%s5404_s1 + $0x1c4] sm:$0xf0]  ;;  %1603 = vmatpush.bf16.msra.mxu0 %v2324_v29  ;;  %v2444_v46 = vor.u32 %v3410_v41, %v2443_v40  ;;  %v2371_v49 = vld [vmem:[%s5404_s1 + $0xb0] sm:$0xf]  ;;  %v3392_v51 = vld [vmem:[%s5404_s1 + $0xb4] sm:$0xf0]  ;;  %v2308_v56 = vor.u32 %v3376_v48, %v2307_v47 }
   0xd   :  { %1616 = vmatpush.bf16.msra.mxu1 %v2388_v33  ;;  %v2508_v50 = vor.u32 %v3426_v43, %v2507_v42  ;;  %v2435_v52 = vld [vmem:[%s5404_s1 + $0x130] sm:$0xf]  ;;  %v3408_v53 = vld [vmem:[%s5404_s1 + $0x134] sm:$0xf0]  ;;  %v2372_v57 = vor.u32 %v3392_v51, %v2371_v49  ;;  %v2299_v59 = vld [vmem:[%s5404_s1 + $0x20] sm:$0xf] }
   0xe   :  { %1629 = vmatpush.bf16.msra.mxu2 %v2452_v34  ;;  %v2499_v54 = vld [vmem:[%s5404_s1 + $0x1b0] sm:$0xf]  ;;  %v3424_v55 = vld [vmem:[%s5404_s1 + $0x1b4] sm:$0xf0]  ;;  %v2436_v58 = vor.u32 %v3408_v53, %v2435_v52  ;;  %v3374_v60 = vld [vmem:[%s5404_s1 + $0x24] sm:$0xf0] }
   0xf   :  { %1642 = vmatpush.bf16.msra.mxu3 %v2516_v38  ;;  %v2363_v61 = vld [vmem:[%s5404_s1 + $0xa0] sm:$0xf]  ;;  %v2500_v62 = vor.u32 %v3424_v55, %v2499_v54  ;;  %v3390_v63 = vld [vmem:[%s5404_s1 + $0xa4] sm:$0xf0]  ;;  %v2300_v4 = vor.u32 %v3374_v60, %v2299_v59  ;;  %v2291_v7 = vld [vmem:[%s5404_s1 + $0x10] sm:$0xf] }
  0x10   :  { %1604 = vmatpush.bf16.msra.mxu0 %v2316_v44  ;;  %v2427_v0 = vld [vmem:[%s5404_s1 + $0x120] sm:$0xf]  ;;  %v3406_v1 = vld [vmem:[%s5404_s1 + $0x124] sm:$0xf0]  ;;  %v2364_v5 = vor.u32 %v3390_v63, %v2363_v61  ;;  %v3372_v8 = vld [vmem:[%s5404_s1 + $0x14] sm:$0xf0] }
  0x11   :  { %1617 = vmatpush.bf16.msra.mxu1 %v2380_v45  ;;  %v2491_v2 = vld [vmem:[%s5404_s1 + $0x1a0] sm:$0xf]  ;;  %v3422_v3 = vld [vmem:[%s5404_s1 + $0x1a4] sm:$0xf0]  ;;  %v2428_v6 = vor.u32 %v3406_v1, %v2427_v0  ;;  %v2355_v9 = vld [vmem:[%s5404_s1 + $0x90] sm:$0xf]  ;;  %v2292_v16 = vor.u32 %v3372_v8, %v2291_v7 }
  0x12   :  { %1630 = vmatpush.bf16.msra.mxu2 %v2444_v46  ;;  %v2492_v10 = vor.u32 %v3422_v3, %v2491_v2  ;;  %v3388_v11 = vld [vmem:[%s5404_s1 + $0x94] sm:$0xf0]  ;;  %v2419_v12 = vld [vmem:[%s5404_s1 + $0x110] sm:$0xf]  ;;  %v2283_v17 = vld [vmem:[%s5404_s1] sm:$0xf] }
  0x13   :  { %1643 = vmatpush.bf16.msra.mxu3 %v2508_v50  ;;  %v3404_v13 = vld [vmem:[%s5404_s1 + $0x114] sm:$0xf0]  ;;  %v2483_v14 = vld [vmem:[%s5404_s1 + $0x190] sm:$0xf]  ;;  %v3370_v18 = vld [vmem:[%s5404_s1 + $0x4] sm:$0xf0]  ;;  %v2356_v19 = vor.u32 %v3388_v11, %v2355_v9 }
  0x14   :  { %1605 = vmatpush.bf16.msra.mxu0 %v2308_v56  ;;  %v3420_v15 = vld [vmem:[%s5404_s1 + $0x194] sm:$0xf0]  ;;  %v2420_v20 = vor.u32 %v3404_v13, %v2419_v12  ;;  %v2347_v21 = vld [vmem:[%s5404_s1 + $0x80] sm:$0xf]  ;;  %v3386_v22 = vld [vmem:[%s5404_s1 + $0x84] sm:$0xf0]  ;;  %v2284_v31 = vor.u32 %v3370_v18, %v2283_v17 }
  0x15   :  { %1618 = vmatpush.bf16.msra.mxu1 %v2372_v57  ;;  %v2411_v23 = vld [vmem:[%s5404_s1 + $0x100] sm:$0xf]  ;;  %v2484_v24 = vor.u32 %v3420_v15, %v2483_v14  ;;  %v3402_v25 = vld [vmem:[%s5404_s1 + $0x104] sm:$0xf0]  ;;  %v2595_v28 = vld [vmem:[%s5404_s1 + $0x270] sm:$0xf]  ;;  %v2348_v35 = vor.u32 %v3386_v22, %v2347_v21 }
  0x16   :  { %1631 = vmatpush.bf16.msra.mxu2 %v2436_v58  ;;  %v2475_v26 = vld [vmem:[%s5404_s1 + $0x180] sm:$0xf]  ;;  %v3418_v27 = vld [vmem:[%s5404_s1 + $0x184] sm:$0xf0]  ;;  %v3448_v29 = vld [vmem:[%s5404_s1 + $0x274] sm:$0xf0]  ;;  %v2412_v36 = vor.u32 %v3402_v25, %v2411_v23 }
  0x17   :  { %1644 = vmatpush.bf16.msra.mxu3 %v2500_v62  ;;  %v2659_v30 = vld [vmem:[%s5404_s1 + $0x2f0] sm:$0xf]  ;;  %v3464_v32 = vld [vmem:[%s5404_s1 + $0x2f4] sm:$0xf0]  ;;  %v2476_v39 = vor.u32 %v3418_v27, %v2475_v26  ;;  %v2596_v40 = vor.u32 %v3448_v29, %v2595_v28  ;;  %v2587_v43 = vld [vmem:[%s5404_s1 + $0x260] sm:$0xf] }
  0x18   :  { %1606 = vmatpush.bf16.msra.mxu0 %v2300_v4  ;;  %v2723_v33 = vld [vmem:[%s5404_s1 + $0x370] sm:$0xf]  ;;  %v3480_v34 = vld [vmem:[%s5404_s1 + $0x374] sm:$0xf0]  ;;  %v2660_v41 = vor.u32 %v3464_v32, %v2659_v30  ;;  %v3446_v44 = vld [vmem:[%s5404_s1 + $0x264] sm:$0xf0] }
  0x19   :  { %1619 = vmatpush.bf16.msra.mxu1 %v2364_v5  ;;  %v2787_v37 = vld [vmem:[%s5404_s1 + $0x3f0] sm:$0xf]  ;;  %v3496_v38 = vld [vmem:[%s5404_s1 + $0x3f4] sm:$0xf0]  ;;  %v2724_v42 = vor.u32 %v3480_v34, %v2723_v33  ;;  %v2651_v45 = vld [vmem:[%s5404_s1 + $0x2e0] sm:$0xf]  ;;  %v2588_v52 = vor.u32 %v3446_v44, %v2587_v43 }
  0x1a   :  { %1632 = vmatpush.bf16.msra.mxu2 %v2428_v6  ;;  %v2788_v46 = vor.u32 %v3496_v38, %v2787_v37  ;;  %v3462_v47 = vld [vmem:[%s5404_s1 + $0x2e4] sm:$0xf0]  ;;  %v2715_v48 = vld [vmem:[%s5404_s1 + $0x360] sm:$0xf]  ;;  %v2579_v55 = vld [vmem:[%s5404_s1 + $0x250] sm:$0xf] }
  0x1b   :  { %1645 = vmatpush.bf16.msra.mxu3 %v2492_v10  ;;  %v3478_v49 = vld [vmem:[%s5404_s1 + $0x364] sm:$0xf0]  ;;  %v2779_v50 = vld [vmem:[%s5404_s1 + $0x3e0] sm:$0xf]  ;;  %v2652_v53 = vor.u32 %v3462_v47, %v2651_v45  ;;  %v3444_v56 = vld [vmem:[%s5404_s1 + $0x254] sm:$0xf0] }
  0x1c   :  { %1607 = vmatpush.bf16.msra.mxu0 %v2292_v16  ;;  %v3494_v51 = vld [vmem:[%s5404_s1 + $0x3e4] sm:$0xf0]  ;;  %v2716_v54 = vor.u32 %v3478_v49, %v2715_v48  ;;  %v2643_v57 = vld [vmem:[%s5404_s1 + $0x2d0] sm:$0xf]  ;;  %v3460_v59 = vld [vmem:[%s5404_s1 + $0x2d4] sm:$0xf0]  ;;  %v2580_v0 = vor.u32 %v3444_v56, %v2579_v55 }
  0x1d   :  { %1620 = vmatpush.bf16.msra.mxu1 %v2356_v19  ;;  %v2780_v58 = vor.u32 %v3494_v51, %v2779_v50  ;;  %v2707_v60 = vld [vmem:[%s5404_s1 + $0x350] sm:$0xf]  ;;  %v3476_v61 = vld [vmem:[%s5404_s1 + $0x354] sm:$0xf0]  ;;  %v2571_v1 = vld [vmem:[%s5404_s1 + $0x240] sm:$0xf]  ;;  %v2644_v3 = vor.u32 %v3460_v59, %v2643_v57 }
  0x1e   :  { %1633 = vmatpush.bf16.msra.mxu2 %v2420_v20  ;;  %v2771_v62 = vld [vmem:[%s5404_s1 + $0x3d0] sm:$0xf]  ;;  %v3492_v63 = vld [vmem:[%s5404_s1 + $0x3d4] sm:$0xf0]  ;;  %v21_v2 = vld [vmem:[%s5403_s0] sm:$0xff]  ;;  %v2708_v4 = vor.u32 %v3476_v61, %v2707_v60 }
  0x1f   :  { %1646 = vmatpush.bf16.msra.mxu3 %v2484_v24  ;;  %v3442_v5 = vld [vmem:[%s5404_s1 + $0x244] sm:$0xf0]  ;;  %v2635_v6 = vld [vmem:[%s5404_s1 + $0x2c0] sm:$0xf]  ;;  %286 = vst [vmem:[#allocation1] ss:$9 sm:$0xff] %v21_v2  ;;  %v2772_v7 = vor.u32 %v3492_v63, %v2771_v62 }
  0x20   :  { %1608 = vmatpush.bf16.msra.mxu0 %v2284_v31  ;;  %v3458_v8 = vld [vmem:[%s5404_s1 + $0x2c4] sm:$0xf0]  ;;  %v2699_v9 = vld [vmem:[%s5404_s1 + $0x340] sm:$0xf]  ;;  %v2572_v13 = vor.u32 %v3442_v5, %v2571_v1  ;;  %v2563_v16 = vld [vmem:[%s5404_s1 + $0x230] sm:$0xf] }
  0x21   :  { %1621 = vmatpush.bf16.msra.mxu1 %v2348_v35  ;;  %v3474_v10 = vld [vmem:[%s5404_s1 + $0x344] sm:$0xf0]  ;;  %v2763_v11 = vld [vmem:[%s5404_s1 + $0x3c0] sm:$0xf]  ;;  %v2636_v14 = vor.u32 %v3458_v8, %v2635_v6  ;;  %v3440_v17 = vld [vmem:[%s5404_s1 + $0x234] sm:$0xf0] }
  0x22   :  { %1634 = vmatpush.bf16.msra.mxu2 %v2412_v36  ;;  %v3490_v12 = vld [vmem:[%s5404_s1 + $0x3c4] sm:$0xf0]  ;;  %v2700_v15 = vor.u32 %v3474_v10, %v2699_v9  ;;  %v2627_v18 = vld [vmem:[%s5404_s1 + $0x2b0] sm:$0xf]  ;;  %v3456_v20 = vld [vmem:[%s5404_s1 + $0x2b4] sm:$0xf0]  ;;  %v2564_v26 = vor.u32 %v3440_v17, %v2563_v16 }
  0x23   :  { %1647 = vmatpush.bf16.msra.mxu3 %v2476_v39  ;;  %v2764_v19 = vor.u32 %v3490_v12, %v2763_v11  ;;  %v2691_v21 = vld [vmem:[%s5404_s1 + $0x330] sm:$0xf]  ;;  %v3472_v22 = vld [vmem:[%s5404_s1 + $0x334] sm:$0xf0]  ;;  %v2555_v25 = vld [vmem:[%s5404_s1 + $0x220] sm:$0xf]  ;;  %v2628_v30 = vor.u32 %v3456_v20, %v2627_v18 }
  0x24   :  { %1653 = vmatpush.bf16.msrb.mxu0 %v2596_v40  ;;  %v2755_v23 = vld [vmem:[%s5404_s1 + $0x3b0] sm:$0xf]  ;;  %v3488_v24 = vld [vmem:[%s5404_s1 + $0x3b4] sm:$0xf0]  ;;  %v2692_v31 = vor.u32 %v3472_v22, %v2691_v21  ;;  %v3438_v32 = vld [vmem:[%s5404_s1 + $0x224] sm:$0xf0] }
  0x25   :  { %1666 = vmatpush.bf16.msrb.mxu1 %v2660_v41  ;;  %v2619_v33 = vld [vmem:[%s5404_s1 + $0x2a0] sm:$0xf]  ;;  %v2756_v35 = vor.u32 %v3488_v24, %v2755_v23  ;;  %v3454_v36 = vld [vmem:[%s5404_s1 + $0x2a4] sm:$0xf0]  ;;  %v2556_v41 = vor.u32 %v3438_v32, %v2555_v25  ;;  %v3436_v45 = vld [vmem:[%s5404_s1 + $0x214] sm:$0xf0] }
  0x26   :  { %1679 = vmatpush.bf16.msrb.mxu2 %v2724_v42  ;;  %v4038_v27 = vld [vmem:[#allocation1 + $0x12] sm:$0xff]  ;;  %v4040_v28 = vld [vmem:[#allocation1] sm:$0xff]  ;;  %v4050_v34 = vld [vmem:[#allocation1 + $0x9] sm:$0xff]  ;;  %v2620_v43 = vor.u32 %v3454_v36, %v2619_v33 }
  0x27   :  { %1692 = vmatpush.bf16.msrb.mxu3 %v2788_v46  ;;  %v4042_v29 = vld [vmem:[#allocation1 + $0x1b] sm:$0xff]  ;;  %v3470_v38 = vld [vmem:[%s5404_s1 + $0x324] sm:$0xf0]  ;;  %1635 = vmatmul.bf16.vlgmr.msra.gmra.mxu2 %v4038_v27  ;;  %v2547_v42 = vld [vmem:[%s5404_s1 + $0x210] sm:$0xf] }
  0x28   :  { %1654 = vmatpush.bf16.msrb.mxu0 %v2588_v52  ;;  %v2683_v37 = vld [vmem:[%s5404_s1 + $0x320] sm:$0xf]  ;;  %v3486_v40 = vld [vmem:[%s5404_s1 + $0x3a4] sm:$0xf0]  ;;  %1648 = vmatmul.bf16.vlgmr.msra.gmra.mxu3 %v4042_v29  ;;  %v2611_v46 = vld [vmem:[%s5404_s1 + $0x290] sm:$0xf]  ;;  %v2548_v55 = vor.u32 %v3436_v45, %v2547_v42 }
  0x29   :  { %1667 = vmatpush.bf16.msrb.mxu1 %v2652_v53  ;;  %v2747_v39 = vld [vmem:[%s5404_s1 + $0x3a0] sm:$0xf]  ;;  %1609 = vmatmul.bf16.vlgmr.msra.gmra.mxu0 %v4040_v28  ;;  %v2684_v44 = vor.u32 %v3470_v38, %v2683_v37  ;;  %v3452_v47 = vld [vmem:[%s5404_s1 + $0x294] sm:$0xf0]  ;;  %v2675_v49 = vld [vmem:[%s5404_s1 + $0x310] sm:$0xf] }
  0x2a   :  { %1680 = vmatpush.bf16.msrb.mxu2 %v2716_v54  ;;  %1622 = vmatmul.bf16.vlgmr.msra.gmra.mxu1 %v4050_v34  ;;  %v2748_v48 = vor.u32 %v3486_v40, %v2747_v39  ;;  %v3468_v50 = vld [vmem:[%s5404_s1 + $0x314] sm:$0xf0]  ;;  %v2739_v51 = vld [vmem:[%s5404_s1 + $0x390] sm:$0xf]  ;;  %v2539_v53 = vld [vmem:[%s5404_s1 + $0x200] sm:$0xf]  ;;  %v2612_v62 = vor.u32 %v3452_v47, %v2611_v46 }
  0x2b   :  { %1693 = vmatpush.bf16.msrb.mxu3 %v2780_v58  ;;  %v3484_v52 = vld [vmem:[%s5404_s1 + $0x394] sm:$0xf0]  ;;  %v3434_v54 = vld [vmem:[%s5404_s1 + $0x204] sm:$0xf0]  ;;  %v2603_v56 = vld [vmem:[%s5404_s1 + $0x280] sm:$0xf]  ;;  %v2676_v63 = vor.u32 %v3468_v50, %v2675_v49 }
  0x2c   :  { %1655 = vmatpush.bf16.msrb.mxu0 %v2580_v0  ;;  %v3450_v57 = vld [vmem:[%s5404_s1 + $0x284] sm:$0xf0]  ;;  %v2667_v58 = vld [vmem:[%s5404_s1 + $0x300] sm:$0xf]  ;;  %v4113_v60 = vld [vmem:[#allocation1 + $0x36] sm:$0xff]  ;;  %v2540_v9 = vor.u32 %v3434_v54, %v2539_v53 }
  0x2d   :  { %1668 = vmatpush.bf16.msrb.mxu1 %v2644_v3  ;;  %v3466_v59 = vld [vmem:[%s5404_s1 + $0x304] sm:$0xf0]  ;;  %v4120_v1 = vld [vmem:[#allocation1 + $0x3f] sm:$0xff]  ;;  %v4122_v2 = vld [vmem:[#allocation1 + $0x2d] sm:$0xff]  ;;  %v2740_v3 = vor.u32 %v3484_v52, %v2739_v51 }
  0x2e   :  { %1681 = vmatpush.bf16.msrb.mxu2 %v2708_v4  ;;  %v22_v61 = vld [vmem:[%s5403_s0 + $0x8] sm:$0xff]  ;;  %v2731_v4 = vld [vmem:[%s5404_s1 + $0x380] sm:$0xf]  ;;  %v2851_v6 = vld [vmem:[%s5404_s1 + $0x470] sm:$0xf] }
  0x2f   :  { %1694 = vmatpush.bf16.msrb.mxu3 %v2772_v7  ;;  %v4118_v0 = vld [vmem:[#allocation1 + $0x24] sm:$0xff]  ;;  %v3512_v7 = vld [vmem:[%s5404_s1 + $0x474] sm:$0xf0]  ;;  %v2915_v8 = vld [vmem:[%s5404_s1 + $0x4f0] sm:$0xf] }
  0x30   :  { %1656 = vmatpush.bf16.msrb.mxu0 %v2572_v13  ;;  %v3482_v5 = vld [vmem:[%s5404_s1 + $0x384] sm:$0xf0]  ;;  %296 = vst [vmem:[#allocation1] ss:$9 sm:$0xff] %v22_v61  ;;  %v3528_v10 = vld [vmem:[%s5404_s1 + $0x4f4] sm:$0xf0]  ;;  %v2604_v13 = vor.u32 %v3450_v57, %v2603_v56  ;;  %v2852_v18 = vor.u32 %v3512_v7, %v2851_v6 }
  0x31   :  { %1669 = vmatpush.bf16.msrb.mxu1 %v2636_v14  ;;  %v2979_v11 = vld [vmem:[%s5404_s1 + $0x570] sm:$0xf]  ;;  %v3544_v12 = vld [vmem:[%s5404_s1 + $0x574] sm:$0xf0]  ;;  %v2668_v14 = vor.u32 %v3466_v59, %v2667_v58  ;;  %v2732_v17 = vor.u32 %v3482_v5, %v2731_v4  ;;  %v2843_v21 = vld [vmem:[%s5404_s1 + $0x460] sm:$0xf] }
  0x32   :  { %1682 = vmatpush.bf16.msrb.mxu2 %v2700_v15  ;;  %v3043_v15 = vld [vmem:[%s5404_s1 + $0x5f0] sm:$0xf]  ;;  %v3560_v16 = vld [vmem:[%s5404_s1 + $0x5f4] sm:$0xf0]  ;;  %v2980_v20 = vor.u32 %v3544_v12, %v2979_v11  ;;  %v3510_v22 = vld [vmem:[%s5404_s1 + $0x464] sm:$0xf0] }
  0x33   :  { %1695 = vmatpush.bf16.msrb.mxu3 %v2764_v19  ;;  %v2916_v19 = vor.u32 %v3528_v10, %v2915_v8  ;;  %v2907_v23 = vld [vmem:[%s5404_s1 + $0x4e0] sm:$0xf]  ;;  %v3044_v24 = vor.u32 %v3560_v16, %v3043_v15  ;;  %v3526_v25 = vld [vmem:[%s5404_s1 + $0x4e4] sm:$0xf0]  ;;  %v2844_v33 = vor.u32 %v3510_v22, %v2843_v21  ;;  %v2835_v37 = vld [vmem:[%s5404_s1 + $0x450] sm:$0xf] }
  0x34   :  { %1657 = vmatpush.bf16.msrb.mxu0 %v2564_v26  ;;  %v2971_v26 = vld [vmem:[%s5404_s1 + $0x560] sm:$0xf]  ;;  %v3558_v32 = vld [vmem:[%s5404_s1 + $0x5e4] sm:$0xf0]  ;;  %v3508_v38 = vld [vmem:[%s5404_s1 + $0x454] sm:$0xf0] }
  0x35   :  { %1670 = vmatpush.bf16.msrb.mxu1 %v2628_v30  ;;  %v3542_v30 = vld [vmem:[%s5404_s1 + $0x564] sm:$0xf0]  ;;  %v2899_v39 = vld [vmem:[%s5404_s1 + $0x4d0] sm:$0xf]  ;;  %v3556_v45 = vld [vmem:[%s5404_s1 + $0x5d4] sm:$0xf0]  ;;  %v2836_v46 = vor.u32 %v3508_v38, %v2835_v37 }
  0x36   :  { %1683 = vmatpush.bf16.msrb.mxu2 %v2692_v31  ;;  %v3035_v31 = vld [vmem:[%s5404_s1 + $0x5e0] sm:$0xf]  ;;  %v2972_v36 = vor.u32 %v3542_v30, %v2971_v26  ;;  %v2963_v42 = vld [vmem:[%s5404_s1 + $0x550] sm:$0xf]  ;;  %v3506_v50 = vld [vmem:[%s5404_s1 + $0x444] sm:$0xf0] }
  0x37   :  { %1696 = vmatpush.bf16.msrb.mxu3 %v2756_v35  ;;  %v2908_v35 = vor.u32 %v3526_v25, %v2907_v23  ;;  %v3036_v40 = vor.u32 %v3558_v32, %v3035_v31  ;;  %v2827_v49 = vld [vmem:[%s5404_s1 + $0x440] sm:$0xf]  ;;  %v3522_v53 = vld [vmem:[%s5404_s1 + $0x4c4] sm:$0xf0]  ;;  %v3520_v5 = vld [vmem:[%s5404_s1 + $0x4b4] sm:$0xf0] }
  0x38   :  { %1658 = vmatpush.bf16.msrb.mxu0 %v2556_v41  ;;  %v3524_v41 = vld [vmem:[%s5404_s1 + $0x4d4] sm:$0xf0]  ;;  %v2891_v51 = vld [vmem:[%s5404_s1 + $0x4c0] sm:$0xf]  ;;  %v3554_v57 = vld [vmem:[%s5404_s1 + $0x5c4] sm:$0xf0]  ;;  %v2828_v58 = vor.u32 %v3506_v50, %v2827_v49 }
  0x39   :  { %1671 = vmatpush.bf16.msrb.mxu1 %v2620_v43  ;;  %v3540_v43 = vld [vmem:[%s5404_s1 + $0x554] sm:$0xf0]  ;;  %v2900_v47 = vor.u32 %v3524_v41, %v2899_v39  ;;  %v2955_v54 = vld [vmem:[%s5404_s1 + $0x540] sm:$0xf]  ;;  %v2892_v59 = vor.u32 %v3522_v53, %v2891_v51  ;;  %v2947_v6 = vld [vmem:[%s5404_s1 + $0x530] sm:$0xf] }
  0x3a   :  { %1684 = vmatpush.bf16.msrb.mxu2 %v2684_v44  ;;  %v3027_v44 = vld [vmem:[%s5404_s1 + $0x5d0] sm:$0xf]  ;;  %v3019_v56 = vld [vmem:[%s5404_s1 + $0x5c0] sm:$0xf]  ;;  %v3536_v7 = vld [vmem:[%s5404_s1 + $0x534] sm:$0xf0] }
  0x3b   :  { %1697 = vmatpush.bf16.msrb.mxu3 %v2748_v48  ;;  %v2964_v48 = vor.u32 %v3540_v43, %v2963_v42  ;;  %v3028_v52 = vor.u32 %v3556_v45, %v3027_v44  ;;  %v3020_v4 = vor.u32 %v3554_v57, %v3019_v56  ;;  %v3011_v8 = vld [vmem:[%s5404_s1 + $0x5b0] sm:$0xf]  ;;  %v2948_v12 = vor.u32 %v3536_v7, %v2947_v6  ;;  %v2875_v15 = vld [vmem:[%s5404_s1 + $0x4a0] sm:$0xf]  ;;  %v3550_v21 = vld [vmem:[%s5404_s1 + $0x5a4] sm:$0xf0] }
  0x3c   :  { %1659 = vmatpush.bf16.msrb.mxu0 %v2548_v55  ;;  %v3538_v55 = vld [vmem:[%s5404_s1 + $0x544] sm:$0xf0]  ;;  %v2803_v25 = vld [vmem:[%s5404_s1 + $0x410] sm:$0xf]  ;;  %v3500_v26 = vld [vmem:[%s5404_s1 + $0x414] sm:$0xf0] }
  0x3d   :  { %1672 = vmatpush.bf16.msrb.mxu1 %v2612_v62  ;;  %v2956_v61 = vor.u32 %v3538_v55, %v2955_v54  ;;  %v2819_v62 = vld [vmem:[%s5404_s1 + $0x430] sm:$0xf]  ;;  %v3516_v32 = vld [vmem:[%s5404_s1 + $0x494] sm:$0xf0]  ;;  %v2804_v38 = vor.u32 %v3500_v26, %v2803_v25  ;;  %v2795_v39 = vld [vmem:[%s5404_s1 + $0x400] sm:$0xf] }
  0x3e   :  { %1685 = vmatpush.bf16.msrb.mxu2 %v2676_v63  ;;  %v3504_v63 = vld [vmem:[%s5404_s1 + $0x434] sm:$0xf0]  ;;  %v2867_v30 = vld [vmem:[%s5404_s1 + $0x490] sm:$0xf]  ;;  %v2859_v43 = vld [vmem:[%s5404_s1 + $0x480] sm:$0xf] }
  0x3f   :  { %1698 = vmatpush.bf16.msrb.mxu3 %v2740_v3  ;;  %v2883_v3 = vld [vmem:[%s5404_s1 + $0x4b0] sm:$0xf]  ;;  %v2820_v10 = vor.u32 %v3504_v63, %v2819_v62  ;;  %v3548_v37 = vld [vmem:[%s5404_s1 + $0x594] sm:$0xf0]  ;;  %v2868_v41 = vor.u32 %v3516_v32, %v2867_v30  ;;  %v3514_v44 = vld [vmem:[%s5404_s1 + $0x484] sm:$0xf0] }
  0x40   :  { %1660 = vmatpush.bf16.msrb.mxu0 %v2540_v9  ;;  %v3552_v9 = vld [vmem:[%s5404_s1 + $0x5b4] sm:$0xf0]  ;;  %v2884_v11 = vor.u32 %v3520_v5, %v2883_v3  ;;  %v2923_v45 = vld [vmem:[%s5404_s1 + $0x500] sm:$0xf]  ;;  %v3546_v49 = vld [vmem:[%s5404_s1 + $0x584] sm:$0xf0]  ;;  %v2860_v57 = vor.u32 %v3514_v44, %v2859_v43 }
  0x41   :  { %1673 = vmatpush.bf16.msrb.mxu1 %v2604_v13  ;;  %v2811_v13 = vld [vmem:[%s5404_s1 + $0x420] sm:$0xf]  ;;  %v3012_v16 = vor.u32 %v3552_v9, %v3011_v8  ;;  %v3107_v50 = vld [vmem:[%s5404_s1 + $0x670] sm:$0xf]  ;;  %v3576_v51 = vld [vmem:[%s5404_s1 + $0x674] sm:$0xf0] }
  0x42   :  { %1686 = vmatpush.bf16.msrb.mxu2 %v2668_v14  ;;  %v3502_v14 = vld [vmem:[%s5404_s1 + $0x424] sm:$0xf0]  ;;  %v3592_v54 = vld [vmem:[%s5404_s1 + $0x6f4] sm:$0xf0]  ;;  %v3235_v55 = vld [vmem:[%s5404_s1 + $0x770] sm:$0xf]  ;;  %v3108_v63 = vor.u32 %v3576_v51, %v3107_v50 }
  0x43   :  { %1699 = vmatpush.bf16.msrb.mxu3 %v2732_v17  ;;  %1661 = vmatmul.bf16.vlgmr.msrb.gmra.mxu0 %v4118_v0  ;;  %v3518_v17 = vld [vmem:[%s5404_s1 + $0x4a4] sm:$0xf0]  ;;  %v2812_v22 = vor.u32 %v3502_v14, %v2811_v13  ;;  %v3608_v56 = vld [vmem:[%s5404_s1 + $0x774] sm:$0xf0]  ;;  %v3099_v5 = vld [vmem:[%s5404_s1 + $0x660] sm:$0xf] }
  0x44   :  { %1705 = vmatpush.bf16.msra.mxu0 %v2852_v18  ;;  %1674 = vmatmul.bf16.vlgmr.msrb.gmra.mxu1 %v4122_v2  ;;  %v2939_v18 = vld [vmem:[%s5404_s1 + $0x520] sm:$0xf]  ;;  %v2876_v23 = vor.u32 %v3518_v17, %v2875_v15  ;;  %v3574_v6 = vld [vmem:[%s5404_s1 + $0x664] sm:$0xf0]  ;;  %v299_v15 = vld [vmem:[#allocation1 + $0x12] sm:$0xff] }
  0x45   :  { %1718 = vmatpush.bf16.msra.mxu1 %v2916_v19  ;;  %1687 = vmatmul.bf16.vlgmr.msrb.gmra.mxu2 %v4113_v60  ;;  %v3534_v19 = vld [vmem:[%s5404_s1 + $0x524] sm:$0xf0]  ;;  %v3163_v7 = vld [vmem:[%s5404_s1 + $0x6e0] sm:$0xf]  ;;  %v3588_v25 = vld [vmem:[%s5404_s1 + $0x6d4] sm:$0xf0] }
  0x46   :  { %1731 = vmatpush.bf16.msra.mxu2 %v2980_v20  ;;  %1700 = vmatmul.bf16.vlgmr.msrb.gmra.mxu3 %v4120_v1  ;;  %v3003_v20 = vld [vmem:[%s5404_s1 + $0x5a0] sm:$0xf]  ;;  %v3590_v9 = vld [vmem:[%s5404_s1 + $0x6e4] sm:$0xf0]  ;;  %v3219_v26 = vld [vmem:[%s5404_s1 + $0x750] sm:$0xf] }
  0x47   :  { %1744 = vmatpush.bf16.msra.mxu3 %v3044_v24  ;;  %v2940_v24 = vor.u32 %v3534_v19, %v2939_v18  ;;  %v3004_v31 = vor.u32 %v3550_v21, %v3003_v20  ;;  %v3291_v13 = vld [vmem:[%s5404_s1 + $0x7e0] sm:$0xf]  ;;  %v3622_v14 = vld [vmem:[%s5404_s1 + $0x7e4] sm:$0xf0]  ;;  %v3100_v18 = vor.u32 %v3574_v6, %v3099_v5  ;;  %v3164_v19 = vor.u32 %v3590_v9, %v3163_v7  ;;  %v3091_v21 = vld [vmem:[%s5404_s1 + $0x650] sm:$0xf] }
  0x48   :  { %1706 = vmatpush.bf16.msra.mxu0 %v2844_v33  ;;  %v2931_v33 = vld [vmem:[%s5404_s1 + $0x510] sm:$0xf]  ;;  %v300_v17 = vld [vmem:[#allocation1 + $0x1b] sm:$0xff]  ;;  %v3602_v43 = vld [vmem:[%s5404_s1 + $0x744] sm:$0xf0] }
  0x49   :  { %1719 = vmatpush.bf16.msra.mxu1 %v2908_v35  ;;  %v3532_v35 = vld [vmem:[%s5404_s1 + $0x514] sm:$0xf0]  ;;  %v3275_v44 = vld [vmem:[%s5404_s1 + $0x7c0] sm:$0xf] }
  0x4a   :  { %1732 = vmatpush.bf16.msra.mxu2 %v2972_v36  ;;  %v2995_v36 = vld [vmem:[%s5404_s1 + $0x590] sm:$0xf]  ;;  %v2932_v42 = vor.u32 %v3532_v35, %v2931_v33  ;;  %v3604_v30 = vld [vmem:[%s5404_s1 + $0x754] sm:$0xf0]  ;;  %v3083_v35 = vld [vmem:[%s5404_s1 + $0x640] sm:$0xf] }
  0x4b   :  { %1745 = vmatpush.bf16.msra.mxu3 %v3036_v40  ;;  %v3498_v40 = vld [vmem:[%s5404_s1 + $0x404] sm:$0xf0]  ;;  %v3620_v32 = vld [vmem:[%s5404_s1 + $0x7d4] sm:$0xf0] }
  0x4c   :  { %1707 = vmatpush.bf16.msra.mxu0 %v2836_v46  ;;  %v2996_v46 = vor.u32 %v3548_v37, %v2995_v36  ;;  %v2796_v53 = vor.u32 %v3498_v40, %v2795_v39  ;;  %v3220_v37 = vor.u32 %v3604_v30, %v3219_v26  ;;  %v3147_v39 = vld [vmem:[%s5404_s1 + $0x6c0] sm:$0xf]  ;;  %v3586_v40 = vld [vmem:[%s5404_s1 + $0x6c4] sm:$0xf0] }
  0x4d   :  { %1720 = vmatpush.bf16.msra.mxu1 %v2900_v47  ;;  %v3530_v47 = vld [vmem:[%s5404_s1 + $0x504] sm:$0xf0] }
  0x4e   :  { %1733 = vmatpush.bf16.msra.mxu2 %v2964_v48  ;;  %v2987_v48 = vld [vmem:[%s5404_s1 + $0x580] sm:$0xf] }
  0x4f   :  { %1746 = vmatpush.bf16.msra.mxu3 %v3028_v52  ;;  %v3171_v52 = vld [vmem:[%s5404_s1 + $0x6f0] sm:$0xf]  ;;  %v2988_v62 = vor.u32 %v3546_v49, %v2987_v48 }
  0x50   :  { %1708 = vmatpush.bf16.msra.mxu0 %v2828_v58  ;;  %v2924_v58 = vor.u32 %v3530_v47, %v2923_v45  ;;  %v3172_v3 = vor.u32 %v3592_v54, %v3171_v52  ;;  %v3618_v45 = vld [vmem:[%s5404_s1 + $0x7c4] sm:$0xf0] }
  0x51   :  { %1721 = vmatpush.bf16.msra.mxu1 %v2892_v59  ;;  %v3299_v59 = vld [vmem:[%s5404_s1 + $0x7f0] sm:$0xf] }
  0x52   :  { %1734 = vmatpush.bf16.msra.mxu2 %v2956_v61  ;;  %v3624_v61 = vld [vmem:[%s5404_s1 + $0x7f4] sm:$0xf0] }
  0x53   :  { %1747 = vmatpush.bf16.msra.mxu3 %v3020_v4  ;;  %v3236_v4 = vor.u32 %v3608_v56, %v3235_v55  ;;  %v3300_v8 = vor.u32 %v3624_v61, %v3299_v59 }
  0x54   :  { %1709 = vmatpush.bf16.msra.mxu0 %v2820_v10  ;;  %v3227_v10 = vld [vmem:[%s5404_s1 + $0x760] sm:$0xf] }
  0x55   :  { %1722 = vmatpush.bf16.msra.mxu1 %v2884_v11  ;;  %v3606_v11 = vld [vmem:[%s5404_s1 + $0x764] sm:$0xf0] }
  0x56   :  { %1735 = vmatpush.bf16.msra.mxu2 %v2948_v12  ;;  %v297_v12 = vld [vmem:[#allocation1] sm:$0xff]  ;;  %v3228_v20 = vor.u32 %v3606_v11, %v3227_v10 }
  0x57   :  { %1748 = vmatpush.bf16.msra.mxu3 %v3012_v16  ;;  %v298_v16 = vld [vmem:[#allocation1 + $0x9] sm:$0xff] }
  0x58   :  { %1710 = vmatpush.bf16.msra.mxu0 %v2812_v22  ;;  %v3572_v22 = vld [vmem:[%s5404_s1 + $0x654] sm:$0xf0] }
  0x59   :  { %1723 = vmatpush.bf16.msra.mxu1 %v2876_v23  ;;  %v3155_v23 = vld [vmem:[%s5404_s1 + $0x6d0] sm:$0xf]  ;;  %v3092_v33 = vor.u32 %v3572_v22, %v3091_v21 }
  0x5a   :  { %1736 = vmatpush.bf16.msra.mxu2 %v2940_v24  ;;  %v3292_v24 = vor.u32 %v3622_v14, %v3291_v13  ;;  %v3156_v36 = vor.u32 %v3588_v25, %v3155_v23 }
  0x5b   :  { %1749 = vmatpush.bf16.msra.mxu3 %v3004_v31  ;;  %v3283_v31 = vld [vmem:[%s5404_s1 + $0x7d0] sm:$0xf] }
  0x5c   :  { %1711 = vmatpush.bf16.msra.mxu0 %v2804_v38  ;;  %v3570_v38 = vld [vmem:[%s5404_s1 + $0x644] sm:$0xf0] }
  0x5d   :  { %1724 = vmatpush.bf16.msra.mxu1 %v2868_v41  ;;  %v3284_v41 = vor.u32 %v3620_v32, %v3283_v31 }
  0x5e   :  { %1737 = vmatpush.bf16.msra.mxu2 %v2932_v42  ;;  %v3211_v42 = vld [vmem:[%s5404_s1 + $0x740] sm:$0xf] }
  0x5f   :  { %1750 = vmatpush.bf16.msra.mxu3 %v2996_v46 }
  0x60   :  { %1712 = vmatpush.bf16.msra.mxu0 %v2796_v53 }
  0x61   :  { %1725 = vmatpush.bf16.msra.mxu1 %v2860_v57 }
  0x62   :  { %1738 = vmatpush.bf16.msra.mxu2 %v2924_v58 }
  0x63   :  { %1751 = vmatpush.bf16.msra.mxu3 %v2988_v62  ;;  %1713 = vmatmul.bf16.vlgmr.msra.gmra.mxu0 %v297_v12 }
  0x64   :  { %1757 = vmatpush.bf16.msrb.mxu0 %v3108_v63  ;;  %1726 = vmatmul.bf16.vlgmr.msra.gmra.mxu1 %v298_v16 }
  0x65   :  { %1770 = vmatpush.bf16.msrb.mxu1 %v3172_v3  ;;  %1739 = vmatmul.bf16.vlgmr.msra.gmra.mxu2 %v299_v15 }
  0x66   :  { %1783 = vmatpush.bf16.msrb.mxu2 %v3236_v4  ;;  %1752 = vmatmul.bf16.vlgmr.msra.gmra.mxu3 %v300_v17 }
  0x67   :  { %1796 = vmatpush.bf16.msrb.mxu3 %v3300_v8 }
  0x68   :  { %1758 = vmatpush.bf16.msrb.mxu0 %v3100_v18 }
  0x69   :  { %1771 = vmatpush.bf16.msrb.mxu1 %v3164_v19 }
  0x6a   :  { %1784 = vmatpush.bf16.msrb.mxu2 %v3228_v20 }
  0x6b   :  { %1797 = vmatpush.bf16.msrb.mxu3 %v3292_v24 }
  0x6c   :  { %10 = vsyncpa [#allocation3], 0  ;;  %1759 = vmatpush.bf16.msrb.mxu0 %v3092_v33  ;;  %v3084_v46 = vor.u32 %v3570_v38, %v3083_v35  ;;  %v3148_v47 = vor.u32 %v3586_v40, %v3147_v39  ;;  %v3212_v48 = vor.u32 %v3602_v43, %v3211_v42  ;;  %v3075_v49 = vld [vmem:[%s5404_s1 + $0x630] sm:$0xf]  ;;  %v3568_v50 = vld [vmem:[%s5404_s1 + $0x634] sm:$0xf0]  ;;  %v3276_v52 = vor.u32 %v3618_v45, %v3275_v44 }
  0x6d   :  { %1772 = vmatpush.bf16.msrb.mxu1 %v3156_v36  ;;  %v3139_v51 = vld [vmem:[%s5404_s1 + $0x6b0] sm:$0xf]  ;;  %v3584_v53 = vld [vmem:[%s5404_s1 + $0x6b4] sm:$0xf0]  ;;  %v3076_v58 = vor.u32 %v3568_v50, %v3075_v49  ;;  %v3067_v62 = vld [vmem:[%s5404_s1 + $0x620] sm:$0xf] }
  0x6e   :  { %1785 = vmatpush.bf16.msrb.mxu2 %v3220_v37  ;;  %v3203_v54 = vld [vmem:[%s5404_s1 + $0x730] sm:$0xf]  ;;  %v3600_v55 = vld [vmem:[%s5404_s1 + $0x734] sm:$0xf0]  ;;  %v3140_v59 = vor.u32 %v3584_v53, %v3139_v51  ;;  %v3566_v63 = vld [vmem:[%s5404_s1 + $0x624] sm:$0xf0] }
  0x6f   :  { %1798 = vmatpush.bf16.msrb.mxu3 %v3284_v41  ;;  %v3267_v56 = vld [vmem:[%s5404_s1 + $0x7b0] sm:$0xf]  ;;  %v3616_v57 = vld [vmem:[%s5404_s1 + $0x7b4] sm:$0xf0]  ;;  %v3204_v61 = vor.u32 %v3600_v55, %v3203_v54  ;;  %v3131_v3 = vld [vmem:[%s5404_s1 + $0x6a0] sm:$0xf]  ;;  %v3068_v10 = vor.u32 %v3566_v63, %v3067_v62 }
  0x70   :  { %1760 = vmatpush.bf16.msrb.mxu0 %v3084_v46  ;;  %v3268_v4 = vor.u32 %v3616_v57, %v3267_v56  ;;  %v3582_v5 = vld [vmem:[%s5404_s1 + $0x6a4] sm:$0xf0]  ;;  %v3195_v6 = vld [vmem:[%s5404_s1 + $0x720] sm:$0xf]  ;;  %v3059_v13 = vld [vmem:[%s5404_s1 + $0x610] sm:$0xf] }
  0x71   :  { %1773 = vmatpush.bf16.msrb.mxu1 %v3148_v47  ;;  %v3598_v7 = vld [vmem:[%s5404_s1 + $0x724] sm:$0xf0]  ;;  %v3259_v8 = vld [vmem:[%s5404_s1 + $0x7a0] sm:$0xf]  ;;  %v3132_v11 = vor.u32 %v3582_v5, %v3131_v3  ;;  %v3564_v14 = vld [vmem:[%s5404_s1 + $0x614] sm:$0xf0] }
  0x72   :  { %1786 = vmatpush.bf16.msrb.mxu2 %v3212_v48  ;;  %v3614_v9 = vld [vmem:[%s5404_s1 + $0x7a4] sm:$0xf0]  ;;  %v3196_v12 = vor.u32 %v3598_v7, %v3195_v6  ;;  %v3123_v15 = vld [vmem:[%s5404_s1 + $0x690] sm:$0xf]  ;;  %v3580_v17 = vld [vmem:[%s5404_s1 + $0x694] sm:$0xf0]  ;;  %v3060_v22 = vor.u32 %v3564_v14, %v3059_v13 }
  0x73   :  { %1799 = vmatpush.bf16.msrb.mxu3 %v3276_v52  ;;  %v3260_v16 = vor.u32 %v3614_v9, %v3259_v8  ;;  %v3187_v18 = vld [vmem:[%s5404_s1 + $0x710] sm:$0xf]  ;;  %v3596_v19 = vld [vmem:[%s5404_s1 + $0x714] sm:$0xf0]  ;;  %v3051_v23 = vld [vmem:[%s5404_s1 + $0x600] sm:$0xf]  ;;  %v3124_v25 = vor.u32 %v3580_v17, %v3123_v15 }
  0x74   :  { %1761 = vmatpush.bf16.msrb.mxu0 %v3076_v58  ;;  %v3251_v20 = vld [vmem:[%s5404_s1 + $0x790] sm:$0xf]  ;;  %v3612_v21 = vld [vmem:[%s5404_s1 + $0x794] sm:$0xf0]  ;;  %v3562_v24 = vld [vmem:[%s5404_s1 + $0x604] sm:$0xf0]  ;;  %v3188_v26 = vor.u32 %v3596_v19, %v3187_v18 }
  0x75   :  { %1774 = vmatpush.bf16.msrb.mxu1 %v3140_v59  ;;  %v3115_v30 = vld [vmem:[%s5404_s1 + $0x680] sm:$0xf]  ;;  %v3578_v31 = vld [vmem:[%s5404_s1 + $0x684] sm:$0xf0]  ;;  %v3252_v33 = vor.u32 %v3612_v21, %v3251_v20  ;;  %v3383_v38 = vld [vmem:[%s5404_s1 + $0x74] sm:$0xf]  ;;  %v3052_v41 = vor.u32 %v3562_v24, %v3051_v23 }
  0x76   :  { %1787 = vmatpush.bf16.msrb.mxu2 %v3204_v61  ;;  %v3179_v32 = vld [vmem:[%s5404_s1 + $0x700] sm:$0xf]  ;;  %v3594_v35 = vld [vmem:[%s5404_s1 + $0x704] sm:$0xf0]  ;;  %v2341_v39 = vld [vmem:[%s5404_s1 + $0x78] sm:$0xf0]  ;;  %v3116_v45 = vor.u32 %v3578_v31, %v3115_v30 }
  0x77   :  { %1800 = vmatpush.bf16.msrb.mxu3 %v3268_v4  ;;  %v3243_v36 = vld [vmem:[%s5404_s1 + $0x780] sm:$0xf]  ;;  %v3610_v37 = vld [vmem:[%s5404_s1 + $0x784] sm:$0xf0]  ;;  %v3399_v40 = vld [vmem:[%s5404_s1 + $0xf4] sm:$0xf]  ;;  %v3180_v46 = vor.u32 %v3594_v35, %v3179_v32  ;;  %v2344_v50 = vor.u32 %v3383_v38, %v2341_v39 }
  0x78   :  { %1762 = vmatpush.bf16.msrb.mxu0 %v3068_v10  ;;  %v2405_v42 = vld [vmem:[%s5404_s1 + $0xf8] sm:$0xf0]  ;;  %v3415_v43 = vld [vmem:[%s5404_s1 + $0x174] sm:$0xf]  ;;  %v3244_v49 = vor.u32 %v3610_v37, %v3243_v36  ;;  %v3381_v53 = vld [vmem:[%s5404_s1 + $0x64] sm:$0xf] }
  0x79   :  { %1775 = vmatpush.bf16.msrb.mxu1 %v3132_v11  ;;  %v2469_v44 = vld [vmem:[%s5404_s1 + $0x178] sm:$0xf0]  ;;  %v3431_v47 = vld [vmem:[%s5404_s1 + $0x1f4] sm:$0xf]  ;;  %v2408_v51 = vor.u32 %v3399_v40, %v2405_v42  ;;  %v2333_v54 = vld [vmem:[%s5404_s1 + $0x68] sm:$0xf0] }
  0x7a   :  { %1788 = vmatpush.bf16.msrb.mxu2 %v3196_v12  ;;  %v2533_v48 = vld [vmem:[%s5404_s1 + $0x1f8] sm:$0xf0]  ;;  %v2472_v52 = vor.u32 %v3415_v43, %v2469_v44  ;;  %v3397_v55 = vld [vmem:[%s5404_s1 + $0xe4] sm:$0xf]  ;;  %v2397_v57 = vld [vmem:[%s5404_s1 + $0xe8] sm:$0xf0]  ;;  %v2336_v6 = vor.u32 %v3381_v53, %v2333_v54 }
  0x7b   :  { %1801 = vmatpush.bf16.msrb.mxu3 %v3260_v16  ;;  %v2536_v56 = vor.u32 %v3431_v47, %v2533_v48  ;;  %v3413_v58 = vld [vmem:[%s5404_s1 + $0x164] sm:$0xf]  ;;  %v2461_v59 = vld [vmem:[%s5404_s1 + $0x168] sm:$0xf0]  ;;  %v303_v3 = vld [vmem:[#allocation1 + $0x36] sm:$0xff]  ;;  %v2400_v7 = vor.u32 %v3397_v55, %v2397_v57  ;;  %vm2019_vm0 = vcmask 1041408  }
  0x7c   :  { %1763 = vmatpush.bf16.msrb.mxu0 %v3060_v22  ;;  %v301_v61 = vld [vmem:[#allocation1 + $0x24] sm:$0xff]  ;;  %v2525_v63 = vld [vmem:[%s5404_s1 + $0x1e8] sm:$0xf0]  ;;  %v2464_v8 = vor.u32 %v3413_v58, %v2461_v59  ;;  %v3379_v9 = vld [vmem:[%s5404_s1 + $0x54] sm:$0xf]  ;;  %s2272_s19 = sshll.u32 %s5408_s5, 4  ;;  %s2273_s19 = int_to_ptr.hbm [resolvable:$true] %s2272_s19 }
  0x7d   :  { %1776 = vmatpush.bf16.msrb.mxu1 %v3124_v25  ;;  %v3429_v62 = vld [vmem:[%s5404_s1 + $0x1e4] sm:$0xf]  ;;  %v302_v4 = vld [vmem:[#allocation1 + $0x2d] sm:$0xff]  ;;  %v2325_v10 = vld [vmem:[%s5404_s1 + $0x58] sm:$0xf0] }
  0x7e   :  { %1789 = vmatpush.bf16.msrb.mxu2 %v3188_v26  ;;  %v304_v5 = vld [vmem:[#allocation1 + $0x3f] sm:$0xff]  ;;  %v3395_v11 = vld [vmem:[%s5404_s1 + $0xd4] sm:$0xf]  ;;  %v2528_v12 = vor.u32 %v3429_v62, %v2525_v63  ;;  %v2328_v18 = vor.u32 %v3379_v9, %v2325_v10  ;;  %v2317_v22 = vld [vmem:[%s5404_s1 + $0x48] sm:$0xf0] }
  0x7f   :  { %1802 = vmatpush.bf16.msrb.mxu3 %v3252_v33  ;;  %v2389_v13 = vld [vmem:[%s5404_s1 + $0xd8] sm:$0xf0]  ;;  %v3411_v14 = vld [vmem:[%s5404_s1 + $0x154] sm:$0xf]  ;;  %v3377_v21 = vld [vmem:[%s5404_s1 + $0x44] sm:$0xf] }
  0x80   :  { %1764 = vmatpush.bf16.msrb.mxu0 %v3052_v41  ;;  %v2453_v15 = vld [vmem:[%s5404_s1 + $0x158] sm:$0xf0]  ;;  %v3427_v16 = vld [vmem:[%s5404_s1 + $0x1d4] sm:$0xf]  ;;  %v2392_v19 = vor.u32 %v3395_v11, %v2389_v13  ;;  %v3393_v23 = vld [vmem:[%s5404_s1 + $0xc4] sm:$0xf]  ;;  %v2320_v33 = vor.u32 %v3377_v21, %v2317_v22 }
  0x81   :  { %1777 = vmatpush.bf16.msrb.mxu1 %v3116_v45  ;;  %v2517_v17 = vld [vmem:[%s5404_s1 + $0x1d8] sm:$0xf0]  ;;  %v2456_v20 = vor.u32 %v3411_v14, %v2453_v15  ;;  %v2381_v25 = vld [vmem:[%s5404_s1 + $0xc8] sm:$0xf0]  ;;  %v3409_v26 = vld [vmem:[%s5404_s1 + $0x144] sm:$0xf] }
  0x82   :  { %1790 = vmatpush.bf16.msrb.mxu2 %v3180_v46  ;;  %v2520_v24 = vor.u32 %v3427_v16, %v2517_v17  ;;  %v2445_v30 = vld [vmem:[%s5404_s1 + $0x148] sm:$0xf0]  ;;  %v3425_v31 = vld [vmem:[%s5404_s1 + $0x1c4] sm:$0xf]  ;;  %v2384_v35 = vor.u32 %v3393_v23, %v2381_v25  ;;  %v3375_v37 = vld [vmem:[%s5404_s1 + $0x34] sm:$0xf] }
  0x83   :  { %1803 = vmatpush.bf16.msrb.mxu3 %v3244_v49  ;;  %1765 = vmatmul.bf16.vlgmr.msrb.gmra.mxu0 %v301_v61  ;;  %v2509_v32 = vld [vmem:[%s5404_s1 + $0x1c8] sm:$0xf0]  ;;  %v2448_v36 = vor.u32 %v3409_v26, %v2445_v30  ;;  %v2309_v38 = vld [vmem:[%s5404_s1 + $0x38] sm:$0xf0]  ;;  %v3391_v39 = vld [vmem:[%s5404_s1 + $0xb4] sm:$0xf] }
  0x84   :  { %1809 = vmatpush.bf16.msra.mxu0 %v2344_v50  ;;  %1778 = vmatmul.bf16.vlgmr.msrb.gmra.mxu1 %v302_v4  ;;  %v2512_v40 = vor.u32 %v3425_v31, %v2509_v32  ;;  %v2373_v41 = vld [vmem:[%s5404_s1 + $0xb8] sm:$0xf0]  ;;  %v3407_v42 = vld [vmem:[%s5404_s1 + $0x134] sm:$0xf]  ;;  %v2312_v46 = vor.u32 %v3375_v37, %v2309_v38  ;;  %v3373_v49 = vld [vmem:[%s5404_s1 + $0x24] sm:$0xf] }
  0x85   :  { %1822 = vmatpush.bf16.msra.mxu1 %v2408_v51  ;;  %1791 = vmatmul.bf16.vlgmr.msrb.gmra.mxu2 %v303_v3  ;;  %v2437_v43 = vld [vmem:[%s5404_s1 + $0x138] sm:$0xf0]  ;;  %v3423_v44 = vld [vmem:[%s5404_s1 + $0x1b4] sm:$0xf]  ;;  %v2376_v47 = vor.u32 %v3391_v39, %v2373_v41  ;;  %v2301_v50 = vld [vmem:[%s5404_s1 + $0x28] sm:$0xf0] }
  0x86   :  { %1835 = vmatpush.bf16.msra.mxu2 %v2472_v52  ;;  %1804 = vmatmul.bf16.vlgmr.msrb.gmra.mxu3 %v304_v5  ;;  %v2501_v45 = vld [vmem:[%s5404_s1 + $0x1b8] sm:$0xf0]  ;;  %v2440_v48 = vor.u32 %v3407_v42, %v2437_v43  ;;  %v3389_v51 = vld [vmem:[%s5404_s1 + $0xa4] sm:$0xf]  ;;  %v2365_v53 = vld [vmem:[%s5404_s1 + $0xa8] sm:$0xf0]  ;;  %v2304_v58 = vor.u32 %v3373_v49, %v2301_v50 }
  0x87   :  { %1848 = vmatpush.bf16.msra.mxu3 %v2536_v56  ;;  %v2504_v52 = vor.u32 %v3423_v44, %v2501_v45  ;;  %v3405_v54 = vld [vmem:[%s5404_s1 + $0x124] sm:$0xf]  ;;  %v2429_v55 = vld [vmem:[%s5404_s1 + $0x128] sm:$0xf0]  ;;  %v2368_v59 = vor.u32 %v3389_v51, %v2365_v53  ;;  %v3371_v62 = vld [vmem:[%s5404_s1 + $0x14] sm:$0xf] }
  0x88   :  { %1810 = vmatpush.bf16.msra.mxu0 %v2336_v6  ;;  %v3421_v56 = vld [vmem:[%s5404_s1 + $0x1a4] sm:$0xf]  ;;  %v2493_v57 = vld [vmem:[%s5404_s1 + $0x1a8] sm:$0xf0]  ;;  %v2432_v61 = vor.u32 %v3405_v54, %v2429_v55  ;;  %v2293_v63 = vld [vmem:[%s5404_s1 + $0x18] sm:$0xf0] }
  0x89   :  { %1823 = vmatpush.bf16.msra.mxu1 %v2400_v7  ;;  %v3387_v3 = vld [vmem:[%s5404_s1 + $0x94] sm:$0xf]  ;;  %v2496_v4 = vor.u32 %v3421_v56, %v2493_v57  ;;  %v2357_v5 = vld [vmem:[%s5404_s1 + $0x98] sm:$0xf0]  ;;  %v2296_v10 = vor.u32 %v3371_v62, %v2293_v63  ;;  %v3369_v11 = vld [vmem:[%s5404_s1 + $0x4] sm:$0xf] }
  0x8a   :  { %1836 = vmatpush.bf16.msra.mxu2 %v2464_v8  ;;  %v3403_v6 = vld [vmem:[%s5404_s1 + $0x114] sm:$0xf]  ;;  %v2421_v7 = vld [vmem:[%s5404_s1 + $0x118] sm:$0xf0]  ;;  %v2360_v13 = vor.u32 %v3387_v3, %v2357_v5  ;;  %v3385_v15 = vld [vmem:[%s5404_s1 + $0x84] sm:$0xf] }
  0x8b   :  { %1849 = vmatpush.bf16.msra.mxu3 %v2528_v12  ;;  %v3419_v8 = vld [vmem:[%s5404_s1 + $0x194] sm:$0xf]  ;;  %v2485_v9 = vld [vmem:[%s5404_s1 + $0x198] sm:$0xf0]  ;;  %v2285_v12 = vld [vmem:[%s5404_s1 + $0x8] sm:$0xf0]  ;;  %v2424_v14 = vor.u32 %v3403_v6, %v2421_v7 }
  0x8c   :  { %1811 = vmatpush.bf16.msra.mxu0 %v2328_v18  ;;  %v2349_v16 = vld [vmem:[%s5404_s1 + $0x88] sm:$0xf0]  ;;  %v3401_v17 = vld [vmem:[%s5404_s1 + $0x104] sm:$0xf]  ;;  %v2488_v18 = vor.u32 %v3419_v8, %v2485_v9  ;;  %v3447_v22 = vld [vmem:[%s5404_s1 + $0x274] sm:$0xf]  ;;  %v2288_v25 = vor.u32 %v3369_v11, %v2285_v12 }
  0x8d   :  { %1824 = vmatpush.bf16.msra.mxu1 %v2392_v19  ;;  %v2413_v19 = vld [vmem:[%s5404_s1 + $0x108] sm:$0xf0]  ;;  %v2597_v23 = vld [vmem:[%s5404_s1 + $0x278] sm:$0xf0]  ;;  %v3479_v30 = vld [vmem:[%s5404_s1 + $0x374] sm:$0xf]  ;;  %v2352_v32 = vor.u32 %v3385_v15, %v2349_v16 }
  0x8e   :  { %1837 = vmatpush.bf16.msra.mxu2 %v2456_v20  ;;  %v3417_v20 = vld [vmem:[%s5404_s1 + $0x184] sm:$0xf]  ;;  %v2477_v21 = vld [vmem:[%s5404_s1 + $0x188] sm:$0xf0]  ;;  %v2661_v26 = vld [vmem:[%s5404_s1 + $0x2f8] sm:$0xf0]  ;;  %v2600_v38 = vor.u32 %v3447_v22, %v2597_v23 }
  0x8f   :  { %1850 = vmatpush.bf16.msra.mxu3 %v2520_v24  ;;  %v3463_v24 = vld [vmem:[%s5404_s1 + $0x2f4] sm:$0xf]  ;;  %v2725_v31 = vld [vmem:[%s5404_s1 + $0x378] sm:$0xf0]  ;;  %v2480_v37 = vor.u32 %v3417_v20, %v2477_v21  ;;  %v3445_v41 = vld [vmem:[%s5404_s1 + $0x264] sm:$0xf] }
  0x90   :  { %1812 = vmatpush.bf16.msra.mxu0 %v2320_v33  ;;  %v2416_v33 = vor.u32 %v3401_v17, %v2413_v19  ;;  %v2664_v39 = vor.u32 %v3463_v24, %v2661_v26  ;;  %v2589_v42 = vld [vmem:[%s5404_s1 + $0x268] sm:$0xf0]  ;;  %v3461_v43 = vld [vmem:[%s5404_s1 + $0x2e4] sm:$0xf]  ;;  %v3443_v53 = vld [vmem:[%s5404_s1 + $0x254] sm:$0xf] }
  0x91   :  { %1825 = vmatpush.bf16.msra.mxu1 %v2384_v35  ;;  %v3495_v35 = vld [vmem:[%s5404_s1 + $0x3f4] sm:$0xf]  ;;  %v2653_v45 = vld [vmem:[%s5404_s1 + $0x2e8] sm:$0xf0]  ;;  %v2592_v50 = vor.u32 %v3445_v41, %v2589_v42  ;;  %v2581_v54 = vld [vmem:[%s5404_s1 + $0x258] sm:$0xf0] }
  0x92   :  { %1838 = vmatpush.bf16.msra.mxu2 %v2448_v36  ;;  %v2789_v36 = vld [vmem:[%s5404_s1 + $0x3f8] sm:$0xf0]  ;;  %v2781_v49 = vld [vmem:[%s5404_s1 + $0x3e8] sm:$0xf0]  ;;  %v2656_v51 = vor.u32 %v3461_v43, %v2653_v45  ;;  %v3459_v55 = vld [vmem:[%s5404_s1 + $0x2d4] sm:$0xf]  ;;  %v2584_v63 = vor.u32 %v3443_v53, %v2581_v54 }
  0x93   :  { %1851 = vmatpush.bf16.msra.mxu3 %v2512_v40  ;;  %v2728_v40 = vor.u32 %v3479_v30, %v2725_v31  ;;  %v2792_v44 = vor.u32 %v3495_v35, %v2789_v36  ;;  %v2645_v57 = vld [vmem:[%s5404_s1 + $0x2d8] sm:$0xf0]  ;;  %v2573_v5 = vld [vmem:[%s5404_s1 + $0x248] sm:$0xf0]  ;;  %v3473_v6 = vld [vmem:[%s5404_s1 + $0x344] sm:$0xf] }
  0x94   :  { %1813 = vmatpush.bf16.msra.mxu0 %v2312_v46  ;;  %v3477_v46 = vld [vmem:[%s5404_s1 + $0x364] sm:$0xf]  ;;  %v2773_v62 = vld [vmem:[%s5404_s1 + $0x3d8] sm:$0xf0]  ;;  %v2648_v3 = vor.u32 %v3459_v55, %v2645_v57  ;;  %v2701_v7 = vld [vmem:[%s5404_s1 + $0x348] sm:$0xf0] }
  0x95   :  { %1826 = vmatpush.bf16.msra.mxu1 %v2376_v47  ;;  %v2717_v47 = vld [vmem:[%s5404_s1 + $0x368] sm:$0xf0]  ;;  %v3489_v8 = vld [vmem:[%s5404_s1 + $0x3c4] sm:$0xf]  ;;  %v2704_v12 = vor.u32 %v3473_v6, %v2701_v7  ;;  %v3455_v15 = vld [vmem:[%s5404_s1 + $0x2b4] sm:$0xf] }
  0x96   :  { %1839 = vmatpush.bf16.msra.mxu2 %v2440_v48  ;;  %v3493_v48 = vld [vmem:[%s5404_s1 + $0x3e4] sm:$0xf]  ;;  %v2765_v9 = vld [vmem:[%s5404_s1 + $0x3c8] sm:$0xf0]  ;;  %v2629_v17 = vld [vmem:[%s5404_s1 + $0x2b8] sm:$0xf0] }
  0x97   :  { %1852 = vmatpush.bf16.msra.mxu3 %v2504_v52  ;;  %v2720_v52 = vor.u32 %v3477_v46, %v2717_v47  ;;  %v2784_v56 = vor.u32 %v3493_v48, %v2781_v49  ;;  %v2768_v16 = vor.u32 %v3489_v8, %v2765_v9  ;;  %v2693_v19 = vld [vmem:[%s5404_s1 + $0x338] sm:$0xf0]  ;;  %v3487_v20 = vld [vmem:[%s5404_s1 + $0x3b4] sm:$0xf]  ;;  %v2632_v23 = vor.u32 %v3455_v15, %v2629_v17  ;;  %v2557_v26 = vld [vmem:[%s5404_s1 + $0x228] sm:$0xf0] }
  0x98   :  { %1814 = vmatpush.bf16.msra.mxu0 %v2304_v58  ;;  %v3475_v58 = vld [vmem:[%s5404_s1 + $0x354] sm:$0xf]  ;;  %v2757_v21 = vld [vmem:[%s5404_s1 + $0x3b8] sm:$0xf0]  ;;  %v3453_v30 = vld [vmem:[%s5404_s1 + $0x2a4] sm:$0xf] }
  0x99   :  { %1827 = vmatpush.bf16.msra.mxu1 %v2368_v59  ;;  %v2709_v59 = vld [vmem:[%s5404_s1 + $0x358] sm:$0xf0]  ;;  %v2760_v31 = vor.u32 %v3487_v20, %v2757_v21  ;;  %v2685_v35 = vld [vmem:[%s5404_s1 + $0x328] sm:$0xf0]  ;;  %v3485_v36 = vld [vmem:[%s5404_s1 + $0x3a4] sm:$0xf] }
  0x9a   :  { %1840 = vmatpush.bf16.msra.mxu2 %v2432_v61  ;;  %v3491_v61 = vld [vmem:[%s5404_s1 + $0x3d4] sm:$0xf]  ;;  %v2549_v42 = vld [vmem:[%s5404_s1 + $0x218] sm:$0xf0]  ;;  %v2605_v57 = vld [vmem:[%s5404_s1 + $0x288] sm:$0xf0] }
  0x9b   :  { %1853 = vmatpush.bf16.msra.mxu3 %v2496_v4  ;;  %v3441_v4 = vld [vmem:[%s5404_s1 + $0x244] sm:$0xf]  ;;  %v3435_v41 = vld [vmem:[%s5404_s1 + $0x214] sm:$0xf]  ;;  %v2613_v45 = vld [vmem:[%s5404_s1 + $0x298] sm:$0xf0] }
  0x9c   :  { %1815 = vmatpush.bf16.msra.mxu0 %v2296_v10  ;;  %v2576_v10 = vor.u32 %v3441_v4, %v2573_v5  ;;  %v3451_v43 = vld [vmem:[%s5404_s1 + $0x294] sm:$0xf]  ;;  %v2677_v47 = vld [vmem:[%s5404_s1 + $0x318] sm:$0xf0]  ;;  %v3509_v17 = vld [vmem:[%s5404_s1 + $0x464] sm:$0xf] }
  0x9d   :  { %1828 = vmatpush.bf16.msra.mxu1 %v2360_v13  ;;  %v3439_v13 = vld [vmem:[%s5404_s1 + $0x234] sm:$0xf]  ;;  %v2741_v49 = vld [vmem:[%s5404_s1 + $0x398] sm:$0xf0]  ;;  %v2616_v54 = vor.u32 %v3451_v43, %v2613_v45  ;;  %v2909_v21 = vld [vmem:[%s5404_s1 + $0x4e8] sm:$0xf0] }
  0x9e   :  { %1841 = vmatpush.bf16.msra.mxu2 %v2424_v14  ;;  %v2565_v14 = vld [vmem:[%s5404_s1 + $0x238] sm:$0xf0]  ;;  %v3467_v46 = vld [vmem:[%s5404_s1 + $0x314] sm:$0xf] }
  0x9f   :  { %1854 = vmatpush.bf16.msra.mxu3 %v2488_v18  ;;  %v3471_v18 = vld [vmem:[%s5404_s1 + $0x334] sm:$0xf]  ;;  %v2568_v22 = vor.u32 %v3439_v13, %v2565_v14  ;;  %v2680_v55 = vor.u32 %v3467_v46, %v2677_v47  ;;  %v2853_v4 = vld [vmem:[%s5404_s1 + $0x478] sm:$0xf0] }
  0xa0   :  { %1816 = vmatpush.bf16.msra.mxu0 %v2288_v25  ;;  %v2696_v24 = vor.u32 %v3471_v18, %v2693_v19  ;;  %v3437_v25 = vld [vmem:[%s5404_s1 + $0x224] sm:$0xf]  ;;  %v3483_v48 = vld [vmem:[%s5404_s1 + $0x394] sm:$0xf]  ;;  %v2981_v6 = vld [vmem:[%s5404_s1 + $0x578] sm:$0xf0] }
  0xa1   :  { %1829 = vmatpush.bf16.msra.mxu1 %v2352_v32  ;;  %v2621_v32 = vld [vmem:[%s5404_s1 + $0x2a8] sm:$0xf0]  ;;  %v3527_v5 = vld [vmem:[%s5404_s1 + $0x4f4] sm:$0xf]  ;;  %v3525_v19 = vld [vmem:[%s5404_s1 + $0x4e4] sm:$0xf] }
  0xa2   :  { %1842 = vmatpush.bf16.msra.mxu2 %v2416_v33  ;;  %v3469_v33 = vld [vmem:[%s5404_s1 + $0x324] sm:$0xf]  ;;  %v3559_v9 = vld [vmem:[%s5404_s1 + $0x5f4] sm:$0xf]  ;;  %v2845_v18 = vld [vmem:[%s5404_s1 + $0x468] sm:$0xf0] }
  0xa3   :  { %1855 = vmatpush.bf16.msra.mxu3 %v2480_v37  ;;  %1817 = vmatmul.bf16.vlgmr.msra.gmra.mxu0 %v4040_v28  ;;  %v3457_v28 = vld [vmem:[%s5404_s1 + $0x2c4] sm:$0xf]  ;;  %v2749_v37 = vld [vmem:[%s5404_s1 + $0x3a8] sm:$0xf0] }
  0xa4   :  { %1861 = vmatpush.bf16.msrb.mxu0 %v2600_v38  ;;  %1830 = vmatmul.bf16.vlgmr.msra.gmra.mxu1 %v4050_v34  ;;  %v2637_v34 = vld [vmem:[%s5404_s1 + $0x2c8] sm:$0xf0]  ;;  %v2560_v38 = vor.u32 %v3437_v25, %v2557_v26  ;;  %v3557_v25 = vld [vmem:[%s5404_s1 + $0x5e4] sm:$0xf] }
  0xa5   :  { %1874 = vmatpush.bf16.msrb.mxu1 %v2664_v39  ;;  %1843 = vmatmul.bf16.vlgmr.msra.gmra.mxu2 %v4038_v27  ;;  %v2712_v27 = vor.u32 %v3475_v58, %v2709_v59  ;;  %v2640_v11 = vor.u32 %v3457_v28, %v2637_v34  ;;  %v2624_v39 = vor.u32 %v3453_v30, %v2621_v32  ;;  %v3465_v58 = vld [vmem:[%s5404_s1 + $0x304] sm:$0xf]  ;;  %v3543_v34 = vld [vmem:[%s5404_s1 + $0x574] sm:$0xf]  ;;  %v3037_v26 = vld [vmem:[%s5404_s1 + $0x5e8] sm:$0xf0] }
  0xa6   :  { %1887 = vmatpush.bf16.msrb.mxu2 %v2728_v40  ;;  %1856 = vmatmul.bf16.vlgmr.msra.gmra.mxu3 %v4042_v29  ;;  %v2776_v29 = vor.u32 %v3491_v61, %v2773_v62  ;;  %v2688_v40 = vor.u32 %v3469_v33, %v2685_v35  ;;  %v4888_v53 = vpop.f32.mrf.mxu0  ;;  %v2744_v61 = vor.u32 %v3483_v48, %v2741_v49  ;;  %v2669_v62 = vld [vmem:[%s5404_s1 + $0x308] sm:$0xf0]  ;;  %v3507_v35 = vld [vmem:[%s5404_s1 + $0x454] sm:$0xf]  ;;  %v3505_v48 = vld [vmem:[%s5404_s1 + $0x444] sm:$0xf] }
  0xa7   :  { %1900 = vmatpush.bf16.msrb.mxu3 %v2792_v44  ;;  %v2752_v44 = vor.u32 %v3485_v36, %v2749_v37  ;;  %v4899_v59 = vpop.f32.mrf.mxu1  ;;  %v2672_v8 = vor.u32 %v3465_v58, %v2669_v62  ;;  %v2912_v32 = vor.u32 %v3525_v19, %v2909_v21  ;;  %v2837_v36 = vld [vmem:[%s5404_s1 + $0x458] sm:$0xf0]  ;;  %v3523_v37 = vld [vmem:[%s5404_s1 + $0x4d4] sm:$0xf]  ;;  %v3005_v21 = vld [vmem:[%s5404_s1 + $0x5a8] sm:$0xf0] }
  0xa8   :  { %1862 = vmatpush.bf16.msrb.mxu0 %v2592_v50  ;;  %v2552_v50 = vor.u32 %v3435_v41, %v2549_v42  ;;  %v2965_v41 = vld [vmem:[%s5404_s1 + $0x558] sm:$0xf0]  ;;  %v3555_v42 = vld [vmem:[%s5404_s1 + $0x5d4] sm:$0xf] }
  0xa9   :  { %1875 = vmatpush.bf16.msrb.mxu1 %v2656_v51  ;;  %v3433_v51 = vld [vmem:[%s5404_s1 + $0x204] sm:$0xf]  ;;  %v2821_v62 = vld [vmem:[%s5404_s1 + $0x438] sm:$0xf0] }
  0xaa   :  { %1888 = vmatpush.bf16.msrb.mxu2 %v2720_v52  ;;  %v2541_v52 = vld [vmem:[%s5404_s1 + $0x208] sm:$0xf0] }
  0xab   :  { %1901 = vmatpush.bf16.msrb.mxu3 %v2784_v56  ;;  %v3449_v56 = vld [vmem:[%s5404_s1 + $0x284] sm:$0xf]  ;;  %v2544_v28 = vor.u32 %v3433_v51, %v2541_v52  ;;  %v4936_v14 = vpop.f32.mrf.mxu3  ;;  %v2957_v51 = vld [vmem:[%s5404_s1 + $0x548] sm:$0xf0] }
  0xac   :  { %1863 = vmatpush.bf16.msrb.mxu0 %v2584_v63  ;;  %v3481_v63 = vld [vmem:[%s5404_s1 + $0x384] sm:$0xf]  ;;  %v2608_v7 = vor.u32 %v3449_v56, %v2605_v57 }
  0xad   :  { %1876 = vmatpush.bf16.msrb.mxu1 %v2648_v3  ;;  %v2733_v3 = vld [vmem:[%s5404_s1 + $0x388] sm:$0xf0]  ;;  %v3553_v52 = vld [vmem:[%s5404_s1 + $0x5c4] sm:$0xf] }
  0xae   :  { %1889 = vmatpush.bf16.msrb.mxu2 %v2712_v27  ;;  %v3511_v27 = vld [vmem:[%s5404_s1 + $0x474] sm:$0xf] }
  0xaf   :  { %1902 = vmatpush.bf16.msrb.mxu3 %v2776_v29  ;;  %v2917_v29 = vld [vmem:[%s5404_s1 + $0x4f8] sm:$0xf0]  ;;  %v2856_v13 = vor.u32 %v3511_v27, %v2853_v4  ;;  %v1625_v30 = vpop.f32.mrf.mxu1 }
  0xb0   :  { %1864 = vmatpush.bf16.msrb.mxu0 %v2576_v10  ;;  %v3045_v10 = vld [vmem:[%s5404_s1 + $0x5f8] sm:$0xf0]  ;;  %v2920_v15 = vor.u32 %v3527_v5, %v2917_v29  ;;  %v3535_v5 = vld [vmem:[%s5404_s1 + $0x534] sm:$0xf] }
  0xb1   :  { %1877 = vmatpush.bf16.msrb.mxu1 %v2640_v11  ;;  %v4934_v11 = vpop.f32.mrf.mxu2  ;;  %v3048_v20 = vor.u32 %v3559_v9, %v3045_v10  ;;  %v2885_v4 = vld [vmem:[%s5404_s1 + $0x4b8] sm:$0xf0]  ;;  %v3551_v29 = vld [vmem:[%s5404_s1 + $0x5b4] sm:$0xf]  ;;  %v3501_v9 = vld [vmem:[%s5404_s1 + $0x424] sm:$0xf] }
  0xb2   :  { %1890 = vmatpush.bf16.msrb.mxu2 %v2704_v12  ;;  %v2736_v12 = vor.u32 %v3481_v63, %v2733_v3  ;;  %v3519_v63 = vld [vmem:[%s5404_s1 + $0x4b4] sm:$0xf]  ;;  %v2813_v10 = vld [vmem:[%s5404_s1 + $0x428] sm:$0xf0] }
  0xb3   :  { %1903 = vmatpush.bf16.msrb.mxu3 %v2768_v16  ;;  %v2984_v16 = vor.u32 %v3543_v34, %v2981_v6  ;;  %v1651_v45 = vpop.f32.mrf.mxu3  ;;  %v3013_v34 = vld [vmem:[%s5404_s1 + $0x5b8] sm:$0xf0]  ;;  %v3499_v30 = vld [vmem:[%s5404_s1 + $0x414] sm:$0xf] }
  0xb4   :  { %1865 = vmatpush.bf16.msrb.mxu0 %v2568_v22  ;;  %v3541_v22 = vld [vmem:[%s5404_s1 + $0x564] sm:$0xf] }
  0xb5   :  { %1878 = vmatpush.bf16.msrb.mxu1 %v2632_v23  ;;  %v2973_v23 = vld [vmem:[%s5404_s1 + $0x568] sm:$0xf0] }
  0xb6   :  { %1891 = vmatpush.bf16.msrb.mxu2 %v2696_v24  ;;  %v1612_v24 = vpop.f32.mrf.mxu0  ;;  %v2976_v33 = vor.u32 %v3541_v22, %v2973_v23  ;;  %v5073_v22 = vld [vmem:[%s5405_s2] sm:$0x3]  ;;  %v2816_v23 = vor.u32 %v3501_v9, %v2813_v10  ;;  %v3101_v9 = vld [vmem:[%s5404_s1 + $0x668] sm:$0xf0]  ;;  %v3589_v10 = vld [vmem:[%s5404_s1 + $0x6e4] sm:$0xf] }
  0xb7   :  { %1904 = vmatpush.bf16.msrb.mxu3 %v2760_v31  ;;  %v2848_v31 = vor.u32 %v3509_v17, %v2845_v18  ;;  %v3533_v17 = vld [vmem:[%s5404_s1 + $0x524] sm:$0xf]  ;;  %v2941_v18 = vld [vmem:[%s5404_s1 + $0x528] sm:$0xf0] }
  0xb8   :  { %1866 = vmatpush.bf16.msrb.mxu0 %v2560_v38  ;;  %v3040_v38 = vor.u32 %v3557_v25, %v3037_v26  ;;  %v2944_v26 = vor.u32 %v3533_v17, %v2941_v18  ;;  %v3621_v17 = vld [vmem:[%s5404_s1 + $0x7e4] sm:$0xf]  ;;  %v3293_v18 = vld [vmem:[%s5404_s1 + $0x7e8] sm:$0xf0] }
  0xb9   :  { %1879 = vmatpush.bf16.msrb.mxu1 %v2624_v39  ;;  %v2901_v39 = vld [vmem:[%s5404_s1 + $0x4d8] sm:$0xf0]  ;;  %v1638_v43 = vpop.f32.mrf.mxu2 }
  0xba   :  { %1892 = vmatpush.bf16.msrb.mxu2 %v2688_v40  ;;  %v3539_v40 = vld [vmem:[%s5404_s1 + $0x554] sm:$0xf]  ;;  %v2904_v46 = vor.u32 %v3523_v37, %v2901_v39  ;;  %v2797_v43 = vld [vmem:[%s5404_s1 + $0x408] sm:$0xf0] }
  0xbb   :  { %1905 = vmatpush.bf16.msrb.mxu3 %v2752_v44  ;;  %v2840_v44 = vor.u32 %v3507_v35, %v2837_v36  ;;  %v2968_v47 = vor.u32 %v3539_v40, %v2965_v41  ;;  %v2869_v36 = vld [vmem:[%s5404_s1 + $0x498] sm:$0xf0]  ;;  %v3531_v37 = vld [vmem:[%s5404_s1 + $0x514] sm:$0xf]  ;;  %v281_v41 = vperm.slane %v5073_v22, 0 }
  0xbc   :  { %1867 = vmatpush.bf16.msrb.mxu0 %v2552_v50  ;;  %v3537_v50 = vld [vmem:[%s5404_s1 + $0x544] sm:$0xf]  ;;  %v3547_v39 = vld [vmem:[%s5404_s1 + $0x594] sm:$0xf]  ;;  %v2997_v40 = vld [vmem:[%s5404_s1 + $0x598] sm:$0xf0] }
  0xbd   :  { %1880 = vmatpush.bf16.msrb.mxu1 %v2616_v54  ;;  %v3021_v54 = vld [vmem:[%s5404_s1 + $0x5c8] sm:$0xf0]  ;;  %v2960_v58 = vor.u32 %v3537_v50, %v2957_v51 }
  0xbe   :  { %1893 = vmatpush.bf16.msrb.mxu2 %v2680_v55  ;;  %v3024_v27 = vor.u32 %v3553_v52, %v3021_v54  ;;  %v2989_v50 = vld [vmem:[%s5404_s1 + $0x588] sm:$0xf0]  ;;  %v3575_v52 = vld [vmem:[%s5404_s1 + $0x674] sm:$0xf]  ;;  %v3109_v54 = vld [vmem:[%s5404_s1 + $0x678] sm:$0xf0] }
  0xbf   :  { %1906 = vmatpush.bf16.msrb.mxu3 %v2744_v61  ;;  %v3503_v61 = vld [vmem:[%s5404_s1 + $0x434] sm:$0xf] }
  0xc0   :  { %1868 = vmatpush.bf16.msrb.mxu0 %v2544_v28  ;;  %v5014_v56 = vpop.f32.mrf.mxu0  ;;  %v2949_v28 = vld [vmem:[%s5404_s1 + $0x538] sm:$0xf0]  ;;  %v2824_v6 = vor.u32 %v3503_v61, %v2821_v62  ;;  %v3607_v61 = vld [vmem:[%s5404_s1 + $0x774] sm:$0xf] }
  0xc1   :  { %1881 = vmatpush.bf16.msrb.mxu1 %v2608_v7  ;;  %v5025_v3 = vpop.f32.mrf.mxu1  ;;  %v2888_v7 = vor.u32 %v3519_v63, %v2885_v4  ;;  %v3237_v62 = vld [vmem:[%s5404_s1 + $0x778] sm:$0xf0]  ;;  %v3623_v4 = vld [vmem:[%s5404_s1 + $0x7f4] sm:$0xf] }
  0xc2   :  { %1894 = vmatpush.bf16.msrb.mxu2 %v2672_v8  ;;  %v2952_v8 = vor.u32 %v3535_v5, %v2949_v28  ;;  %v3301_v5 = vld [vmem:[%s5404_s1 + $0x7f8] sm:$0xf0] }
  0xc3   :  { %1907 = vmatpush.bf16.msrb.mxu3 %v2736_v12  ;;  %1869 = vmatmul.bf16.vlgmr.msrb.gmra.mxu0 %v4118_v0  ;;  %v2829_v0 = vld [vmem:[%s5404_s1 + $0x448] sm:$0xf0]  ;;  %v3517_v12 = vld [vmem:[%s5404_s1 + $0x4a4] sm:$0xf] }
  0xc4   :  { %1913 = vmatpush.bf16.msra.mxu0 %v2856_v13  ;;  %1882 = vmatmul.bf16.vlgmr.msrb.gmra.mxu1 %v4122_v2  ;;  %v2893_v2 = vld [vmem:[%s5404_s1 + $0x4c8] sm:$0xf0]  ;;  %v2832_v55 = vor.u32 %v3505_v48, %v2829_v0  ;;  %v3529_v48 = vld [vmem:[%s5404_s1 + $0x504] sm:$0xf] }
  0xc5   :  { %1926 = vmatpush.bf16.msra.mxu1 %v2920_v15  ;;  %1895 = vmatmul.bf16.vlgmr.msrb.gmra.mxu2 %v4113_v60  ;;  %v3029_v60 = vld [vmem:[%s5404_s1 + $0x5d8] sm:$0xf0]  ;;  %v3016_v15 = vor.u32 %v3551_v29, %v3013_v34  ;;  %v3112_v29 = vor.u32 %v3575_v52, %v3109_v54  ;;  %v1611_v34 = vadd.f32 %v4888_v53, %v281_v41  ;;  %v3165_v53 = vld [vmem:[%s5404_s1 + $0x6e8] sm:$0xf0] }
  0xc6   :  { %1939 = vmatpush.bf16.msra.mxu2 %v2984_v16  ;;  %1908 = vmatmul.bf16.vlgmr.msrb.gmra.mxu3 %v4120_v1  ;;  %v3521_v1 = vld [vmem:[%s5404_s1 + $0x4c4] sm:$0xf]  ;;  %v3032_v49 = vor.u32 %v3555_v42, %v3029_v60  ;;  %v2877_v16 = vld [vmem:[%s5404_s1 + $0x4a8] sm:$0xf0] }
  0xc7   :  { %1952 = vmatpush.bf16.msra.mxu3 %v3048_v20  ;;  %v2896_v57 = vor.u32 %v3521_v1, %v2893_v2  ;;  %v3549_v20 = vld [vmem:[%s5404_s1 + $0x5a4] sm:$0xf]  ;;  %v2880_v25 = vor.u32 %v3517_v12, %v2877_v16  ;;  %v3000_v1 = vor.u32 %v3547_v39, %v2997_v40  ;;  %v3304_v12 = vor.u32 %v3623_v4, %v3301_v5  ;;  %v3229_v16 = vld [vmem:[%s5404_s1 + $0x768] sm:$0xf0]  ;;  %v3285_v39 = vld [vmem:[%s5404_s1 + $0x7d8] sm:$0xf0] }
  0xc8   :  { %1914 = vmatpush.bf16.msra.mxu0 %v2848_v31  ;;  %v5051_v13 = vpop.f32.mrf.mxu2  ;;  %v1664_v24 = vpop.f32.mrf.mxu0  ;;  %v2805_v31 = vld [vmem:[%s5404_s1 + $0x418] sm:$0xf0]  ;;  %v3008_v35 = vor.u32 %v3549_v20, %v3005_v21  ;;  %v3497_v60 = vld [vmem:[%s5404_s1 + $0x404] sm:$0xf]  ;;  %v1624_v21 = vadd.f32 %v4899_v59, %v1611_v34  ;;  %v3296_v59 = vor.u32 %v3621_v17, %v3293_v18  ;;  %v3615_v4 = vld [vmem:[%s5404_s1 + $0x7b4] sm:$0xf] }
  0xc9   :  { %1927 = vmatpush.bf16.msra.mxu1 %v2912_v32  ;;  %v5062_v19 = vpop.f32.mrf.mxu3  ;;  %v3515_v32 = vld [vmem:[%s5404_s1 + $0x494] sm:$0xf]  ;;  %v2808_v42 = vor.u32 %v3499_v30, %v2805_v31  ;;  %v3545_v2 = vld [vmem:[%s5404_s1 + $0x584] sm:$0xf]  ;;  %v3657_v40 = vld [vmem:[#allocation1 + $0x1b] sm:$0xff] }
  0xca   :  { %1940 = vmatpush.bf16.msra.mxu2 %v2976_v33  ;;  %v1677_v33 = vpop.f32.mrf.mxu1  ;;  %v2992_v28 = vor.u32 %v3545_v2, %v2989_v50  ;;  %v3587_v30 = vld [vmem:[%s5404_s1 + $0x6d4] sm:$0xf]  ;;  %v3654_v31 = vld [vmem:[#allocation1] sm:$0xff]  ;;  %v3277_v2 = vld [vmem:[%s5404_s1 + $0x7c8] sm:$0xf0] }
  0xcb   :  { %1953 = vmatpush.bf16.msra.mxu3 %v3040_v38  ;;  %v2933_v38 = vld [vmem:[%s5404_s1 + $0x518] sm:$0xf0]  ;;  %v3603_v33 = vld [vmem:[%s5404_s1 + $0x754] sm:$0xf]  ;;  %v3613_v17 = vld [vmem:[%s5404_s1 + $0x7a4] sm:$0xf] }
  0xcc   :  { %1915 = vmatpush.bf16.msra.mxu0 %v2840_v44  ;;  %v2872_v44 = vor.u32 %v3515_v32, %v2869_v36  ;;  %v2936_v45 = vor.u32 %v3531_v37, %v2933_v38  ;;  %v3157_v32 = vld [vmem:[%s5404_s1 + $0x6d8] sm:$0xf0]  ;;  %v3655_v36 = vld [vmem:[#allocation1 + $0x12] sm:$0xff]  ;;  %v3656_v37 = vld [vmem:[#allocation1 + $0x9] sm:$0xff] }
  0xcd   :  { %1928 = vmatpush.bf16.msra.mxu1 %v2904_v46  ;;  %v3513_v46 = vld [vmem:[%s5404_s1 + $0x484] sm:$0xf]  ;;  %v3619_v38 = vld [vmem:[%s5404_s1 + $0x7d4] sm:$0xf]  ;;  %v3269_v5 = vld [vmem:[%s5404_s1 + $0x7b8] sm:$0xf0] }
  0xce   :  { %1941 = vmatpush.bf16.msra.mxu2 %v2968_v47  ;;  %v2861_v47 = vld [vmem:[%s5404_s1 + $0x488] sm:$0xf0] }
  0xcf   :  { %1954 = vmatpush.bf16.msra.mxu3 %v3032_v49  ;;  %v2925_v49 = vld [vmem:[%s5404_s1 + $0x508] sm:$0xf0]  ;;  %v2864_v63 = vor.u32 %v3513_v46, %v2861_v47  ;;  %v3585_v46 = vld [vmem:[%s5404_s1 + $0x6c4] sm:$0xf]  ;;  %v3288_v47 = vor.u32 %v3619_v38, %v3285_v39 }
  0xd0   :  { %1916 = vmatpush.bf16.msra.mxu0 %v2832_v55  ;;  %v1690_v0 = vpop.f32.mrf.mxu2  ;;  %v3591_v55 = vld [vmem:[%s5404_s1 + $0x6f4] sm:$0xf]  ;;  %v3261_v18 = vld [vmem:[%s5404_s1 + $0x7a8] sm:$0xf0] }
  0xd1   :  { %1929 = vmatpush.bf16.msra.mxu1 %v2896_v57  ;;  %v1703_v51 = vpop.f32.mrf.mxu3  ;;  %v2800_v57 = vor.u32 %v3497_v60, %v2797_v43  ;;  %v3160_v60 = vor.u32 %v3587_v30, %v3157_v32  ;;  %v3213_v0 = vld [vmem:[%s5404_s1 + $0x748] sm:$0xf0]  ;;  %v3563_v30 = vld [vmem:[%s5404_s1 + $0x614] sm:$0xf]  ;;  %v3264_v32 = vor.u32 %v3613_v17, %v3261_v18 }
  0xd2   :  { %1942 = vmatpush.bf16.msra.mxu2 %v2960_v58  ;;  %v3173_v58 = vld [vmem:[%s5404_s1 + $0x6f8] sm:$0xf0]  ;;  %v3631_v18 = vld [vmem:[%s5406_s3 + $0x30] sm:$0xff] }
  0xd3   :  { %1955 = vmatpush.bf16.msra.mxu3 %v3024_v27  ;;  %v2928_v27 = vor.u32 %v3529_v48, %v2925_v49  ;;  %v3601_v48 = vld [vmem:[%s5404_s1 + $0x744] sm:$0xf] }
  0xd4   :  { %1917 = vmatpush.bf16.msra.mxu0 %v2824_v6  ;;  %v3176_v6 = vor.u32 %v3591_v55, %v3173_v58  ;;  %v3617_v49 = vld [vmem:[%s5404_s1 + $0x7c4] sm:$0xf]  ;;  %v3216_v55 = vor.u32 %v3601_v48, %v3213_v0  ;;  %v3077_v58 = vld [vmem:[%s5404_s1 + $0x638] sm:$0xf0]  ;;  %v3245_v48 = vld [vmem:[%s5404_s1 + $0x788] sm:$0xf0] }
  0xd5   :  { %1930 = vmatpush.bf16.msra.mxu1 %v2888_v7  ;;  %v3240_v7 = vor.u32 %v3607_v61, %v3237_v62  ;;  %v3583_v61 = vld [vmem:[%s5404_s1 + $0x6b4] sm:$0xf]  ;;  %v3280_v62 = vor.u32 %v3617_v49, %v3277_v2 }
  0xd6   :  { %1943 = vmatpush.bf16.msra.mxu2 %v2952_v8  ;;  %v3573_v8 = vld [vmem:[%s5404_s1 + $0x664] sm:$0xf] }
  0xd7   :  { %1956 = vmatpush.bf16.msra.mxu3 %v3016_v15  ;;  %v3605_v15 = vld [vmem:[%s5404_s1 + $0x764] sm:$0xf]  ;;  %v3104_v20 = vor.u32 %v3573_v8, %v3101_v9  ;;  %v3069_v8 = vld [vmem:[%s5404_s1 + $0x628] sm:$0xf0] }
  0xd8   :  { %1918 = vmatpush.bf16.msra.mxu0 %v2816_v23  ;;  %v3168_v23 = vor.u32 %v3589_v10, %v3165_v53  ;;  %v3232_v24 = vor.u32 %v3605_v15, %v3229_v16  ;;  %v3581_v9 = vld [vmem:[%s5404_s1 + $0x6a4] sm:$0xf]  ;;  %v3272_v10 = vor.u32 %v3615_v4, %v3269_v5  ;;  %v3197_v15 = vld [vmem:[%s5404_s1 + $0x728] sm:$0xf0] }
  0xd9   :  { %1931 = vmatpush.bf16.msra.mxu1 %v2880_v25  ;;  %v3571_v25 = vld [vmem:[%s5404_s1 + $0x654] sm:$0xf]  ;;  %v3597_v53 = vld [vmem:[%s5404_s1 + $0x724] sm:$0xf] }
  0xda   :  { %1944 = vmatpush.bf16.msra.mxu2 %v2944_v26  ;;  %v3093_v26 = vld [vmem:[%s5404_s1 + $0x658] sm:$0xf0] }
  0xdb   :  { %1957 = vmatpush.bf16.msra.mxu3 %v3008_v35  ;;  %v3221_v35 = vld [vmem:[%s5404_s1 + $0x758] sm:$0xf0]  ;;  %v3096_v41 = vor.u32 %v3571_v25, %v3093_v26  ;;  %v3200_v26 = vor.u32 %v3597_v53, %v3197_v15 }
  0xdc   :  { %1919 = vmatpush.bf16.msra.mxu0 %v2808_v42  ;;  %v1637_v42 = vadd.f32 %v4934_v11, %v1624_v21  ;;  %v3224_v43 = vor.u32 %v3603_v33, %v3221_v35  ;;  %v3149_v11 = vld [vmem:[%s5404_s1 + $0x6c8] sm:$0xf0]  ;;  %v3595_v33 = vld [vmem:[%s5404_s1 + $0x714] sm:$0xf]  ;;  %v3189_v35 = vld [vmem:[%s5404_s1 + $0x718] sm:$0xf0] }
  0xdd   :  { %1932 = vmatpush.bf16.msra.mxu1 %v2872_v44  ;;  %v3569_v44 = vld [vmem:[%s5404_s1 + $0x644] sm:$0xf]  ;;  %v3152_v54 = vor.u32 %v3585_v46, %v3149_v11  ;;  %v3181_v46 = vld [vmem:[%s5404_s1 + $0x708] sm:$0xf0] }
  0xde   :  { %1945 = vmatpush.bf16.msra.mxu2 %v2936_v45  ;;  %v3085_v45 = vld [vmem:[%s5404_s1 + $0x648] sm:$0xf0]  ;;  %v1650_v52 = vadd.f32 %v4936_v14, %v1637_v42  ;;  %v3141_v14 = vld [vmem:[%s5404_s1 + $0x6b8] sm:$0xf0]  ;;  %v3561_v42 = vld [vmem:[%s5404_s1 + $0x604] sm:$0xf] }
  0xdf   :  { %1958 = vmatpush.bf16.msra.mxu3 %v3000_v1  ;;  %v3088_v50 = vor.u32 %v3569_v44, %v3085_v45  ;;  %v3144_v34 = vor.u32 %v3583_v61, %v3141_v14  ;;  %v3593_v45 = vld [vmem:[%s5404_s1 + $0x704] sm:$0xf]  ;;  %v3659_v61 = vld [vmem:[#allocation1 + $0x2d] sm:$0xff] }
  0xe0   :  { %1920 = vmatpush.bf16.msra.mxu0 %v2800_v57  ;;  %v5217_v1 = vpop.f32.mrf.mxu0  ;;  %v3567_v57 = vld [vmem:[%s5404_s1 + $0x634] sm:$0xf]  ;;  %v3609_v11 = vld [vmem:[%s5404_s1 + $0x784] sm:$0xf] }
  0xe1   :  { %1933 = vmatpush.bf16.msra.mxu1 %v2864_v63  ;;  %v5225_v51 = vpop.f32.mrf.mxu1  ;;  %v3599_v63 = vld [vmem:[%s5404_s1 + $0x734] sm:$0xf]  ;;  %v3661_v14 = vld [vmem:[#allocation1 + $0x3f] sm:$0xff] }
  0xe2   :  { %1946 = vmatpush.bf16.msra.mxu2 %v2928_v27  ;;  %v3205_v27 = vld [vmem:[%s5404_s1 + $0x738] sm:$0xf0] }
  0xe3   :  { %1959 = vmatpush.bf16.msra.mxu3 %v2992_v28  ;;  %1921 = vmatmul.bf16.vlgmr.msra.gmra.mxu0 %v3654_v31  ;;  %v3080_v28 = vor.u32 %v3567_v57, %v3077_v58  ;;  %v3061_v31 = vld [vmem:[%s5404_s1 + $0x618] sm:$0xf0]  ;;  %v3658_v58 = vld [vmem:[#allocation1 + $0x24] sm:$0xff] }
  0xe4   :  { %1965 = vmatpush.bf16.msrb.mxu0 %v3112_v29  ;;  %1934 = vmatmul.bf16.vlgmr.msra.gmra.mxu1 %v3656_v37  ;;  %v1663_v29 = vadd.f32 %v5014_v56, %v1650_v52  ;;  %v3133_v56 = vld [vmem:[%s5404_s1 + $0x6a8] sm:$0xf0]  ;;  %v3253_v37 = vld [vmem:[%s5404_s1 + $0x798] sm:$0xf0]  ;;  %v3064_v38 = vor.u32 %v3563_v30, %v3061_v31  ;;  %v3184_v52 = vor.u32 %v3593_v45, %v3181_v46 }
  0xe5   :  { %1978 = vmatpush.bf16.msrb.mxu1 %v3176_v6  ;;  %1947 = vmatmul.bf16.vlgmr.msra.gmra.mxu2 %v3655_v36  ;;  %v3208_v6 = vor.u32 %v3599_v63, %v3205_v27  ;;  %v3136_v25 = vor.u32 %v3581_v9, %v3133_v56  ;;  %v3611_v36 = vld [vmem:[%s5404_s1 + $0x794] sm:$0xf]  ;;  %v3688_v63 = vmov 2.0  }
  0xe6   :  { %1991 = vmatpush.bf16.msrb.mxu2 %v3240_v7  ;;  %1960 = vmatmul.bf16.vlgmr.msra.gmra.mxu3 %v3657_v40  ;;  %v3565_v7 = vld [vmem:[%s5404_s1 + $0x624] sm:$0xf]  ;;  %v3256_v44 = vor.u32 %v3611_v36, %v3253_v37  ;;  %3644 = vrcp.f32 %v3688_v63  ;;  %v282_v37 = vperm.slane %v5073_v22, 1 }
  0xe7   :  { %2004 = vmatpush.bf16.msrb.mxu3 %v3304_v12  ;;  %v3072_v21 = vor.u32 %v3565_v7, %v3069_v8 }
  0xe8   :  { %1966 = vmatpush.bf16.msrb.mxu0 %v3104_v20  ;;  %v5262_v12 = vpop.f32.mrf.mxu2  ;;  %v1716_v20 = vpop.f32.mrf.mxu0 }
  0xe9   :  { %1979 = vmatpush.bf16.msrb.mxu1 %v3168_v23  ;;  %v5273_v16 = vpop.f32.mrf.mxu3  ;;  %v1729_v23 = vpop.f32.mrf.mxu1 }
  0xea   :  { %1992 = vmatpush.bf16.msrb.mxu2 %v3232_v24  ;;  %v1676_v24 = vadd.f32 %v5025_v3, %v1663_v29  ;;  %v3125_v3 = vld [vmem:[%s5404_s1 + $0x698] sm:$0xf0] }
  0xeb   :  { %2005 = vmatpush.bf16.msrb.mxu3 %v3296_v59  ;;  %v3579_v59 = vld [vmem:[%s5404_s1 + $0x694] sm:$0xf] }
  0xec   :  { %1967 = vmatpush.bf16.msrb.mxu0 %v3096_v41  ;;  %v1689_v39 = vadd.f32 %v5051_v13, %v1676_v24  ;;  %v3128_v40 = vor.u32 %v3579_v59, %v3125_v3  ;;  %v3192_v41 = vor.u32 %v3595_v33, %v3189_v35  ;;  %v3117_v13 = vld [vmem:[%s5404_s1 + $0x688] sm:$0xf0]  ;;  %v3629_v59 = vld [vmem:[%s5406_s3 + $0x20] sm:$0xff]  ;;  %v3628_v35 = vld [vmem:[%s5406_s3 + $0x18] sm:$0xff] }
  0xed   :  { %1980 = vmatpush.bf16.msrb.mxu1 %v3160_v60  ;;  %v3053_v60 = vld [vmem:[%s5404_s1 + $0x608] sm:$0xf0] }
  0xee   :  { %1993 = vmatpush.bf16.msrb.mxu2 %v3224_v43  ;;  %v3577_v43 = vld [vmem:[%s5404_s1 + $0x684] sm:$0xf]  ;;  %v3056_v49 = vor.u32 %v3561_v42, %v3053_v60  ;;  %v1702_v2 = vadd.f32 %v5062_v19, %v1689_v39 }
  0xef   :  { %2006 = vmatpush.bf16.msrb.mxu3 %v3288_v47 }
  0xf0   :  { %1968 = vmatpush.bf16.msrb.mxu0 %v3088_v50  ;;  %v1742_v47 = vpop.f32.mrf.mxu2  ;;  %v3120_v50 = vor.u32 %v3577_v43, %v3117_v13  ;;  %v3626_v13 = vld [vmem:[%s5406_s3 + $0x8] sm:$0xff] }
  0xf1   :  { %1981 = vmatpush.bf16.msrb.mxu1 %v3152_v54  ;;  %v1755_v0 = vpop.f32.mrf.mxu3  ;;  %v3248_v54 = vor.u32 %v3609_v11, %v3245_v48  ;;  %v3625_v48 = vld [vmem:[%s5406_s3] sm:$0xff] }
  0xf2   :  { %1994 = vmatpush.bf16.msrb.mxu2 %v3216_v55  ;;  %v1715_v55 = vadd.f32 %v5217_v1, %v1702_v2 }
  0xf3   :  { %2007 = vmatpush.bf16.msrb.mxu3 %v3280_v62  ;;  %v3660_v62 = vld [vmem:[#allocation1 + $0x36] sm:$0xff] }
  0xf4   :  { %1969 = vmatpush.bf16.msrb.mxu0 %v3080_v28  ;;  %v1728_v57 = vadd.f32 %v5225_v51, %v1715_v55  ;;  %v3645_v28 = vpop.eup %3644 }
  0xf5   :  { %1982 = vmatpush.bf16.msrb.mxu1 %v3144_v34  ;;  %v2035_v7 = vmul.f32 2.0, %v3645_v28  ;;  %vm2039_vm1 = vweird.f32 %v3645_v28 }
  0xf6   :  { %1995 = vmatpush.bf16.msrb.mxu2 %v3208_v6  ;;  %v1741_v19 = vadd.f32 %v5262_v12, %v1728_v57  ;;  %v3632_v12 = vld [vmem:[%s5406_s3 + $0x38] sm:$0xff] }
  0xf7   :  { %2008 = vmatpush.bf16.msrb.mxu3 %v3272_v10  ;;  %v2036_v53 = vsub.f32 1.0, %v2035_v7 }
  0xf8   :  { %1970 = vmatpush.bf16.msrb.mxu0 %v3072_v21  ;;  %v1754_v1 = vadd.f32 %v5273_v16, %v1741_v19 }
  0xf9   :  { %1983 = vmatpush.bf16.msrb.mxu1 %v3136_v25  ;;  %v2037_v20 = vmul.f32 %v3645_v28, %v2036_v53  ;;  %v3630_v25 = vld [vmem:[%s5406_s3 + $0x28] sm:$0xff] }
  0xfa   :  { %1996 = vmatpush.bf16.msrb.mxu2 %v3200_v26 }
  0xfb   :  { %2009 = vmatpush.bf16.msrb.mxu3 %v3264_v32  ;;  %v2038_v26 = vadd.f32 %v3645_v28, %v2037_v20 }
  0xfc   :  { %1971 = vmatpush.bf16.msrb.mxu0 %v3064_v38 }
  0xfd   :  { %1984 = vmatpush.bf16.msrb.mxu1 %v3128_v40  ;;  %v5349_v32 = vsel %vm2039_vm1, %v3645_v28, %v2038_v26  ;;  %v3627_v40 = vld [vmem:[%s5406_s3 + $0x10] sm:$0xff] }
  0xfe   :  { %1997 = vmatpush.bf16.msrb.mxu2 %v3192_v41 }
  0xff   :  { %2010 = vmatpush.bf16.msrb.mxu3 %v3256_v44 }
 0x100   :  { %1972 = vmatpush.bf16.msrb.mxu0 %v3056_v49  ;;  %v1766_v27 = vpop.f32.mrf.mxu0 }
 0x101   :  { %1985 = vmatpush.bf16.msrb.mxu1 %v3120_v50  ;;  %v1779_v4 = vpop.f32.mrf.mxu1  ;;  %v1767_v5 = vadd.f32 %v1766_v27, %v1754_v1 }
 0x102   :  { %1998 = vmatpush.bf16.msrb.mxu2 %v3184_v52 }
 0x103   :  { %2011 = vmatpush.bf16.msrb.mxu3 %v3248_v54  ;;  %1973 = vmatmul.bf16.vlgmr.msrb.gmra.mxu0 %v3658_v58  ;;  %v1780_v29 = vadd.f32 %v1779_v4, %v1767_v5 }
 0x104   :  { %1986 = vmatmul.bf16.vlgmr.msrb.gmra.mxu1 %v3659_v61  ;;  %2221 = vmatpush.bf16.msra.mxu0 %v3632_v12 }
 0x105   :  { %1999 = vmatmul.bf16.vlgmr.msrb.gmra.mxu2 %v3660_v62 }
 0x106   :  { %2012 = vmatmul.bf16.vlgmr.msrb.gmra.mxu3 %v3661_v14 }
 0x108   :  { %v1792_v51 = vpop.f32.mrf.mxu2  ;;  %v1768_v8 = vpop.f32.mrf.mxu0  ;;  %2222 = vmatpush.bf16.msra.mxu0 %v3631_v18 }
 0x109   :  { %v1793_v34 = vadd.f32 %v1792_v51, %v1780_v29  ;;  %v1805_v6 = vpop.f32.mrf.mxu3  ;;  %v1781_v9 = vpop.f32.mrf.mxu1 }
 0x10b   :  { %v1806_v10 = vadd.f32 %v1805_v6, %v1793_v34 }
 0x10c   :  { %2223 = vmatpush.bf16.msra.mxu0 %v3630_v25 }
 0x10d   :  { %v2017_v56 = vmax.f32 %v1806_v10, 0.0 }
 0x10f   :  { %v2020_v15 = vsel %vm2019_vm0, %v2017_v56, 0.0 }
 0x110   :  { %v2021_v16 = vrot.slane %v2020_v15, 4  ;;  %v1794_v17 = vpop.f32.mrf.mxu2  ;;  %2224 = vmatpush.bf16.msra.mxu0 %v3629_v59 }
 0x111   :  { %v1807_v21 = vpop.f32.mrf.mxu3 }
 0x112   :  { %v2022_v23 = vadd.f32 %v2021_v16, %v2020_v15 }
 0x114   :  { %v2023_v24 = vrot.slane %v2022_v23, 2  ;;  %2225 = vmatpush.bf16.msra.mxu0 %v3628_v35 }
 0x116   :  { %v2024_v30 = vadd.f32 %v2023_v24, %v2022_v23 }
 0x118   :  { %v2025_v31 = vrot.slane %v2024_v30, 1  ;;  %2226 = vmatpush.bf16.msra.mxu0 %v3627_v40 }
 0x11a   :  { %v2026_v3 = vadd.f32 %v2025_v31, %v2024_v30 }
 0x11c   :  { %v2041_v33 = vmul.f32 %v5349_v32, %v2026_v3  ;;  %2227 = vmatpush.bf16.msra.mxu0 %v3626_v13 }
 0x11e   :  { %v2043_v36 = vsub.f32 %v2017_v56, %v2041_v33 }
 0x120   :  { %v2045_v38 = vmul.f32 %v2043_v36, %v2043_v36  ;;  %v1818_v39 = vpop.f32.mrf.mxu0  ;;  %2228 = vmatpush.bf16.msra.mxu0 %v3625_v48 }
 0x121   :  { %v1819_v41 = vadd.f32 %v1818_v39, %v282_v37  ;;  %v1831_v42 = vpop.f32.mrf.mxu1 }
 0x122   :  { %v2047_v60 = vsel %vm2019_vm0, %v2045_v38, 0.0 }
 0x123   :  { %v2048_v43 = vrot.slane %v2047_v60, 4  ;;  %v1832_v44 = vadd.f32 %v1831_v42, %v1819_v41  ;;  %v3640_v41 = vld [vmem:[%s5406_s3 + $0x78] sm:$0xff] }
 0x124   :  { %2234 = vmatpush.bf16.msra.mxu1 %v3640_v41 }
 0x125   :  { %v2049_v45 = vadd.f32 %v2048_v43, %v2047_v60 }
 0x127   :  { %v2050_v11 = vrot.slane %v2049_v45, 2 }
 0x128   :  { %v1844_v46 = vpop.f32.mrf.mxu2  ;;  %v1820_v49 = vpop.f32.mrf.mxu0 }
 0x129   :  { %v1845_v22 = vadd.f32 %v1844_v46, %v1832_v44  ;;  %v1857_v47 = vpop.f32.mrf.mxu3  ;;  %v2051_v2 = vadd.f32 %v2050_v11, %v2049_v45  ;;  %v1833_v50 = vpop.f32.mrf.mxu1  ;;  %v3639_v44 = vld [vmem:[%s5406_s3 + $0x70] sm:$0xff] }
 0x12a   :  { %2235 = vmatpush.bf16.msra.mxu1 %v3639_v44  ;;  %v3636_v50 = vld [vmem:[%s5406_s3 + $0x58] sm:$0xff] }
 0x12b   :  { %v1858_v0 = vadd.f32 %v1857_v47, %v1845_v22  ;;  %v2052_v52 = vrot.slane %v2051_v2, 1  ;;  %v3638_v47 = vld [vmem:[%s5406_s3 + $0x68] sm:$0xff] }
 0x12d   :  { %v2053_v54 = vadd.f32 %v2052_v52, %v2051_v2 }
 0x12e   :  { %2236 = vmatpush.bf16.msra.mxu1 %v3638_v47 }
 0x12f   :  { %v2061_v58 = vmul.f32 %v2053_v54, %v5349_v32 }
 0x130   :  { %v1846_v55 = vpop.f32.mrf.mxu2 }
 0x131   :  { %v1859_v57 = vpop.f32.mrf.mxu3  ;;  %v2063_v61 = vadd.f32 1e-05, %v2061_v58  ;;  %v3635_v55 = vld [vmem:[%s5406_s3 + $0x50] sm:$0xff] }
 0x133   :  { %3646 = vrsqrt.f32 %v2063_v61  ;;  %vm2071_vm3 = vweird.f32 %v2063_v61 }
 0x139   :  { %v3647_v62 = vpop.eup %3646 }
 0x13a   :  { %v2066_v19 = vmul.f32 %v3647_v62, %v2063_v61  ;;  %vm2072_vm2 = vweird.f32 %v3647_v62  ;;  %v3634_v61 = vld [vmem:[%s5406_s3 + $0x48] sm:$0xff] }
 0x13b   :  { %vm2073_vm4 = vmor %vm2071_vm3, %vm2072_vm2 }
 0x13c   :  { %v2067_v14 = vmul.f32 %v3647_v62, %v2066_v19 }
 0x13e   :  { %v2068_v63 = vmul.f32 0.5, %v2067_v14 }
 0x140   :  { %v1870_v1 = vpop.f32.mrf.mxu0  ;;  %v2069_v4 = vsub.f32 1.5, %v2068_v63  ;;  %v3633_v63 = vld [vmem:[%s5406_s3 + $0x40] sm:$0xff] }
 0x141   :  { %v1883_v27 = vpop.f32.mrf.mxu1  ;;  %v1871_v53 = vadd.f32 %v1870_v1, %v1858_v0  ;;  %v3637_v0 = vld [vmem:[%s5406_s3 + $0x60] sm:$0xff] }
 0x142   :  { %v2070_v5 = vmul.f32 %v3647_v62, %v2069_v4  ;;  %2237 = vmatpush.bf16.msra.mxu1 %v3637_v0 }
 0x143   :  { %v1884_v18 = vadd.f32 %v1883_v27, %v1871_v53 }
 0x144   :  { %v2074_v29 = vsel %vm2073_vm4, %v3647_v62, %v2070_v5 }
 0x145   :  { %v2085_v34 = vmul.f32 %v2074_v29, %v2043_v36 }
 0x146   :  { %2238 = vmatpush.bf16.msra.mxu1 %v3636_v50 }
 0x147   :  { %v2087_v7 = vpack.c.bf16 %v2085_v34, %v2085_v34 }
 0x148   :  { %v1896_v28 = vpop.f32.mrf.mxu2  ;;  %v1872_v6 = vpop.f32.mrf.mxu0 }
 0x149   :  { %v1909_v51 = vpop.f32.mrf.mxu3  ;;  %v1885_v8 = vpop.f32.mrf.mxu1  ;;  %2229 = vmatmul.bf16.vlgmr.msra.gmra.mxu0 %v2087_v7  ;;  %v1897_v21 = vadd.f32 %v1896_v28, %v1884_v18 }
 0x14a   :  { %2239 = vmatpush.bf16.msra.mxu1 %v3635_v55 }
 0x14b   :  { %v1910_v25 = vadd.f32 %v1909_v51, %v1897_v21 }
 0x14e   :  { %2240 = vmatpush.bf16.msra.mxu1 %v3634_v61 }
 0x150   :  { %v1898_v9 = vpop.f32.mrf.mxu2 }
 0x151   :  { %v1911_v10 = vpop.f32.mrf.mxu3 }
 0x152   :  { %2241 = vmatpush.bf16.msra.mxu1 %v3633_v63 }
 0x160   :  { %v1922_v12 = vpop.f32.mrf.mxu0 }
 0x161   :  { %v1935_v56 = vpop.f32.mrf.mxu1  ;;  %v1923_v26 = vadd.f32 %v1922_v12, %v1910_v25 }
 0x163   :  { %v1936_v30 = vadd.f32 %v1935_v56, %v1923_v26 }
 0x168   :  { %v1948_v15 = vpop.f32.mrf.mxu2  ;;  %v1924_v17 = vpop.f32.mrf.mxu0 }
 0x169   :  { %v1961_v16 = vpop.f32.mrf.mxu3  ;;  %v1937_v20 = vpop.f32.mrf.mxu1  ;;  %v1949_v31 = vadd.f32 %v1948_v15, %v1936_v30 }
 0x16b   :  { %v1962_v59 = vadd.f32 %v1961_v16, %v1949_v31  ;;  %v2247_v16 = vlaneseq }
 0x16d   :  { %v2248_v17 = vand.u32 127, %v2247_v16 }
 0x16f   :  { %vm2249_vm8 = vcmp.lt.s32.totalorder %v2248_v17, 10 }
 0x170   :  { %v1950_v23 = vpop.f32.mrf.mxu2 }
 0x171   :  { %v1963_v24 = vpop.f32.mrf.mxu3 }
 0x180   :  { %v1974_v3 = vpop.f32.mrf.mxu0 }
 0x181   :  { %v1987_v33 = vpop.f32.mrf.mxu1  ;;  %v1975_v35 = vadd.f32 %v1974_v3, %v1962_v59 }
 0x183   :  { %v1988_v36 = vadd.f32 %v1987_v33, %v1975_v35 }
 0x188   :  { %v2000_v37 = vpop.f32.mrf.mxu2  ;;  %v1976_v40 = vpop.f32.mrf.mxu0 }
 0x189   :  { %v2001_v38 = vadd.f32 %v2000_v37, %v1988_v36  ;;  %v2013_v39 = vpop.f32.mrf.mxu3  ;;  %v1989_v42 = vpop.f32.mrf.mxu1 }
 0x18b   :  { %v2014_v60 = vadd.f32 %v2013_v39, %v2001_v38 }
 0x18d   :  { %v2018_v43 = vmax.f32 %v2014_v60, 0.0 }
 0x18f   :  { %v2027_v13 = vsel %vm2019_vm0, %v2018_v43, 0.0 }
 0x190   :  { %v2028_v45 = vrot.slane %v2027_v13, 4  ;;  %v2002_v46 = vpop.f32.mrf.mxu2 }
 0x191   :  { %v2015_v22 = vpop.f32.mrf.mxu3 }
 0x192   :  { %v2029_v11 = vadd.f32 %v2028_v45, %v2027_v13 }
 0x194   :  { %v2030_v48 = vrot.slane %v2029_v11, 2 }
 0x196   :  { %v2031_v49 = vadd.f32 %v2030_v48, %v2029_v11 }
 0x198   :  { %v2032_v2 = vrot.slane %v2031_v49, 1 }
 0x19a   :  { %v2033_v52 = vadd.f32 %v2032_v2, %v2031_v49 }
 0x19c   :  { %v2042_v54 = vmul.f32 %v5349_v32, %v2033_v52 }
 0x19e   :  { %v2044_v57 = vsub.f32 %v2018_v43, %v2042_v54 }
 0x1a0   :  { %v2046_v58 = vmul.f32 %v2044_v57, %v2044_v57 }
 0x1a2   :  { %v2054_v62 = vsel %vm2019_vm0, %v2046_v58, 0.0 }
 0x1a3   :  { %v2055_v19 = vrot.slane %v2054_v62, 4 }
 0x1a5   :  { %v2056_v14 = vadd.f32 %v2055_v19, %v2054_v62 }
 0x1a7   :  { %v2057_v1 = vrot.slane %v2056_v14, 2 }
 0x1a9   :  { %v2058_v27 = vadd.f32 %v2057_v1, %v2056_v14 }
 0x1ab   :  { %v2059_v4 = vrot.slane %v2058_v27, 1 }
 0x1ad   :  { %v2060_v5 = vadd.f32 %v2059_v4, %v2058_v27 }
 0x1af   :  { %v2062_v28 = vmul.f32 %v2060_v5, %v5349_v32  ;;  %v3643_v32 = vld [vmem:[%s5407_s4] ss:$0 sm:$0xff]  ;;  %s3689_s4 = smov [#allocation2]  }
 0x1b0   :  { %s2270_s16 = sshll.u32 %s3689_s4, 4  ;;  %s2271_s16 = int_to_ptr.vmem [resolvable:$true] %s2270_s16 }
 0x1b1   :  { %v2064_v29 = vadd.f32 1e-05, %v2062_v28 }
 0x1b3   :  { %3648 = vrsqrt.f32 %v2064_v29  ;;  %vm2081_vm6 = vweird.f32 %v2064_v29 }
 0x1b9   :  { %v3649_v51 = vpop.eup %3648 }
 0x1ba   :  { %v2076_v34 = vmul.f32 %v3649_v51, %v2064_v29  ;;  %vm2082_vm5 = vweird.f32 %v3649_v51 }
 0x1bb   :  { %vm2083_vm7 = vmor %vm2081_vm6, %vm2082_vm5 }
 0x1bc   :  { %v2077_v6 = vmul.f32 %v3649_v51, %v2076_v34 }
 0x1be   :  { %v2078_v7 = vmul.f32 0.5, %v2077_v6 }
 0x1c0   :  { %v2079_v8 = vsub.f32 1.5, %v2078_v7 }
 0x1c2   :  { %v2080_v9 = vmul.f32 %v3649_v51, %v2079_v8 }
 0x1c4   :  { %v2084_v10 = vsel %vm2083_vm7, %v3649_v51, %v2080_v9 }
 0x1c5   :  { %v2086_v12 = vmul.f32 %v2084_v10, %v2044_v57 }
 0x1c6   :  { %v2230_v53 = vpop.f32.mrf.mxu0 }
 0x1c7   :  { %v2088_v56 = vpack.c.bf16 %v2086_v12, %v2086_v12  ;;  %v2231_v18 = vadd.f32 %v3643_v32, %v2230_v53 }
 0x1c9   :  { %2242 = vmatmul.bf16.vlgmr.msra.gmra.mxu1 %v2088_v56 }
 0x1ce   :  { %v2232_v15 = vpop.f32.mrf.mxu0 }
 0x246   :  { %v2243_v20 = vpop.f32.mrf.mxu1 }
 0x247   :  { %v2244_v21 = vadd.f32 %v2243_v20, %v2231_v18 }
 0x249   :  { %v2250_v23 = vsel %vm2249_vm8, %v2244_v21, -1e+30 }
 0x24a   :  { %v2251_v24 = vsel %vm2019_vm0, %v2250_v23, -inf }
 0x24b   :  { %2252 = vmax.xlane.f32.xlu0 %v2251_v24 }
 0x24e   :  { %v2245_v25 = vpop.f32.mrf.mxu1 }
 0x2be   :  { %v2253_v26 = vpop.xlane.xlu0 %2252 }
 0x2bf   :  { %v2254_v30 = vsub.f32 %v2250_v23, %v2253_v26 }
 0x2c1   :  { %v2255_v31 = vmul.f32 1.442695, %v2254_v30 }
 0x2c3   :  { %3650 = vpow2.f32 %v2255_v31 }
 0x2c9   :  { %v3651_v59 = vpop.eup %3650 }
 0x2ca   :  { %v2257_v3 = vsel %vm2019_vm0, %v3651_v59, 0.0 }
 0x2cb   :  { %2258 = vadd.xlane.f32.xlu0 %v2257_v3 }
 0x33e   :  { %v2259_v33 = vpop.xlane.xlu0 %2258 }
 0x33f   :  { %3652 = vlog2.f32 %v2259_v33 }
 0x345   :  { %v3653_v35 = vpop.eup %3652 }
 0x346   :  { %v2261_v36 = vmul.f32 0.6931472, %v3653_v35 }
 0x348   :  { %v2262_v37 = vadd.f32 %v2261_v36, %v2253_v26 }
 0x34a   :  { %v2263_v38 = vsub.f32 %v2244_v21, %v2262_v37 }
 0x34c   :  { %2264 = vst [vmem:[#allocation2] sm:$0x3] %v2263_v38 }
 0x34d   :  { %2275 = dma.vmem_to_hbm [thread:$0]  %s2271_s16, 32, %s2273_s19, [#allocation3]  }
 0x34e   :  { %3686 = dma.done.wait [#allocation3], 32  }
 0x34f   :  { %3687 = vsyncadd [#allocation3], 4294967264 }
 0x350   :  { %2280 = vsyncpa [#allocation3], 1 }

</bundles_post_ra>
